<compile_context>
chip_gen: v7x
topology: tpu7x:2x2x1
jax: 0.10.0
libtpu: 0.0.40
codegen_flags: <defaults>
</compile_context>

<pallas_src>
import jax
import jax.numpy as jnp
import numpy as np
from jax.experimental import pallas as pl
from jax.experimental.pallas import tpu as pltpu

N_MASK = 6
N_HID = 256
LRELU_SLOPE = 0.01   # PyTorch nn.LeakyReLU default
BN_EPS = 1e-5        # PyTorch nn.BatchNorm1d default
LANE = 128


def _round_up(n, m):
    return ((n + m - 1) // m) * m


def _leaky_relu(h):
    return jnp.where(h > 0, h, LRELU_SLOPE * h)


def _batchnorm_onepass(h, gamma, beta):
    # BatchNorm1d training mode, biased batch stats, single pass over axis 0:
    # var = E[h^2] - mean^2 (clamped for safety against tiny f32 cancellation).
    mu = jnp.mean(h, axis=0, keepdims=True)
    ex2 = jnp.mean(h * h, axis=0, keepdims=True)
    var = jnp.maximum(ex2 - mu * mu, 0.0)
    return (h - mu) * jax.lax.rsqrt(var + BN_EPS) * gamma + beta


# ------------------------------ Pallas kernel ------------------------------

def realnvp_kernel(x_ref, mask_ref, onem_ref,
                   w1_ref, b1_ref, g1_ref, be1_ref,
                   w2_ref, b2_ref, g2_ref, be2_ref,
                   w3_ref, b3_ref,
                   lw_ref, lb_ref,
                   out_ref, logdet_ref):
    z = x_ref[...]                                        # [B, Dp] f32
    logdet = jnp.zeros((1, z.shape[1]), jnp.float32)      # row-constant acc

    def tail(hk, k, i):
        # layers 2 and 3 of net k (0 = s-net, 1 = t-net), coupling layer i
        h2 = jnp.dot(hk.astype(jnp.bfloat16), w2_ref[k, i],
                     preferred_element_type=jnp.float32) + b2_ref[k, i]
        h2 = _batchnorm_onepass(_leaky_relu(h2), g2_ref[k, i], be2_ref[k, i])
        return jnp.dot(h2.astype(jnp.bfloat16), w3_ref[k, i],
                       preferred_element_type=jnp.float32) + b3_ref[k, i]

    # Static unroll over the 6 coupling layers, reversed, as in forward().
    for i in reversed(range(N_MASK)):
        m = mask_ref[i]                                   # [1, Dp]
        one_m = onem_ref[i]                               # [1, Dp]
        z_ = m * z

        # Fused s/t first layer: one [B, Dp] x [Dp, 2H] matmul, then fused
        # LeakyReLU + BatchNorm over the concatenated hidden (per-column stats
        # are identical to running the two BatchNorms separately).
        h = jnp.dot(z_.astype(jnp.bfloat16), w1_ref[i],
                    preferred_element_type=jnp.float32) + b1_ref[i]
        h = _batchnorm_onepass(_leaky_relu(h), g1_ref[i], be1_ref[i])

        s = jnp.tanh(tail(h[:, :N_HID], 0, i)) * one_m    # s-net has Tanh head
        t = tail(h[:, N_HID:], 1, i) * one_m

        z = one_m * (z - t) * jnp.exp(-s) + z_
        # torch: log_det_J -= s.sum(dim=0)  (batch reduce, row-constant)
        logdet = logdet - jnp.sum(s, axis=0, keepdims=True)

    out_ref[...] = (jnp.dot(z.astype(jnp.bfloat16), lw_ref[...],
                            preferred_element_type=jnp.float32) + lb_ref[...])
    logdet_ref[...] = logdet


def realnvp_forward(x, kp):
    B, D = x.shape
    dim_out = kp["dim_out"]
    Dp = kp["mask"].shape[-1]
    Op = kp["lw"].shape[-1]

    # Lane-dense input: zero-pad features to 128 lanes.
    xp = jnp.zeros((B, Dp), jnp.float32).at[:, :D].set(x)

    args = (xp, kp["mask"], kp["one_m"],
            kp["w1"], kp["b1"], kp["g1"], kp["be1"],
            kp["w2"], kp["b2"], kp["g2"], kp["be2"],
            kp["w3"], kp["b3"],
            kp["lw"], kp["lb"])

    vmem = pl.BlockSpec(memory_space=pltpu.MemorySpace.VMEM)

    # Advisory cost estimate for XLA's scheduler around the custom call.
    flops = (N_MASK * (2 * B * Dp * 2 * N_HID          # fused layer 1
                       + 2 * 2 * B * N_HID * N_HID     # layer 2 (s + t)
                       + 2 * 2 * B * N_HID * Dp)       # layer 3 (s + t)
             + 2 * B * Dp * Op)                        # final linear
    transcendentals = N_MASK * (2 * B * Dp + 4 * N_HID)   # tanh/exp + BN rsqrt
    bytes_accessed = (sum(int(a.size) * a.dtype.itemsize for a in args)
                      + B * Op * 4 + Dp * 4)

    out_pad, logdet_pad = pl.pallas_call(
        realnvp_kernel,
        out_shape=(jax.ShapeDtypeStruct((B, Op), jnp.float32),   # linear(z), lane-dense
                   jax.ShapeDtypeStruct((1, Dp), jnp.float32)),  # row-constant log_det_J
        in_specs=[vmem] * len(args),
        out_specs=(vmem, vmem),
        compiler_params=pltpu.CompilerParams(
            # generous but v7x-safe scoped-VMEM budget (actual use is a few MiB)
            vmem_limit_bytes=32 * 1024 * 1024),
        cost_estimate=pl.CostEstimate(flops=flops,
                                      transcendentals=transcendentals,
                                      bytes_accessed=bytes_accessed),
    )(*args)

    out = out_pad[:, :dim_out]
    # torch returns log_det_J with shape [B, D] and identical rows.
    logdet = jnp.broadcast_to(logdet_pad[:, :D], (B, D))
    return out, logdet


# ------------------------- parameter construction --------------------------

def init_params(key, dim_in, dim_out):
    """Natural (torch-like) f32 parameters."""
    keys = iter(jax.random.split(key, 128))

    def lin(fan_in, fan_out):
        bound = 1.0 / np.sqrt(fan_in)
        w = jax.random.uniform(next(keys), (fan_in, fan_out), jnp.float32, -bound, bound)
        b = jax.random.uniform(next(keys), (1, fan_out), jnp.float32, -bound, bound)
        return w, b

    w1, b1, w2, b2, w3, b3 = [], [], [], [], [], []
    for _k in range(2):                          # 0 = s-nets, 1 = t-nets
        W1, B1, W2, B2, W3, B3 = [], [], [], [], [], []
        for _i in range(N_MASK):
            a, ab = lin(dim_in, N_HID)
            c, cb = lin(N_HID, N_HID)
            d, db = lin(N_HID, dim_in)
            W1.append(a); B1.append(ab); W2.append(c); B2.append(cb); W3.append(d); B3.append(db)
        w1.append(jnp.stack(W1)); b1.append(jnp.stack(B1))
        w2.append(jnp.stack(W2)); b2.append(jnp.stack(B2))
        w3.append(jnp.stack(W3)); b3.append(jnp.stack(B3))

    mask = jax.random.bernoulli(next(keys), 0.5, (N_MASK, 1, dim_in)).astype(jnp.float32)
    lw, lb = lin(dim_in, dim_out)

    return dict(
        mask=mask,
        w1=jnp.stack(w1), b1=jnp.stack(b1),              # [2, 6, D, H], [2, 6, 1, H]
        g1=jnp.ones((2, N_MASK, 1, N_HID), jnp.float32),
        be1=jnp.zeros((2, N_MASK, 1, N_HID), jnp.float32),
        w2=jnp.stack(w2), b2=jnp.stack(b2),              # [2, 6, H, H], [2, 6, 1, H]
        g2=jnp.ones((2, N_MASK, 1, N_HID), jnp.float32),
        be2=jnp.zeros((2, N_MASK, 1, N_HID), jnp.float32),
        w3=jnp.stack(w3), b3=jnp.stack(b3),              # [2, 6, H, D], [2, 6, 1, D]
        lw=lw, lb=lb,                                    # [D, dim_out], [1, dim_out]
    )


def pack_params(p, dim_in, dim_out):
    """Kernel-ready params: lane-padded, s/t layer-1 fused, weights in bf16."""
    H = N_HID
    Dp = _round_up(dim_in, LANE)
    Op = _round_up(dim_out, LANE)

    # mask padded with 1 (and one_m with 0) so padded columns stay exactly 0.
    mask = jnp.ones((N_MASK, 1, Dp), jnp.float32).at[:, :, :dim_in].set(p["mask"])
    one_m = jnp.zeros((N_MASK, 1, Dp), jnp.float32).at[:, :, :dim_in].set(1.0 - p["mask"])

    # Fused first layer: [6, Dp, 2H] (cols 0:H -> s-net, H:2H -> t-net).
    w1 = jnp.zeros((N_MASK, Dp, 2 * H), jnp.float32)
    w1 = w1.at[:, :dim_in, :H].set(p["w1"][0]).at[:, :dim_in, H:].set(p["w1"][1])
    b1 = jnp.concatenate([p["b1"][0], p["b1"][1]], axis=-1)     # [6, 1, 2H]
    g1 = jnp.concatenate([p["g1"][0], p["g1"][1]], axis=-1)
    be1 = jnp.concatenate([p["be1"][0], p["be1"][1]], axis=-1)

    # Third layer: pad output features to Dp with zero columns / zero bias.
    w3 = jnp.zeros((2, N_MASK, H, Dp), jnp.float32).at[..., :dim_in].set(p["w3"])
    b3 = jnp.zeros((2, N_MASK, 1, Dp), jnp.float32).at[..., :dim_in].set(p["b3"])

    # Final linear, lane-padded on both sides.
    lw = jnp.zeros((Dp, Op), jnp.float32).at[:dim_in, :dim_out].set(p["lw"])
    lb = jnp.zeros((1, Op), jnp.float32).at[:, :dim_out].set(p["lb"])

    return dict(
        mask=mask, one_m=one_m,
        w1=w1.astype(jnp.bfloat16), b1=b1, g1=g1, be1=be1,
        w2=p["w2"].astype(jnp.bfloat16), b2=p["b2"], g2=p["g2"], be2=p["be2"],
        w3=w3.astype(jnp.bfloat16), b3=b3,
        lw=lw.astype(jnp.bfloat16), lb=lb,
        dim_in=dim_in, dim_out=dim_out,
    )


# --------------------------- pure-JAX references ---------------------------

def realnvp_ref(x, p, *, mirror_kernel):
    """Reference on natural (unpadded, unfused) params.

    mirror_kernel=True : same numerics as the kernel (bf16 weights / dot
                         inputs, one-pass BN variance) -> tight comparison.
    mirror_kernel=False: pure f32, textbook two-pass BN -> module semantics,
                         loose comparison bounding the bf16-weight deviation.
    """
    wdt = jnp.bfloat16 if mirror_kernel else jnp.float32

    def mm(a, w):
        return jnp.dot(a.astype(wdt), w.astype(wdt),
                       preferred_element_type=jnp.float32)

    def bn(h, gamma, beta):
        mu = jnp.mean(h, axis=0, keepdims=True)
        if mirror_kernel:
            var = jnp.maximum(jnp.mean(h * h, axis=0, keepdims=True) - mu * mu, 0.0)
        else:
            var = jnp.mean((h - mu) ** 2, axis=0, keepdims=True)
        return (h - mu) * jax.lax.rsqrt(var + BN_EPS) * gamma + beta

    def net(h, k, i, tanh_out):
        h = mm(h, p["w1"][k, i]) + p["b1"][k, i]
        h = bn(_leaky_relu(h), p["g1"][k, i], p["be1"][k, i])
        h = mm(h, p["w2"][k, i]) + p["b2"][k, i]
        h = bn(_leaky_relu(h), p["g2"][k, i], p["be2"][k, i])
        h = mm(h, p["w3"][k, i]) + p["b3"][k, i]
        return jnp.tanh(h) if tanh_out else h

    z = x
    logdet = jnp.zeros_like(x)
    for i in reversed(range(N_MASK)):
        m = p["mask"][i]
        one_m = 1.0 - m
        z_ = m * z
        s = net(z_, 0, i, True) * one_m
        t = net(z_, 1, i, False) * one_m
        z = one_m * (z - t) * jnp.exp(-s) + z_
        logdet = logdet - jnp.sum(s, axis=0, keepdims=True)
    return mm(z, p["lw"]) + p["lb"], logdet


if __name__ == "__main__":
    # Small smoke-test shapes (B=8 fills only 8 MXU rows; perf-relevant batches
    # would be >=128 — see TODO above for batch-sharding on v7x).
    B, dim_in, dim_out = 8, 16, 8
    key = jax.random.PRNGKey(0)
    pkey, xkey = jax.random.split(key)

    params = init_params(pkey, dim_in, dim_out)
    kparams = pack_params(params, dim_in, dim_out)
    x = jax.random.normal(xkey, (B, dim_in), jnp.float32)

    out, logdet = jax.block_until_ready(realnvp_forward(x, kparams))

    # Tight check: reference mirroring the kernel's numerics (bf16 weights,
    # one-pass BN) on unpadded/unfused params — validates padding/fusion logic.
    m_out, m_logdet = realnvp_ref(x, params, mirror_kernel=True)
    np.testing.assert_allclose(np.asarray(out), np.asarray(m_out), rtol=5e-3, atol=5e-3)
    np.testing.assert_allclose(np.asarray(logdet), np.asarray(m_logdet), rtol=5e-3, atol=5e-3)

    # Loose sanity check against pure-f32 module semantics (bounds the
    # deliberate bf16 weight-quantization error).
    f_out, f_logdet = realnvp_ref(x, params, mirror_kernel=False)
    np.testing.assert_allclose(np.asarray(out), np.asarray(f_out), rtol=1e-1, atol=1e-1)
    np.testing.assert_allclose(np.asarray(logdet), np.asarray(f_logdet), rtol=1e-1, atol=1e-1)

    print("KERNEL_OK")
</pallas_src>

<mosaic_0001>
module attributes {stable_mosaic.version = 11 : i64} {
  func.func @realnvp_kernel(%arg0: memref<8x128xf32, #tpu.memory_space<vmem>>, %arg1: memref<6x1x128xf32, #tpu.memory_space<vmem>>, %arg2: memref<6x1x128xf32, #tpu.memory_space<vmem>>, %arg3: memref<6x128x512xbf16, #tpu.memory_space<vmem>>, %arg4: memref<6x1x512xf32, #tpu.memory_space<vmem>>, %arg5: memref<6x1x512xf32, #tpu.memory_space<vmem>>, %arg6: memref<6x1x512xf32, #tpu.memory_space<vmem>>, %arg7: memref<2x6x256x256xbf16, #tpu.memory_space<vmem>>, %arg8: memref<2x6x1x256xf32, #tpu.memory_space<vmem>>, %arg9: memref<2x6x1x256xf32, #tpu.memory_space<vmem>>, %arg10: memref<2x6x1x256xf32, #tpu.memory_space<vmem>>, %arg11: memref<2x6x256x128xbf16, #tpu.memory_space<vmem>>, %arg12: memref<2x6x1x128xf32, #tpu.memory_space<vmem>>, %arg13: memref<128x128xbf16, #tpu.memory_space<vmem>>, %arg14: memref<1x128xf32, #tpu.memory_space<vmem>>, %arg15: memref<8x128xf32, #tpu.memory_space<vmem>>, %arg16: memref<1x128xf32, #tpu.memory_space<vmem>>) attributes {dimension_semantics = [], scalar_prefetch = 0 : i64, scratch_operands = 0 : i64, tpu.core_type = #tpu.core_type<tc>} {
    %c0 = arith.constant 0 : index
    %c0_0 = arith.constant 0 : index
    %0 = vector.load %arg0[%c0, %c0_0] : memref<8x128xf32, #tpu.memory_space<vmem>>, vector<8x128xf32>
    %cst = arith.constant 0.000000e+00 : f32
    %1 = vector.broadcast %cst : f32 to vector<1x128xf32>
    %c5 = arith.constant 5 : index
    %c0_1 = arith.constant 0 : index
    %c0_2 = arith.constant 0 : index
    %2 = vector.load %arg1[%c5, %c0_1, %c0_2] : memref<6x1x128xf32, #tpu.memory_space<vmem>>, vector<1x1x128xf32>
    %3 = vector.shape_cast %2 : vector<1x1x128xf32> to vector<1x128xf32>
    %c5_3 = arith.constant 5 : index
    %c0_4 = arith.constant 0 : index
    %c0_5 = arith.constant 0 : index
    %4 = vector.load %arg2[%c5_3, %c0_4, %c0_5] : memref<6x1x128xf32, #tpu.memory_space<vmem>>, vector<1x1x128xf32>
    %5 = vector.shape_cast %4 : vector<1x1x128xf32> to vector<1x128xf32>
    %6 = vector.broadcast %3 : vector<1x128xf32> to vector<8x128xf32>
    %7 = arith.mulf %6, %0 : vector<8x128xf32>
    %8 = arith.truncf %7 : vector<8x128xf32> to vector<8x128xbf16>
    %c5_6 = arith.constant 5 : index
    %c0_7 = arith.constant 0 : index
    %c0_8 = arith.constant 0 : index
    %9 = vector.load %arg3[%c5_6, %c0_7, %c0_8] : memref<6x128x512xbf16, #tpu.memory_space<vmem>>, vector<1x128x512xbf16>
    %10 = vector.shape_cast %9 : vector<1x128x512xbf16> to vector<128x512xbf16>
    %cst_9 = arith.constant dense<0.000000e+00> : vector<8x512xf32>
    %11 = tpu.matmul %8, %10, %cst_9 {dimension_numbers = #tpu.dot_dimension_numbers<[1], [0], [0], [1], [0, 0, 1, 1], [], []>} : vector<8x128xbf16>, vector<128x512xbf16>, vector<8x512xf32> -> vector<8x512xf32>
    %c5_10 = arith.constant 5 : index
    %c0_11 = arith.constant 0 : index
    %c0_12 = arith.constant 0 : index
    %12 = vector.load %arg4[%c5_10, %c0_11, %c0_12] : memref<6x1x512xf32, #tpu.memory_space<vmem>>, vector<1x1x512xf32>
    %13 = vector.shape_cast %12 : vector<1x1x512xf32> to vector<1x512xf32>
    %14 = vector.broadcast %13 : vector<1x512xf32> to vector<8x512xf32>
    %15 = arith.addf %11, %14 : vector<8x512xf32>
    %cst_13 = arith.constant 0.000000e+00 : f32
    %16 = vector.broadcast %cst_13 : f32 to vector<8x512xf32>
    %17 = arith.cmpf ogt, %15, %16 : vector<8x512xf32>
    %cst_14 = arith.constant 0.00999999977 : f32
    %18 = vector.broadcast %cst_14 : f32 to vector<8x512xf32>
    %19 = arith.mulf %18, %15 : vector<8x512xf32>
    %20 = arith.select %17, %15, %19 : vector<8x512xi1>, vector<8x512xf32>
    %c5_15 = arith.constant 5 : index
    %c0_16 = arith.constant 0 : index
    %c0_17 = arith.constant 0 : index
    %21 = vector.load %arg5[%c5_15, %c0_16, %c0_17] : memref<6x1x512xf32, #tpu.memory_space<vmem>>, vector<1x1x512xf32>
    %22 = vector.shape_cast %21 : vector<1x1x512xf32> to vector<1x512xf32>
    %c5_18 = arith.constant 5 : index
    %c0_19 = arith.constant 0 : index
    %c0_20 = arith.constant 0 : index
    %23 = vector.load %arg6[%c5_18, %c0_19, %c0_20] : memref<6x1x512xf32, #tpu.memory_space<vmem>>, vector<1x1x512xf32>
    %24 = vector.shape_cast %23 : vector<1x1x512xf32> to vector<1x512xf32>
    %cst_21 = arith.constant dense<0.000000e+00> : vector<512xf32>
    %25 = vector.multi_reduction <add>, %20, %cst_21 [0] : vector<8x512xf32> to vector<512xf32>
    %26 = vector.shape_cast %25 : vector<512xf32> to vector<1x512xf32>
    %cst_22 = arith.constant 8.000000e+00 : f32
    %27 = vector.broadcast %cst_22 : f32 to vector<1x512xf32>
    %28 = arith.divf %26, %27 : vector<1x512xf32>
    %29 = arith.mulf %20, %20 : vector<8x512xf32>
    %cst_23 = arith.constant dense<0.000000e+00> : vector<512xf32>
    %30 = vector.multi_reduction <add>, %29, %cst_23 [0] : vector<8x512xf32> to vector<512xf32>
    %31 = vector.shape_cast %30 : vector<512xf32> to vector<1x512xf32>
    %cst_24 = arith.constant 8.000000e+00 : f32
    %32 = vector.broadcast %cst_24 : f32 to vector<1x512xf32>
    %33 = arith.divf %31, %32 : vector<1x512xf32>
    %34 = arith.mulf %28, %28 : vector<1x512xf32>
    %35 = arith.subf %33, %34 : vector<1x512xf32>
    %cst_25 = arith.constant 0.000000e+00 : f32
    %36 = vector.broadcast %cst_25 : f32 to vector<1x512xf32>
    %37 = arith.maximumf %35, %36 : vector<1x512xf32>
    %38 = vector.broadcast %28 : vector<1x512xf32> to vector<8x512xf32>
    %39 = arith.subf %20, %38 : vector<8x512xf32>
    %cst_26 = arith.constant 9.99999974E-6 : f32
    %40 = vector.broadcast %cst_26 : f32 to vector<1x512xf32>
    %41 = arith.addf %37, %40 : vector<1x512xf32>
    %42 = math.rsqrt %41 : vector<1x512xf32>
    %43 = vector.broadcast %42 : vector<1x512xf32> to vector<8x512xf32>
    %44 = arith.mulf %39, %43 : vector<8x512xf32>
    %45 = vector.broadcast %22 : vector<1x512xf32> to vector<8x512xf32>
    %46 = arith.mulf %44, %45 : vector<8x512xf32>
    %47 = vector.broadcast %24 : vector<1x512xf32> to vector<8x512xf32>
    %48 = arith.addf %46, %47 : vector<8x512xf32>
    %49 = vector.extract_strided_slice %48 {offsets = [0, 0], sizes = [8, 256], strides = [1, 1]} : vector<8x512xf32> to vector<8x256xf32>
    %50 = arith.truncf %49 : vector<8x256xf32> to vector<8x256xbf16>
    %c0_27 = arith.constant 0 : index
    %c5_28 = arith.constant 5 : index
    %c0_29 = arith.constant 0 : index
    %c0_30 = arith.constant 0 : index
    %51 = vector.load %arg7[%c0_27, %c5_28, %c0_29, %c0_30] : memref<2x6x256x256xbf16, #tpu.memory_space<vmem>>, vector<1x1x256x256xbf16>
    %52 = vector.shape_cast %51 : vector<1x1x256x256xbf16> to vector<256x256xbf16>
    %cst_31 = arith.constant dense<0.000000e+00> : vector<8x256xf32>
    %53 = tpu.matmul %50, %52, %cst_31 {dimension_numbers = #tpu.dot_dimension_numbers<[1], [0], [0], [1], [0, 0, 1, 1], [], []>} : vector<8x256xbf16>, vector<256x256xbf16>, vector<8x256xf32> -> vector<8x256xf32>
    %c0_32 = arith.constant 0 : index
    %c5_33 = arith.constant 5 : index
    %c0_34 = arith.constant 0 : index
    %c0_35 = arith.constant 0 : index
    %54 = vector.load %arg8[%c0_32, %c5_33, %c0_34, %c0_35] : memref<2x6x1x256xf32, #tpu.memory_space<vmem>>, vector<1x1x1x256xf32>
    %55 = vector.shape_cast %54 : vector<1x1x1x256xf32> to vector<1x256xf32>
    %56 = vector.broadcast %55 : vector<1x256xf32> to vector<8x256xf32>
    %57 = arith.addf %53, %56 : vector<8x256xf32>
    %cst_36 = arith.constant 0.000000e+00 : f32
    %58 = vector.broadcast %cst_36 : f32 to vector<8x256xf32>
    %59 = arith.cmpf ogt, %57, %58 : vector<8x256xf32>
    %cst_37 = arith.constant 0.00999999977 : f32
    %60 = vector.broadcast %cst_37 : f32 to vector<8x256xf32>
    %61 = arith.mulf %60, %57 : vector<8x256xf32>
    %62 = arith.select %59, %57, %61 : vector<8x256xi1>, vector<8x256xf32>
    %c0_38 = arith.constant 0 : index
    %c5_39 = arith.constant 5 : index
    %c0_40 = arith.constant 0 : index
    %c0_41 = arith.constant 0 : index
    %63 = vector.load %arg9[%c0_38, %c5_39, %c0_40, %c0_41] : memref<2x6x1x256xf32, #tpu.memory_space<vmem>>, vector<1x1x1x256xf32>
    %64 = vector.shape_cast %63 : vector<1x1x1x256xf32> to vector<1x256xf32>
    %c0_42 = arith.constant 0 : index
    %c5_43 = arith.constant 5 : index
    %c0_44 = arith.constant 0 : index
    %c0_45 = arith.constant 0 : index
    %65 = vector.load %arg10[%c0_42, %c5_43, %c0_44, %c0_45] : memref<2x6x1x256xf32, #tpu.memory_space<vmem>>, vector<1x1x1x256xf32>
    %66 = vector.shape_cast %65 : vector<1x1x1x256xf32> to vector<1x256xf32>
    %cst_46 = arith.constant dense<0.000000e+00> : vector<256xf32>
    %67 = vector.multi_reduction <add>, %62, %cst_46 [0] : vector<8x256xf32> to vector<256xf32>
    %68 = vector.shape_cast %67 : vector<256xf32> to vector<1x256xf32>
    %cst_47 = arith.constant 8.000000e+00 : f32
    %69 = vector.broadcast %cst_47 : f32 to vector<1x256xf32>
    %70 = arith.divf %68, %69 : vector<1x256xf32>
    %71 = arith.mulf %62, %62 : vector<8x256xf32>
    %cst_48 = arith.constant dense<0.000000e+00> : vector<256xf32>
    %72 = vector.multi_reduction <add>, %71, %cst_48 [0] : vector<8x256xf32> to vector<256xf32>
    %73 = vector.shape_cast %72 : vector<256xf32> to vector<1x256xf32>
    %cst_49 = arith.constant 8.000000e+00 : f32
    %74 = vector.broadcast %cst_49 : f32 to vector<1x256xf32>
    %75 = arith.divf %73, %74 : vector<1x256xf32>
    %76 = arith.mulf %70, %70 : vector<1x256xf32>
    %77 = arith.subf %75, %76 : vector<1x256xf32>
    %cst_50 = arith.constant 0.000000e+00 : f32
    %78 = vector.broadcast %cst_50 : f32 to vector<1x256xf32>
    %79 = arith.maximumf %77, %78 : vector<1x256xf32>
    %80 = vector.broadcast %70 : vector<1x256xf32> to vector<8x256xf32>
    %81 = arith.subf %62, %80 : vector<8x256xf32>
    %cst_51 = arith.constant 9.99999974E-6 : f32
    %82 = vector.broadcast %cst_51 : f32 to vector<1x256xf32>
    %83 = arith.addf %79, %82 : vector<1x256xf32>
    %84 = math.rsqrt %83 : vector<1x256xf32>
    %85 = vector.broadcast %84 : vector<1x256xf32> to vector<8x256xf32>
    %86 = arith.mulf %81, %85 : vector<8x256xf32>
    %87 = vector.broadcast %64 : vector<1x256xf32> to vector<8x256xf32>
    %88 = arith.mulf %86, %87 : vector<8x256xf32>
    %89 = vector.broadcast %66 : vector<1x256xf32> to vector<8x256xf32>
    %90 = arith.addf %88, %89 : vector<8x256xf32>
    %91 = arith.truncf %90 : vector<8x256xf32> to vector<8x256xbf16>
    %c0_52 = arith.constant 0 : index
    %c5_53 = arith.constant 5 : index
    %c0_54 = arith.constant 0 : index
    %c0_55 = arith.constant 0 : index
    %92 = vector.load %arg11[%c0_52, %c5_53, %c0_54, %c0_55] : memref<2x6x256x128xbf16, #tpu.memory_space<vmem>>, vector<1x1x256x128xbf16>
    %93 = vector.shape_cast %92 : vector<1x1x256x128xbf16> to vector<256x128xbf16>
    %cst_56 = arith.constant dense<0.000000e+00> : vector<8x128xf32>
    %94 = tpu.matmul %91, %93, %cst_56 {dimension_numbers = #tpu.dot_dimension_numbers<[1], [0], [0], [1], [0, 0, 1, 1], [], []>} : vector<8x256xbf16>, vector<256x128xbf16>, vector<8x128xf32> -> vector<8x128xf32>
    %c0_57 = arith.constant 0 : index
    %c5_58 = arith.constant 5 : index
    %c0_59 = arith.constant 0 : index
    %c0_60 = arith.constant 0 : index
    %95 = vector.load %arg12[%c0_57, %c5_58, %c0_59, %c0_60] : memref<2x6x1x128xf32, #tpu.memory_space<vmem>>, vector<1x1x1x128xf32>
    %96 = vector.shape_cast %95 : vector<1x1x1x128xf32> to vector<1x128xf32>
    %97 = vector.broadcast %96 : vector<1x128xf32> to vector<8x128xf32>
    %98 = arith.addf %94, %97 : vector<8x128xf32>
    %99 = math.tanh %98 : vector<8x128xf32>
    %100 = vector.broadcast %5 : vector<1x128xf32> to vector<8x128xf32>
    %101 = arith.mulf %99, %100 : vector<8x128xf32>
    %102 = vector.extract_strided_slice %48 {offsets = [0, 256], sizes = [8, 256], strides = [1, 1]} : vector<8x512xf32> to vector<8x256xf32>
    %103 = arith.truncf %102 : vector<8x256xf32> to vector<8x256xbf16>
    %c1 = arith.constant 1 : index
    %c5_61 = arith.constant 5 : index
    %c0_62 = arith.constant 0 : index
    %c0_63 = arith.constant 0 : index
    %104 = vector.load %arg7[%c1, %c5_61, %c0_62, %c0_63] : memref<2x6x256x256xbf16, #tpu.memory_space<vmem>>, vector<1x1x256x256xbf16>
    %105 = vector.shape_cast %104 : vector<1x1x256x256xbf16> to vector<256x256xbf16>
    %cst_64 = arith.constant dense<0.000000e+00> : vector<8x256xf32>
    %106 = tpu.matmul %103, %105, %cst_64 {dimension_numbers = #tpu.dot_dimension_numbers<[1], [0], [0], [1], [0, 0, 1, 1], [], []>} : vector<8x256xbf16>, vector<256x256xbf16>, vector<8x256xf32> -> vector<8x256xf32>
    %c1_65 = arith.constant 1 : index
    %c5_66 = arith.constant 5 : index
    %c0_67 = arith.constant 0 : index
    %c0_68 = arith.constant 0 : index
    %107 = vector.load %arg8[%c1_65, %c5_66, %c0_67, %c0_68] : memref<2x6x1x256xf32, #tpu.memory_space<vmem>>, vector<1x1x1x256xf32>
    %108 = vector.shape_cast %107 : vector<1x1x1x256xf32> to vector<1x256xf32>
    %109 = vector.broadcast %108 : vector<1x256xf32> to vector<8x256xf32>
    %110 = arith.addf %106, %109 : vector<8x256xf32>
    %cst_69 = arith.constant 0.000000e+00 : f32
    %111 = vector.broadcast %cst_69 : f32 to vector<8x256xf32>
    %112 = arith.cmpf ogt, %110, %111 : vector<8x256xf32>
    %cst_70 = arith.constant 0.00999999977 : f32
    %113 = vector.broadcast %cst_70 : f32 to vector<8x256xf32>
    %114 = arith.mulf %113, %110 : vector<8x256xf32>
    %115 = arith.select %112, %110, %114 : vector<8x256xi1>, vector<8x256xf32>
    %c1_71 = arith.constant 1 : index
    %c5_72 = arith.constant 5 : index
    %c0_73 = arith.constant 0 : index
    %c0_74 = arith.constant 0 : index
    %116 = vector.load %arg9[%c1_71, %c5_72, %c0_73, %c0_74] : memref<2x6x1x256xf32, #tpu.memory_space<vmem>>, vector<1x1x1x256xf32>
    %117 = vector.shape_cast %116 : vector<1x1x1x256xf32> to vector<1x256xf32>
    %c1_75 = arith.constant 1 : index
    %c5_76 = arith.constant 5 : index
    %c0_77 = arith.constant 0 : index
    %c0_78 = arith.constant 0 : index
    %118 = vector.load %arg10[%c1_75, %c5_76, %c0_77, %c0_78] : memref<2x6x1x256xf32, #tpu.memory_space<vmem>>, vector<1x1x1x256xf32>
    %119 = vector.shape_cast %118 : vector<1x1x1x256xf32> to vector<1x256xf32>
    %cst_79 = arith.constant dense<0.000000e+00> : vector<256xf32>
    %120 = vector.multi_reduction <add>, %115, %cst_79 [0] : vector<8x256xf32> to vector<256xf32>
    %121 = vector.shape_cast %120 : vector<256xf32> to vector<1x256xf32>
    %cst_80 = arith.constant 8.000000e+00 : f32
    %122 = vector.broadcast %cst_80 : f32 to vector<1x256xf32>
    %123 = arith.divf %121, %122 : vector<1x256xf32>
    %124 = arith.mulf %115, %115 : vector<8x256xf32>
    %cst_81 = arith.constant dense<0.000000e+00> : vector<256xf32>
    %125 = vector.multi_reduction <add>, %124, %cst_81 [0] : vector<8x256xf32> to vector<256xf32>
    %126 = vector.shape_cast %125 : vector<256xf32> to vector<1x256xf32>
    %cst_82 = arith.constant 8.000000e+00 : f32
    %127 = vector.broadcast %cst_82 : f32 to vector<1x256xf32>
    %128 = arith.divf %126, %127 : vector<1x256xf32>
    %129 = arith.mulf %123, %123 : vector<1x256xf32>
    %130 = arith.subf %128, %129 : vector<1x256xf32>
    %cst_83 = arith.constant 0.000000e+00 : f32
    %131 = vector.broadcast %cst_83 : f32 to vector<1x256xf32>
    %132 = arith.maximumf %130, %131 : vector<1x256xf32>
    %133 = vector.broadcast %123 : vector<1x256xf32> to vector<8x256xf32>
    %134 = arith.subf %115, %133 : vector<8x256xf32>
    %cst_84 = arith.constant 9.99999974E-6 : f32
    %135 = vector.broadcast %cst_84 : f32 to vector<1x256xf32>
    %136 = arith.addf %132, %135 : vector<1x256xf32>
    %137 = math.rsqrt %136 : vector<1x256xf32>
    %138 = vector.broadcast %137 : vector<1x256xf32> to vector<8x256xf32>
    %139 = arith.mulf %134, %138 : vector<8x256xf32>
    %140 = vector.broadcast %117 : vector<1x256xf32> to vector<8x256xf32>
    %141 = arith.mulf %139, %140 : vector<8x256xf32>
    %142 = vector.broadcast %119 : vector<1x256xf32> to vector<8x256xf32>
    %143 = arith.addf %141, %142 : vector<8x256xf32>
    %144 = arith.truncf %143 : vector<8x256xf32> to vector<8x256xbf16>
    %c1_85 = arith.constant 1 : index
    %c5_86 = arith.constant 5 : index
    %c0_87 = arith.constant 0 : index
    %c0_88 = arith.constant 0 : index
    %145 = vector.load %arg11[%c1_85, %c5_86, %c0_87, %c0_88] : memref<2x6x256x128xbf16, #tpu.memory_space<vmem>>, vector<1x1x256x128xbf16>
    %146 = vector.shape_cast %145 : vector<1x1x256x128xbf16> to vector<256x128xbf16>
    %cst_89 = arith.constant dense<0.000000e+00> : vector<8x128xf32>
    %147 = tpu.matmul %144, %146, %cst_89 {dimension_numbers = #tpu.dot_dimension_numbers<[1], [0], [0], [1], [0, 0, 1, 1], [], []>} : vector<8x256xbf16>, vector<256x128xbf16>, vector<8x128xf32> -> vector<8x128xf32>
    %c1_90 = arith.constant 1 : index
    %c5_91 = arith.constant 5 : index
    %c0_92 = arith.constant 0 : index
    %c0_93 = arith.constant 0 : index
    %148 = vector.load %arg12[%c1_90, %c5_91, %c0_92, %c0_93] : memref<2x6x1x128xf32, #tpu.memory_space<vmem>>, vector<1x1x1x128xf32>
    %149 = vector.shape_cast %148 : vector<1x1x1x128xf32> to vector<1x128xf32>
    %150 = vector.broadcast %149 : vector<1x128xf32> to vector<8x128xf32>
    %151 = arith.addf %147, %150 : vector<8x128xf32>
    %152 = vector.broadcast %5 : vector<1x128xf32> to vector<8x128xf32>
    %153 = arith.mulf %151, %152 : vector<8x128xf32>
    %154 = arith.subf %0, %153 : vector<8x128xf32>
    %155 = vector.broadcast %5 : vector<1x128xf32> to vector<8x128xf32>
    %156 = arith.mulf %155, %154 : vector<8x128xf32>
    %cst_94 = arith.constant 0.000000e+00 : f32
    %157 = vector.broadcast %cst_94 : f32 to vector<8x128xf32>
    %158 = arith.subf %157, %101 : vector<8x128xf32>
    %159 = math.exp %158 : vector<8x128xf32>
    %160 = arith.mulf %156, %159 : vector<8x128xf32>
    %161 = arith.addf %160, %7 : vector<8x128xf32>
    %cst_95 = arith.constant dense<0.000000e+00> : vector<128xf32>
    %162 = vector.multi_reduction <add>, %101, %cst_95 [0] : vector<8x128xf32> to vector<128xf32>
    %163 = vector.shape_cast %162 : vector<128xf32> to vector<1x128xf32>
    %164 = arith.subf %1, %163 : vector<1x128xf32>
    %c4 = arith.constant 4 : index
    %c0_96 = arith.constant 0 : index
    %c0_97 = arith.constant 0 : index
    %165 = vector.load %arg1[%c4, %c0_96, %c0_97] : memref<6x1x128xf32, #tpu.memory_space<vmem>>, vector<1x1x128xf32>
    %166 = vector.shape_cast %165 : vector<1x1x128xf32> to vector<1x128xf32>
    %c4_98 = arith.constant 4 : index
    %c0_99 = arith.constant 0 : index
    %c0_100 = arith.constant 0 : index
    %167 = vector.load %arg2[%c4_98, %c0_99, %c0_100] : memref<6x1x128xf32, #tpu.memory_space<vmem>>, vector<1x1x128xf32>
    %168 = vector.shape_cast %167 : vector<1x1x128xf32> to vector<1x128xf32>
    %169 = vector.broadcast %166 : vector<1x128xf32> to vector<8x128xf32>
    %170 = arith.mulf %169, %161 : vector<8x128xf32>
    %171 = arith.truncf %170 : vector<8x128xf32> to vector<8x128xbf16>
    %c4_101 = arith.constant 4 : index
    %c0_102 = arith.constant 0 : index
    %c0_103 = arith.constant 0 : index
    %172 = vector.load %arg3[%c4_101, %c0_102, %c0_103] : memref<6x128x512xbf16, #tpu.memory_space<vmem>>, vector<1x128x512xbf16>
    %173 = vector.shape_cast %172 : vector<1x128x512xbf16> to vector<128x512xbf16>
    %cst_104 = arith.constant dense<0.000000e+00> : vector<8x512xf32>
    %174 = tpu.matmul %171, %173, %cst_104 {dimension_numbers = #tpu.dot_dimension_numbers<[1], [0], [0], [1], [0, 0, 1, 1], [], []>} : vector<8x128xbf16>, vector<128x512xbf16>, vector<8x512xf32> -> vector<8x512xf32>
    %c4_105 = arith.constant 4 : index
    %c0_106 = arith.constant 0 : index
    %c0_107 = arith.constant 0 : index
    %175 = vector.load %arg4[%c4_105, %c0_106, %c0_107] : memref<6x1x512xf32, #tpu.memory_space<vmem>>, vector<1x1x512xf32>
    %176 = vector.shape_cast %175 : vector<1x1x512xf32> to vector<1x512xf32>
    %177 = vector.broadcast %176 : vector<1x512xf32> to vector<8x512xf32>
    %178 = arith.addf %174, %177 : vector<8x512xf32>
    %cst_108 = arith.constant 0.000000e+00 : f32
    %179 = vector.broadcast %cst_108 : f32 to vector<8x512xf32>
    %180 = arith.cmpf ogt, %178, %179 : vector<8x512xf32>
    %cst_109 = arith.constant 0.00999999977 : f32
    %181 = vector.broadcast %cst_109 : f32 to vector<8x512xf32>
    %182 = arith.mulf %181, %178 : vector<8x512xf32>
    %183 = arith.select %180, %178, %182 : vector<8x512xi1>, vector<8x512xf32>
    %c4_110 = arith.constant 4 : index
    %c0_111 = arith.constant 0 : index
    %c0_112 = arith.constant 0 : index
    %184 = vector.load %arg5[%c4_110, %c0_111, %c0_112] : memref<6x1x512xf32, #tpu.memory_space<vmem>>, vector<1x1x512xf32>
    %185 = vector.shape_cast %184 : vector<1x1x512xf32> to vector<1x512xf32>
    %c4_113 = arith.constant 4 : index
    %c0_114 = arith.constant 0 : index
    %c0_115 = arith.constant 0 : index
    %186 = vector.load %arg6[%c4_113, %c0_114, %c0_115] : memref<6x1x512xf32, #tpu.memory_space<vmem>>, vector<1x1x512xf32>
    %187 = vector.shape_cast %186 : vector<1x1x512xf32> to vector<1x512xf32>
    %cst_116 = arith.constant dense<0.000000e+00> : vector<512xf32>
    %188 = vector.multi_reduction <add>, %183, %cst_116 [0] : vector<8x512xf32> to vector<512xf32>
    %189 = vector.shape_cast %188 : vector<512xf32> to vector<1x512xf32>
    %cst_117 = arith.constant 8.000000e+00 : f32
    %190 = vector.broadcast %cst_117 : f32 to vector<1x512xf32>
    %191 = arith.divf %189, %190 : vector<1x512xf32>
    %192 = arith.mulf %183, %183 : vector<8x512xf32>
    %cst_118 = arith.constant dense<0.000000e+00> : vector<512xf32>
    %193 = vector.multi_reduction <add>, %192, %cst_118 [0] : vector<8x512xf32> to vector<512xf32>
    %194 = vector.shape_cast %193 : vector<512xf32> to vector<1x512xf32>
    %cst_119 = arith.constant 8.000000e+00 : f32
    %195 = vector.broadcast %cst_119 : f32 to vector<1x512xf32>
    %196 = arith.divf %194, %195 : vector<1x512xf32>
    %197 = arith.mulf %191, %191 : vector<1x512xf32>
    %198 = arith.subf %196, %197 : vector<1x512xf32>
    %cst_120 = arith.constant 0.000000e+00 : f32
    %199 = vector.broadcast %cst_120 : f32 to vector<1x512xf32>
    %200 = arith.maximumf %198, %199 : vector<1x512xf32>
    %201 = vector.broadcast %191 : vector<1x512xf32> to vector<8x512xf32>
    %202 = arith.subf %183, %201 : vector<8x512xf32>
    %cst_121 = arith.constant 9.99999974E-6 : f32
    %203 = vector.broadcast %cst_121 : f32 to vector<1x512xf32>
    %204 = arith.addf %200, %203 : vector<1x512xf32>
    %205 = math.rsqrt %204 : vector<1x512xf32>
    %206 = vector.broadcast %205 : vector<1x512xf32> to vector<8x512xf32>
    %207 = arith.mulf %202, %206 : vector<8x512xf32>
    %208 = vector.broadcast %185 : vector<1x512xf32> to vector<8x512xf32>
    %209 = arith.mulf %207, %208 : vector<8x512xf32>
    %210 = vector.broadcast %187 : vector<1x512xf32> to vector<8x512xf32>
    %211 = arith.addf %209, %210 : vector<8x512xf32>
    %212 = vector.extract_strided_slice %211 {offsets = [0, 0], sizes = [8, 256], strides = [1, 1]} : vector<8x512xf32> to vector<8x256xf32>
    %213 = arith.truncf %212 : vector<8x256xf32> to vector<8x256xbf16>
    %c0_122 = arith.constant 0 : index
    %c4_123 = arith.constant 4 : index
    %c0_124 = arith.constant 0 : index
    %c0_125 = arith.constant 0 : index
    %214 = vector.load %arg7[%c0_122, %c4_123, %c0_124, %c0_125] : memref<2x6x256x256xbf16, #tpu.memory_space<vmem>>, vector<1x1x256x256xbf16>
    %215 = vector.shape_cast %214 : vector<1x1x256x256xbf16> to vector<256x256xbf16>
    %cst_126 = arith.constant dense<0.000000e+00> : vector<8x256xf32>
    %216 = tpu.matmul %213, %215, %cst_126 {dimension_numbers = #tpu.dot_dimension_numbers<[1], [0], [0], [1], [0, 0, 1, 1], [], []>} : vector<8x256xbf16>, vector<256x256xbf16>, vector<8x256xf32> -> vector<8x256xf32>
    %c0_127 = arith.constant 0 : index
    %c4_128 = arith.constant 4 : index
    %c0_129 = arith.constant 0 : index
    %c0_130 = arith.constant 0 : index
    %217 = vector.load %arg8[%c0_127, %c4_128, %c0_129, %c0_130] : memref<2x6x1x256xf32, #tpu.memory_space<vmem>>, vector<1x1x1x256xf32>
    %218 = vector.shape_cast %217 : vector<1x1x1x256xf32> to vector<1x256xf32>
    %219 = vector.broadcast %218 : vector<1x256xf32> to vector<8x256xf32>
    %220 = arith.addf %216, %219 : vector<8x256xf32>
    %cst_131 = arith.constant 0.000000e+00 : f32
    %221 = vector.broadcast %cst_131 : f32 to vector<8x256xf32>
    %222 = arith.cmpf ogt, %220, %221 : vector<8x256xf32>
    %cst_132 = arith.constant 0.00999999977 : f32
    %223 = vector.broadcast %cst_132 : f32 to vector<8x256xf32>
    %224 = arith.mulf %223, %220 : vector<8x256xf32>
    %225 = arith.select %222, %220, %224 : vector<8x256xi1>, vector<8x256xf32>
    %c0_133 = arith.constant 0 : index
    %c4_134 = arith.constant 4 : index
    %c0_135 = arith.constant 0 : index
    %c0_136 = arith.constant 0 : index
    %226 = vector.load %arg9[%c0_133, %c4_134, %c0_135, %c0_136] : memref<2x6x1x256xf32, #tpu.memory_space<vmem>>, vector<1x1x1x256xf32>
    %227 = vector.shape_cast %226 : vector<1x1x1x256xf32> to vector<1x256xf32>
    %c0_137 = arith.constant 0 : index
    %c4_138 = arith.constant 4 : index
    %c0_139 = arith.constant 0 : index
    %c0_140 = arith.constant 0 : index
    %228 = vector.load %arg10[%c0_137, %c4_138, %c0_139, %c0_140] : memref<2x6x1x256xf32, #tpu.memory_space<vmem>>, vector<1x1x1x256xf32>
    %229 = vector.shape_cast %228 : vector<1x1x1x256xf32> to vector<1x256xf32>
    %cst_141 = arith.constant dense<0.000000e+00> : vector<256xf32>
    %230 = vector.multi_reduction <add>, %225, %cst_141 [0] : vector<8x256xf32> to vector<256xf32>
    %231 = vector.shape_cast %230 : vector<256xf32> to vector<1x256xf32>
    %cst_142 = arith.constant 8.000000e+00 : f32
    %232 = vector.broadcast %cst_142 : f32 to vector<1x256xf32>
    %233 = arith.divf %231, %232 : vector<1x256xf32>
    %234 = arith.mulf %225, %225 : vector<8x256xf32>
    %cst_143 = arith.constant dense<0.000000e+00> : vector<256xf32>
    %235 = vector.multi_reduction <add>, %234, %cst_143 [0] : vector<8x256xf32> to vector<256xf32>
    %236 = vector.shape_cast %235 : vector<256xf32> to vector<1x256xf32>
    %cst_144 = arith.constant 8.000000e+00 : f32
    %237 = vector.broadcast %cst_144 : f32 to vector<1x256xf32>
    %238 = arith.divf %236, %237 : vector<1x256xf32>
    %239 = arith.mulf %233, %233 : vector<1x256xf32>
    %240 = arith.subf %238, %239 : vector<1x256xf32>
    %cst_145 = arith.constant 0.000000e+00 : f32
    %241 = vector.broadcast %cst_145 : f32 to vector<1x256xf32>
    %242 = arith.maximumf %240, %241 : vector<1x256xf32>
    %243 = vector.broadcast %233 : vector<1x256xf32> to vector<8x256xf32>
    %244 = arith.subf %225, %243 : vector<8x256xf32>
    %cst_146 = arith.constant 9.99999974E-6 : f32
    %245 = vector.broadcast %cst_146 : f32 to vector<1x256xf32>
    %246 = arith.addf %242, %245 : vector<1x256xf32>
    %247 = math.rsqrt %246 : vector<1x256xf32>
    %248 = vector.broadcast %247 : vector<1x256xf32> to vector<8x256xf32>
    %249 = arith.mulf %244, %248 : vector<8x256xf32>
    %250 = vector.broadcast %227 : vector<1x256xf32> to vector<8x256xf32>
    %251 = arith.mulf %249, %250 : vector<8x256xf32>
    %252 = vector.broadcast %229 : vector<1x256xf32> to vector<8x256xf32>
    %253 = arith.addf %251, %252 : vector<8x256xf32>
    %254 = arith.truncf %253 : vector<8x256xf32> to vector<8x256xbf16>
    %c0_147 = arith.constant 0 : index
    %c4_148 = arith.constant 4 : index
    %c0_149 = arith.constant 0 : index
    %c0_150 = arith.constant 0 : index
    %255 = vector.load %arg11[%c0_147, %c4_148, %c0_149, %c0_150] : memref<2x6x256x128xbf16, #tpu.memory_space<vmem>>, vector<1x1x256x128xbf16>
    %256 = vector.shape_cast %255 : vector<1x1x256x128xbf16> to vector<256x128xbf16>
    %cst_151 = arith.constant dense<0.000000e+00> : vector<8x128xf32>
    %257 = tpu.matmul %254, %256, %cst_151 {dimension_numbers = #tpu.dot_dimension_numbers<[1], [0], [0], [1], [0, 0, 1, 1], [], []>} : vector<8x256xbf16>, vector<256x128xbf16>, vector<8x128xf32> -> vector<8x128xf32>
    %c0_152 = arith.constant 0 : index
    %c4_153 = arith.constant 4 : index
    %c0_154 = arith.constant 0 : index
    %c0_155 = arith.constant 0 : index
    %258 = vector.load %arg12[%c0_152, %c4_153, %c0_154, %c0_155] : memref<2x6x1x128xf32, #tpu.memory_space<vmem>>, vector<1x1x1x128xf32>
    %259 = vector.shape_cast %258 : vector<1x1x1x128xf32> to vector<1x128xf32>
    %260 = vector.broadcast %259 : vector<1x128xf32> to vector<8x128xf32>
    %261 = arith.addf %257, %260 : vector<8x128xf32>
    %262 = math.tanh %261 : vector<8x128xf32>
    %263 = vector.broadcast %168 : vector<1x128xf32> to vector<8x128xf32>
    %264 = arith.mulf %262, %263 : vector<8x128xf32>
    %265 = vector.extract_strided_slice %211 {offsets = [0, 256], sizes = [8, 256], strides = [1, 1]} : vector<8x512xf32> to vector<8x256xf32>
    %266 = arith.truncf %265 : vector<8x256xf32> to vector<8x256xbf16>
    %c1_156 = arith.constant 1 : index
    %c4_157 = arith.constant 4 : index
    %c0_158 = arith.constant 0 : index
    %c0_159 = arith.constant 0 : index
    %267 = vector.load %arg7[%c1_156, %c4_157, %c0_158, %c0_159] : memref<2x6x256x256xbf16, #tpu.memory_space<vmem>>, vector<1x1x256x256xbf16>
    %268 = vector.shape_cast %267 : vector<1x1x256x256xbf16> to vector<256x256xbf16>
    %cst_160 = arith.constant dense<0.000000e+00> : vector<8x256xf32>
    %269 = tpu.matmul %266, %268, %cst_160 {dimension_numbers = #tpu.dot_dimension_numbers<[1], [0], [0], [1], [0, 0, 1, 1], [], []>} : vector<8x256xbf16>, vector<256x256xbf16>, vector<8x256xf32> -> vector<8x256xf32>
    %c1_161 = arith.constant 1 : index
    %c4_162 = arith.constant 4 : index
    %c0_163 = arith.constant 0 : index
    %c0_164 = arith.constant 0 : index
    %270 = vector.load %arg8[%c1_161, %c4_162, %c0_163, %c0_164] : memref<2x6x1x256xf32, #tpu.memory_space<vmem>>, vector<1x1x1x256xf32>
    %271 = vector.shape_cast %270 : vector<1x1x1x256xf32> to vector<1x256xf32>
    %272 = vector.broadcast %271 : vector<1x256xf32> to vector<8x256xf32>
    %273 = arith.addf %269, %272 : vector<8x256xf32>
    %cst_165 = arith.constant 0.000000e+00 : f32
    %274 = vector.broadcast %cst_165 : f32 to vector<8x256xf32>
    %275 = arith.cmpf ogt, %273, %274 : vector<8x256xf32>
    %cst_166 = arith.constant 0.00999999977 : f32
    %276 = vector.broadcast %cst_166 : f32 to vector<8x256xf32>
    %277 = arith.mulf %276, %273 : vector<8x256xf32>
    %278 = arith.select %275, %273, %277 : vector<8x256xi1>, vector<8x256xf32>
    %c1_167 = arith.constant 1 : index
    %c4_168 = arith.constant 4 : index
    %c0_169 = arith.constant 0 : index
    %c0_170 = arith.constant 0 : index
    %279 = vector.load %arg9[%c1_167, %c4_168, %c0_169, %c0_170] : memref<2x6x1x256xf32, #tpu.memory_space<vmem>>, vector<1x1x1x256xf32>
    %280 = vector.shape_cast %279 : vector<1x1x1x256xf32> to vector<1x256xf32>
    %c1_171 = arith.constant 1 : index
    %c4_172 = arith.constant 4 : index
    %c0_173 = arith.constant 0 : index
    %c0_174 = arith.constant 0 : index
    %281 = vector.load %arg10[%c1_171, %c4_172, %c0_173, %c0_174] : memref<2x6x1x256xf32, #tpu.memory_space<vmem>>, vector<1x1x1x256xf32>
    %282 = vector.shape_cast %281 : vector<1x1x1x256xf32> to vector<1x256xf32>
    %cst_175 = arith.constant dense<0.000000e+00> : vector<256xf32>
    %283 = vector.multi_reduction <add>, %278, %cst_175 [0] : vector<8x256xf32> to vector<256xf32>
    %284 = vector.shape_cast %283 : vector<256xf32> to vector<1x256xf32>
    %cst_176 = arith.constant 8.000000e+00 : f32
    %285 = vector.broadcast %cst_176 : f32 to vector<1x256xf32>
    %286 = arith.divf %284, %285 : vector<1x256xf32>
    %287 = arith.mulf %278, %278 : vector<8x256xf32>
    %cst_177 = arith.constant dense<0.000000e+00> : vector<256xf32>
    %288 = vector.multi_reduction <add>, %287, %cst_177 [0] : vector<8x256xf32> to vector<256xf32>
    %289 = vector.shape_cast %288 : vector<256xf32> to vector<1x256xf32>
    %cst_178 = arith.constant 8.000000e+00 : f32
    %290 = vector.broadcast %cst_178 : f32 to vector<1x256xf32>
    %291 = arith.divf %289, %290 : vector<1x256xf32>
    %292 = arith.mulf %286, %286 : vector<1x256xf32>
    %293 = arith.subf %291, %292 : vector<1x256xf32>
    %cst_179 = arith.constant 0.000000e+00 : f32
    %294 = vector.broadcast %cst_179 : f32 to vector<1x256xf32>
    %295 = arith.maximumf %293, %294 : vector<1x256xf32>
    %296 = vector.broadcast %286 : vector<1x256xf32> to vector<8x256xf32>
    %297 = arith.subf %278, %296 : vector<8x256xf32>
    %cst_180 = arith.constant 9.99999974E-6 : f32
    %298 = vector.broadcast %cst_180 : f32 to vector<1x256xf32>
    %299 = arith.addf %295, %298 : vector<1x256xf32>
    %300 = math.rsqrt %299 : vector<1x256xf32>
    %301 = vector.broadcast %300 : vector<1x256xf32> to vector<8x256xf32>
    %302 = arith.mulf %297, %301 : vector<8x256xf32>
    %303 = vector.broadcast %280 : vector<1x256xf32> to vector<8x256xf32>
    %304 = arith.mulf %302, %303 : vector<8x256xf32>
    %305 = vector.broadcast %282 : vector<1x256xf32> to vector<8x256xf32>
    %306 = arith.addf %304, %305 : vector<8x256xf32>
    %307 = arith.truncf %306 : vector<8x256xf32> to vector<8x256xbf16>
    %c1_181 = arith.constant 1 : index
    %c4_182 = arith.constant 4 : index
    %c0_183 = arith.constant 0 : index
    %c0_184 = arith.constant 0 : index
    %308 = vector.load %arg11[%c1_181, %c4_182, %c0_183, %c0_184] : memref<2x6x256x128xbf16, #tpu.memory_space<vmem>>, vector<1x1x256x128xbf16>
    %309 = vector.shape_cast %308 : vector<1x1x256x128xbf16> to vector<256x128xbf16>
    %cst_185 = arith.constant dense<0.000000e+00> : vector<8x128xf32>
    %310 = tpu.matmul %307, %309, %cst_185 {dimension_numbers = #tpu.dot_dimension_numbers<[1], [0], [0], [1], [0, 0, 1, 1], [], []>} : vector<8x256xbf16>, vector<256x128xbf16>, vector<8x128xf32> -> vector<8x128xf32>
    %c1_186 = arith.constant 1 : index
    %c4_187 = arith.constant 4 : index
    %c0_188 = arith.constant 0 : index
    %c0_189 = arith.constant 0 : index
    %311 = vector.load %arg12[%c1_186, %c4_187, %c0_188, %c0_189] : memref<2x6x1x128xf32, #tpu.memory_space<vmem>>, vector<1x1x1x128xf32>
    %312 = vector.shape_cast %311 : vector<1x1x1x128xf32> to vector<1x128xf32>
    %313 = vector.broadcast %312 : vector<1x128xf32> to vector<8x128xf32>
    %314 = arith.addf %310, %313 : vector<8x128xf32>
    %315 = vector.broadcast %168 : vector<1x128xf32> to vector<8x128xf32>
    %316 = arith.mulf %314, %315 : vector<8x128xf32>
    %317 = arith.subf %161, %316 : vector<8x128xf32>
    %318 = vector.broadcast %168 : vector<1x128xf32> to vector<8x128xf32>
    %319 = arith.mulf %318, %317 : vector<8x128xf32>
    %cst_190 = arith.constant 0.000000e+00 : f32
    %320 = vector.broadcast %cst_190 : f32 to vector<8x128xf32>
    %321 = arith.subf %320, %264 : vector<8x128xf32>
    %322 = math.exp %321 : vector<8x128xf32>
    %323 = arith.mulf %319, %322 : vector<8x128xf32>
    %324 = arith.addf %323, %170 : vector<8x128xf32>
    %cst_191 = arith.constant dense<0.000000e+00> : vector<128xf32>
    %325 = vector.multi_reduction <add>, %264, %cst_191 [0] : vector<8x128xf32> to vector<128xf32>
    %326 = vector.shape_cast %325 : vector<128xf32> to vector<1x128xf32>
    %327 = arith.subf %164, %326 : vector<1x128xf32>
    %c3 = arith.constant 3 : index
    %c0_192 = arith.constant 0 : index
    %c0_193 = arith.constant 0 : index
    %328 = vector.load %arg1[%c3, %c0_192, %c0_193] : memref<6x1x128xf32, #tpu.memory_space<vmem>>, vector<1x1x128xf32>
    %329 = vector.shape_cast %328 : vector<1x1x128xf32> to vector<1x128xf32>
    %c3_194 = arith.constant 3 : index
    %c0_195 = arith.constant 0 : index
    %c0_196 = arith.constant 0 : index
    %330 = vector.load %arg2[%c3_194, %c0_195, %c0_196] : memref<6x1x128xf32, #tpu.memory_space<vmem>>, vector<1x1x128xf32>
    %331 = vector.shape_cast %330 : vector<1x1x128xf32> to vector<1x128xf32>
    %332 = vector.broadcast %329 : vector<1x128xf32> to vector<8x128xf32>
    %333 = arith.mulf %332, %324 : vector<8x128xf32>
    %334 = arith.truncf %333 : vector<8x128xf32> to vector<8x128xbf16>
    %c3_197 = arith.constant 3 : index
    %c0_198 = arith.constant 0 : index
    %c0_199 = arith.constant 0 : index
    %335 = vector.load %arg3[%c3_197, %c0_198, %c0_199] : memref<6x128x512xbf16, #tpu.memory_space<vmem>>, vector<1x128x512xbf16>
    %336 = vector.shape_cast %335 : vector<1x128x512xbf16> to vector<128x512xbf16>
    %cst_200 = arith.constant dense<0.000000e+00> : vector<8x512xf32>
    %337 = tpu.matmul %334, %336, %cst_200 {dimension_numbers = #tpu.dot_dimension_numbers<[1], [0], [0], [1], [0, 0, 1, 1], [], []>} : vector<8x128xbf16>, vector<128x512xbf16>, vector<8x512xf32> -> vector<8x512xf32>
    %c3_201 = arith.constant 3 : index
    %c0_202 = arith.constant 0 : index
    %c0_203 = arith.constant 0 : index
    %338 = vector.load %arg4[%c3_201, %c0_202, %c0_203] : memref<6x1x512xf32, #tpu.memory_space<vmem>>, vector<1x1x512xf32>
    %339 = vector.shape_cast %338 : vector<1x1x512xf32> to vector<1x512xf32>
    %340 = vector.broadcast %339 : vector<1x512xf32> to vector<8x512xf32>
    %341 = arith.addf %337, %340 : vector<8x512xf32>
    %cst_204 = arith.constant 0.000000e+00 : f32
    %342 = vector.broadcast %cst_204 : f32 to vector<8x512xf32>
    %343 = arith.cmpf ogt, %341, %342 : vector<8x512xf32>
    %cst_205 = arith.constant 0.00999999977 : f32
    %344 = vector.broadcast %cst_205 : f32 to vector<8x512xf32>
    %345 = arith.mulf %344, %341 : vector<8x512xf32>
    %346 = arith.select %343, %341, %345 : vector<8x512xi1>, vector<8x512xf32>
    %c3_206 = arith.constant 3 : index
    %c0_207 = arith.constant 0 : index
    %c0_208 = arith.constant 0 : index
    %347 = vector.load %arg5[%c3_206, %c0_207, %c0_208] : memref<6x1x512xf32, #tpu.memory_space<vmem>>, vector<1x1x512xf32>
    %348 = vector.shape_cast %347 : vector<1x1x512xf32> to vector<1x512xf32>
    %c3_209 = arith.constant 3 : index
    %c0_210 = arith.constant 0 : index
    %c0_211 = arith.constant 0 : index
    %349 = vector.load %arg6[%c3_209, %c0_210, %c0_211] : memref<6x1x512xf32, #tpu.memory_space<vmem>>, vector<1x1x512xf32>
    %350 = vector.shape_cast %349 : vector<1x1x512xf32> to vector<1x512xf32>
    %cst_212 = arith.constant dense<0.000000e+00> : vector<512xf32>
    %351 = vector.multi_reduction <add>, %346, %cst_212 [0] : vector<8x512xf32> to vector<512xf32>
    %352 = vector.shape_cast %351 : vector<512xf32> to vector<1x512xf32>
    %cst_213 = arith.constant 8.000000e+00 : f32
    %353 = vector.broadcast %cst_213 : f32 to vector<1x512xf32>
    %354 = arith.divf %352, %353 : vector<1x512xf32>
    %355 = arith.mulf %346, %346 : vector<8x512xf32>
    %cst_214 = arith.constant dense<0.000000e+00> : vector<512xf32>
    %356 = vector.multi_reduction <add>, %355, %cst_214 [0] : vector<8x512xf32> to vector<512xf32>
    %357 = vector.shape_cast %356 : vector<512xf32> to vector<1x512xf32>
    %cst_215 = arith.constant 8.000000e+00 : f32
    %358 = vector.broadcast %cst_215 : f32 to vector<1x512xf32>
    %359 = arith.divf %357, %358 : vector<1x512xf32>
    %360 = arith.mulf %354, %354 : vector<1x512xf32>
    %361 = arith.subf %359, %360 : vector<1x512xf32>
    %cst_216 = arith.constant 0.000000e+00 : f32
    %362 = vector.broadcast %cst_216 : f32 to vector<1x512xf32>
    %363 = arith.maximumf %361, %362 : vector<1x512xf32>
    %364 = vector.broadcast %354 : vector<1x512xf32> to vector<8x512xf32>
    %365 = arith.subf %346, %364 : vector<8x512xf32>
    %cst_217 = arith.constant 9.99999974E-6 : f32
    %366 = vector.broadcast %cst_217 : f32 to vector<1x512xf32>
    %367 = arith.addf %363, %366 : vector<1x512xf32>
    %368 = math.rsqrt %367 : vector<1x512xf32>
    %369 = vector.broadcast %368 : vector<1x512xf32> to vector<8x512xf32>
    %370 = arith.mulf %365, %369 : vector<8x512xf32>
    %371 = vector.broadcast %348 : vector<1x512xf32> to vector<8x512xf32>
    %372 = arith.mulf %370, %371 : vector<8x512xf32>
    %373 = vector.broadcast %350 : vector<1x512xf32> to vector<8x512xf32>
    %374 = arith.addf %372, %373 : vector<8x512xf32>
    %375 = vector.extract_strided_slice %374 {offsets = [0, 0], sizes = [8, 256], strides = [1, 1]} : vector<8x512xf32> to vector<8x256xf32>
    %376 = arith.truncf %375 : vector<8x256xf32> to vector<8x256xbf16>
    %c0_218 = arith.constant 0 : index
    %c3_219 = arith.constant 3 : index
    %c0_220 = arith.constant 0 : index
    %c0_221 = arith.constant 0 : index
    %377 = vector.load %arg7[%c0_218, %c3_219, %c0_220, %c0_221] : memref<2x6x256x256xbf16, #tpu.memory_space<vmem>>, vector<1x1x256x256xbf16>
    %378 = vector.shape_cast %377 : vector<1x1x256x256xbf16> to vector<256x256xbf16>
    %cst_222 = arith.constant dense<0.000000e+00> : vector<8x256xf32>
    %379 = tpu.matmul %376, %378, %cst_222 {dimension_numbers = #tpu.dot_dimension_numbers<[1], [0], [0], [1], [0, 0, 1, 1], [], []>} : vector<8x256xbf16>, vector<256x256xbf16>, vector<8x256xf32> -> vector<8x256xf32>
    %c0_223 = arith.constant 0 : index
    %c3_224 = arith.constant 3 : index
    %c0_225 = arith.constant 0 : index
    %c0_226 = arith.constant 0 : index
    %380 = vector.load %arg8[%c0_223, %c3_224, %c0_225, %c0_226] : memref<2x6x1x256xf32, #tpu.memory_space<vmem>>, vector<1x1x1x256xf32>
    %381 = vector.shape_cast %380 : vector<1x1x1x256xf32> to vector<1x256xf32>
    %382 = vector.broadcast %381 : vector<1x256xf32> to vector<8x256xf32>
    %383 = arith.addf %379, %382 : vector<8x256xf32>
    %cst_227 = arith.constant 0.000000e+00 : f32
    %384 = vector.broadcast %cst_227 : f32 to vector<8x256xf32>
    %385 = arith.cmpf ogt, %383, %384 : vector<8x256xf32>
    %cst_228 = arith.constant 0.00999999977 : f32
    %386 = vector.broadcast %cst_228 : f32 to vector<8x256xf32>
    %387 = arith.mulf %386, %383 : vector<8x256xf32>
    %388 = arith.select %385, %383, %387 : vector<8x256xi1>, vector<8x256xf32>
    %c0_229 = arith.constant 0 : index
    %c3_230 = arith.constant 3 : index
    %c0_231 = arith.constant 0 : index
    %c0_232 = arith.constant 0 : index
    %389 = vector.load %arg9[%c0_229, %c3_230, %c0_231, %c0_232] : memref<2x6x1x256xf32, #tpu.memory_space<vmem>>, vector<1x1x1x256xf32>
    %390 = vector.shape_cast %389 : vector<1x1x1x256xf32> to vector<1x256xf32>
    %c0_233 = arith.constant 0 : index
    %c3_234 = arith.constant 3 : index
    %c0_235 = arith.constant 0 : index
    %c0_236 = arith.constant 0 : index
    %391 = vector.load %arg10[%c0_233, %c3_234, %c0_235, %c0_236] : memref<2x6x1x256xf32, #tpu.memory_space<vmem>>, vector<1x1x1x256xf32>
    %392 = vector.shape_cast %391 : vector<1x1x1x256xf32> to vector<1x256xf32>
    %cst_237 = arith.constant dense<0.000000e+00> : vector<256xf32>
    %393 = vector.multi_reduction <add>, %388, %cst_237 [0] : vector<8x256xf32> to vector<256xf32>
    %394 = vector.shape_cast %393 : vector<256xf32> to vector<1x256xf32>
    %cst_238 = arith.constant 8.000000e+00 : f32
    %395 = vector.broadcast %cst_238 : f32 to vector<1x256xf32>
    %396 = arith.divf %394, %395 : vector<1x256xf32>
    %397 = arith.mulf %388, %388 : vector<8x256xf32>
    %cst_239 = arith.constant dense<0.000000e+00> : vector<256xf32>
    %398 = vector.multi_reduction <add>, %397, %cst_239 [0] : vector<8x256xf32> to vector<256xf32>
    %399 = vector.shape_cast %398 : vector<256xf32> to vector<1x256xf32>
    %cst_240 = arith.constant 8.000000e+00 : f32
    %400 = vector.broadcast %cst_240 : f32 to vector<1x256xf32>
    %401 = arith.divf %399, %400 : vector<1x256xf32>
    %402 = arith.mulf %396, %396 : vector<1x256xf32>
    %403 = arith.subf %401, %402 : vector<1x256xf32>
    %cst_241 = arith.constant 0.000000e+00 : f32
    %404 = vector.broadcast %cst_241 : f32 to vector<1x256xf32>
    %405 = arith.maximumf %403, %404 : vector<1x256xf32>
    %406 = vector.broadcast %396 : vector<1x256xf32> to vector<8x256xf32>
    %407 = arith.subf %388, %406 : vector<8x256xf32>
    %cst_242 = arith.constant 9.99999974E-6 : f32
    %408 = vector.broadcast %cst_242 : f32 to vector<1x256xf32>
    %409 = arith.addf %405, %408 : vector<1x256xf32>
    %410 = math.rsqrt %409 : vector<1x256xf32>
    %411 = vector.broadcast %410 : vector<1x256xf32> to vector<8x256xf32>
    %412 = arith.mulf %407, %411 : vector<8x256xf32>
    %413 = vector.broadcast %390 : vector<1x256xf32> to vector<8x256xf32>
    %414 = arith.mulf %412, %413 : vector<8x256xf32>
    %415 = vector.broadcast %392 : vector<1x256xf32> to vector<8x256xf32>
    %416 = arith.addf %414, %415 : vector<8x256xf32>
    %417 = arith.truncf %416 : vector<8x256xf32> to vector<8x256xbf16>
    %c0_243 = arith.constant 0 : index
    %c3_244 = arith.constant 3 : index
    %c0_245 = arith.constant 0 : index
    %c0_246 = arith.constant 0 : index
    %418 = vector.load %arg11[%c0_243, %c3_244, %c0_245, %c0_246] : memref<2x6x256x128xbf16, #tpu.memory_space<vmem>>, vector<1x1x256x128xbf16>
    %419 = vector.shape_cast %418 : vector<1x1x256x128xbf16> to vector<256x128xbf16>
    %cst_247 = arith.constant dense<0.000000e+00> : vector<8x128xf32>
    %420 = tpu.matmul %417, %419, %cst_247 {dimension_numbers = #tpu.dot_dimension_numbers<[1], [0], [0], [1], [0, 0, 1, 1], [], []>} : vector<8x256xbf16>, vector<256x128xbf16>, vector<8x128xf32> -> vector<8x128xf32>
    %c0_248 = arith.constant 0 : index
    %c3_249 = arith.constant 3 : index
    %c0_250 = arith.constant 0 : index
    %c0_251 = arith.constant 0 : index
    %421 = vector.load %arg12[%c0_248, %c3_249, %c0_250, %c0_251] : memref<2x6x1x128xf32, #tpu.memory_space<vmem>>, vector<1x1x1x128xf32>
    %422 = vector.shape_cast %421 : vector<1x1x1x128xf32> to vector<1x128xf32>
    %423 = vector.broadcast %422 : vector<1x128xf32> to vector<8x128xf32>
    %424 = arith.addf %420, %423 : vector<8x128xf32>
    %425 = math.tanh %424 : vector<8x128xf32>
    %426 = vector.broadcast %331 : vector<1x128xf32> to vector<8x128xf32>
    %427 = arith.mulf %425, %426 : vector<8x128xf32>
    %428 = vector.extract_strided_slice %374 {offsets = [0, 256], sizes = [8, 256], strides = [1, 1]} : vector<8x512xf32> to vector<8x256xf32>
    %429 = arith.truncf %428 : vector<8x256xf32> to vector<8x256xbf16>
    %c1_252 = arith.constant 1 : index
    %c3_253 = arith.constant 3 : index
    %c0_254 = arith.constant 0 : index
    %c0_255 = arith.constant 0 : index
    %430 = vector.load %arg7[%c1_252, %c3_253, %c0_254, %c0_255] : memref<2x6x256x256xbf16, #tpu.memory_space<vmem>>, vector<1x1x256x256xbf16>
    %431 = vector.shape_cast %430 : vector<1x1x256x256xbf16> to vector<256x256xbf16>
    %cst_256 = arith.constant dense<0.000000e+00> : vector<8x256xf32>
    %432 = tpu.matmul %429, %431, %cst_256 {dimension_numbers = #tpu.dot_dimension_numbers<[1], [0], [0], [1], [0, 0, 1, 1], [], []>} : vector<8x256xbf16>, vector<256x256xbf16>, vector<8x256xf32> -> vector<8x256xf32>
    %c1_257 = arith.constant 1 : index
    %c3_258 = arith.constant 3 : index
    %c0_259 = arith.constant 0 : index
    %c0_260 = arith.constant 0 : index
    %433 = vector.load %arg8[%c1_257, %c3_258, %c0_259, %c0_260] : memref<2x6x1x256xf32, #tpu.memory_space<vmem>>, vector<1x1x1x256xf32>
    %434 = vector.shape_cast %433 : vector<1x1x1x256xf32> to vector<1x256xf32>
    %435 = vector.broadcast %434 : vector<1x256xf32> to vector<8x256xf32>
    %436 = arith.addf %432, %435 : vector<8x256xf32>
    %cst_261 = arith.constant 0.000000e+00 : f32
    %437 = vector.broadcast %cst_261 : f32 to vector<8x256xf32>
    %438 = arith.cmpf ogt, %436, %437 : vector<8x256xf32>
    %cst_262 = arith.constant 0.00999999977 : f32
    %439 = vector.broadcast %cst_262 : f32 to vector<8x256xf32>
    %440 = arith.mulf %439, %436 : vector<8x256xf32>
    %441 = arith.select %438, %436, %440 : vector<8x256xi1>, vector<8x256xf32>
    %c1_263 = arith.constant 1 : index
    %c3_264 = arith.constant 3 : index
    %c0_265 = arith.constant 0 : index
    %c0_266 = arith.constant 0 : index
    %442 = vector.load %arg9[%c1_263, %c3_264, %c0_265, %c0_266] : memref<2x6x1x256xf32, #tpu.memory_space<vmem>>, vector<1x1x1x256xf32>
    %443 = vector.shape_cast %442 : vector<1x1x1x256xf32> to vector<1x256xf32>
    %c1_267 = arith.constant 1 : index
    %c3_268 = arith.constant 3 : index
    %c0_269 = arith.constant 0 : index
    %c0_270 = arith.constant 0 : index
    %444 = vector.load %arg10[%c1_267, %c3_268, %c0_269, %c0_270] : memref<2x6x1x256xf32, #tpu.memory_space<vmem>>, vector<1x1x1x256xf32>
    %445 = vector.shape_cast %444 : vector<1x1x1x256xf32> to vector<1x256xf32>
    %cst_271 = arith.constant dense<0.000000e+00> : vector<256xf32>
    %446 = vector.multi_reduction <add>, %441, %cst_271 [0] : vector<8x256xf32> to vector<256xf32>
    %447 = vector.shape_cast %446 : vector<256xf32> to vector<1x256xf32>
    %cst_272 = arith.constant 8.000000e+00 : f32
    %448 = vector.broadcast %cst_272 : f32 to vector<1x256xf32>
    %449 = arith.divf %447, %448 : vector<1x256xf32>
    %450 = arith.mulf %441, %441 : vector<8x256xf32>
    %cst_273 = arith.constant dense<0.000000e+00> : vector<256xf32>
    %451 = vector.multi_reduction <add>, %450, %cst_273 [0] : vector<8x256xf32> to vector<256xf32>
    %452 = vector.shape_cast %451 : vector<256xf32> to vector<1x256xf32>
    %cst_274 = arith.constant 8.000000e+00 : f32
    %453 = vector.broadcast %cst_274 : f32 to vector<1x256xf32>
    %454 = arith.divf %452, %453 : vector<1x256xf32>
    %455 = arith.mulf %449, %449 : vector<1x256xf32>
    %456 = arith.subf %454, %455 : vector<1x256xf32>
    %cst_275 = arith.constant 0.000000e+00 : f32
    %457 = vector.broadcast %cst_275 : f32 to vector<1x256xf32>
    %458 = arith.maximumf %456, %457 : vector<1x256xf32>
    %459 = vector.broadcast %449 : vector<1x256xf32> to vector<8x256xf32>
    %460 = arith.subf %441, %459 : vector<8x256xf32>
    %cst_276 = arith.constant 9.99999974E-6 : f32
    %461 = vector.broadcast %cst_276 : f32 to vector<1x256xf32>
    %462 = arith.addf %458, %461 : vector<1x256xf32>
    %463 = math.rsqrt %462 : vector<1x256xf32>
    %464 = vector.broadcast %463 : vector<1x256xf32> to vector<8x256xf32>
    %465 = arith.mulf %460, %464 : vector<8x256xf32>
    %466 = vector.broadcast %443 : vector<1x256xf32> to vector<8x256xf32>
    %467 = arith.mulf %465, %466 : vector<8x256xf32>
    %468 = vector.broadcast %445 : vector<1x256xf32> to vector<8x256xf32>
    %469 = arith.addf %467, %468 : vector<8x256xf32>
    %470 = arith.truncf %469 : vector<8x256xf32> to vector<8x256xbf16>
    %c1_277 = arith.constant 1 : index
    %c3_278 = arith.constant 3 : index
    %c0_279 = arith.constant 0 : index
    %c0_280 = arith.constant 0 : index
    %471 = vector.load %arg11[%c1_277, %c3_278, %c0_279, %c0_280] : memref<2x6x256x128xbf16, #tpu.memory_space<vmem>>, vector<1x1x256x128xbf16>
    %472 = vector.shape_cast %471 : vector<1x1x256x128xbf16> to vector<256x128xbf16>
    %cst_281 = arith.constant dense<0.000000e+00> : vector<8x128xf32>
    %473 = tpu.matmul %470, %472, %cst_281 {dimension_numbers = #tpu.dot_dimension_numbers<[1], [0], [0], [1], [0, 0, 1, 1], [], []>} : vector<8x256xbf16>, vector<256x128xbf16>, vector<8x128xf32> -> vector<8x128xf32>
    %c1_282 = arith.constant 1 : index
    %c3_283 = arith.constant 3 : index
    %c0_284 = arith.constant 0 : index
    %c0_285 = arith.constant 0 : index
    %474 = vector.load %arg12[%c1_282, %c3_283, %c0_284, %c0_285] : memref<2x6x1x128xf32, #tpu.memory_space<vmem>>, vector<1x1x1x128xf32>
    %475 = vector.shape_cast %474 : vector<1x1x1x128xf32> to vector<1x128xf32>
    %476 = vector.broadcast %475 : vector<1x128xf32> to vector<8x128xf32>
    %477 = arith.addf %473, %476 : vector<8x128xf32>
    %478 = vector.broadcast %331 : vector<1x128xf32> to vector<8x128xf32>
    %479 = arith.mulf %477, %478 : vector<8x128xf32>
    %480 = arith.subf %324, %479 : vector<8x128xf32>
    %481 = vector.broadcast %331 : vector<1x128xf32> to vector<8x128xf32>
    %482 = arith.mulf %481, %480 : vector<8x128xf32>
    %cst_286 = arith.constant 0.000000e+00 : f32
    %483 = vector.broadcast %cst_286 : f32 to vector<8x128xf32>
    %484 = arith.subf %483, %427 : vector<8x128xf32>
    %485 = math.exp %484 : vector<8x128xf32>
    %486 = arith.mulf %482, %485 : vector<8x128xf32>
    %487 = arith.addf %486, %333 : vector<8x128xf32>
    %cst_287 = arith.constant dense<0.000000e+00> : vector<128xf32>
    %488 = vector.multi_reduction <add>, %427, %cst_287 [0] : vector<8x128xf32> to vector<128xf32>
    %489 = vector.shape_cast %488 : vector<128xf32> to vector<1x128xf32>
    %490 = arith.subf %327, %489 : vector<1x128xf32>
    %c2 = arith.constant 2 : index
    %c0_288 = arith.constant 0 : index
    %c0_289 = arith.constant 0 : index
    %491 = vector.load %arg1[%c2, %c0_288, %c0_289] : memref<6x1x128xf32, #tpu.memory_space<vmem>>, vector<1x1x128xf32>
    %492 = vector.shape_cast %491 : vector<1x1x128xf32> to vector<1x128xf32>
    %c2_290 = arith.constant 2 : index
    %c0_291 = arith.constant 0 : index
    %c0_292 = arith.constant 0 : index
    %493 = vector.load %arg2[%c2_290, %c0_291, %c0_292] : memref<6x1x128xf32, #tpu.memory_space<vmem>>, vector<1x1x128xf32>
    %494 = vector.shape_cast %493 : vector<1x1x128xf32> to vector<1x128xf32>
    %495 = vector.broadcast %492 : vector<1x128xf32> to vector<8x128xf32>
    %496 = arith.mulf %495, %487 : vector<8x128xf32>
    %497 = arith.truncf %496 : vector<8x128xf32> to vector<8x128xbf16>
    %c2_293 = arith.constant 2 : index
    %c0_294 = arith.constant 0 : index
    %c0_295 = arith.constant 0 : index
    %498 = vector.load %arg3[%c2_293, %c0_294, %c0_295] : memref<6x128x512xbf16, #tpu.memory_space<vmem>>, vector<1x128x512xbf16>
    %499 = vector.shape_cast %498 : vector<1x128x512xbf16> to vector<128x512xbf16>
    %cst_296 = arith.constant dense<0.000000e+00> : vector<8x512xf32>
    %500 = tpu.matmul %497, %499, %cst_296 {dimension_numbers = #tpu.dot_dimension_numbers<[1], [0], [0], [1], [0, 0, 1, 1], [], []>} : vector<8x128xbf16>, vector<128x512xbf16>, vector<8x512xf32> -> vector<8x512xf32>
    %c2_297 = arith.constant 2 : index
    %c0_298 = arith.constant 0 : index
    %c0_299 = arith.constant 0 : index
    %501 = vector.load %arg4[%c2_297, %c0_298, %c0_299] : memref<6x1x512xf32, #tpu.memory_space<vmem>>, vector<1x1x512xf32>
    %502 = vector.shape_cast %501 : vector<1x1x512xf32> to vector<1x512xf32>
    %503 = vector.broadcast %502 : vector<1x512xf32> to vector<8x512xf32>
    %504 = arith.addf %500, %503 : vector<8x512xf32>
    %cst_300 = arith.constant 0.000000e+00 : f32
    %505 = vector.broadcast %cst_300 : f32 to vector<8x512xf32>
    %506 = arith.cmpf ogt, %504, %505 : vector<8x512xf32>
    %cst_301 = arith.constant 0.00999999977 : f32
    %507 = vector.broadcast %cst_301 : f32 to vector<8x512xf32>
    %508 = arith.mulf %507, %504 : vector<8x512xf32>
    %509 = arith.select %506, %504, %508 : vector<8x512xi1>, vector<8x512xf32>
    %c2_302 = arith.constant 2 : index
    %c0_303 = arith.constant 0 : index
    %c0_304 = arith.constant 0 : index
    %510 = vector.load %arg5[%c2_302, %c0_303, %c0_304] : memref<6x1x512xf32, #tpu.memory_space<vmem>>, vector<1x1x512xf32>
    %511 = vector.shape_cast %510 : vector<1x1x512xf32> to vector<1x512xf32>
    %c2_305 = arith.constant 2 : index
    %c0_306 = arith.constant 0 : index
    %c0_307 = arith.constant 0 : index
    %512 = vector.load %arg6[%c2_305, %c0_306, %c0_307] : memref<6x1x512xf32, #tpu.memory_space<vmem>>, vector<1x1x512xf32>
    %513 = vector.shape_cast %512 : vector<1x1x512xf32> to vector<1x512xf32>
    %cst_308 = arith.constant dense<0.000000e+00> : vector<512xf32>
    %514 = vector.multi_reduction <add>, %509, %cst_308 [0] : vector<8x512xf32> to vector<512xf32>
    %515 = vector.shape_cast %514 : vector<512xf32> to vector<1x512xf32>
    %cst_309 = arith.constant 8.000000e+00 : f32
    %516 = vector.broadcast %cst_309 : f32 to vector<1x512xf32>
    %517 = arith.divf %515, %516 : vector<1x512xf32>
    %518 = arith.mulf %509, %509 : vector<8x512xf32>
    %cst_310 = arith.constant dense<0.000000e+00> : vector<512xf32>
    %519 = vector.multi_reduction <add>, %518, %cst_310 [0] : vector<8x512xf32> to vector<512xf32>
    %520 = vector.shape_cast %519 : vector<512xf32> to vector<1x512xf32>
    %cst_311 = arith.constant 8.000000e+00 : f32
    %521 = vector.broadcast %cst_311 : f32 to vector<1x512xf32>
    %522 = arith.divf %520, %521 : vector<1x512xf32>
    %523 = arith.mulf %517, %517 : vector<1x512xf32>
    %524 = arith.subf %522, %523 : vector<1x512xf32>
    %cst_312 = arith.constant 0.000000e+00 : f32
    %525 = vector.broadcast %cst_312 : f32 to vector<1x512xf32>
    %526 = arith.maximumf %524, %525 : vector<1x512xf32>
    %527 = vector.broadcast %517 : vector<1x512xf32> to vector<8x512xf32>
    %528 = arith.subf %509, %527 : vector<8x512xf32>
    %cst_313 = arith.constant 9.99999974E-6 : f32
    %529 = vector.broadcast %cst_313 : f32 to vector<1x512xf32>
    %530 = arith.addf %526, %529 : vector<1x512xf32>
    %531 = math.rsqrt %530 : vector<1x512xf32>
    %532 = vector.broadcast %531 : vector<1x512xf32> to vector<8x512xf32>
    %533 = arith.mulf %528, %532 : vector<8x512xf32>
    %534 = vector.broadcast %511 : vector<1x512xf32> to vector<8x512xf32>
    %535 = arith.mulf %533, %534 : vector<8x512xf32>
    %536 = vector.broadcast %513 : vector<1x512xf32> to vector<8x512xf32>
    %537 = arith.addf %535, %536 : vector<8x512xf32>
    %538 = vector.extract_strided_slice %537 {offsets = [0, 0], sizes = [8, 256], strides = [1, 1]} : vector<8x512xf32> to vector<8x256xf32>
    %539 = arith.truncf %538 : vector<8x256xf32> to vector<8x256xbf16>
    %c0_314 = arith.constant 0 : index
    %c2_315 = arith.constant 2 : index
    %c0_316 = arith.constant 0 : index
    %c0_317 = arith.constant 0 : index
    %540 = vector.load %arg7[%c0_314, %c2_315, %c0_316, %c0_317] : memref<2x6x256x256xbf16, #tpu.memory_space<vmem>>, vector<1x1x256x256xbf16>
    %541 = vector.shape_cast %540 : vector<1x1x256x256xbf16> to vector<256x256xbf16>
    %cst_318 = arith.constant dense<0.000000e+00> : vector<8x256xf32>
    %542 = tpu.matmul %539, %541, %cst_318 {dimension_numbers = #tpu.dot_dimension_numbers<[1], [0], [0], [1], [0, 0, 1, 1], [], []>} : vector<8x256xbf16>, vector<256x256xbf16>, vector<8x256xf32> -> vector<8x256xf32>
    %c0_319 = arith.constant 0 : index
    %c2_320 = arith.constant 2 : index
    %c0_321 = arith.constant 0 : index
    %c0_322 = arith.constant 0 : index
    %543 = vector.load %arg8[%c0_319, %c2_320, %c0_321, %c0_322] : memref<2x6x1x256xf32, #tpu.memory_space<vmem>>, vector<1x1x1x256xf32>
    %544 = vector.shape_cast %543 : vector<1x1x1x256xf32> to vector<1x256xf32>
    %545 = vector.broadcast %544 : vector<1x256xf32> to vector<8x256xf32>
    %546 = arith.addf %542, %545 : vector<8x256xf32>
    %cst_323 = arith.constant 0.000000e+00 : f32
    %547 = vector.broadcast %cst_323 : f32 to vector<8x256xf32>
    %548 = arith.cmpf ogt, %546, %547 : vector<8x256xf32>
    %cst_324 = arith.constant 0.00999999977 : f32
    %549 = vector.broadcast %cst_324 : f32 to vector<8x256xf32>
    %550 = arith.mulf %549, %546 : vector<8x256xf32>
    %551 = arith.select %548, %546, %550 : vector<8x256xi1>, vector<8x256xf32>
    %c0_325 = arith.constant 0 : index
    %c2_326 = arith.constant 2 : index
    %c0_327 = arith.constant 0 : index
    %c0_328 = arith.constant 0 : index
    %552 = vector.load %arg9[%c0_325, %c2_326, %c0_327, %c0_328] : memref<2x6x1x256xf32, #tpu.memory_space<vmem>>, vector<1x1x1x256xf32>
    %553 = vector.shape_cast %552 : vector<1x1x1x256xf32> to vector<1x256xf32>
    %c0_329 = arith.constant 0 : index
    %c2_330 = arith.constant 2 : index
    %c0_331 = arith.constant 0 : index
    %c0_332 = arith.constant 0 : index
    %554 = vector.load %arg10[%c0_329, %c2_330, %c0_331, %c0_332] : memref<2x6x1x256xf32, #tpu.memory_space<vmem>>, vector<1x1x1x256xf32>
    %555 = vector.shape_cast %554 : vector<1x1x1x256xf32> to vector<1x256xf32>
    %cst_333 = arith.constant dense<0.000000e+00> : vector<256xf32>
    %556 = vector.multi_reduction <add>, %551, %cst_333 [0] : vector<8x256xf32> to vector<256xf32>
    %557 = vector.shape_cast %556 : vector<256xf32> to vector<1x256xf32>
    %cst_334 = arith.constant 8.000000e+00 : f32
    %558 = vector.broadcast %cst_334 : f32 to vector<1x256xf32>
    %559 = arith.divf %557, %558 : vector<1x256xf32>
    %560 = arith.mulf %551, %551 : vector<8x256xf32>
    %cst_335 = arith.constant dense<0.000000e+00> : vector<256xf32>
    %561 = vector.multi_reduction <add>, %560, %cst_335 [0] : vector<8x256xf32> to vector<256xf32>
    %562 = vector.shape_cast %561 : vector<256xf32> to vector<1x256xf32>
    %cst_336 = arith.constant 8.000000e+00 : f32
    %563 = vector.broadcast %cst_336 : f32 to vector<1x256xf32>
    %564 = arith.divf %562, %563 : vector<1x256xf32>
    %565 = arith.mulf %559, %559 : vector<1x256xf32>
    %566 = arith.subf %564, %565 : vector<1x256xf32>
    %cst_337 = arith.constant 0.000000e+00 : f32
    %567 = vector.broadcast %cst_337 : f32 to vector<1x256xf32>
    %568 = arith.maximumf %566, %567 : vector<1x256xf32>
    %569 = vector.broadcast %559 : vector<1x256xf32> to vector<8x256xf32>
    %570 = arith.subf %551, %569 : vector<8x256xf32>
    %cst_338 = arith.constant 9.99999974E-6 : f32
    %571 = vector.broadcast %cst_338 : f32 to vector<1x256xf32>
    %572 = arith.addf %568, %571 : vector<1x256xf32>
    %573 = math.rsqrt %572 : vector<1x256xf32>
    %574 = vector.broadcast %573 : vector<1x256xf32> to vector<8x256xf32>
    %575 = arith.mulf %570, %574 : vector<8x256xf32>
    %576 = vector.broadcast %553 : vector<1x256xf32> to vector<8x256xf32>
    %577 = arith.mulf %575, %576 : vector<8x256xf32>
    %578 = vector.broadcast %555 : vector<1x256xf32> to vector<8x256xf32>
    %579 = arith.addf %577, %578 : vector<8x256xf32>
    %580 = arith.truncf %579 : vector<8x256xf32> to vector<8x256xbf16>
    %c0_339 = arith.constant 0 : index
    %c2_340 = arith.constant 2 : index
    %c0_341 = arith.constant 0 : index
    %c0_342 = arith.constant 0 : index
    %581 = vector.load %arg11[%c0_339, %c2_340, %c0_341, %c0_342] : memref<2x6x256x128xbf16, #tpu.memory_space<vmem>>, vector<1x1x256x128xbf16>
    %582 = vector.shape_cast %581 : vector<1x1x256x128xbf16> to vector<256x128xbf16>
    %cst_343 = arith.constant dense<0.000000e+00> : vector<8x128xf32>
    %583 = tpu.matmul %580, %582, %cst_343 {dimension_numbers = #tpu.dot_dimension_numbers<[1], [0], [0], [1], [0, 0, 1, 1], [], []>} : vector<8x256xbf16>, vector<256x128xbf16>, vector<8x128xf32> -> vector<8x128xf32>
    %c0_344 = arith.constant 0 : index
    %c2_345 = arith.constant 2 : index
    %c0_346 = arith.constant 0 : index
    %c0_347 = arith.constant 0 : index
    %584 = vector.load %arg12[%c0_344, %c2_345, %c0_346, %c0_347] : memref<2x6x1x128xf32, #tpu.memory_space<vmem>>, vector<1x1x1x128xf32>
    %585 = vector.shape_cast %584 : vector<1x1x1x128xf32> to vector<1x128xf32>
    %586 = vector.broadcast %585 : vector<1x128xf32> to vector<8x128xf32>
    %587 = arith.addf %583, %586 : vector<8x128xf32>
    %588 = math.tanh %587 : vector<8x128xf32>
    %589 = vector.broadcast %494 : vector<1x128xf32> to vector<8x128xf32>
    %590 = arith.mulf %588, %589 : vector<8x128xf32>
    %591 = vector.extract_strided_slice %537 {offsets = [0, 256], sizes = [8, 256], strides = [1, 1]} : vector<8x512xf32> to vector<8x256xf32>
    %592 = arith.truncf %591 : vector<8x256xf32> to vector<8x256xbf16>
    %c1_348 = arith.constant 1 : index
    %c2_349 = arith.constant 2 : index
    %c0_350 = arith.constant 0 : index
    %c0_351 = arith.constant 0 : index
    %593 = vector.load %arg7[%c1_348, %c2_349, %c0_350, %c0_351] : memref<2x6x256x256xbf16, #tpu.memory_space<vmem>>, vector<1x1x256x256xbf16>
    %594 = vector.shape_cast %593 : vector<1x1x256x256xbf16> to vector<256x256xbf16>
    %cst_352 = arith.constant dense<0.000000e+00> : vector<8x256xf32>
    %595 = tpu.matmul %592, %594, %cst_352 {dimension_numbers = #tpu.dot_dimension_numbers<[1], [0], [0], [1], [0, 0, 1, 1], [], []>} : vector<8x256xbf16>, vector<256x256xbf16>, vector<8x256xf32> -> vector<8x256xf32>
    %c1_353 = arith.constant 1 : index
    %c2_354 = arith.constant 2 : index
    %c0_355 = arith.constant 0 : index
    %c0_356 = arith.constant 0 : index
    %596 = vector.load %arg8[%c1_353, %c2_354, %c0_355, %c0_356] : memref<2x6x1x256xf32, #tpu.memory_space<vmem>>, vector<1x1x1x256xf32>
    %597 = vector.shape_cast %596 : vector<1x1x1x256xf32> to vector<1x256xf32>
    %598 = vector.broadcast %597 : vector<1x256xf32> to vector<8x256xf32>
    %599 = arith.addf %595, %598 : vector<8x256xf32>
    %cst_357 = arith.constant 0.000000e+00 : f32
    %600 = vector.broadcast %cst_357 : f32 to vector<8x256xf32>
    %601 = arith.cmpf ogt, %599, %600 : vector<8x256xf32>
    %cst_358 = arith.constant 0.00999999977 : f32
    %602 = vector.broadcast %cst_358 : f32 to vector<8x256xf32>
    %603 = arith.mulf %602, %599 : vector<8x256xf32>
    %604 = arith.select %601, %599, %603 : vector<8x256xi1>, vector<8x256xf32>
    %c1_359 = arith.constant 1 : index
    %c2_360 = arith.constant 2 : index
    %c0_361 = arith.constant 0 : index
    %c0_362 = arith.constant 0 : index
    %605 = vector.load %arg9[%c1_359, %c2_360, %c0_361, %c0_362] : memref<2x6x1x256xf32, #tpu.memory_space<vmem>>, vector<1x1x1x256xf32>
    %606 = vector.shape_cast %605 : vector<1x1x1x256xf32> to vector<1x256xf32>
    %c1_363 = arith.constant 1 : index
    %c2_364 = arith.constant 2 : index
    %c0_365 = arith.constant 0 : index
    %c0_366 = arith.constant 0 : index
    %607 = vector.load %arg10[%c1_363, %c2_364, %c0_365, %c0_366] : memref<2x6x1x256xf32, #tpu.memory_space<vmem>>, vector<1x1x1x256xf32>
    %608 = vector.shape_cast %607 : vector<1x1x1x256xf32> to vector<1x256xf32>
    %cst_367 = arith.constant dense<0.000000e+00> : vector<256xf32>
    %609 = vector.multi_reduction <add>, %604, %cst_367 [0] : vector<8x256xf32> to vector<256xf32>
    %610 = vector.shape_cast %609 : vector<256xf32> to vector<1x256xf32>
    %cst_368 = arith.constant 8.000000e+00 : f32
    %611 = vector.broadcast %cst_368 : f32 to vector<1x256xf32>
    %612 = arith.divf %610, %611 : vector<1x256xf32>
    %613 = arith.mulf %604, %604 : vector<8x256xf32>
    %cst_369 = arith.constant dense<0.000000e+00> : vector<256xf32>
    %614 = vector.multi_reduction <add>, %613, %cst_369 [0] : vector<8x256xf32> to vector<256xf32>
    %615 = vector.shape_cast %614 : vector<256xf32> to vector<1x256xf32>
    %cst_370 = arith.constant 8.000000e+00 : f32
    %616 = vector.broadcast %cst_370 : f32 to vector<1x256xf32>
    %617 = arith.divf %615, %616 : vector<1x256xf32>
    %618 = arith.mulf %612, %612 : vector<1x256xf32>
    %619 = arith.subf %617, %618 : vector<1x256xf32>
    %cst_371 = arith.constant 0.000000e+00 : f32
    %620 = vector.broadcast %cst_371 : f32 to vector<1x256xf32>
    %621 = arith.maximumf %619, %620 : vector<1x256xf32>
    %622 = vector.broadcast %612 : vector<1x256xf32> to vector<8x256xf32>
    %623 = arith.subf %604, %622 : vector<8x256xf32>
    %cst_372 = arith.constant 9.99999974E-6 : f32
    %624 = vector.broadcast %cst_372 : f32 to vector<1x256xf32>
    %625 = arith.addf %621, %624 : vector<1x256xf32>
    %626 = math.rsqrt %625 : vector<1x256xf32>
    %627 = vector.broadcast %626 : vector<1x256xf32> to vector<8x256xf32>
    %628 = arith.mulf %623, %627 : vector<8x256xf32>
    %629 = vector.broadcast %606 : vector<1x256xf32> to vector<8x256xf32>
    %630 = arith.mulf %628, %629 : vector<8x256xf32>
    %631 = vector.broadcast %608 : vector<1x256xf32> to vector<8x256xf32>
    %632 = arith.addf %630, %631 : vector<8x256xf32>
    %633 = arith.truncf %632 : vector<8x256xf32> to vector<8x256xbf16>
    %c1_373 = arith.constant 1 : index
    %c2_374 = arith.constant 2 : index
    %c0_375 = arith.constant 0 : index
    %c0_376 = arith.constant 0 : index
    %634 = vector.load %arg11[%c1_373, %c2_374, %c0_375, %c0_376] : memref<2x6x256x128xbf16, #tpu.memory_space<vmem>>, vector<1x1x256x128xbf16>
    %635 = vector.shape_cast %634 : vector<1x1x256x128xbf16> to vector<256x128xbf16>
    %cst_377 = arith.constant dense<0.000000e+00> : vector<8x128xf32>
    %636 = tpu.matmul %633, %635, %cst_377 {dimension_numbers = #tpu.dot_dimension_numbers<[1], [0], [0], [1], [0, 0, 1, 1], [], []>} : vector<8x256xbf16>, vector<256x128xbf16>, vector<8x128xf32> -> vector<8x128xf32>
    %c1_378 = arith.constant 1 : index
    %c2_379 = arith.constant 2 : index
    %c0_380 = arith.constant 0 : index
    %c0_381 = arith.constant 0 : index
    %637 = vector.load %arg12[%c1_378, %c2_379, %c0_380, %c0_381] : memref<2x6x1x128xf32, #tpu.memory_space<vmem>>, vector<1x1x1x128xf32>
    %638 = vector.shape_cast %637 : vector<1x1x1x128xf32> to vector<1x128xf32>
    %639 = vector.broadcast %638 : vector<1x128xf32> to vector<8x128xf32>
    %640 = arith.addf %636, %639 : vector<8x128xf32>
    %641 = vector.broadcast %494 : vector<1x128xf32> to vector<8x128xf32>
    %642 = arith.mulf %640, %641 : vector<8x128xf32>
    %643 = arith.subf %487, %642 : vector<8x128xf32>
    %644 = vector.broadcast %494 : vector<1x128xf32> to vector<8x128xf32>
    %645 = arith.mulf %644, %643 : vector<8x128xf32>
    %cst_382 = arith.constant 0.000000e+00 : f32
    %646 = vector.broadcast %cst_382 : f32 to vector<8x128xf32>
    %647 = arith.subf %646, %590 : vector<8x128xf32>
    %648 = math.exp %647 : vector<8x128xf32>
    %649 = arith.mulf %645, %648 : vector<8x128xf32>
    %650 = arith.addf %649, %496 : vector<8x128xf32>
    %cst_383 = arith.constant dense<0.000000e+00> : vector<128xf32>
    %651 = vector.multi_reduction <add>, %590, %cst_383 [0] : vector<8x128xf32> to vector<128xf32>
    %652 = vector.shape_cast %651 : vector<128xf32> to vector<1x128xf32>
    %653 = arith.subf %490, %652 : vector<1x128xf32>
    %c1_384 = arith.constant 1 : index
    %c0_385 = arith.constant 0 : index
    %c0_386 = arith.constant 0 : index
    %654 = vector.load %arg1[%c1_384, %c0_385, %c0_386] : memref<6x1x128xf32, #tpu.memory_space<vmem>>, vector<1x1x128xf32>
    %655 = vector.shape_cast %654 : vector<1x1x128xf32> to vector<1x128xf32>
    %c1_387 = arith.constant 1 : index
    %c0_388 = arith.constant 0 : index
    %c0_389 = arith.constant 0 : index
    %656 = vector.load %arg2[%c1_387, %c0_388, %c0_389] : memref<6x1x128xf32, #tpu.memory_space<vmem>>, vector<1x1x128xf32>
    %657 = vector.shape_cast %656 : vector<1x1x128xf32> to vector<1x128xf32>
    %658 = vector.broadcast %655 : vector<1x128xf32> to vector<8x128xf32>
    %659 = arith.mulf %658, %650 : vector<8x128xf32>
    %660 = arith.truncf %659 : vector<8x128xf32> to vector<8x128xbf16>
    %c1_390 = arith.constant 1 : index
    %c0_391 = arith.constant 0 : index
    %c0_392 = arith.constant 0 : index
    %661 = vector.load %arg3[%c1_390, %c0_391, %c0_392] : memref<6x128x512xbf16, #tpu.memory_space<vmem>>, vector<1x128x512xbf16>
    %662 = vector.shape_cast %661 : vector<1x128x512xbf16> to vector<128x512xbf16>
    %cst_393 = arith.constant dense<0.000000e+00> : vector<8x512xf32>
    %663 = tpu.matmul %660, %662, %cst_393 {dimension_numbers = #tpu.dot_dimension_numbers<[1], [0], [0], [1], [0, 0, 1, 1], [], []>} : vector<8x128xbf16>, vector<128x512xbf16>, vector<8x512xf32> -> vector<8x512xf32>
    %c1_394 = arith.constant 1 : index
    %c0_395 = arith.constant 0 : index
    %c0_396 = arith.constant 0 : index
    %664 = vector.load %arg4[%c1_394, %c0_395, %c0_396] : memref<6x1x512xf32, #tpu.memory_space<vmem>>, vector<1x1x512xf32>
    %665 = vector.shape_cast %664 : vector<1x1x512xf32> to vector<1x512xf32>
    %666 = vector.broadcast %665 : vector<1x512xf32> to vector<8x512xf32>
    %667 = arith.addf %663, %666 : vector<8x512xf32>
    %cst_397 = arith.constant 0.000000e+00 : f32
    %668 = vector.broadcast %cst_397 : f32 to vector<8x512xf32>
    %669 = arith.cmpf ogt, %667, %668 : vector<8x512xf32>
    %cst_398 = arith.constant 0.00999999977 : f32
    %670 = vector.broadcast %cst_398 : f32 to vector<8x512xf32>
    %671 = arith.mulf %670, %667 : vector<8x512xf32>
    %672 = arith.select %669, %667, %671 : vector<8x512xi1>, vector<8x512xf32>
    %c1_399 = arith.constant 1 : index
    %c0_400 = arith.constant 0 : index
    %c0_401 = arith.constant 0 : index
    %673 = vector.load %arg5[%c1_399, %c0_400, %c0_401] : memref<6x1x512xf32, #tpu.memory_space<vmem>>, vector<1x1x512xf32>
    %674 = vector.shape_cast %673 : vector<1x1x512xf32> to vector<1x512xf32>
    %c1_402 = arith.constant 1 : index
    %c0_403 = arith.constant 0 : index
    %c0_404 = arith.constant 0 : index
    %675 = vector.load %arg6[%c1_402, %c0_403, %c0_404] : memref<6x1x512xf32, #tpu.memory_space<vmem>>, vector<1x1x512xf32>
    %676 = vector.shape_cast %675 : vector<1x1x512xf32> to vector<1x512xf32>
    %cst_405 = arith.constant dense<0.000000e+00> : vector<512xf32>
    %677 = vector.multi_reduction <add>, %672, %cst_405 [0] : vector<8x512xf32> to vector<512xf32>
    %678 = vector.shape_cast %677 : vector<512xf32> to vector<1x512xf32>
    %cst_406 = arith.constant 8.000000e+00 : f32
    %679 = vector.broadcast %cst_406 : f32 to vector<1x512xf32>
    %680 = arith.divf %678, %679 : vector<1x512xf32>
    %681 = arith.mulf %672, %672 : vector<8x512xf32>
    %cst_407 = arith.constant dense<0.000000e+00> : vector<512xf32>
    %682 = vector.multi_reduction <add>, %681, %cst_407 [0] : vector<8x512xf32> to vector<512xf32>
    %683 = vector.shape_cast %682 : vector<512xf32> to vector<1x512xf32>
    %cst_408 = arith.constant 8.000000e+00 : f32
    %684 = vector.broadcast %cst_408 : f32 to vector<1x512xf32>
    %685 = arith.divf %683, %684 : vector<1x512xf32>
    %686 = arith.mulf %680, %680 : vector<1x512xf32>
    %687 = arith.subf %685, %686 : vector<1x512xf32>
    %cst_409 = arith.constant 0.000000e+00 : f32
    %688 = vector.broadcast %cst_409 : f32 to vector<1x512xf32>
    %689 = arith.maximumf %687, %688 : vector<1x512xf32>
    %690 = vector.broadcast %680 : vector<1x512xf32> to vector<8x512xf32>
    %691 = arith.subf %672, %690 : vector<8x512xf32>
    %cst_410 = arith.constant 9.99999974E-6 : f32
    %692 = vector.broadcast %cst_410 : f32 to vector<1x512xf32>
    %693 = arith.addf %689, %692 : vector<1x512xf32>
    %694 = math.rsqrt %693 : vector<1x512xf32>
    %695 = vector.broadcast %694 : vector<1x512xf32> to vector<8x512xf32>
    %696 = arith.mulf %691, %695 : vector<8x512xf32>
    %697 = vector.broadcast %674 : vector<1x512xf32> to vector<8x512xf32>
    %698 = arith.mulf %696, %697 : vector<8x512xf32>
    %699 = vector.broadcast %676 : vector<1x512xf32> to vector<8x512xf32>
    %700 = arith.addf %698, %699 : vector<8x512xf32>
    %701 = vector.extract_strided_slice %700 {offsets = [0, 0], sizes = [8, 256], strides = [1, 1]} : vector<8x512xf32> to vector<8x256xf32>
    %702 = arith.truncf %701 : vector<8x256xf32> to vector<8x256xbf16>
    %c0_411 = arith.constant 0 : index
    %c1_412 = arith.constant 1 : index
    %c0_413 = arith.constant 0 : index
    %c0_414 = arith.constant 0 : index
    %703 = vector.load %arg7[%c0_411, %c1_412, %c0_413, %c0_414] : memref<2x6x256x256xbf16, #tpu.memory_space<vmem>>, vector<1x1x256x256xbf16>
    %704 = vector.shape_cast %703 : vector<1x1x256x256xbf16> to vector<256x256xbf16>
    %cst_415 = arith.constant dense<0.000000e+00> : vector<8x256xf32>
    %705 = tpu.matmul %702, %704, %cst_415 {dimension_numbers = #tpu.dot_dimension_numbers<[1], [0], [0], [1], [0, 0, 1, 1], [], []>} : vector<8x256xbf16>, vector<256x256xbf16>, vector<8x256xf32> -> vector<8x256xf32>
    %c0_416 = arith.constant 0 : index
    %c1_417 = arith.constant 1 : index
    %c0_418 = arith.constant 0 : index
    %c0_419 = arith.constant 0 : index
    %706 = vector.load %arg8[%c0_416, %c1_417, %c0_418, %c0_419] : memref<2x6x1x256xf32, #tpu.memory_space<vmem>>, vector<1x1x1x256xf32>
    %707 = vector.shape_cast %706 : vector<1x1x1x256xf32> to vector<1x256xf32>
    %708 = vector.broadcast %707 : vector<1x256xf32> to vector<8x256xf32>
    %709 = arith.addf %705, %708 : vector<8x256xf32>
    %cst_420 = arith.constant 0.000000e+00 : f32
    %710 = vector.broadcast %cst_420 : f32 to vector<8x256xf32>
    %711 = arith.cmpf ogt, %709, %710 : vector<8x256xf32>
    %cst_421 = arith.constant 0.00999999977 : f32
    %712 = vector.broadcast %cst_421 : f32 to vector<8x256xf32>
    %713 = arith.mulf %712, %709 : vector<8x256xf32>
    %714 = arith.select %711, %709, %713 : vector<8x256xi1>, vector<8x256xf32>
    %c0_422 = arith.constant 0 : index
    %c1_423 = arith.constant 1 : index
    %c0_424 = arith.constant 0 : index
    %c0_425 = arith.constant 0 : index
    %715 = vector.load %arg9[%c0_422, %c1_423, %c0_424, %c0_425] : memref<2x6x1x256xf32, #tpu.memory_space<vmem>>, vector<1x1x1x256xf32>
    %716 = vector.shape_cast %715 : vector<1x1x1x256xf32> to vector<1x256xf32>
    %c0_426 = arith.constant 0 : index
    %c1_427 = arith.constant 1 : index
    %c0_428 = arith.constant 0 : index
    %c0_429 = arith.constant 0 : index
    %717 = vector.load %arg10[%c0_426, %c1_427, %c0_428, %c0_429] : memref<2x6x1x256xf32, #tpu.memory_space<vmem>>, vector<1x1x1x256xf32>
    %718 = vector.shape_cast %717 : vector<1x1x1x256xf32> to vector<1x256xf32>
    %cst_430 = arith.constant dense<0.000000e+00> : vector<256xf32>
    %719 = vector.multi_reduction <add>, %714, %cst_430 [0] : vector<8x256xf32> to vector<256xf32>
    %720 = vector.shape_cast %719 : vector<256xf32> to vector<1x256xf32>
    %cst_431 = arith.constant 8.000000e+00 : f32
    %721 = vector.broadcast %cst_431 : f32 to vector<1x256xf32>
    %722 = arith.divf %720, %721 : vector<1x256xf32>
    %723 = arith.mulf %714, %714 : vector<8x256xf32>
    %cst_432 = arith.constant dense<0.000000e+00> : vector<256xf32>
    %724 = vector.multi_reduction <add>, %723, %cst_432 [0] : vector<8x256xf32> to vector<256xf32>
    %725 = vector.shape_cast %724 : vector<256xf32> to vector<1x256xf32>
    %cst_433 = arith.constant 8.000000e+00 : f32
    %726 = vector.broadcast %cst_433 : f32 to vector<1x256xf32>
    %727 = arith.divf %725, %726 : vector<1x256xf32>
    %728 = arith.mulf %722, %722 : vector<1x256xf32>
    %729 = arith.subf %727, %728 : vector<1x256xf32>
    %cst_434 = arith.constant 0.000000e+00 : f32
    %730 = vector.broadcast %cst_434 : f32 to vector<1x256xf32>
    %731 = arith.maximumf %729, %730 : vector<1x256xf32>
    %732 = vector.broadcast %722 : vector<1x256xf32> to vector<8x256xf32>
    %733 = arith.subf %714, %732 : vector<8x256xf32>
    %cst_435 = arith.constant 9.99999974E-6 : f32
    %734 = vector.broadcast %cst_435 : f32 to vector<1x256xf32>
    %735 = arith.addf %731, %734 : vector<1x256xf32>
    %736 = math.rsqrt %735 : vector<1x256xf32>
    %737 = vector.broadcast %736 : vector<1x256xf32> to vector<8x256xf32>
    %738 = arith.mulf %733, %737 : vector<8x256xf32>
    %739 = vector.broadcast %716 : vector<1x256xf32> to vector<8x256xf32>
    %740 = arith.mulf %738, %739 : vector<8x256xf32>
    %741 = vector.broadcast %718 : vector<1x256xf32> to vector<8x256xf32>
    %742 = arith.addf %740, %741 : vector<8x256xf32>
    %743 = arith.truncf %742 : vector<8x256xf32> to vector<8x256xbf16>
    %c0_436 = arith.constant 0 : index
    %c1_437 = arith.constant 1 : index
    %c0_438 = arith.constant 0 : index
    %c0_439 = arith.constant 0 : index
    %744 = vector.load %arg11[%c0_436, %c1_437, %c0_438, %c0_439] : memref<2x6x256x128xbf16, #tpu.memory_space<vmem>>, vector<1x1x256x128xbf16>
    %745 = vector.shape_cast %744 : vector<1x1x256x128xbf16> to vector<256x128xbf16>
    %cst_440 = arith.constant dense<0.000000e+00> : vector<8x128xf32>
    %746 = tpu.matmul %743, %745, %cst_440 {dimension_numbers = #tpu.dot_dimension_numbers<[1], [0], [0], [1], [0, 0, 1, 1], [], []>} : vector<8x256xbf16>, vector<256x128xbf16>, vector<8x128xf32> -> vector<8x128xf32>
    %c0_441 = arith.constant 0 : index
    %c1_442 = arith.constant 1 : index
    %c0_443 = arith.constant 0 : index
    %c0_444 = arith.constant 0 : index
    %747 = vector.load %arg12[%c0_441, %c1_442, %c0_443, %c0_444] : memref<2x6x1x128xf32, #tpu.memory_space<vmem>>, vector<1x1x1x128xf32>
    %748 = vector.shape_cast %747 : vector<1x1x1x128xf32> to vector<1x128xf32>
    %749 = vector.broadcast %748 : vector<1x128xf32> to vector<8x128xf32>
    %750 = arith.addf %746, %749 : vector<8x128xf32>
    %751 = math.tanh %750 : vector<8x128xf32>
    %752 = vector.broadcast %657 : vector<1x128xf32> to vector<8x128xf32>
    %753 = arith.mulf %751, %752 : vector<8x128xf32>
    %754 = vector.extract_strided_slice %700 {offsets = [0, 256], sizes = [8, 256], strides = [1, 1]} : vector<8x512xf32> to vector<8x256xf32>
    %755 = arith.truncf %754 : vector<8x256xf32> to vector<8x256xbf16>
    %c1_445 = arith.constant 1 : index
    %c1_446 = arith.constant 1 : index
    %c0_447 = arith.constant 0 : index
    %c0_448 = arith.constant 0 : index
    %756 = vector.load %arg7[%c1_445, %c1_446, %c0_447, %c0_448] : memref<2x6x256x256xbf16, #tpu.memory_space<vmem>>, vector<1x1x256x256xbf16>
    %757 = vector.shape_cast %756 : vector<1x1x256x256xbf16> to vector<256x256xbf16>
    %cst_449 = arith.constant dense<0.000000e+00> : vector<8x256xf32>
    %758 = tpu.matmul %755, %757, %cst_449 {dimension_numbers = #tpu.dot_dimension_numbers<[1], [0], [0], [1], [0, 0, 1, 1], [], []>} : vector<8x256xbf16>, vector<256x256xbf16>, vector<8x256xf32> -> vector<8x256xf32>
    %c1_450 = arith.constant 1 : index
    %c1_451 = arith.constant 1 : index
    %c0_452 = arith.constant 0 : index
    %c0_453 = arith.constant 0 : index
    %759 = vector.load %arg8[%c1_450, %c1_451, %c0_452, %c0_453] : memref<2x6x1x256xf32, #tpu.memory_space<vmem>>, vector<1x1x1x256xf32>
    %760 = vector.shape_cast %759 : vector<1x1x1x256xf32> to vector<1x256xf32>
    %761 = vector.broadcast %760 : vector<1x256xf32> to vector<8x256xf32>
    %762 = arith.addf %758, %761 : vector<8x256xf32>
    %cst_454 = arith.constant 0.000000e+00 : f32
    %763 = vector.broadcast %cst_454 : f32 to vector<8x256xf32>
    %764 = arith.cmpf ogt, %762, %763 : vector<8x256xf32>
    %cst_455 = arith.constant 0.00999999977 : f32
    %765 = vector.broadcast %cst_455 : f32 to vector<8x256xf32>
    %766 = arith.mulf %765, %762 : vector<8x256xf32>
    %767 = arith.select %764, %762, %766 : vector<8x256xi1>, vector<8x256xf32>
    %c1_456 = arith.constant 1 : index
    %c1_457 = arith.constant 1 : index
    %c0_458 = arith.constant 0 : index
    %c0_459 = arith.constant 0 : index
    %768 = vector.load %arg9[%c1_456, %c1_457, %c0_458, %c0_459] : memref<2x6x1x256xf32, #tpu.memory_space<vmem>>, vector<1x1x1x256xf32>
    %769 = vector.shape_cast %768 : vector<1x1x1x256xf32> to vector<1x256xf32>
    %c1_460 = arith.constant 1 : index
    %c1_461 = arith.constant 1 : index
    %c0_462 = arith.constant 0 : index
    %c0_463 = arith.constant 0 : index
    %770 = vector.load %arg10[%c1_460, %c1_461, %c0_462, %c0_463] : memref<2x6x1x256xf32, #tpu.memory_space<vmem>>, vector<1x1x1x256xf32>
    %771 = vector.shape_cast %770 : vector<1x1x1x256xf32> to vector<1x256xf32>
    %cst_464 = arith.constant dense<0.000000e+00> : vector<256xf32>
    %772 = vector.multi_reduction <add>, %767, %cst_464 [0] : vector<8x256xf32> to vector<256xf32>
    %773 = vector.shape_cast %772 : vector<256xf32> to vector<1x256xf32>
    %cst_465 = arith.constant 8.000000e+00 : f32
    %774 = vector.broadcast %cst_465 : f32 to vector<1x256xf32>
    %775 = arith.divf %773, %774 : vector<1x256xf32>
    %776 = arith.mulf %767, %767 : vector<8x256xf32>
    %cst_466 = arith.constant dense<0.000000e+00> : vector<256xf32>
    %777 = vector.multi_reduction <add>, %776, %cst_466 [0] : vector<8x256xf32> to vector<256xf32>
    %778 = vector.shape_cast %777 : vector<256xf32> to vector<1x256xf32>
    %cst_467 = arith.constant 8.000000e+00 : f32
    %779 = vector.broadcast %cst_467 : f32 to vector<1x256xf32>
    %780 = arith.divf %778, %779 : vector<1x256xf32>
    %781 = arith.mulf %775, %775 : vector<1x256xf32>
    %782 = arith.subf %780, %781 : vector<1x256xf32>
    %cst_468 = arith.constant 0.000000e+00 : f32
    %783 = vector.broadcast %cst_468 : f32 to vector<1x256xf32>
    %784 = arith.maximumf %782, %783 : vector<1x256xf32>
    %785 = vector.broadcast %775 : vector<1x256xf32> to vector<8x256xf32>
    %786 = arith.subf %767, %785 : vector<8x256xf32>
    %cst_469 = arith.constant 9.99999974E-6 : f32
    %787 = vector.broadcast %cst_469 : f32 to vector<1x256xf32>
    %788 = arith.addf %784, %787 : vector<1x256xf32>
    %789 = math.rsqrt %788 : vector<1x256xf32>
    %790 = vector.broadcast %789 : vector<1x256xf32> to vector<8x256xf32>
    %791 = arith.mulf %786, %790 : vector<8x256xf32>
    %792 = vector.broadcast %769 : vector<1x256xf32> to vector<8x256xf32>
    %793 = arith.mulf %791, %792 : vector<8x256xf32>
    %794 = vector.broadcast %771 : vector<1x256xf32> to vector<8x256xf32>
    %795 = arith.addf %793, %794 : vector<8x256xf32>
    %796 = arith.truncf %795 : vector<8x256xf32> to vector<8x256xbf16>
    %c1_470 = arith.constant 1 : index
    %c1_471 = arith.constant 1 : index
    %c0_472 = arith.constant 0 : index
    %c0_473 = arith.constant 0 : index
    %797 = vector.load %arg11[%c1_470, %c1_471, %c0_472, %c0_473] : memref<2x6x256x128xbf16, #tpu.memory_space<vmem>>, vector<1x1x256x128xbf16>
    %798 = vector.shape_cast %797 : vector<1x1x256x128xbf16> to vector<256x128xbf16>
    %cst_474 = arith.constant dense<0.000000e+00> : vector<8x128xf32>
    %799 = tpu.matmul %796, %798, %cst_474 {dimension_numbers = #tpu.dot_dimension_numbers<[1], [0], [0], [1], [0, 0, 1, 1], [], []>} : vector<8x256xbf16>, vector<256x128xbf16>, vector<8x128xf32> -> vector<8x128xf32>
    %c1_475 = arith.constant 1 : index
    %c1_476 = arith.constant 1 : index
    %c0_477 = arith.constant 0 : index
    %c0_478 = arith.constant 0 : index
    %800 = vector.load %arg12[%c1_475, %c1_476, %c0_477, %c0_478] : memref<2x6x1x128xf32, #tpu.memory_space<vmem>>, vector<1x1x1x128xf32>
    %801 = vector.shape_cast %800 : vector<1x1x1x128xf32> to vector<1x128xf32>
    %802 = vector.broadcast %801 : vector<1x128xf32> to vector<8x128xf32>
    %803 = arith.addf %799, %802 : vector<8x128xf32>
    %804 = vector.broadcast %657 : vector<1x128xf32> to vector<8x128xf32>
    %805 = arith.mulf %803, %804 : vector<8x128xf32>
    %806 = arith.subf %650, %805 : vector<8x128xf32>
    %807 = vector.broadcast %657 : vector<1x128xf32> to vector<8x128xf32>
    %808 = arith.mulf %807, %806 : vector<8x128xf32>
    %cst_479 = arith.constant 0.000000e+00 : f32
    %809 = vector.broadcast %cst_479 : f32 to vector<8x128xf32>
    %810 = arith.subf %809, %753 : vector<8x128xf32>
    %811 = math.exp %810 : vector<8x128xf32>
    %812 = arith.mulf %808, %811 : vector<8x128xf32>
    %813 = arith.addf %812, %659 : vector<8x128xf32>
    %cst_480 = arith.constant dense<0.000000e+00> : vector<128xf32>
    %814 = vector.multi_reduction <add>, %753, %cst_480 [0] : vector<8x128xf32> to vector<128xf32>
    %815 = vector.shape_cast %814 : vector<128xf32> to vector<1x128xf32>
    %816 = arith.subf %653, %815 : vector<1x128xf32>
    %c0_481 = arith.constant 0 : index
    %c0_482 = arith.constant 0 : index
    %c0_483 = arith.constant 0 : index
    %817 = vector.load %arg1[%c0_481, %c0_482, %c0_483] : memref<6x1x128xf32, #tpu.memory_space<vmem>>, vector<1x1x128xf32>
    %818 = vector.shape_cast %817 : vector<1x1x128xf32> to vector<1x128xf32>
    %c0_484 = arith.constant 0 : index
    %c0_485 = arith.constant 0 : index
    %c0_486 = arith.constant 0 : index
    %819 = vector.load %arg2[%c0_484, %c0_485, %c0_486] : memref<6x1x128xf32, #tpu.memory_space<vmem>>, vector<1x1x128xf32>
    %820 = vector.shape_cast %819 : vector<1x1x128xf32> to vector<1x128xf32>
    %821 = vector.broadcast %818 : vector<1x128xf32> to vector<8x128xf32>
    %822 = arith.mulf %821, %813 : vector<8x128xf32>
    %823 = arith.truncf %822 : vector<8x128xf32> to vector<8x128xbf16>
    %c0_487 = arith.constant 0 : index
    %c0_488 = arith.constant 0 : index
    %c0_489 = arith.constant 0 : index
    %824 = vector.load %arg3[%c0_487, %c0_488, %c0_489] : memref<6x128x512xbf16, #tpu.memory_space<vmem>>, vector<1x128x512xbf16>
    %825 = vector.shape_cast %824 : vector<1x128x512xbf16> to vector<128x512xbf16>
    %cst_490 = arith.constant dense<0.000000e+00> : vector<8x512xf32>
    %826 = tpu.matmul %823, %825, %cst_490 {dimension_numbers = #tpu.dot_dimension_numbers<[1], [0], [0], [1], [0, 0, 1, 1], [], []>} : vector<8x128xbf16>, vector<128x512xbf16>, vector<8x512xf32> -> vector<8x512xf32>
    %c0_491 = arith.constant 0 : index
    %c0_492 = arith.constant 0 : index
    %c0_493 = arith.constant 0 : index
    %827 = vector.load %arg4[%c0_491, %c0_492, %c0_493] : memref<6x1x512xf32, #tpu.memory_space<vmem>>, vector<1x1x512xf32>
    %828 = vector.shape_cast %827 : vector<1x1x512xf32> to vector<1x512xf32>
    %829 = vector.broadcast %828 : vector<1x512xf32> to vector<8x512xf32>
    %830 = arith.addf %826, %829 : vector<8x512xf32>
    %cst_494 = arith.constant 0.000000e+00 : f32
    %831 = vector.broadcast %cst_494 : f32 to vector<8x512xf32>
    %832 = arith.cmpf ogt, %830, %831 : vector<8x512xf32>
    %cst_495 = arith.constant 0.00999999977 : f32
    %833 = vector.broadcast %cst_495 : f32 to vector<8x512xf32>
    %834 = arith.mulf %833, %830 : vector<8x512xf32>
    %835 = arith.select %832, %830, %834 : vector<8x512xi1>, vector<8x512xf32>
    %c0_496 = arith.constant 0 : index
    %c0_497 = arith.constant 0 : index
    %c0_498 = arith.constant 0 : index
    %836 = vector.load %arg5[%c0_496, %c0_497, %c0_498] : memref<6x1x512xf32, #tpu.memory_space<vmem>>, vector<1x1x512xf32>
    %837 = vector.shape_cast %836 : vector<1x1x512xf32> to vector<1x512xf32>
    %c0_499 = arith.constant 0 : index
    %c0_500 = arith.constant 0 : index
    %c0_501 = arith.constant 0 : index
    %838 = vector.load %arg6[%c0_499, %c0_500, %c0_501] : memref<6x1x512xf32, #tpu.memory_space<vmem>>, vector<1x1x512xf32>
    %839 = vector.shape_cast %838 : vector<1x1x512xf32> to vector<1x512xf32>
    %cst_502 = arith.constant dense<0.000000e+00> : vector<512xf32>
    %840 = vector.multi_reduction <add>, %835, %cst_502 [0] : vector<8x512xf32> to vector<512xf32>
    %841 = vector.shape_cast %840 : vector<512xf32> to vector<1x512xf32>
    %cst_503 = arith.constant 8.000000e+00 : f32
    %842 = vector.broadcast %cst_503 : f32 to vector<1x512xf32>
    %843 = arith.divf %841, %842 : vector<1x512xf32>
    %844 = arith.mulf %835, %835 : vector<8x512xf32>
    %cst_504 = arith.constant dense<0.000000e+00> : vector<512xf32>
    %845 = vector.multi_reduction <add>, %844, %cst_504 [0] : vector<8x512xf32> to vector<512xf32>
    %846 = vector.shape_cast %845 : vector<512xf32> to vector<1x512xf32>
    %cst_505 = arith.constant 8.000000e+00 : f32
    %847 = vector.broadcast %cst_505 : f32 to vector<1x512xf32>
    %848 = arith.divf %846, %847 : vector<1x512xf32>
    %849 = arith.mulf %843, %843 : vector<1x512xf32>
    %850 = arith.subf %848, %849 : vector<1x512xf32>
    %cst_506 = arith.constant 0.000000e+00 : f32
    %851 = vector.broadcast %cst_506 : f32 to vector<1x512xf32>
    %852 = arith.maximumf %850, %851 : vector<1x512xf32>
    %853 = vector.broadcast %843 : vector<1x512xf32> to vector<8x512xf32>
    %854 = arith.subf %835, %853 : vector<8x512xf32>
    %cst_507 = arith.constant 9.99999974E-6 : f32
    %855 = vector.broadcast %cst_507 : f32 to vector<1x512xf32>
    %856 = arith.addf %852, %855 : vector<1x512xf32>
    %857 = math.rsqrt %856 : vector<1x512xf32>
    %858 = vector.broadcast %857 : vector<1x512xf32> to vector<8x512xf32>
    %859 = arith.mulf %854, %858 : vector<8x512xf32>
    %860 = vector.broadcast %837 : vector<1x512xf32> to vector<8x512xf32>
    %861 = arith.mulf %859, %860 : vector<8x512xf32>
    %862 = vector.broadcast %839 : vector<1x512xf32> to vector<8x512xf32>
    %863 = arith.addf %861, %862 : vector<8x512xf32>
    %864 = vector.extract_strided_slice %863 {offsets = [0, 0], sizes = [8, 256], strides = [1, 1]} : vector<8x512xf32> to vector<8x256xf32>
    %865 = arith.truncf %864 : vector<8x256xf32> to vector<8x256xbf16>
    %c0_508 = arith.constant 0 : index
    %c0_509 = arith.constant 0 : index
    %c0_510 = arith.constant 0 : index
    %c0_511 = arith.constant 0 : index
    %866 = vector.load %arg7[%c0_508, %c0_509, %c0_510, %c0_511] : memref<2x6x256x256xbf16, #tpu.memory_space<vmem>>, vector<1x1x256x256xbf16>
    %867 = vector.shape_cast %866 : vector<1x1x256x256xbf16> to vector<256x256xbf16>
    %cst_512 = arith.constant dense<0.000000e+00> : vector<8x256xf32>
    %868 = tpu.matmul %865, %867, %cst_512 {dimension_numbers = #tpu.dot_dimension_numbers<[1], [0], [0], [1], [0, 0, 1, 1], [], []>} : vector<8x256xbf16>, vector<256x256xbf16>, vector<8x256xf32> -> vector<8x256xf32>
    %c0_513 = arith.constant 0 : index
    %c0_514 = arith.constant 0 : index
    %c0_515 = arith.constant 0 : index
    %c0_516 = arith.constant 0 : index
    %869 = vector.load %arg8[%c0_513, %c0_514, %c0_515, %c0_516] : memref<2x6x1x256xf32, #tpu.memory_space<vmem>>, vector<1x1x1x256xf32>
    %870 = vector.shape_cast %869 : vector<1x1x1x256xf32> to vector<1x256xf32>
    %871 = vector.broadcast %870 : vector<1x256xf32> to vector<8x256xf32>
    %872 = arith.addf %868, %871 : vector<8x256xf32>
    %cst_517 = arith.constant 0.000000e+00 : f32
    %873 = vector.broadcast %cst_517 : f32 to vector<8x256xf32>
    %874 = arith.cmpf ogt, %872, %873 : vector<8x256xf32>
    %cst_518 = arith.constant 0.00999999977 : f32
    %875 = vector.broadcast %cst_518 : f32 to vector<8x256xf32>
    %876 = arith.mulf %875, %872 : vector<8x256xf32>
    %877 = arith.select %874, %872, %876 : vector<8x256xi1>, vector<8x256xf32>
    %c0_519 = arith.constant 0 : index
    %c0_520 = arith.constant 0 : index
    %c0_521 = arith.constant 0 : index
    %c0_522 = arith.constant 0 : index
    %878 = vector.load %arg9[%c0_519, %c0_520, %c0_521, %c0_522] : memref<2x6x1x256xf32, #tpu.memory_space<vmem>>, vector<1x1x1x256xf32>
    %879 = vector.shape_cast %878 : vector<1x1x1x256xf32> to vector<1x256xf32>
    %c0_523 = arith.constant 0 : index
    %c0_524 = arith.constant 0 : index
    %c0_525 = arith.constant 0 : index
    %c0_526 = arith.constant 0 : index
    %880 = vector.load %arg10[%c0_523, %c0_524, %c0_525, %c0_526] : memref<2x6x1x256xf32, #tpu.memory_space<vmem>>, vector<1x1x1x256xf32>
    %881 = vector.shape_cast %880 : vector<1x1x1x256xf32> to vector<1x256xf32>
    %cst_527 = arith.constant dense<0.000000e+00> : vector<256xf32>
    %882 = vector.multi_reduction <add>, %877, %cst_527 [0] : vector<8x256xf32> to vector<256xf32>
    %883 = vector.shape_cast %882 : vector<256xf32> to vector<1x256xf32>
    %cst_528 = arith.constant 8.000000e+00 : f32
    %884 = vector.broadcast %cst_528 : f32 to vector<1x256xf32>
    %885 = arith.divf %883, %884 : vector<1x256xf32>
    %886 = arith.mulf %877, %877 : vector<8x256xf32>
    %cst_529 = arith.constant dense<0.000000e+00> : vector<256xf32>
    %887 = vector.multi_reduction <add>, %886, %cst_529 [0] : vector<8x256xf32> to vector<256xf32>
    %888 = vector.shape_cast %887 : vector<256xf32> to vector<1x256xf32>
    %cst_530 = arith.constant 8.000000e+00 : f32
    %889 = vector.broadcast %cst_530 : f32 to vector<1x256xf32>
    %890 = arith.divf %888, %889 : vector<1x256xf32>
    %891 = arith.mulf %885, %885 : vector<1x256xf32>
    %892 = arith.subf %890, %891 : vector<1x256xf32>
    %cst_531 = arith.constant 0.000000e+00 : f32
    %893 = vector.broadcast %cst_531 : f32 to vector<1x256xf32>
    %894 = arith.maximumf %892, %893 : vector<1x256xf32>
    %895 = vector.broadcast %885 : vector<1x256xf32> to vector<8x256xf32>
    %896 = arith.subf %877, %895 : vector<8x256xf32>
    %cst_532 = arith.constant 9.99999974E-6 : f32
    %897 = vector.broadcast %cst_532 : f32 to vector<1x256xf32>
    %898 = arith.addf %894, %897 : vector<1x256xf32>
    %899 = math.rsqrt %898 : vector<1x256xf32>
    %900 = vector.broadcast %899 : vector<1x256xf32> to vector<8x256xf32>
    %901 = arith.mulf %896, %900 : vector<8x256xf32>
    %902 = vector.broadcast %879 : vector<1x256xf32> to vector<8x256xf32>
    %903 = arith.mulf %901, %902 : vector<8x256xf32>
    %904 = vector.broadcast %881 : vector<1x256xf32> to vector<8x256xf32>
    %905 = arith.addf %903, %904 : vector<8x256xf32>
    %906 = arith.truncf %905 : vector<8x256xf32> to vector<8x256xbf16>
    %c0_533 = arith.constant 0 : index
    %c0_534 = arith.constant 0 : index
    %c0_535 = arith.constant 0 : index
    %c0_536 = arith.constant 0 : index
    %907 = vector.load %arg11[%c0_533, %c0_534, %c0_535, %c0_536] : memref<2x6x256x128xbf16, #tpu.memory_space<vmem>>, vector<1x1x256x128xbf16>
    %908 = vector.shape_cast %907 : vector<1x1x256x128xbf16> to vector<256x128xbf16>
    %cst_537 = arith.constant dense<0.000000e+00> : vector<8x128xf32>
    %909 = tpu.matmul %906, %908, %cst_537 {dimension_numbers = #tpu.dot_dimension_numbers<[1], [0], [0], [1], [0, 0, 1, 1], [], []>} : vector<8x256xbf16>, vector<256x128xbf16>, vector<8x128xf32> -> vector<8x128xf32>
    %c0_538 = arith.constant 0 : index
    %c0_539 = arith.constant 0 : index
    %c0_540 = arith.constant 0 : index
    %c0_541 = arith.constant 0 : index
    %910 = vector.load %arg12[%c0_538, %c0_539, %c0_540, %c0_541] : memref<2x6x1x128xf32, #tpu.memory_space<vmem>>, vector<1x1x1x128xf32>
    %911 = vector.shape_cast %910 : vector<1x1x1x128xf32> to vector<1x128xf32>
    %912 = vector.broadcast %911 : vector<1x128xf32> to vector<8x128xf32>
    %913 = arith.addf %909, %912 : vector<8x128xf32>
    %914 = math.tanh %913 : vector<8x128xf32>
    %915 = vector.broadcast %820 : vector<1x128xf32> to vector<8x128xf32>
    %916 = arith.mulf %914, %915 : vector<8x128xf32>
    %917 = vector.extract_strided_slice %863 {offsets = [0, 256], sizes = [8, 256], strides = [1, 1]} : vector<8x512xf32> to vector<8x256xf32>
    %918 = arith.truncf %917 : vector<8x256xf32> to vector<8x256xbf16>
    %c1_542 = arith.constant 1 : index
    %c0_543 = arith.constant 0 : index
    %c0_544 = arith.constant 0 : index
    %c0_545 = arith.constant 0 : index
    %919 = vector.load %arg7[%c1_542, %c0_543, %c0_544, %c0_545] : memref<2x6x256x256xbf16, #tpu.memory_space<vmem>>, vector<1x1x256x256xbf16>
    %920 = vector.shape_cast %919 : vector<1x1x256x256xbf16> to vector<256x256xbf16>
    %cst_546 = arith.constant dense<0.000000e+00> : vector<8x256xf32>
    %921 = tpu.matmul %918, %920, %cst_546 {dimension_numbers = #tpu.dot_dimension_numbers<[1], [0], [0], [1], [0, 0, 1, 1], [], []>} : vector<8x256xbf16>, vector<256x256xbf16>, vector<8x256xf32> -> vector<8x256xf32>
    %c1_547 = arith.constant 1 : index
    %c0_548 = arith.constant 0 : index
    %c0_549 = arith.constant 0 : index
    %c0_550 = arith.constant 0 : index
    %922 = vector.load %arg8[%c1_547, %c0_548, %c0_549, %c0_550] : memref<2x6x1x256xf32, #tpu.memory_space<vmem>>, vector<1x1x1x256xf32>
    %923 = vector.shape_cast %922 : vector<1x1x1x256xf32> to vector<1x256xf32>
    %924 = vector.broadcast %923 : vector<1x256xf32> to vector<8x256xf32>
    %925 = arith.addf %921, %924 : vector<8x256xf32>
    %cst_551 = arith.constant 0.000000e+00 : f32
    %926 = vector.broadcast %cst_551 : f32 to vector<8x256xf32>
    %927 = arith.cmpf ogt, %925, %926 : vector<8x256xf32>
    %cst_552 = arith.constant 0.00999999977 : f32
    %928 = vector.broadcast %cst_552 : f32 to vector<8x256xf32>
    %929 = arith.mulf %928, %925 : vector<8x256xf32>
    %930 = arith.select %927, %925, %929 : vector<8x256xi1>, vector<8x256xf32>
    %c1_553 = arith.constant 1 : index
    %c0_554 = arith.constant 0 : index
    %c0_555 = arith.constant 0 : index
    %c0_556 = arith.constant 0 : index
    %931 = vector.load %arg9[%c1_553, %c0_554, %c0_555, %c0_556] : memref<2x6x1x256xf32, #tpu.memory_space<vmem>>, vector<1x1x1x256xf32>
    %932 = vector.shape_cast %931 : vector<1x1x1x256xf32> to vector<1x256xf32>
    %c1_557 = arith.constant 1 : index
    %c0_558 = arith.constant 0 : index
    %c0_559 = arith.constant 0 : index
    %c0_560 = arith.constant 0 : index
    %933 = vector.load %arg10[%c1_557, %c0_558, %c0_559, %c0_560] : memref<2x6x1x256xf32, #tpu.memory_space<vmem>>, vector<1x1x1x256xf32>
    %934 = vector.shape_cast %933 : vector<1x1x1x256xf32> to vector<1x256xf32>
    %cst_561 = arith.constant dense<0.000000e+00> : vector<256xf32>
    %935 = vector.multi_reduction <add>, %930, %cst_561 [0] : vector<8x256xf32> to vector<256xf32>
    %936 = vector.shape_cast %935 : vector<256xf32> to vector<1x256xf32>
    %cst_562 = arith.constant 8.000000e+00 : f32
    %937 = vector.broadcast %cst_562 : f32 to vector<1x256xf32>
    %938 = arith.divf %936, %937 : vector<1x256xf32>
    %939 = arith.mulf %930, %930 : vector<8x256xf32>
    %cst_563 = arith.constant dense<0.000000e+00> : vector<256xf32>
    %940 = vector.multi_reduction <add>, %939, %cst_563 [0] : vector<8x256xf32> to vector<256xf32>
    %941 = vector.shape_cast %940 : vector<256xf32> to vector<1x256xf32>
    %cst_564 = arith.constant 8.000000e+00 : f32
    %942 = vector.broadcast %cst_564 : f32 to vector<1x256xf32>
    %943 = arith.divf %941, %942 : vector<1x256xf32>
    %944 = arith.mulf %938, %938 : vector<1x256xf32>
    %945 = arith.subf %943, %944 : vector<1x256xf32>
    %cst_565 = arith.constant 0.000000e+00 : f32
    %946 = vector.broadcast %cst_565 : f32 to vector<1x256xf32>
    %947 = arith.maximumf %945, %946 : vector<1x256xf32>
    %948 = vector.broadcast %938 : vector<1x256xf32> to vector<8x256xf32>
    %949 = arith.subf %930, %948 : vector<8x256xf32>
    %cst_566 = arith.constant 9.99999974E-6 : f32
    %950 = vector.broadcast %cst_566 : f32 to vector<1x256xf32>
    %951 = arith.addf %947, %950 : vector<1x256xf32>
    %952 = math.rsqrt %951 : vector<1x256xf32>
    %953 = vector.broadcast %952 : vector<1x256xf32> to vector<8x256xf32>
    %954 = arith.mulf %949, %953 : vector<8x256xf32>
    %955 = vector.broadcast %932 : vector<1x256xf32> to vector<8x256xf32>
    %956 = arith.mulf %954, %955 : vector<8x256xf32>
    %957 = vector.broadcast %934 : vector<1x256xf32> to vector<8x256xf32>
    %958 = arith.addf %956, %957 : vector<8x256xf32>
    %959 = arith.truncf %958 : vector<8x256xf32> to vector<8x256xbf16>
    %c1_567 = arith.constant 1 : index
    %c0_568 = arith.constant 0 : index
    %c0_569 = arith.constant 0 : index
    %c0_570 = arith.constant 0 : index
    %960 = vector.load %arg11[%c1_567, %c0_568, %c0_569, %c0_570] : memref<2x6x256x128xbf16, #tpu.memory_space<vmem>>, vector<1x1x256x128xbf16>
    %961 = vector.shape_cast %960 : vector<1x1x256x128xbf16> to vector<256x128xbf16>
    %cst_571 = arith.constant dense<0.000000e+00> : vector<8x128xf32>
    %962 = tpu.matmul %959, %961, %cst_571 {dimension_numbers = #tpu.dot_dimension_numbers<[1], [0], [0], [1], [0, 0, 1, 1], [], []>} : vector<8x256xbf16>, vector<256x128xbf16>, vector<8x128xf32> -> vector<8x128xf32>
    %c1_572 = arith.constant 1 : index
    %c0_573 = arith.constant 0 : index
    %c0_574 = arith.constant 0 : index
    %c0_575 = arith.constant 0 : index
    %963 = vector.load %arg12[%c1_572, %c0_573, %c0_574, %c0_575] : memref<2x6x1x128xf32, #tpu.memory_space<vmem>>, vector<1x1x1x128xf32>
    %964 = vector.shape_cast %963 : vector<1x1x1x128xf32> to vector<1x128xf32>
    %965 = vector.broadcast %964 : vector<1x128xf32> to vector<8x128xf32>
    %966 = arith.addf %962, %965 : vector<8x128xf32>
    %967 = vector.broadcast %820 : vector<1x128xf32> to vector<8x128xf32>
    %968 = arith.mulf %966, %967 : vector<8x128xf32>
    %969 = arith.subf %813, %968 : vector<8x128xf32>
    %970 = vector.broadcast %820 : vector<1x128xf32> to vector<8x128xf32>
    %971 = arith.mulf %970, %969 : vector<8x128xf32>
    %cst_576 = arith.constant 0.000000e+00 : f32
    %972 = vector.broadcast %cst_576 : f32 to vector<8x128xf32>
    %973 = arith.subf %972, %916 : vector<8x128xf32>
    %974 = math.exp %973 : vector<8x128xf32>
    %975 = arith.mulf %971, %974 : vector<8x128xf32>
    %976 = arith.addf %975, %822 : vector<8x128xf32>
    %cst_577 = arith.constant dense<0.000000e+00> : vector<128xf32>
    %977 = vector.multi_reduction <add>, %916, %cst_577 [0] : vector<8x128xf32> to vector<128xf32>
    %978 = vector.shape_cast %977 : vector<128xf32> to vector<1x128xf32>
    %979 = arith.subf %816, %978 : vector<1x128xf32>
    %980 = arith.truncf %976 : vector<8x128xf32> to vector<8x128xbf16>
    %c0_578 = arith.constant 0 : index
    %c0_579 = arith.constant 0 : index
    %981 = vector.load %arg13[%c0_578, %c0_579] : memref<128x128xbf16, #tpu.memory_space<vmem>>, vector<128x128xbf16>
    %cst_580 = arith.constant dense<0.000000e+00> : vector<8x128xf32>
    %982 = tpu.matmul %980, %981, %cst_580 {dimension_numbers = #tpu.dot_dimension_numbers<[1], [0], [0], [1], [0, 0, 1, 1], [], []>} : vector<8x128xbf16>, vector<128x128xbf16>, vector<8x128xf32> -> vector<8x128xf32>
    %c0_581 = arith.constant 0 : index
    %c0_582 = arith.constant 0 : index
    %983 = vector.load %arg14[%c0_581, %c0_582] : memref<1x128xf32, #tpu.memory_space<vmem>>, vector<1x128xf32>
    %984 = vector.broadcast %983 : vector<1x128xf32> to vector<8x128xf32>
    %985 = arith.addf %982, %984 : vector<8x128xf32>
    %c0_583 = arith.constant 0 : index
    %c0_584 = arith.constant 0 : index
    %986 = vector.load %arg15[%c0_583, %c0_584] : memref<8x128xf32, #tpu.memory_space<vmem>>, vector<8x128xf32>
    tpu.vector_store %arg15[%c0_583, %c0_584], %985 {strides = array<i32>} : memref<8x128xf32, #tpu.memory_space<vmem>>, vector<8x128xf32>,
    %c0_585 = arith.constant 0 : index
    %c0_586 = arith.constant 0 : index
    %987 = vector.load %arg16[%c0_585, %c0_586] : memref<1x128xf32, #tpu.memory_space<vmem>>, vector<1x128xf32>
    tpu.vector_store %arg16[%c0_585, %c0_586], %979 {strides = array<i32>} : memref<1x128xf32, #tpu.memory_space<vmem>>, vector<1x128xf32>,
    return
  }
}

</mosaic_0001>

<bundles_post_ra>
// kernel: tpu_custom_call.1
= control target key start
LH: loop header
LB: loop body
LE: loop exit
PB: predicated region body
PF: predicated region fallthrough
CT: control target
= control target key end

     0   :  { %s13009_s0 = inlined_call_operand.hbm [shape: f32[8,128], index: 0, kind: input, shape index: {}]   ;;  %s13010_s1 = inlined_call_operand.hbm [shape: f32[6,1,128], index: 1, kind: input, shape index: {}]   ;;  %s13011_s2 = inlined_call_operand.hbm [shape: f32[6,1,128], index: 2, kind: input, shape index: {}]   ;;  %s13012_s3 = inlined_call_operand.hbm [shape: bf16[6,128,512], index: 3, kind: input, shape index: {}]   ;;  %s13013_s4 = inlined_call_operand.hbm [shape: f32[6,1,512], index: 4, kind: input, shape index: {}]   ;;  %s13014_s5 = inlined_call_operand.hbm [shape: f32[6,1,512], index: 5, kind: input, shape index: {}]   ;;  %s13015_s6 = inlined_call_operand.hbm [shape: f32[6,1,512], index: 6, kind: input, shape index: {}]   ;;  %s13016_s7 = inlined_call_operand.hbm [shape: bf16[2,6,256,256], index: 7, kind: input, shape index: {}]   ;;  %s13017_s8 = inlined_call_operand.hbm [shape: f32[2,6,1,256], index: 8, kind: input, shape index: {}]   ;;  %s13018_s9 = inlined_call_operand.hbm [shape: f32[2,6,1,256], index: 9, kind: input, shape index: {}]   ;;  %s13019_s10 = inlined_call_operand.hbm [shape: f32[2,6,1,256], index: 10, kind: input, shape index: {}]   ;;  %s13020_s11 = inlined_call_operand.hbm [shape: bf16[2,6,256,128], index: 11, kind: input, shape index: {}]   ;;  %s13021_s12 = inlined_call_operand.hbm [shape: f32[2,6,1,128], index: 12, kind: input, shape index: {}]   ;;  %s13022_s13 = inlined_call_operand.hbm [shape: bf16[128,128], index: 13, kind: input, shape index: {}]   ;;  %s13023_s14 = inlined_call_operand.hbm [shape: f32[1,128], index: 14, kind: input, shape index: {}]   ;;  %s13024_s15 = inlined_call_operand.hbm [shape: f32[8,128], index: 15, kind: output, shape index: {0}]   ;;  %s13025_s16 = inlined_call_operand.hbm [shape: f32[1,128], index: 16, kind: output, shape index: {1}]  }
   0x1   :  { %13031 = sst [smem:[#allocation39_spill]] %s13009_s0 }
   0x2   :  { %22 = vsyncpa [#allocation3], 0 }
   0x3   :  { %23 = vsyncpa [#allocation6], 0 }
   0x4   :  { %24 = vsyncpa [#allocation9], 0 }
   0x5   :  { %25 = vsyncpa [#allocation12], 0 }
   0x6   :  { %26 = vsyncpa [#allocation15], 0 }
   0x7   :  { %27 = vsyncpa [#allocation18], 0 }
   0x8   :  { %28 = vsyncpa [#allocation21], 0 }
   0x9   :  { %29 = vsyncpa [#allocation24], 0 }
   0xa   :  { %30 = vsyncpa [#allocation4], 0 }
   0xb   :  { %31 = vsyncpa [#allocation28], 0  ;;  %s12115_s21 = smov [#allocation5]   ;;  %s11721_s25 = scalar_lea.hbm %s13010_s1, 96 }
   0xc   :  { %s47_s22 = sshll.u32 %s12115_s21, 4  ;;  %p11722_p0 = scmp.ne.s32.totalorder %s13010_s1, %s11721_s25  ;;  %s48_s22 = int_to_ptr.vmem [resolvable:$true] %s47_s22 }
   0xd   :  { %p11725_p1 = scmp.lt.u32.totalorder %s11721_s25, %s13010_s1 }
   0xf   :  { %p11727_p2 = pnand %p11725_p1, %p11722_p0 }
  0x11   :  { %11730 = shalt.err (!%p11727_p2)
}
  0x12   :  { %s11731_s30 = scalar_lea.vmem %s48_s22, 96  ;;  %p11736_p4 = scmp.lt.s32.totalorder %s48_s22, %s48_s22 }
  0x13   :  { %p11732_p3 = scmp.ne.s32.totalorder %s48_s22, %s11731_s30  ;;  %p11737_p5 = scmp.lt.s32.totalorder %s11731_s30, %s11731_s30 }
  0x15   :  { %p11738_p6 = por %p11737_p5, %p11736_p4 }
  0x17   :  { %p11739_p7 = pnand %p11738_p6, %p11732_p3 }
  0x19   :  { %11742 = shalt.err (!%p11739_p7)
}
  0x1a   :  { %s13029_s0 = smov 16   ;;  %s13027_s17 = smov 1  }
  0x1b   :  { %53 = dma.hbm_to_vmem [thread:$0]  %s13010_s1, 96, %s48_s22, [#allocation6], %s13029_s0, %s13029_s0, %s13027_s17  }
  0x1c   :  { %s12118_s20 = smov [#allocation8]   ;;  %s11743_s25 = scalar_lea.hbm %s13012_s3, 24576 }
  0x1d   :  { %s71_s21 = sshll.u32 %s12118_s20, 4  ;;  %p11744_p8 = scmp.ne.s32.totalorder %s13012_s3, %s11743_s25  ;;  %s72_s21 = int_to_ptr.vmem [resolvable:$true] %s71_s21 }
  0x1e   :  { %p11747_p9 = scmp.lt.u32.totalorder %s11743_s25, %s13012_s3 }
  0x20   :  { %p11749_p10 = pnand %p11747_p9, %p11744_p8 }
  0x22   :  { %11752 = shalt.err (!%p11749_p10)
}
  0x23   :  { %s11753_s30 = scalar_lea.vmem %s72_s21, 24576  ;;  %p11758_p12 = scmp.lt.s32.totalorder %s72_s21, %s72_s21 }
  0x24   :  { %p11754_p11 = scmp.ne.s32.totalorder %s72_s21, %s11753_s30  ;;  %p11759_p13 = scmp.lt.s32.totalorder %s11753_s30, %s11753_s30 }
  0x26   :  { %p11760_p0 = por %p11759_p13, %p11758_p12 }
  0x28   :  { %p11761_p1 = pnand %p11760_p0, %p11754_p11 }
  0x2a   :  { %11764 = shalt.err (!%p11761_p1)
}
  0x2b   :  { %s12119_s1 = smov 256   ;;  %s12120_s19 = smov [#allocation11]  }
  0x2c   :  { %77 = dma.hbm_to_vmem [thread:$0]  %s13012_s3, 24576, %s72_s21, [#allocation9], %s12119_s1, %s12119_s1, %s13029_s0  }
  0x2d   :  { %s95_s20 = sshll.u32 %s12120_s19, 4  ;;  %s12121_s23 = smov [#allocation14]   ;;  %s96_s20 = int_to_ptr.vmem [resolvable:$true] %s95_s20 }
  0x2e   :  { %s119_s24 = sshll.u32 %s12121_s23, 4  ;;  %s11765_s27 = scalar_lea.hbm %s13014_s5, 384  ;;  %s120_s24 = int_to_ptr.vmem [resolvable:$true] %s119_s24 }
  0x2f   :  { %p11766_p2 = scmp.ne.s32.totalorder %s13014_s5, %s11765_s27  ;;  %p11769_p3 = scmp.lt.u32.totalorder %s11765_s27, %s13014_s5 }
  0x31   :  { %p11771_p4 = pnand %p11769_p3, %p11766_p2 }
  0x33   :  { %11774 = shalt.err (!%p11771_p4)
}
  0x34   :  { %s11775_s3 = scalar_lea.vmem %s96_s20, 384  ;;  %p11780_p6 = scmp.lt.s32.totalorder %s96_s20, %s96_s20 }
  0x35   :  { %p11776_p5 = scmp.ne.s32.totalorder %s96_s20, %s11775_s3  ;;  %p11781_p7 = scmp.lt.s32.totalorder %s11775_s3, %s11775_s3 }
  0x37   :  { %p11782_p8 = por %p11781_p7, %p11780_p6 }
  0x39   :  { %p11783_p9 = pnand %p11782_p8, %p11776_p5 }
  0x3b   :  { %11786 = shalt.err (!%p11783_p9)
}
  0x3c   :  { %s12122_s21 = smov 64   ;;  %s12123_s1 = smov 4  }
  0x3d   :  { %101 = dma.hbm_to_vmem [thread:$0]  %s13014_s5, 384, %s96_s20, [#allocation12], %s12122_s21, %s12122_s21, %s12123_s1  }
  0x3e   :  { %s11787_s23 = scalar_lea.hbm %s13016_s7, 49152 }
  0x3f   :  { %p11788_p10 = scmp.ne.s32.totalorder %s13016_s7, %s11787_s23  ;;  %p11791_p11 = scmp.lt.u32.totalorder %s11787_s23, %s13016_s7 }
  0x41   :  { %p11793_p12 = pnand %p11791_p11, %p11788_p10 }
  0x43   :  { %11796 = shalt.err (!%p11793_p12)
}
  0x44   :  { %s11797_s29 = scalar_lea.vmem %s120_s24, 49152  ;;  %p11802_p0 = scmp.lt.s32.totalorder %s120_s24, %s120_s24 }
  0x45   :  { %p11798_p13 = scmp.ne.s32.totalorder %s120_s24, %s11797_s29  ;;  %p11803_p1 = scmp.lt.s32.totalorder %s11797_s29, %s11797_s29 }
  0x47   :  { %p11804_p2 = por %p11803_p1, %p11802_p0 }
  0x49   :  { %p11805_p3 = pnand %p11804_p2, %p11798_p13 }
  0x4b   :  { %11808 = shalt.err (!%p11805_p3)
}
  0x4c   :  { %s12124_s5 = smov 128   ;;  %s12125_s20 = smov 8  }
  0x4d   :  { %125 = dma.hbm_to_vmem [thread:$0]  %s13016_s7, 49152, %s120_s24, [#allocation15], %s12124_s5, %s12124_s5, %s12125_s20  }
  0x4e   :  { %s12126_s22 = smov [#allocation17]   ;;  %s12127_s17 = smov [#allocation20]  }
  0x4f   :  { %s143_s18 = sshll.u32 %s12126_s22, 4  ;;  %s167_s19 = sshll.u32 %s12127_s17, 4  ;;  %s144_s18 = int_to_ptr.vmem [resolvable:$true] %s143_s18  ;;  %s168_s19 = int_to_ptr.vmem [resolvable:$true] %s167_s19 }
  0x50   :  { %s11809_s26 = scalar_lea.hbm %s13018_s9, 384 }
  0x51   :  { %p11810_p4 = scmp.ne.s32.totalorder %s13018_s9, %s11809_s26  ;;  %p11813_p5 = scmp.lt.u32.totalorder %s11809_s26, %s13018_s9 }
  0x53   :  { %p11815_p6 = pnand %p11813_p5, %p11810_p4 }
  0x55   :  { %11818 = shalt.err (!%p11815_p6)
}
  0x56   :  { %s11819_s7 = scalar_lea.vmem %s144_s18, 384  ;;  %p11824_p8 = scmp.lt.s32.totalorder %s144_s18, %s144_s18 }
  0x57   :  { %p11820_p7 = scmp.ne.s32.totalorder %s144_s18, %s11819_s7  ;;  %p11825_p9 = scmp.lt.s32.totalorder %s11819_s7, %s11819_s7 }
  0x59   :  { %p11826_p10 = por %p11825_p9, %p11824_p8 }
  0x5b   :  { %p11827_p11 = pnand %p11826_p10, %p11820_p7 }
  0x5d   :  { %11830 = shalt.err (!%p11827_p11)
}
  0x5e   :  { %s12128_s24 = smov 32   ;;  %s12129_s5 = smov 2  }
  0x5f   :  { %149 = dma.hbm_to_vmem [thread:$0]  %s13018_s9, 384, %s144_s18, [#allocation18], %s12128_s24, %s12128_s24, %s12129_s5  }
  0x60   :  { %s11831_s22 = scalar_lea.hbm %s13020_s11, 24576 }
  0x61   :  { %p11832_p12 = scmp.ne.s32.totalorder %s13020_s11, %s11831_s22  ;;  %p11835_p13 = scmp.lt.u32.totalorder %s11831_s22, %s13020_s11 }
  0x63   :  { %p11837_p0 = pnand %p11835_p13, %p11832_p12 }
  0x65   :  { %11840 = shalt.err (!%p11837_p0)
}
  0x66   :  { %s11841_s27 = scalar_lea.vmem %s168_s19, 24576  ;;  %p11846_p2 = scmp.lt.s32.totalorder %s168_s19, %s168_s19 }
  0x67   :  { %p11842_p1 = scmp.ne.s32.totalorder %s168_s19, %s11841_s27  ;;  %p11847_p3 = scmp.lt.s32.totalorder %s11841_s27, %s11841_s27 }
  0x69   :  { %p11848_p4 = por %p11847_p3, %p11846_p2 }
  0x6b   :  { %p11849_p5 = pnand %p11848_p4, %p11842_p1 }
  0x6d   :  { %11852 = shalt.err (!%p11849_p5)
}
  0x6e   :  { %173 = dma.hbm_to_vmem [thread:$0]  %s13020_s11, 24576, %s168_s19, [#allocation21], %s12122_s21, %s12122_s21, %s12123_s1  }
  0x6f   :  { %s12130_s28 = smov [#allocation23]   ;;  %s12131_s7 = smov [#allocation2]  }
  0x70   :  { %s191_s29 = sshll.u32 %s12130_s28, 4  ;;  %s38_s20 = sshll.u32 %s12131_s7, 4  ;;  %s192_s29 = int_to_ptr.vmem [resolvable:$true] %s191_s29  ;;  %s39_s20 = int_to_ptr.vmem [resolvable:$true] %s38_s20 }
  0x71   :  { %s11853_s3 = scalar_lea.hbm %s13022_s13, 1024 }
  0x72   :  { %p11854_p6 = scmp.ne.s32.totalorder %s13022_s13, %s11853_s3  ;;  %p11857_p7 = scmp.lt.u32.totalorder %s11853_s3, %s13022_s13 }
  0x74   :  { %p11859_p8 = pnand %p11857_p7, %p11854_p6 }
  0x76   :  { %11862 = shalt.err (!%p11859_p8)
}
  0x77   :  { %s11863_s11 = scalar_lea.vmem %s192_s29, 1024  ;;  %p11868_p10 = scmp.lt.s32.totalorder %s192_s29, %s192_s29 }
  0x78   :  { %p11864_p9 = scmp.ne.s32.totalorder %s192_s29, %s11863_s11  ;;  %p11869_p11 = scmp.lt.s32.totalorder %s11863_s11, %s11863_s11 }
  0x7a   :  { %p11870_p12 = por %p11869_p11, %p11868_p10 }
  0x7c   :  { %p11871_p13 = pnand %p11870_p12, %p11864_p9 }
  0x7e   :  { %11874 = shalt.err (!%p11871_p13)
}
  0x7f   :  { %197 = dma.hbm_to_vmem [thread:$0]  %s13022_s13, 1024, %s192_s29, [#allocation24], %s12122_s21, %s12122_s21, %s12123_s1  }
  0x80   :  { %s13032_s18 = sld [smem:[#allocation39_spill]] }
  0x86   :  { %s11875_s28 = scalar_lea.hbm %s13032_s18, 128 }
  0x87   :  { %p11876_p0 = scmp.ne.s32.totalorder %s13032_s18, %s11875_s28  ;;  %p11879_p1 = scmp.lt.u32.totalorder %s11875_s28, %s13032_s18 }
  0x89   :  { %p11881_p2 = pnand %p11879_p1, %p11876_p0 }
  0x8b   :  { %11884 = shalt.err (!%p11881_p2)
}
  0x8c   :  { %s11885_s22 = scalar_lea.vmem %s39_s20, 128  ;;  %p11890_p4 = scmp.lt.s32.totalorder %s39_s20, %s39_s20 }
  0x8d   :  { %p11886_p3 = scmp.ne.s32.totalorder %s39_s20, %s11885_s22  ;;  %p11891_p5 = scmp.lt.s32.totalorder %s11885_s22, %s11885_s22 }
  0x8f   :  { %p11892_p6 = por %p11891_p5, %p11890_p4 }
  0x91   :  { %p11893_p7 = pnand %p11892_p6, %p11886_p3 }
  0x93   :  { %11896 = shalt.err (!%p11893_p7)
}
  0x94   :  { %41 = dma.hbm_to_vmem [thread:$0]  %s13032_s18, 128, %s39_s20, [#allocation3]  }
  0x95   :  { %s12132_s17 = smov [#allocation7]   ;;  %s12133_s25 = smov [#allocation10]  }
  0x96   :  { %s59_s23 = sshll.u32 %s12132_s17, 4  ;;  %s83_s11 = sshll.u32 %s12133_s25, 4  ;;  %s60_s23 = int_to_ptr.vmem [resolvable:$true] %s59_s23  ;;  %s84_s11 = int_to_ptr.vmem [resolvable:$true] %s83_s11 }
  0x97   :  { %s11897_s27 = scalar_lea.hbm %s13011_s2, 96 }
  0x98   :  { %p11898_p8 = scmp.ne.s32.totalorder %s13011_s2, %s11897_s27  ;;  %p11901_p9 = scmp.lt.u32.totalorder %s11897_s27, %s13011_s2 }
  0x9a   :  { %p11903_p10 = pnand %p11901_p9, %p11898_p8 }
  0x9c   :  { %11906 = shalt.err (!%p11903_p10)
}
  0x9d   :  { %s11907_s20 = scalar_lea.vmem %s60_s23, 96  ;;  %p11912_p12 = scmp.lt.s32.totalorder %s60_s23, %s60_s23 }
  0x9e   :  { %p11908_p11 = scmp.ne.s32.totalorder %s60_s23, %s11907_s20  ;;  %p11913_p13 = scmp.lt.s32.totalorder %s11907_s20, %s11907_s20 }
  0xa0   :  { %p11914_p0 = por %p11913_p13, %p11912_p12 }
  0xa2   :  { %p11915_p1 = pnand %p11914_p0, %p11908_p11 }
  0xa4   :  { %11918 = shalt.err (!%p11915_p1)
}
  0xa5   :  { %s13033_s18 = smov 1   ;;  %s13034_s0 = smov 16  }
  0xa6   :  { %65 = dma.hbm_to_vmem [thread:$0]  %s13011_s2, 96, %s60_s23, [#allocation6], %s13034_s0, %s13034_s0, %s13033_s18  }
  0xa7   :  { %s11919_s17 = scalar_lea.hbm %s13013_s4, 384 }
  0xa8   :  { %p11920_p2 = scmp.ne.s32.totalorder %s13013_s4, %s11919_s17  ;;  %p11923_p3 = scmp.lt.u32.totalorder %s11919_s17, %s13013_s4 }
  0xaa   :  { %p11925_p4 = pnand %p11923_p3, %p11920_p2 }
  0xac   :  { %11928 = shalt.err (!%p11925_p4)
}
  0xad   :  { %s11929_s9 = scalar_lea.vmem %s84_s11, 384  ;;  %p11934_p6 = scmp.lt.s32.totalorder %s84_s11, %s84_s11 }
  0xae   :  { %p11930_p5 = scmp.ne.s32.totalorder %s84_s11, %s11929_s9  ;;  %p11935_p7 = scmp.lt.s32.totalorder %s11929_s9, %s11929_s9 }
  0xb0   :  { %p11936_p8 = por %p11935_p7, %p11934_p6 }
  0xb2   :  { %p11937_p9 = pnand %p11936_p8, %p11930_p5 }
  0xb4   :  { %11940 = shalt.err (!%p11937_p9)
}
  0xb5   :  { %89 = dma.hbm_to_vmem [thread:$0]  %s13013_s4, 384, %s84_s11, [#allocation9], %s12122_s21, %s12122_s21, %s12123_s1  }
  0xb6   :  { %s12134_s28 = smov [#allocation13]   ;;  %s12135_s30 = smov [#allocation16]  }
  0xb7   :  { %s107_s7 = sshll.u32 %s12134_s28, 4  ;;  %s131_s20 = sshll.u32 %s12135_s30, 4  ;;  %s108_s7 = int_to_ptr.vmem [resolvable:$true] %s107_s7  ;;  %s132_s20 = int_to_ptr.vmem [resolvable:$true] %s131_s20 }
  0xb8   :  { %s11941_s13 = scalar_lea.hbm %s13015_s6, 384 }
  0xb9   :  { %p11942_p10 = scmp.ne.s32.totalorder %s13015_s6, %s11941_s13  ;;  %p11945_p11 = scmp.lt.u32.totalorder %s11941_s13, %s13015_s6 }
  0xbb   :  { %p11947_p12 = pnand %p11945_p11, %p11942_p10 }
  0xbd   :  { %11950 = shalt.err (!%p11947_p12)
}
  0xbe   :  { %s11951_s4 = scalar_lea.vmem %s108_s7, 384  ;;  %p11956_p0 = scmp.lt.s32.totalorder %s108_s7, %s108_s7 }
  0xbf   :  { %p11952_p13 = scmp.ne.s32.totalorder %s108_s7, %s11951_s4  ;;  %p11957_p1 = scmp.lt.s32.totalorder %s11951_s4, %s11951_s4 }
  0xc1   :  { %p11958_p2 = por %p11957_p1, %p11956_p0 }
  0xc3   :  { %p11959_p3 = pnand %p11958_p2, %p11952_p13 }
  0xc5   :  { %11962 = shalt.err (!%p11959_p3)
}
  0xc6   :  { %113 = dma.hbm_to_vmem [thread:$0]  %s13015_s6, 384, %s108_s7, [#allocation12], %s12122_s21, %s12122_s21, %s12123_s1  }
  0xc7   :  { %s11963_s2 = scalar_lea.hbm %s13017_s8, 384 }
  0xc8   :  { %p11964_p4 = scmp.ne.s32.totalorder %s13017_s8, %s11963_s2  ;;  %p11967_p5 = scmp.lt.u32.totalorder %s11963_s2, %s13017_s8 }
  0xca   :  { %p11969_p6 = pnand %p11967_p5, %p11964_p4 }
  0xcc   :  { %11972 = shalt.err (!%p11969_p6)
}
  0xcd   :  { %s11973_s22 = scalar_lea.vmem %s132_s20, 384  ;;  %p11978_p8 = scmp.lt.s32.totalorder %s132_s20, %s132_s20 }
  0xce   :  { %p11974_p7 = scmp.ne.s32.totalorder %s132_s20, %s11973_s22  ;;  %p11979_p9 = scmp.lt.s32.totalorder %s11973_s22, %s11973_s22 }
  0xd0   :  { %p11980_p10 = por %p11979_p9, %p11978_p8 }
  0xd2   :  { %p11981_p11 = pnand %p11980_p10, %p11974_p7 }
  0xd4   :  { %11984 = shalt.err (!%p11981_p11)
}
  0xd5   :  { %137 = dma.hbm_to_vmem [thread:$0]  %s13017_s8, 384, %s132_s20, [#allocation15], %s12128_s24, %s12128_s24, %s12129_s5  }
  0xd6   :  { %s12136_s1 = smov [#allocation19]   ;;  %s12137_s13 = smov [#allocation22]  }
  0xd7   :  { %s155_s7 = sshll.u32 %s12136_s1, 4  ;;  %s179_s29 = sshll.u32 %s12137_s13, 4  ;;  %s156_s7 = int_to_ptr.vmem [resolvable:$true] %s155_s7  ;;  %s180_s29 = int_to_ptr.vmem [resolvable:$true] %s179_s29 }
  0xd8   :  { %s11985_s19 = scalar_lea.hbm %s13019_s10, 384 }
  0xd9   :  { %p11986_p12 = scmp.ne.s32.totalorder %s13019_s10, %s11985_s19  ;;  %p11989_p13 = scmp.lt.u32.totalorder %s11985_s19, %s13019_s10 }
  0xdb   :  { %p11991_p0 = pnand %p11989_p13, %p11986_p12 }
  0xdd   :  { %11994 = shalt.err (!%p11991_p0)
}
  0xde   :  { %s11995_s8 = scalar_lea.vmem %s156_s7, 384  ;;  %p12000_p2 = scmp.lt.s32.totalorder %s156_s7, %s156_s7 }
  0xdf   :  { %p11996_p1 = scmp.ne.s32.totalorder %s156_s7, %s11995_s8  ;;  %p12001_p3 = scmp.lt.s32.totalorder %s11995_s8, %s11995_s8 }
  0xe1   :  { %p12002_p4 = por %p12001_p3, %p12000_p2 }
  0xe3   :  { %p12003_p5 = pnand %p12002_p4, %p11996_p1 }
  0xe5   :  { %12006 = shalt.err (!%p12003_p5)
}
  0xe6   :  { %161 = dma.hbm_to_vmem [thread:$0]  %s13019_s10, 384, %s156_s7, [#allocation18], %s12128_s24, %s12128_s24, %s12129_s5  }
  0xe7   :  { %s12007_s28 = scalar_lea.hbm %s13021_s12, 192 }
  0xe8   :  { %p12008_p6 = scmp.ne.s32.totalorder %s13021_s12, %s12007_s28  ;;  %p12011_p7 = scmp.lt.u32.totalorder %s12007_s28, %s13021_s12 }
  0xea   :  { %p12013_p8 = pnand %p12011_p7, %p12008_p6 }
  0xec   :  { %12016 = shalt.err (!%p12013_p8)
}
  0xed   :  { %s12017_s21 = scalar_lea.vmem %s180_s29, 192  ;;  %p12022_p10 = scmp.lt.s32.totalorder %s180_s29, %s180_s29 }
  0xee   :  { %p12018_p9 = scmp.ne.s32.totalorder %s180_s29, %s12017_s21  ;;  %p12023_p11 = scmp.lt.s32.totalorder %s12017_s21, %s12017_s21 }
  0xf0   :  { %p12024_p12 = por %p12023_p11, %p12022_p10 }
  0xf2   :  { %p12025_p13 = pnand %p12024_p12, %p12018_p9 }
  0xf4   :  { %12028 = shalt.err (!%p12025_p13)
}
  0xf5   :  { %185 = dma.hbm_to_vmem [thread:$0]  %s13021_s12, 192, %s180_s29, [#allocation21], %s13034_s0, %s13034_s0, %s13033_s18  }
  0xf6   :  { %s12138_s5 = smov [#allocation25]   ;;  %s12029_s17 = scalar_lea.hbm %s13023_s14, 16 }
  0xf7   :  { %s204_s1 = sshll.u32 %s12138_s5, 4  ;;  %p12030_p0 = scmp.ne.s32.totalorder %s13023_s14, %s12029_s17  ;;  %s205_s1 = int_to_ptr.vmem [resolvable:$true] %s204_s1 }
  0xf8   :  { %p12033_p1 = scmp.lt.u32.totalorder %s12029_s17, %s13023_s14 }
  0xfa   :  { %p12035_p2 = pnand %p12033_p1, %p12030_p0 }
  0xfc   :  { %12038 = shalt.err (!%p12035_p2)
}
  0xfd   :  { %s12039_s26 = scalar_lea.vmem %s205_s1, 16  ;;  %s12043_s12 = scalar_lea.vmem %s205_s1, 32 }
  0xfe   :  { %p12040_p3 = scmp.ne.s32.totalorder %s205_s1, %s12039_s26  ;;  %p12044_p4 = scmp.lt.s32.totalorder %s205_s1, %s205_s1 }
  0xff   :  { %p12045_p5 = scmp.lt.s32.totalorder %s12043_s12, %s12039_s26 }
 0x101   :  { %p12046_p6 = por %p12045_p5, %p12044_p4 }
 0x103   :  { %p12047_p7 = pnand %p12046_p6, %p12040_p3 }
 0x105   :  { %12050 = shalt.err (!%p12047_p7)
}
 0x106   :  { %207 = dma.hbm_to_vmem [thread:$0]  %s13023_s14, 16, %s205_s1, [#allocation24]  }
 0x107   :  { %12095 = dma.done.wait [#allocation3], 128  }
 0x108   :  { %12096 = vsyncadd [#allocation3], 4294967168 }
 0x109   :  { %12097 = dma.done.wait [#allocation6], 192  }
 0x10a   :  { %12098 = vsyncadd [#allocation6], 4294967104 }
 0x10b   :  { %12099 = dma.done.wait [#allocation9], 24960  }
 0x10c   :  { %12100 = vsyncadd [#allocation9], 4294942336 }
 0x10d   :  { %12101 = dma.done.wait [#allocation12], 768  }
 0x10e   :  { %12102 = vsyncadd [#allocation12], 4294966528 }
 0x10f   :  { %12103 = dma.done.wait [#allocation15], 49536  }
 0x110   :  { %12104 = vsyncadd [#allocation15], 4294917760 }
 0x111   :  { %12105 = dma.done.wait [#allocation18], 768  }
 0x112   :  { %12106 = vsyncadd [#allocation18], 4294966528 }
 0x113   :  { %12107 = dma.done.wait [#allocation21], 24768  }
 0x114   :  { %12108 = vsyncadd [#allocation21], 4294942528 }
 0x115   :  { %12109 = dma.done.wait [#allocation24], 1040  }
 0x116   :  { %12110 = vsyncadd [#allocation24], 4294966256  ;;  %v12139_v0 = vmov 0   ;;  %v10535_v1 = vld [vmem:[#allocation8 + $0x504] ss:$16 sps:$4 sm:$0xff]   ;;  %v254_v15 = vld [vmem:[#allocation2] sm:$0xff] }
 0x117   :  { %515 = vmatprep.mubr.bf16.mxu0 %v12139_v0  ;;  %556 = vmatprep.mubr.bf16.mxu1 %v12139_v0  ;;  %v10537_v2 = vld [vmem:[#allocation8 + $0x500] ss:$16 sps:$4 sm:$0xff]   ;;  %v10538_v3 = vld [vmem:[#allocation8 + $0x524] ss:$16 sps:$4 sm:$0xff]   ;;  %v9412_v16 = vld [vmem:[#allocation5 + $0x5] ss:$0 sm:$0xff] }
 0x118   :  { %483 = vmatprep.subr.bf16.mxu0 %v10535_v1  ;;  %v10540_v4 = vld [vmem:[#allocation8 + $0x520] ss:$16 sps:$4 sm:$0xff]   ;;  %v10541_v5 = vld [vmem:[#allocation8 + $0x544] ss:$16 sps:$4 sm:$0xff]   ;;  %v12445_v19 = vmul.f32 %v9412_v16, %v254_v15  ;;  %v10607_v52 = vld [vmem:[#allocation8 + $0x50c] ss:$16 sps:$4 sm:$0xff]  }
 0x119   :  { %484 = vmatpush1.bf16.msra.mxu0 %v10537_v2  ;;  %v10543_v6 = vld [vmem:[#allocation8 + $0x540] ss:$16 sps:$4 sm:$0xff]   ;;  %v10544_v7 = vld [vmem:[#allocation8 + $0x564] ss:$16 sps:$4 sm:$0xff]   ;;  %v10609_v53 = vld [vmem:[#allocation8 + $0x508] ss:$16 sps:$4 sm:$0xff]   ;;  %524 = vmatprep.subr.bf16.mxu1 %v10607_v52 }
 0x11a   :  { %485 = vmatprep.subr.bf16.mxu0 %v10538_v3  ;;  %v10546_v8 = vld [vmem:[#allocation8 + $0x560] ss:$16 sps:$4 sm:$0xff]   ;;  %v10547_v9 = vld [vmem:[#allocation8 + $0x584] ss:$16 sps:$4 sm:$0xff]   ;;  %v12449_v22 = vpack.c.bf16 %v12445_v19, %v12445_v19  ;;  %525 = vmatpush1.bf16.msra.mxu1 %v10609_v53  ;;  %v10610_v55 = vld [vmem:[#allocation8 + $0x52c] ss:$16 sps:$4 sm:$0xff]  }
 0x11b   :  { %v10549_v10 = vld [vmem:[#allocation8 + $0x580] ss:$16 sps:$4 sm:$0xff]   ;;  %v10550_v11 = vld [vmem:[#allocation8 + $0x5a4] ss:$16 sps:$4 sm:$0xff]   ;;  %v10612_v56 = vld [vmem:[#allocation8 + $0x528] ss:$16 sps:$4 sm:$0xff]   ;;  %526 = vmatprep.subr.bf16.mxu1 %v10610_v55 }
 0x11c   :  { %v10552_v12 = vld [vmem:[#allocation8 + $0x5a0] ss:$16 sps:$4 sm:$0xff]   ;;  %v10553_v13 = vld [vmem:[#allocation8 + $0x5c4] ss:$16 sps:$4 sm:$0xff]   ;;  %v10613_v57 = vld [vmem:[#allocation8 + $0x54c] ss:$16 sps:$4 sm:$0xff]  }
 0x11d   :  { %486 = vmatpush1.bf16.msra.mxu0 %v10540_v4  ;;  %v10555_v14 = vld [vmem:[#allocation8 + $0x5c0] ss:$16 sps:$4 sm:$0xff]   ;;  %v10556_v17 = vld [vmem:[#allocation8 + $0x5e4] ss:$16 sps:$4 sm:$0xff]   ;;  %v10615_v58 = vld [vmem:[#allocation8 + $0x548] ss:$16 sps:$4 sm:$0xff]  }
 0x11e   :  { %487 = vmatprep.subr.bf16.mxu0 %v10541_v5  ;;  %v10558_v18 = vld [vmem:[#allocation8 + $0x5e0] ss:$16 sps:$4 sm:$0xff]   ;;  %v10561_v20 = vld [vmem:[#allocation14 + $0x504] ss:$8 sps:$4 sm:$0xff]   ;;  %v10564_v23 = vld [vmem:[#allocation14 + $0x514] ss:$8 sps:$4 sm:$0xff]   ;;  %527 = vmatpush1.bf16.msra.mxu1 %v10612_v56 }
 0x11f   :  { %v10559_v21 = vld [vmem:[#allocation14 + $0x500] ss:$8 sps:$4 sm:$0xff]   ;;  %v10562_v24 = vld [vmem:[#allocation14 + $0x510] ss:$8 sps:$4 sm:$0xff]   ;;  %v10567_v25 = vld [vmem:[#allocation14 + $0x524] ss:$8 sps:$4 sm:$0xff]   ;;  %528 = vmatprep.subr.bf16.mxu1 %v10613_v57 }
 0x120   :  { %v10565_v26 = vld [vmem:[#allocation14 + $0x520] ss:$8 sps:$4 sm:$0xff]   ;;  %v10570_v27 = vld [vmem:[#allocation14 + $0x534] ss:$8 sps:$4 sm:$0xff]   ;;  %v10568_v28 = vld [vmem:[#allocation14 + $0x530] ss:$8 sps:$4 sm:$0xff]  }
 0x121   :  { %488 = vmatpush1.bf16.msra.mxu0 %v10543_v6  ;;  %v10573_v29 = vld [vmem:[#allocation14 + $0x544] ss:$8 sps:$4 sm:$0xff]   ;;  %v10571_v30 = vld [vmem:[#allocation14 + $0x540] ss:$8 sps:$4 sm:$0xff]   ;;  %v10576_v31 = vld [vmem:[#allocation14 + $0x554] ss:$8 sps:$4 sm:$0xff]   ;;  %v303_v6 = vlaneseq }
 0x122   :  { %489 = vmatprep.subr.bf16.mxu0 %v10544_v7  ;;  %v10574_v32 = vld [vmem:[#allocation14 + $0x550] ss:$8 sps:$4 sm:$0xff]   ;;  %v10579_v33 = vld [vmem:[#allocation14 + $0x564] ss:$8 sps:$4 sm:$0xff]   ;;  %v10577_v34 = vld [vmem:[#allocation14 + $0x560] ss:$8 sps:$4 sm:$0xff]   ;;  %529 = vmatpush1.bf16.msra.mxu1 %v10615_v58 }
 0x123   :  { %v10582_v35 = vld [vmem:[#allocation14 + $0x574] ss:$8 sps:$4 sm:$0xff]   ;;  %v10580_v36 = vld [vmem:[#allocation14 + $0x570] ss:$8 sps:$4 sm:$0xff]   ;;  %v10585_v37 = vld [vmem:[#allocation14 + $0x584] ss:$8 sps:$4 sm:$0xff]  }
 0x124   :  { %v10583_v38 = vld [vmem:[#allocation14 + $0x580] ss:$8 sps:$4 sm:$0xff]   ;;  %v10588_v39 = vld [vmem:[#allocation14 + $0x594] ss:$8 sps:$4 sm:$0xff]   ;;  %v10586_v40 = vld [vmem:[#allocation14 + $0x590] ss:$8 sps:$4 sm:$0xff]  }
 0x125   :  { %490 = vmatpush1.bf16.msra.mxu0 %v10546_v8  ;;  %v10591_v41 = vld [vmem:[#allocation14 + $0x5a4] ss:$8 sps:$4 sm:$0xff]   ;;  %v10589_v42 = vld [vmem:[#allocation14 + $0x5a0] ss:$8 sps:$4 sm:$0xff]   ;;  %v10594_v43 = vld [vmem:[#allocation14 + $0x5b4] ss:$8 sps:$4 sm:$0xff]  }
 0x126   :  { %491 = vmatprep.subr.bf16.mxu0 %v10547_v9  ;;  %v10592_v44 = vld [vmem:[#allocation14 + $0x5b0] ss:$8 sps:$4 sm:$0xff]   ;;  %v10597_v45 = vld [vmem:[#allocation14 + $0x5c4] ss:$8 sps:$4 sm:$0xff]   ;;  %v10595_v46 = vld [vmem:[#allocation14 + $0x5c0] ss:$8 sps:$4 sm:$0xff]  }
 0x127   :  { %v10600_v47 = vld [vmem:[#allocation14 + $0x5d4] ss:$8 sps:$4 sm:$0xff]   ;;  %v10598_v48 = vld [vmem:[#allocation14 + $0x5d0] ss:$8 sps:$4 sm:$0xff]   ;;  %v10601_v49 = vld [vmem:[#allocation14 + $0x5e0] ss:$8 sps:$4 sm:$0xff]  }
 0x128   :  { %v10603_v50 = vld [vmem:[#allocation14 + $0x5e4] ss:$8 sps:$4 sm:$0xff]   ;;  %v10606_v51 = vld [vmem:[#allocation14 + $0x5f4] ss:$8 sps:$4 sm:$0xff]   ;;  %v10604_v54 = vld [vmem:[#allocation14 + $0x5f0] ss:$8 sps:$4 sm:$0xff]  }
 0x129   :  { %492 = vmatpush1.bf16.msra.mxu0 %v10549_v10  ;;  %v10616_v59 = vld [vmem:[#allocation8 + $0x56c] ss:$16 sps:$4 sm:$0xff]   ;;  %v10618_v60 = vld [vmem:[#allocation8 + $0x568] ss:$16 sps:$4 sm:$0xff]   ;;  %v12453_v7 = vshrl.u32 %v303_v6, 7  ;;  %s12142_s14 = smov [#allocation27]  }
 0x12a   :  { %493 = vmatprep.subr.bf16.mxu0 %v10550_v11  ;;  %v10619_v61 = vld [vmem:[#allocation8 + $0x58c] ss:$16 sps:$4 sm:$0xff]   ;;  %530 = vmatprep.subr.bf16.mxu1 %v10616_v59  ;;  %v10621_v62 = vld [vmem:[#allocation8 + $0x588] ss:$16 sps:$4 sm:$0xff]   ;;  %v12455_v8 = vld [vmem:[#allocation10 + $0x14] sm:$0xf] }
 0x12b   :  { %v10622_v63 = vld [vmem:[#allocation8 + $0x5ac] ss:$16 sps:$4 sm:$0xff]   ;;  %531 = vmatpush1.bf16.msra.mxu1 %v10618_v60  ;;  %v10624_v1 = vld [vmem:[#allocation8 + $0x5a8] ss:$16 sps:$4 sm:$0xff]   ;;  %v12458_v9 = vsub.s32 0, %v12453_v7  ;;  %v12461_v10 = vsub.s32 1, %v12453_v7 }
 0x12c   :  { %532 = vmatprep.subr.bf16.mxu1 %v10619_v61  ;;  %v10625_v2 = vld [vmem:[#allocation8 + $0x5cc] ss:$16 sps:$4 sm:$0xff]   ;;  %v10627_v3 = vld [vmem:[#allocation8 + $0x5c8] ss:$16 sps:$4 sm:$0xff]   ;;  %s9392_s29 = sshll.u32 %s12142_s14, 4  ;;  %s9393_s29 = int_to_ptr.vmem [resolvable:$true] %s9392_s29 }
 0x12d   :  { %494 = vmatpush1.bf16.msra.mxu0 %v10552_v12  ;;  %v10628_v4 = vld [vmem:[#allocation8 + $0x5ec] ss:$16 sps:$4 sm:$0xff]   ;;  %v10630_v5 = vld [vmem:[#allocation8 + $0x5e8] ss:$16 sps:$4 sm:$0xff]   ;;  %v306_v11 = vrot.slane %v12455_v8, %v12458_v9  ;;  %v310_v12 = vrot.slane %v12455_v8, %v12461_v10  ;;  %s12051_s27 = scalar_lea.vmem %s9393_s29, 16  ;;  %s12055_s8 = scalar_lea.vmem %s9393_s29, 32 }
 0x12e   :  { %495 = vmatprep.subr.bf16.mxu0 %v10553_v13  ;;  %p12052_p8 = scmp.ne.s32.totalorder %s9393_s29, %s12051_s27  ;;  %p12056_p9 = scmp.lt.s32.totalorder %s9393_s29, %s9393_s29 }
 0x12f   :  { %533 = vmatpush1.bf16.msra.mxu1 %v10621_v62  ;;  %v12467_v62 = vld [vmem:[#allocation11 + $0x14] sm:$0xf]  ;;  %p12057_p10 = scmp.lt.s32.totalorder %s12055_s8, %s12051_s27 }
 0x130   :  { %534 = vmatprep.subr.bf16.mxu1 %v10622_v63  ;;  %v12469_v63 = vld [vmem:[#allocation13 + $0x14] sm:$0xf] }
 0x131   :  { %496 = vmatpush1.bf16.msra.mxu0 %v10555_v14  ;;  %p12058_p11 = por %p12057_p10, %p12056_p9 }
 0x132   :  { %497 = vmatprep.subr.bf16.mxu0 %v10556_v17 }
 0x133   :  { %535 = vmatpush1.bf16.msra.mxu1 %v10624_v1  ;;  %p12059_p12 = pnand %p12058_p11, %p12052_p8 }
 0x134   :  { %536 = vmatprep.subr.bf16.mxu1 %v10625_v2  ;;  %v674_v2 = vrot.slane %v12467_v62, %v12458_v9 }
 0x135   :  { %498 = vmatpush1.bf16.msra.mxu0 %v10558_v18 }
 0x136   :  { %928 = vmatprep.subr.bf16.mxu0 %v10561_v20 }
 0x137   :  { %537 = vmatpush1.bf16.msra.mxu1 %v10627_v3 }
 0x138   :  { %516 = vmatmul.mubr.bf16.vlgmr.msra.gmra.mrb[0].mxu0 %v12449_v22  ;;  %538 = vmatprep.subr.bf16.mxu1 %v10628_v4 }
 0x139   :  { %929 = vmatpush1.bf16.msra.mxu0 %v10559_v21 }
 0x13a   :  { %930 = vmatprep.subr.bf16.mxu0 %v10564_v23 }
 0x13b   :  { %539 = vmatpush1.bf16.msra.mxu1 %v10630_v5  ;;  %v678_v5 = vrot.slane %v12467_v62, %v12461_v10 }
 0x13d   :  { %931 = vmatpush1.bf16.msra.mxu0 %v10562_v24 }
 0x13e   :  { %932 = vmatprep.subr.bf16.mxu0 %v10567_v25  ;;  %557 = vmatmul.mubr.bf16.vlgmr.msra.gmra.mrb[0].mxu1 %v12449_v22 }
 0x141   :  { %933 = vmatpush1.bf16.msra.mxu0 %v10565_v26 }
 0x142   :  { %934 = vmatprep.subr.bf16.mxu0 %v10570_v27 }
 0x145   :  { %935 = vmatpush1.bf16.msra.mxu0 %v10568_v28 }
 0x146   :  { %936 = vmatprep.subr.bf16.mxu0 %v10573_v29 }
 0x149   :  { %937 = vmatpush1.bf16.msra.mxu0 %v10571_v30 }
 0x14a   :  { %938 = vmatprep.subr.bf16.mxu0 %v10576_v31 }
 0x14d   :  { %939 = vmatpush1.bf16.msra.mxu0 %v10574_v32 }
 0x14e   :  { %940 = vmatprep.subr.bf16.mxu0 %v10579_v33 }
 0x151   :  { %941 = vmatpush1.bf16.msra.mxu0 %v10577_v34 }
 0x152   :  { %942 = vmatprep.subr.bf16.mxu0 %v10582_v35 }
 0x155   :  { %943 = vmatpush1.bf16.msra.mxu0 %v10580_v36 }
 0x156   :  { %944 = vmatprep.subr.bf16.mxu0 %v10585_v37 }
 0x159   :  { %945 = vmatpush1.bf16.msra.mxu0 %v10583_v38 }
 0x15a   :  { %946 = vmatprep.subr.bf16.mxu0 %v10588_v39 }
 0x15d   :  { %947 = vmatpush1.bf16.msra.mxu0 %v10586_v40 }
 0x15e   :  { %948 = vmatprep.subr.bf16.mxu0 %v10591_v41 }
 0x161   :  { %949 = vmatpush1.bf16.msra.mxu0 %v10589_v42 }
 0x162   :  { %950 = vmatprep.subr.bf16.mxu0 %v10594_v43 }
 0x165   :  { %951 = vmatpush1.bf16.msra.mxu0 %v10592_v44 }
 0x166   :  { %952 = vmatprep.subr.bf16.mxu0 %v10597_v45 }
 0x169   :  { %953 = vmatpush1.bf16.msra.mxu0 %v10595_v46 }
 0x16a   :  { %954 = vmatprep.subr.bf16.mxu0 %v10600_v47 }
 0x16d   :  { %955 = vmatpush1.bf16.msra.mxu0 %v10598_v48 }
 0x16e   :  { %956 = vmatprep.subr.bf16.mxu0 %v10603_v50 }
 0x171   :  { %957 = vmatpush1.bf16.msra.mxu0 %v10601_v49 }
 0x172   :  { %958 = vmatprep.subr.bf16.mxu0 %v10606_v51 }
 0x175   :  { %959 = vmatpush1.bf16.msra.mxu0 %v10604_v54 }
 0x20b   :  { %v517_v13 = vpop.f32.mrb[0].mxu0 }
 0x20c   :  { %v518_v14 = vadd.f32 %v517_v13, %v306_v11  ;;  %v519_v15 = vpop.f32.mrb[1].mxu0 }
 0x20d   :  { %v520_v16 = vadd.f32 %v519_v15, %v310_v12  ;;  %v521_v17 = vpop.f32.mrb[2].mxu0  ;;  %v699_v12 = vrot.slane %v12469_v63, %v12458_v9 }
 0x20e   :  { %vm565_vm0 = vcmp.gt.f32.partialorder %v518_v14, 0.0  ;;  %v569_v18 = vmul.f32 0.01, %v518_v14  ;;  %v522_v20 = vpop.f32.mrb[3].mxu0 }
 0x20f   :  { %vm566_vm1 = vcmp.gt.f32.partialorder %v520_v16, 0.0  ;;  %v570_v21 = vmul.f32 0.01, %v520_v16 }
 0x210   :  { %v573_v22 = vsel %vm565_vm0, %v518_v14, %v569_v18  ;;  %v703_v14 = vrot.slane %v12469_v63, %v12461_v10 }
 0x211   :  { %v581_v23 = vrot.slane %v573_v22, 4  ;;  %v610_v24 = vmul.f32 %v573_v22, %v573_v22  ;;  %v574_v25 = vsel %vm566_vm1, %v520_v16, %v570_v21 }
 0x212   :  { %v587_v26 = vrot.slane %v574_v25, 4  ;;  %v611_v27 = vmul.f32 %v574_v25, %v574_v25 }
 0x213   :  { %v582_v28 = vadd.f32 %v581_v23, %v573_v22  ;;  %v614_v29 = vrot.slane %v610_v24, 4  ;;  %v10632_v23 = vld [vmem:[#allocation20 + $0x280] sm:$0xff]  }
 0x214   :  { %v588_v30 = vadd.f32 %v587_v26, %v574_v25  ;;  %v620_v31 = vrot.slane %v611_v27, 4  ;;  %v10635_v26 = vld [vmem:[#allocation20 + $0x2d0] sm:$0xff]  }
 0x215   :  { %v583_v32 = vrot.slane %v582_v28, 2  ;;  %v615_v33 = vadd.f32 %v614_v29, %v610_v24  ;;  %v10633_v24 = vld [vmem:[#allocation20 + $0x2c8] sm:$0xff]   ;;  %v10638_v29 = vld [vmem:[#allocation20 + $0x298] sm:$0xff]  }
 0x216   :  { %v589_v34 = vrot.slane %v588_v30, 2  ;;  %v621_v35 = vadd.f32 %v620_v31, %v611_v27  ;;  %v10636_v27 = vld [vmem:[#allocation20 + $0x290] sm:$0xff]  }
 0x217   :  { %v584_v36 = vadd.f32 %v583_v32, %v582_v28  ;;  %v616_v37 = vrot.slane %v615_v33, 2  ;;  %v10637_v28 = vld [vmem:[#allocation20 + $0x2d8] sm:$0xff]   ;;  %v10639_v32 = vld [vmem:[#allocation20 + $0x2e0] sm:$0xff]  }
 0x218   :  { %v590_v38 = vadd.f32 %v589_v34, %v588_v30  ;;  %v622_v39 = vrot.slane %v621_v35, 2  ;;  %v12479_v30 = vpop.f32.mrb[0].mxu1 }
 0x219   :  { %v585_v40 = vrot.slane %v584_v36, 1  ;;  %v617_v41 = vadd.f32 %v616_v37, %v615_v33  ;;  %v560_v31 = vpop.f32.mrb[1].mxu1  ;;  %v10640_v33 = vld [vmem:[#allocation20 + $0x2a0] sm:$0xff]   ;;  %v10642_v37 = vld [vmem:[#allocation20 + $0x2a8] sm:$0xff]  }
 0x21a   :  { %v591_v42 = vrot.slane %v590_v38, 1  ;;  %v623_v43 = vadd.f32 %v622_v39, %v621_v35  ;;  %v562_v34 = vpop.f32.mrb[2].mxu1  ;;  %v10644_v39 = vld [vmem:[#allocation20 + $0x2b0] sm:$0xff]  }
 0x21b   :  { %v586_v44 = vadd.f32 %v585_v40, %v584_v36  ;;  %v618_v45 = vrot.slane %v617_v41, 1  ;;  %v563_v35 = vpop.f32.mrb[3].mxu1  ;;  %v10641_v36 = vld [vmem:[#allocation20 + $0x2e8] sm:$0xff]   ;;  %v10645_v40 = vld [vmem:[#allocation20 + $0x2f8] sm:$0xff]  }
 0x21c   :  { %v592_v46 = vadd.f32 %v591_v42, %v590_v38  ;;  %v624_v47 = vrot.slane %v623_v43, 1  ;;  %v10643_v38 = vld [vmem:[#allocation20 + $0x2f0] sm:$0xff]   ;;  %v10649_v42 = vld [vmem:[#allocation14 + $0xb04] ss:$8 sps:$4 sm:$0xff]  }
 0x21d   :  { %v606_v48 = vmul.f32 0.125, %v586_v44  ;;  %v619_v49 = vadd.f32 %v618_v45, %v617_v41  ;;  %v10646_v41 = vld [vmem:[#allocation20 + $0x2b8] sm:$0xff]  }
 0x21e   :  { %v607_v50 = vmul.f32 0.125, %v592_v46  ;;  %v625_v51 = vadd.f32 %v624_v47, %v623_v43  ;;  %v12482_v43 = vsub.s32 3, %v12453_v7 }
 0x21f   :  { %v638_v52 = vmul.f32 0.125, %v619_v49  ;;  %v642_v53 = vmul.f32 %v606_v48, %v606_v48  ;;  %v654_v1 = vsub.f32 %v573_v22, %v606_v48  ;;  %v10631_v22 = vld [vmem:[#allocation20 + $0x2c0] sm:$0xff]  }
 0x220   :  { %v639_v54 = vmul.f32 0.125, %v625_v51  ;;  %v643_v55 = vmul.f32 %v607_v50, %v607_v50  ;;  %v655_v4 = vsub.f32 %v574_v25, %v607_v50  ;;  %10213 = vmatprep.subr.bf16.mxu1 %v10631_v22  ;;  %v10634_v25 = vld [vmem:[#allocation20 + $0x288] sm:$0xff]   ;;  %v318_v44 = vrot.slane %v12455_v8, %v12482_v43  ;;  %v756_v8 = vld [vmem:[#allocation16 + $0xa] sm:$0x3] }
 0x221   :  { %v646_v56 = vsub.f32 %v638_v52, %v642_v53  ;;  %10214 = vmatpush3.bf16.msra.mxu1 %v10632_v23 }
 0x222   :  { %v647_v57 = vsub.f32 %v639_v54, %v643_v55  ;;  %10215 = vmatprep.subr.bf16.mxu1 %v10633_v24  ;;  %v561_v45 = vadd.f32 %v560_v31, %v318_v44 }
 0x223   :  { %v650_v58 = vmax.f32 %v646_v56, 0.0 }
 0x224   :  { %v651_v59 = vmax.f32 %v647_v57, 0.0  ;;  %v572_v46 = vmul.f32 0.01, %v561_v45  ;;  %vm568_vm2 = vcmp.gt.f32.partialorder %v561_v45, 0.0 }
 0x225   :  { %v658_v60 = vadd.f32 1e-05, %v650_v58  ;;  %10216 = vmatpush3.bf16.msra.mxu1 %v10634_v25  ;;  %v761_v58 = vrot.slane %v756_v8, %v12458_v9 }
 0x226   :  { %v659_v61 = vadd.f32 1e-05, %v651_v59  ;;  %10217 = vmatprep.subr.bf16.mxu1 %v10635_v26  ;;  %v12486_v47 = vsel %vm568_vm2, %v561_v45, %v572_v46 }
 0x227   :  { %11599 = vrsqrt.f32 %v658_v60  ;;  %v599_v48 = vrot.slane %v12486_v47, 4  ;;  %v613_v49 = vmul.f32 %v12486_v47, %v12486_v47 }
 0x228   :  { %11601 = vrsqrt.f32 %v659_v61  ;;  %v765_v61 = vrot.slane %v756_v8, %v12461_v10 }
 0x229   :  { %10218 = vmatpush3.bf16.msra.mxu1 %v10636_v27  ;;  %v600_v50 = vadd.f32 %v599_v48, %v12486_v47  ;;  %v632_v51 = vrot.slane %v613_v49, 4 }
 0x22a   :  { %10219 = vmatprep.subr.bf16.mxu1 %v10637_v28 }
 0x22b   :  { %v601_v52 = vrot.slane %v600_v50, 2  ;;  %v633_v53 = vadd.f32 %v632_v51, %v613_v49 }
 0x22d   :  { %10220 = vmatpush3.bf16.msra.mxu1 %v10638_v29  ;;  %v602_v54 = vadd.f32 %v601_v52, %v600_v50  ;;  %v634_v55 = vrot.slane %v633_v53, 2 }
 0x22e   :  { %10221 = vmatprep.subr.bf16.mxu1 %v10639_v32 }
 0x22f   :  { %v603_v56 = vrot.slane %v602_v54, 1  ;;  %v635_v57 = vadd.f32 %v634_v55, %v633_v53 }
 0x231   :  { %v11600_v3 = vpop.eup %11599  ;;  %10222 = vmatpush3.bf16.msra.mxu1 %v10640_v33  ;;  %v604_v59 = vadd.f32 %v603_v56, %v602_v54  ;;  %v636_v60 = vrot.slane %v635_v57, 1 }
 0x232   :  { %v11602_v6 = vpop.eup %11601  ;;  %v666_v11 = vmul.f32 %v11600_v3, %v654_v1  ;;  %10223 = vmatprep.subr.bf16.mxu1 %v10641_v36 }
 0x233   :  { %v667_v13 = vmul.f32 %v11602_v6, %v655_v4  ;;  %v12494_v4 = vmul.f32 0.125, %v604_v59  ;;  %v12511_v59 = vsub.s32 2, %v12453_v7  ;;  %v686_v7 = vrot.slane %v12467_v62, %v12482_v43 }
 0x234   :  { %v691_v15 = vmul.f32 %v674_v2, %v666_v11 }
 0x235   :  { %v692_v16 = vmul.f32 %v678_v5, %v667_v13  ;;  %10224 = vmatpush3.bf16.msra.mxu1 %v10642_v37  ;;  %v637_v5 = vadd.f32 %v636_v60, %v635_v57 }
 0x236   :  { %v716_v17 = vadd.f32 %v699_v12, %v691_v15  ;;  %10225 = vmatprep.subr.bf16.mxu1 %v10643_v38 }
 0x237   :  { %v717_v18 = vadd.f32 %v703_v14, %v692_v16  ;;  %v641_v16 = vmul.f32 0.125, %v637_v5 }
 0x238   :  { %v720_v21 = vpack.c.bf16 %v716_v17, %v716_v17  ;;  %v645_v17 = vmul.f32 %v12494_v4, %v12494_v4 }
 0x239   :  { %v721_v20 = vpack.c.bf16 %v717_v18, %v717_v18  ;;  %10226 = vmatpush3.bf16.msra.mxu1 %v10644_v39 }
 0x23a   :  { %10227 = vmatprep.subr.bf16.mxu1 %v10645_v40  ;;  %v649_v28 = vsub.f32 %v641_v16, %v645_v17  ;;  %v978_v17 = vld [vmem:[#allocation19 + $0xa] sm:$0x3] }
 0x23b   :  { %960 = vmatprep.mubr.bf16.mxu0 %v721_v20 }
 0x23c   :  { %961 = vmatmul.mubr.bf16.vlgmr.msra.gmra.mrb[4].mxu0 %v720_v21  ;;  %v653_v38 = vmax.f32 %v649_v28, 0.0 }
 0x23d   :  { %10228 = vmatpush3.bf16.msra.mxu1 %v10646_v41 }
 0x23e   :  { %1444 = vmatprep.subr.bf16.mxu1 %v10649_v42  ;;  %v661_v49 = vadd.f32 1e-05, %v653_v38 }
 0x240   :  { %11603 = vrsqrt.f32 %v661_v49 }
 0x30f   :  { %v962_v1 = vpop.f32.mrb[4].mxu0 }
 0x310   :  { %v963_v2 = vadd.f32 %v962_v1, %v761_v58  ;;  %v964_v3 = vpop.f32.mrb[5].mxu0 }
 0x311   :  { %v965_v6 = vadd.f32 %v964_v3, %v765_v61  ;;  %v966_v11 = vpop.f32.mrb[6].mxu0  ;;  %v11719_v3 = vld [vmem:[#allocation10 + $0x14] sm:$0xf] }
 0x312   :  { %vm969_vm3 = vcmp.gt.f32.partialorder %v963_v2, 0.0  ;;  %v971_v12 = vmul.f32 0.01, %v963_v2  ;;  %v967_v13 = vpop.f32.mrb[7].mxu0  ;;  %v314_v5 = vrot.slane %v11719_v3, %v12511_v59  ;;  %v11604_v11 = vpop.eup %11603  ;;  %v10667_v3 = vld [vmem:[#allocation14 + $0xb64] ss:$8 sps:$4 sm:$0xff]  }
 0x313   :  { %vm970_vm4 = vcmp.gt.f32.partialorder %v965_v6, 0.0  ;;  %v972_v14 = vmul.f32 0.01, %v965_v6  ;;  %v976_v13 = vld [vmem:[#allocation17 + $0xa] sm:$0x3] }
 0x314   :  { %v12496_v15 = vsel %vm969_vm3, %v963_v2, %v971_v12  ;;  %v559_v12 = vadd.f32 %v12479_v30, %v314_v5  ;;  %v711_v30 = vrot.slane %v12469_v63, %v12482_v43 }
 0x315   :  { %v979_v18 = vrot.slane %v12496_v15, 4  ;;  %v993_v20 = vmul.f32 %v12496_v15, %v12496_v15  ;;  %v12503_v21 = vsel %vm970_vm4, %v965_v6, %v972_v14  ;;  %v657_v6 = vsub.f32 %v12486_v47, %v12494_v4 }
 0x316   :  { %v985_v22 = vrot.slane %v12503_v21, 4  ;;  %v994_v23 = vmul.f32 %v12503_v21, %v12503_v21  ;;  %v571_v16 = vmul.f32 0.01, %v559_v12  ;;  %vm567_vm5 = vcmp.gt.f32.partialorder %v559_v12, 0.0 }
 0x317   :  { %v980_v24 = vadd.f32 %v979_v18, %v12496_v15  ;;  %v995_v25 = vrot.slane %v993_v20, 4  ;;  %v669_v14 = vmul.f32 %v11604_v11, %v657_v6  ;;  %v1031_v47 = vrot.slane %v976_v13, %v12461_v10  ;;  %v10665_v11 = vld [vmem:[#allocation14 + $0xb60] ss:$8 sps:$4 sm:$0xff]  }
 0x318   :  { %v986_v26 = vadd.f32 %v985_v22, %v12503_v21  ;;  %v1001_v27 = vrot.slane %v994_v23, 4 }
 0x319   :  { %v981_v29 = vrot.slane %v980_v24, 2  ;;  %v996_v31 = vadd.f32 %v995_v25, %v993_v20  ;;  %v1027_v20 = vrot.slane %v976_v13, %v12458_v9  ;;  %v694_v4 = vmul.f32 %v686_v7, %v669_v14  ;;  %v10668_v14 = vld [vmem:[#allocation14 + $0xb70] ss:$8 sps:$4 sm:$0xff]   ;;  %v10673_v7 = vld [vmem:[#allocation14 + $0xb84] ss:$8 sps:$4 sm:$0xff]  }
 0x31a   :  { %v987_v32 = vrot.slane %v986_v26, 2  ;;  %v1002_v33 = vadd.f32 %v1001_v27, %v994_v23  ;;  %v1040_v27 = vrot.slane %v978_v17, %v12458_v9 }
 0x31b   :  { %v982_v34 = vadd.f32 %v981_v29, %v980_v24  ;;  %v997_v35 = vrot.slane %v996_v31, 2 }
 0x31c   :  { %v988_v36 = vadd.f32 %v987_v32, %v986_v26  ;;  %v1003_v37 = vrot.slane %v1002_v33, 2  ;;  %v12525_v26 = vsel %vm567_vm5, %v559_v12, %v571_v16  ;;  %v10670_v12 = vld [vmem:[#allocation14 + $0xb74] ss:$8 sps:$4 sm:$0xff]  }
 0x31d   :  { %v983_v39 = vrot.slane %v982_v34, 1  ;;  %v998_v40 = vadd.f32 %v997_v35, %v996_v31  ;;  %v593_v31 = vrot.slane %v12525_v26, 4 }
 0x31e   :  { %v989_v41 = vrot.slane %v988_v36, 1  ;;  %v1004_v42 = vadd.f32 %v1003_v37, %v1002_v33  ;;  %v719_v33 = vadd.f32 %v711_v30, %v694_v4  ;;  %v10682_v4 = vld [vmem:[#allocation14 + $0xbb4] ss:$8 sps:$4 sm:$0xff]   ;;  %v10680_v30 = vld [vmem:[#allocation14 + $0xbb0] ss:$8 sps:$4 sm:$0xff]  }
 0x31f   :  { %v984_v44 = vadd.f32 %v983_v39, %v982_v34  ;;  %v999_v45 = vrot.slane %v998_v40, 1  ;;  %v10647_v39 = vld [vmem:[#allocation14 + $0xb00] ss:$8 sps:$4 sm:$0xff]  }
 0x320   :  { %v990_v46 = vadd.f32 %v989_v41, %v988_v36  ;;  %v1005_v48 = vrot.slane %v1004_v42, 1  ;;  %v594_v36 = vadd.f32 %v593_v31, %v12525_v26 }
 0x321   :  { %v991_v50 = vmul.f32 0.125, %v984_v44  ;;  %v1000_v51 = vadd.f32 %v999_v45, %v998_v40  ;;  %v1237_v40 = vpack.c.bf16 %v719_v33, %v719_v33  ;;  %v10689_v33 = vld [vmem:[#allocation14 + $0xbe0] ss:$8 sps:$4 sm:$0xff]  }
 0x322   :  { %v992_v52 = vmul.f32 0.125, %v990_v46  ;;  %v1006_v53 = vadd.f32 %v1005_v48, %v1004_v42  ;;  %v10652_v42 = vld [vmem:[#allocation14 + $0xb14] ss:$8 sps:$4 sm:$0xff]   ;;  %v595_v44 = vrot.slane %v594_v36, 2  ;;  %v10650_v46 = vld [vmem:[#allocation14 + $0xb10] ss:$8 sps:$4 sm:$0xff]  }
 0x323   :  { %v1007_v54 = vmul.f32 0.125, %v1000_v51  ;;  %v1009_v55 = vmul.f32 %v991_v50, %v991_v50  ;;  %v1015_v18 = vsub.f32 %v12496_v15, %v991_v50  ;;  %v1044_v15 = vrot.slane %v978_v17, %v12461_v10  ;;  %v10655_v48 = vld [vmem:[#allocation14 + $0xb24] ss:$8 sps:$4 sm:$0xff]   ;;  %v10653_v51 = vld [vmem:[#allocation14 + $0xb20] ss:$8 sps:$4 sm:$0xff]  }
 0x324   :  { %v1008_v56 = vmul.f32 0.125, %v1006_v53  ;;  %v1010_v57 = vmul.f32 %v992_v52, %v992_v52  ;;  %v1016_v23 = vsub.f32 %v12503_v21, %v992_v52  ;;  %v612_v21 = vmul.f32 %v12525_v26, %v12525_v26  ;;  %v10658_v52 = vld [vmem:[#allocation14 + $0xb34] ss:$8 sps:$4 sm:$0xff]   ;;  %v10671_v17 = vld [vmem:[#allocation14 + $0xb80] ss:$8 sps:$4 sm:$0xff]  }
 0x325   :  { %v1011_v8 = vsub.f32 %v1007_v54, %v1009_v55  ;;  %v596_v49 = vadd.f32 %v595_v44, %v594_v36  ;;  %v10656_v55 = vld [vmem:[#allocation14 + $0xb30] ss:$8 sps:$4 sm:$0xff]   ;;  %v707_v36 = vrot.slane %v12469_v63, %v12511_v59  ;;  %v10701_v63 = vld [vmem:[#allocation20 + $0x5d8] sm:$0xff]  }
 0x326   :  { %v1012_v58 = vsub.f32 %v1008_v56, %v1010_v57  ;;  %v626_v37 = vrot.slane %v612_v21, 4  ;;  %v10661_v56 = vld [vmem:[#allocation14 + $0xb44] ss:$8 sps:$4 sm:$0xff]   ;;  %v10700_v44 = vld [vmem:[#allocation20 + $0x590] sm:$0xff]  }
 0x327   :  { %v1013_v60 = vmax.f32 %v1011_v8, 0.0  ;;  %v597_v53 = vrot.slane %v596_v49, 1 }
 0x328   :  { %v1014_v61 = vmax.f32 %v1012_v58, 0.0  ;;  %v627_v45 = vadd.f32 %v626_v37, %v612_v21  ;;  %v10659_v58 = vld [vmem:[#allocation14 + $0xb40] ss:$8 sps:$4 sm:$0xff]   ;;  %v10691_v21 = vld [vmem:[#allocation14 + $0xbe4] ss:$8 sps:$4 sm:$0xff]  }
 0x329   :  { %v1017_v1 = vadd.f32 1e-05, %v1013_v60  ;;  %v598_v57 = vadd.f32 %v597_v53, %v596_v49  ;;  %v10664_v60 = vld [vmem:[#allocation14 + $0xb54] ss:$8 sps:$4 sm:$0xff]   ;;  %v10709_v53 = vld [vmem:[#allocation20 + $0x5f8] sm:$0xff]  }
 0x32a   :  { %v1018_v2 = vadd.f32 1e-05, %v1014_v61  ;;  %v628_v50 = vrot.slane %v627_v45, 2  ;;  %v10705_v49 = vld [vmem:[#allocation20 + $0x5e8] sm:$0xff]  }
 0x32b   :  { %11605 = vrsqrt.f32 %v1017_v1  ;;  %v608_v61 = vmul.f32 0.125, %v598_v57  ;;  %v10716_v57 = vld [vmem:[#allocation8 + $0x40c] ss:$16 sps:$4 sm:$0xff]  }
 0x32c   :  { %11607 = vrsqrt.f32 %v1018_v2  ;;  %v629_v54 = vadd.f32 %v628_v50, %v627_v45  ;;  %v10662_v2 = vld [vmem:[#allocation14 + $0xb50] ss:$8 sps:$4 sm:$0xff]   ;;  %v10702_v45 = vld [vmem:[#allocation20 + $0x598] sm:$0xff]  }
 0x32d   :  { %v644_v6 = vmul.f32 %v608_v61, %v608_v61  ;;  %v10706_v50 = vld [vmem:[#allocation20 + $0x5a8] sm:$0xff]  }
 0x32e   :  { %v630_v8 = vrot.slane %v629_v54, 1 }
 0x330   :  { %v631_v1 = vadd.f32 %v630_v8, %v629_v54  ;;  %v10710_v54 = vld [vmem:[#allocation20 + $0x5b8] sm:$0xff]  }
 0x331   :  { %v10722_v8 = vld [vmem:[#allocation8 + $0x42c] ss:$16 sps:$4 sm:$0xff]  }
 0x332   :  { %v640_v5 = vmul.f32 0.125, %v631_v1 }
 0x334   :  { %v648_v13 = vsub.f32 %v640_v5, %v644_v6 }
 0x335   :  { %v11606_v22 = vpop.eup %11605 }
 0x336   :  { %v11608_v24 = vpop.eup %11607  ;;  %v1021_v25 = vmul.f32 %v11606_v22, %v1015_v18  ;;  %v652_v16 = vmax.f32 %v648_v13, 0.0  ;;  %v10676_v18 = vld [vmem:[#allocation14 + $0xb94] ss:$8 sps:$4 sm:$0xff]   ;;  %v10674_v22 = vld [vmem:[#allocation14 + $0xb90] ss:$8 sps:$4 sm:$0xff]  }
 0x337   :  { %v1022_v28 = vmul.f32 %v11608_v24, %v1016_v23  ;;  %v10679_v23 = vld [vmem:[#allocation14 + $0xba4] ss:$8 sps:$4 sm:$0xff]  }
 0x338   :  { %v1034_v29 = vmul.f32 %v1027_v20, %v1021_v25  ;;  %v660_v20 = vadd.f32 1e-05, %v652_v16  ;;  %v10685_v24 = vld [vmem:[#allocation14 + $0xbc4] ss:$8 sps:$4 sm:$0xff]   ;;  %v10683_v25 = vld [vmem:[#allocation14 + $0xbc0] ss:$8 sps:$4 sm:$0xff]  }
 0x339   :  { %v1035_v32 = vmul.f32 %v1031_v47, %v1022_v28  ;;  %v10677_v47 = vld [vmem:[#allocation14 + $0xba0] ss:$8 sps:$4 sm:$0xff]   ;;  %v10688_v28 = vld [vmem:[#allocation14 + $0xbd4] ss:$8 sps:$4 sm:$0xff]  }
 0x33a   :  { %v1047_v34 = vadd.f32 %v1040_v27, %v1034_v29  ;;  %11609 = vrsqrt.f32 %v660_v20  ;;  %v656_v27 = vsub.f32 %v12525_v26, %v608_v61  ;;  %v10686_v29 = vld [vmem:[#allocation14 + $0xbd0] ss:$8 sps:$4 sm:$0xff]  }
 0x33b   :  { %v1048_v35 = vadd.f32 %v1044_v15, %v1035_v32  ;;  %v682_v32 = vrot.slane %v12467_v62, %v12511_v59  ;;  %v10692_v26 = vld [vmem:[#allocation14 + $0xbf0] ss:$8 sps:$4 sm:$0xff]  }
 0x33c   :  { %v1049_v41 = vpack.c.bf16 %v1047_v34, %v1047_v34  ;;  %v10694_v34 = vld [vmem:[#allocation14 + $0xbf4] ss:$8 sps:$4 sm:$0xff]   ;;  %v10726_v61 = vld [vmem:[#allocation8 + $0x448] ss:$16 sps:$4 sm:$0xff]  }
 0x33d   :  { %v1050_v38 = vpack.c.bf16 %v1048_v35, %v1048_v35  ;;  %v10697_v62 = vld [vmem:[#allocation20 + $0x5c8] sm:$0xff]  }
 0x33f   :  { %1220 = vmatprep.mubr.bf16.mxu1 %v1050_v38 }
 0x340   :  { %1221 = vmatmul.mubr.bf16.vlgmr.msra.gmra.mrb[4].mxu1 %v1049_v41  ;;  %v10698_v41 = vld [vmem:[#allocation20 + $0x588] sm:$0xff]  }
 0x341   :  { %1445 = vmatpush1.bf16.msra.mxu1 %v10647_v39  ;;  %1476 = vmatprep.mubr.bf16.mxu1 %v1237_v40  ;;  %v10695_v39 = vld [vmem:[#allocation20 + $0x5c0] sm:$0xff]  }
 0x342   :  { %1446 = vmatprep.subr.bf16.mxu1 %v10652_v42  ;;  %v10696_v40 = vld [vmem:[#allocation20 + $0x580] sm:$0xff]   ;;  %10235 = vmatprep.subr.bf16.mxu0 %v10695_v39  ;;  %v10699_v42 = vld [vmem:[#allocation20 + $0x5d0] sm:$0xff]  }
 0x343   :  { %10236 = vmatpush3.bf16.msra.mxu0 %v10696_v40 }
 0x344   :  { %v11610_v15 = vpop.eup %11609  ;;  %10237 = vmatprep.subr.bf16.mxu0 %v10697_v62 }
 0x345   :  { %1447 = vmatpush1.bf16.msra.mxu1 %v10650_v46  ;;  %v668_v31 = vmul.f32 %v11610_v15, %v656_v27  ;;  %v10703_v46 = vld [vmem:[#allocation20 + $0x5e0] sm:$0xff]  }
 0x346   :  { %1448 = vmatprep.subr.bf16.mxu1 %v10655_v48  ;;  %v10704_v48 = vld [vmem:[#allocation20 + $0x5a0] sm:$0xff]  }
 0x347   :  { %v693_v35 = vmul.f32 %v682_v32, %v668_v31  ;;  %10238 = vmatpush3.bf16.msra.mxu0 %v10698_v41 }
 0x348   :  { %10239 = vmatprep.subr.bf16.mxu0 %v10699_v42 }
 0x349   :  { %1449 = vmatpush1.bf16.msra.mxu1 %v10653_v51  ;;  %v718_v37 = vadd.f32 %v707_v36, %v693_v35  ;;  %v10707_v51 = vld [vmem:[#allocation20 + $0x5f0] sm:$0xff]  }
 0x34a   :  { %1450 = vmatprep.subr.bf16.mxu1 %v10658_v52  ;;  %v10708_v52 = vld [vmem:[#allocation20 + $0x5b0] sm:$0xff]  }
 0x34b   :  { %v1236_v38 = vpack.c.bf16 %v718_v37, %v718_v37  ;;  %10240 = vmatpush3.bf16.msra.mxu0 %v10700_v44 }
 0x34c   :  { %10241 = vmatprep.subr.bf16.mxu0 %v10701_v63 }
 0x34d   :  { %1451 = vmatpush1.bf16.msra.mxu1 %v10656_v55  ;;  %v10713_v55 = vld [vmem:[#allocation8 + $0x404] ss:$16 sps:$4 sm:$0xff]  }
 0x34e   :  { %1452 = vmatprep.subr.bf16.mxu1 %v10661_v56  ;;  %v10714_v56 = vld [vmem:[#allocation8 + $0x408] ss:$16 sps:$4 sm:$0xff]  }
 0x34f   :  { %10242 = vmatpush3.bf16.msra.mxu0 %v10702_v45 }
 0x350   :  { %10243 = vmatprep.subr.bf16.mxu0 %v10703_v46 }
 0x351   :  { %1453 = vmatpush1.bf16.msra.mxu1 %v10659_v58  ;;  %v10720_v58 = vld [vmem:[#allocation8 + $0x428] ss:$16 sps:$4 sm:$0xff]  }
 0x352   :  { %1454 = vmatprep.subr.bf16.mxu1 %v10664_v60  ;;  %v10728_v60 = vld [vmem:[#allocation8 + $0x44c] ss:$16 sps:$4 sm:$0xff]  }
 0x353   :  { %10244 = vmatpush3.bf16.msra.mxu0 %v10704_v48 }
 0x354   :  { %10245 = vmatprep.subr.bf16.mxu0 %v10705_v49 }
 0x355   :  { %1455 = vmatpush1.bf16.msra.mxu1 %v10662_v2 }
 0x356   :  { %1456 = vmatprep.subr.bf16.mxu1 %v10667_v3 }
 0x357   :  { %10246 = vmatpush3.bf16.msra.mxu0 %v10706_v50 }
 0x358   :  { %10247 = vmatprep.subr.bf16.mxu0 %v10707_v51 }
 0x359   :  { %1457 = vmatpush1.bf16.msra.mxu1 %v10665_v11  ;;  %v1272_v11 = vld [vmem:[#allocation16 + $0x16] sm:$0x3] }
 0x35a   :  { %1458 = vmatprep.subr.bf16.mxu1 %v10670_v12  ;;  %v1277_v12 = vrot.slane %v1272_v11, %v12458_v9  ;;  %v1281_v13 = vrot.slane %v1272_v11, %v12461_v10 }
 0x35b   :  { %10248 = vmatpush3.bf16.msra.mxu0 %v10708_v52 }
 0x35c   :  { %10249 = vmatprep.subr.bf16.mxu0 %v10709_v53 }
 0x35d   :  { %1459 = vmatpush1.bf16.msra.mxu1 %v10668_v14 }
 0x35e   :  { %1460 = vmatprep.subr.bf16.mxu1 %v10673_v7 }
 0x35f   :  { %10250 = vmatpush3.bf16.msra.mxu0 %v10710_v54 }
 0x360   :  { %1987 = vmatprep.subr.bf16.mxu0 %v10713_v55 }
 0x361   :  { %1461 = vmatpush1.bf16.msra.mxu1 %v10671_v17 }
 0x362   :  { %1462 = vmatprep.subr.bf16.mxu1 %v10676_v18 }
 0x365   :  { %1463 = vmatpush1.bf16.msra.mxu1 %v10674_v22 }
 0x366   :  { %1464 = vmatprep.subr.bf16.mxu1 %v10679_v23 }
 0x369   :  { %1465 = vmatpush1.bf16.msra.mxu1 %v10677_v47 }
 0x36a   :  { %1466 = vmatprep.subr.bf16.mxu1 %v10682_v4 }
 0x36d   :  { %1467 = vmatpush1.bf16.msra.mxu1 %v10680_v30 }
 0x36e   :  { %1468 = vmatprep.subr.bf16.mxu1 %v10685_v24 }
 0x371   :  { %1469 = vmatpush1.bf16.msra.mxu1 %v10683_v25 }
 0x372   :  { %1470 = vmatprep.subr.bf16.mxu1 %v10688_v28 }
 0x375   :  { %1471 = vmatpush1.bf16.msra.mxu1 %v10686_v29 }
 0x376   :  { %1472 = vmatprep.subr.bf16.mxu1 %v10691_v21 }
 0x379   :  { %1473 = vmatpush1.bf16.msra.mxu1 %v10689_v33 }
 0x37a   :  { %1474 = vmatprep.subr.bf16.mxu1 %v10694_v34 }
 0x37d   :  { %1475 = vmatpush1.bf16.msra.mxu1 %v10692_v26 }
 0x37e   :  { %2028 = vmatprep.subr.bf16.mxu1 %v10716_v57 }
 0x380   :  { %1477 = vmatmul.mubr.bf16.vlgmr.msra.gmra.mrb[8].mxu1 %v1236_v38 }
 0x381   :  { %2060 = vmatprep.mubr.bf16.mxu1 %v12139_v0  ;;  %2029 = vmatpush1.bf16.msra.mxu1 %v10714_v56 }
 0x382   :  { %2030 = vmatprep.subr.bf16.mxu1 %v10722_v8 }
 0x385   :  { %2031 = vmatpush1.bf16.msra.mxu1 %v10720_v58 }
 0x386   :  { %2032 = vmatprep.subr.bf16.mxu1 %v10728_v60  ;;  %v1492_v60 = vld [vmem:[#allocation17 + $0x16] sm:$0x3] }
 0x387   :  { %v1547_v11 = vrot.slane %v1492_v60, %v12461_v10 }
 0x389   :  { %2033 = vmatpush1.bf16.msra.mxu1 %v10726_v61  ;;  %v1494_v61 = vld [vmem:[#allocation19 + $0x16] sm:$0x3] }
 0x413   :  { %v10229_v1 = vpop.f32.mrb[4].mxu1 }
 0x414   :  { %v10230_v2 = vpop.f32.mrb[5].mxu1 }
 0x415   :  { %v12539_v3 = vadd.f32 %v10230_v2, %v10229_v1  ;;  %v10232_v5 = vpop.f32.mrb[6].mxu1  ;;  %v1543_v2 = vrot.slane %v1492_v60, %v12458_v9 }
 0x416   :  { %v10233_v6 = vpop.f32.mrb[7].mxu1 }
 0x453   :  { %v1478_v14 = vpop.f32.mrb[8].mxu1 }
 0x454   :  { %v1479_v7 = vadd.f32 %v1478_v14, %v1277_v12  ;;  %v1480_v16 = vpop.f32.mrb[9].mxu1  ;;  %v1556_v14 = vrot.slane %v1494_v61, %v12458_v9 }
 0x455   :  { %v1481_v17 = vadd.f32 %v1480_v16, %v1281_v13  ;;  %v1482_v18 = vpop.f32.mrb[10].mxu1  ;;  %v1560_v16 = vrot.slane %v1494_v61, %v12461_v10 }
 0x456   :  { %vm1485_vm6 = vcmp.gt.f32.partialorder %v1479_v7, 0.0  ;;  %v1487_v20 = vmul.f32 0.01, %v1479_v7  ;;  %v1483_v22 = vpop.f32.mrb[11].mxu1 }
 0x457   :  { %vm1486_vm7 = vcmp.gt.f32.partialorder %v1481_v17, 0.0  ;;  %v1488_v23 = vmul.f32 0.01, %v1481_v17 }
 0x458   :  { %v1489_v47 = vsel %vm1485_vm6, %v1479_v7, %v1487_v20 }
 0x459   :  { %v1495_v4 = vrot.slane %v1489_v47, 4  ;;  %v1509_v30 = vmul.f32 %v1489_v47, %v1489_v47  ;;  %v1490_v24 = vsel %vm1486_vm7, %v1481_v17, %v1488_v23 }
 0x45a   :  { %v1501_v25 = vrot.slane %v1490_v24, 4  ;;  %v1510_v27 = vmul.f32 %v1490_v24, %v1490_v24 }
 0x45b   :  { %v1496_v28 = vadd.f32 %v1495_v4, %v1489_v47  ;;  %v1511_v15 = vrot.slane %v1509_v30, 4  ;;  %v10711_v4 = vld [vmem:[#allocation8 + $0x400] ss:$16 sps:$4 sm:$0xff]  }
 0x45c   :  { %v1502_v29 = vadd.f32 %v1501_v25, %v1490_v24  ;;  %v1517_v31 = vrot.slane %v1510_v27, 4  ;;  %v10725_v25 = vld [vmem:[#allocation8 + $0x444] ss:$16 sps:$4 sm:$0xff]  }
 0x45d   :  { %v1497_v21 = vrot.slane %v1496_v28, 2  ;;  %v1512_v32 = vadd.f32 %v1511_v15, %v1509_v30  ;;  %v10719_v30 = vld [vmem:[#allocation8 + $0x424] ss:$16 sps:$4 sm:$0xff]   ;;  %v10734_v15 = vld [vmem:[#allocation8 + $0x46c] ss:$16 sps:$4 sm:$0xff]  }
 0x45e   :  { %v1503_v33 = vrot.slane %v1502_v29, 2  ;;  %v1518_v34 = vadd.f32 %v1517_v31, %v1510_v27  ;;  %v10723_v27 = vld [vmem:[#allocation8 + $0x440] ss:$16 sps:$4 sm:$0xff]   ;;  %v10732_v31 = vld [vmem:[#allocation8 + $0x468] ss:$16 sps:$4 sm:$0xff]   ;;  %2034 = vmatprep.subr.bf16.mxu1 %v10734_v15 }
 0x45f   :  { %v1498_v35 = vadd.f32 %v1497_v21, %v1496_v28  ;;  %v1513_v36 = vrot.slane %v1512_v32, 2  ;;  %v10731_v28 = vld [vmem:[#allocation8 + $0x464] ss:$16 sps:$4 sm:$0xff]   ;;  %2035 = vmatpush1.bf16.msra.mxu1 %v10732_v31 }
 0x460   :  { %v1504_v26 = vadd.f32 %v1503_v33, %v1502_v29  ;;  %v1519_v37 = vrot.slane %v1518_v34, 2  ;;  %v10729_v29 = vld [vmem:[#allocation8 + $0x460] ss:$16 sps:$4 sm:$0xff]   ;;  %v10737_v21 = vld [vmem:[#allocation8 + $0x484] ss:$16 sps:$4 sm:$0xff]  }
 0x461   :  { %v1499_v38 = vrot.slane %v1498_v35, 1  ;;  %v1514_v39 = vadd.f32 %v1513_v36, %v1512_v32  ;;  %v10740_v32 = vld [vmem:[#allocation8 + $0x48c] ss:$16 sps:$4 sm:$0xff]   ;;  %v10735_v33 = vld [vmem:[#allocation8 + $0x480] ss:$16 sps:$4 sm:$0xff]  }
 0x462   :  { %v1505_v40 = vrot.slane %v1504_v26, 1  ;;  %v1520_v62 = vadd.f32 %v1519_v37, %v1518_v34  ;;  %v10738_v34 = vld [vmem:[#allocation8 + $0x488] ss:$16 sps:$4 sm:$0xff]   ;;  %2036 = vmatprep.subr.bf16.mxu1 %v10740_v32  ;;  %v10746_v36 = vld [vmem:[#allocation8 + $0x4ac] ss:$16 sps:$4 sm:$0xff]  }
 0x463   :  { %v1500_v41 = vadd.f32 %v1499_v38, %v1498_v35  ;;  %v1515_v42 = vrot.slane %v1514_v39, 1  ;;  %2037 = vmatpush1.bf16.msra.mxu1 %v10738_v34  ;;  %v10743_v35 = vld [vmem:[#allocation8 + $0x4a4] ss:$16 sps:$4 sm:$0xff]   ;;  %v10744_v37 = vld [vmem:[#allocation8 + $0x4a8] ss:$16 sps:$4 sm:$0xff]  }
 0x464   :  { %v1506_v44 = vadd.f32 %v1505_v40, %v1504_v26  ;;  %v1521_v63 = vrot.slane %v1520_v62, 1  ;;  %v10741_v26 = vld [vmem:[#allocation8 + $0x4a0] ss:$16 sps:$4 sm:$0xff]   ;;  %2038 = vmatprep.subr.bf16.mxu1 %v10746_v36  ;;  %v10749_v38 = vld [vmem:[#allocation8 + $0x4c4] ss:$16 sps:$4 sm:$0xff]  }
 0x465   :  { %v1507_v45 = vmul.f32 0.125, %v1500_v41  ;;  %v1516_v46 = vadd.f32 %v1515_v42, %v1514_v39  ;;  %v10752_v39 = vld [vmem:[#allocation8 + $0x4cc] ss:$16 sps:$4 sm:$0xff]   ;;  %v10747_v40 = vld [vmem:[#allocation8 + $0x4c0] ss:$16 sps:$4 sm:$0xff]  }
 0x466   :  { %v1508_v48 = vmul.f32 0.125, %v1506_v44  ;;  %v1522_v49 = vadd.f32 %v1521_v63, %v1520_v62  ;;  %v10750_v62 = vld [vmem:[#allocation8 + $0x4c8] ss:$16 sps:$4 sm:$0xff]   ;;  %v10755_v41 = vld [vmem:[#allocation8 + $0x4e4] ss:$16 sps:$4 sm:$0xff]  }
 0x467   :  { %v1523_v50 = vmul.f32 0.125, %v1516_v46  ;;  %v1525_v51 = vmul.f32 %v1507_v45, %v1507_v45  ;;  %v1531_v1 = vsub.f32 %v1489_v47, %v1507_v45  ;;  %2039 = vmatpush1.bf16.msra.mxu1 %v10744_v37  ;;  %v10753_v42 = vld [vmem:[#allocation8 + $0x4e0] ss:$16 sps:$4 sm:$0xff]   ;;  %v10756_v44 = vld [vmem:[#allocation8 + $0x4e8] ss:$16 sps:$4 sm:$0xff]  }
 0x468   :  { %v1524_v52 = vmul.f32 0.125, %v1522_v49  ;;  %v1526_v53 = vmul.f32 %v1508_v48, %v1508_v48  ;;  %v1532_v6 = vsub.f32 %v1490_v24, %v1508_v48  ;;  %v10717_v24 = vld [vmem:[#allocation8 + $0x420] ss:$16 sps:$4 sm:$0xff]   ;;  %2040 = vmatprep.subr.bf16.mxu1 %v10752_v39  ;;  %v10758_v63 = vld [vmem:[#allocation8 + $0x4ec] ss:$16 sps:$4 sm:$0xff]  }
 0x469   :  { %v1527_v54 = vsub.f32 %v1523_v50, %v1525_v51  ;;  %v10761_v45 = vld [vmem:[#allocation14 + $0x404] ss:$8 sps:$4 sm:$0xff]   ;;  %v9494_v50 = vld [vmem:[#allocation7 + $0x5] ss:$0 sm:$0xff] }
 0x46a   :  { %v1528_v55 = vsub.f32 %v1524_v52, %v1526_v53  ;;  %v9477_v46 = vld [vmem:[#allocation22 + $0x5] ss:$0 sm:$0xff]  ;;  %v10788_v31 = vld [vmem:[#allocation14 + $0x494] ss:$8 sps:$4 sm:$0xff]  }
 0x46b   :  { %v1529_v56 = vmax.f32 %v1527_v54, 0.0  ;;  %2041 = vmatpush1.bf16.msra.mxu1 %v10750_v62  ;;  %v1223_v48 = vadd.f32 %v12539_v3, %v9477_v46  ;;  %v10785_v15 = vld [vmem:[#allocation14 + $0x484] ss:$8 sps:$4 sm:$0xff]   ;;  %v10794_v34 = vld [vmem:[#allocation14 + $0x4b4] ss:$8 sps:$4 sm:$0xff]  }
 0x46c   :  { %v1530_v57 = vmax.f32 %v1528_v55, 0.0  ;;  %2042 = vmatprep.subr.bf16.mxu1 %v10758_v63  ;;  %v9527_v55 = vld [vmem:[#allocation22 + $0xb] ss:$0 sm:$0xff]  ;;  %v10791_v32 = vld [vmem:[#allocation14 + $0x4a4] ss:$8 sps:$4 sm:$0xff]  }
 0x46d   :  { %v1533_v8 = vadd.f32 1e-05, %v1529_v56  ;;  %v10797_v36 = vld [vmem:[#allocation14 + $0x4c4] ss:$8 sps:$4 sm:$0xff]   ;;  %v10800_v37 = vld [vmem:[#allocation14 + $0x4d4] ss:$8 sps:$4 sm:$0xff]  }
 0x46e   :  { %v1534_v58 = vadd.f32 1e-05, %v1530_v57  ;;  %v10803_v39 = vld [vmem:[#allocation14 + $0x4e4] ss:$8 sps:$4 sm:$0xff]   ;;  %v10806_v62 = vld [vmem:[#allocation14 + $0x4f4] ss:$8 sps:$4 sm:$0xff]  }
 0x46f   :  { %11611 = vrsqrt.f32 %v1533_v8  ;;  %2043 = vmatpush1.bf16.msra.mxu1 %v10756_v44 }
 0x470   :  { %11613 = vrsqrt.f32 %v1534_v58 }
 0x471   :  { %11615 = vtanh.f32 %v1223_v48 }
 0x479   :  { %v11612_v5 = vpop.eup %11611 }
 0x47a   :  { %v11614_v12 = vpop.eup %11613  ;;  %v1537_v13 = vmul.f32 %v11612_v5, %v1531_v1  ;;  %v11720_v1 = vld [vmem:[#allocation2] sm:$0xff] }
 0x47b   :  { %v1538_v7 = vmul.f32 %v11614_v12, %v1532_v6  ;;  %v11616_v49 = vpop.eup %11615 }
 0x47c   :  { %v1550_v17 = vmul.f32 %v1543_v2, %v1537_v13  ;;  %v12549_v51 = vmul.f32 %v11616_v49, %v9494_v50 }
 0x47d   :  { %v1551_v18 = vmul.f32 %v1547_v11, %v1538_v7  ;;  %v9544_v11 = vld [vmem:[#allocation5 + $0x4] ss:$0 sm:$0xff] }
 0x47e   :  { %v1563_v20 = vadd.f32 %v1556_v14, %v1550_v17  ;;  %v1747_v52 = vsub.f32 0.0, %v12549_v51  ;;  %v10759_v14 = vld [vmem:[#allocation14 + $0x400] ss:$8 sps:$4 sm:$0xff]   ;;  %v10762_v17 = vld [vmem:[#allocation14 + $0x410] ss:$8 sps:$4 sm:$0xff]  }
 0x47f   :  { %v1564_v22 = vadd.f32 %v1560_v16, %v1551_v18  ;;  %v10764_v16 = vld [vmem:[#allocation14 + $0x414] ss:$8 sps:$4 sm:$0xff]   ;;  %v10767_v18 = vld [vmem:[#allocation14 + $0x424] ss:$8 sps:$4 sm:$0xff]  }
 0x480   :  { %v1565_v47 = vpack.c.bf16 %v1563_v20, %v1563_v20  ;;  %v1748_v53 = vmul.f32 1.442695, %v1747_v52  ;;  %v10765_v20 = vld [vmem:[#allocation14 + $0x420] ss:$8 sps:$4 sm:$0xff]  }
 0x481   :  { %v1566_v23 = vpack.c.bf16 %v1564_v22, %v1564_v22  ;;  %v10770_v22 = vld [vmem:[#allocation14 + $0x434] ss:$8 sps:$4 sm:$0xff]  }
 0x482   :  { %11617 = vpow2.f32 %v1748_v53 }
 0x483   :  { %1736 = vmatprep.mubr.bf16.mxu0 %v1566_v23  ;;  %v10773_v23 = vld [vmem:[#allocation14 + $0x444] ss:$8 sps:$4 sm:$0xff]  }
 0x484   :  { %1737 = vmatmul.mubr.bf16.vlgmr.msra.gmra.mrb[8].mxu0 %v1565_v47  ;;  %v10776_v47 = vld [vmem:[#allocation14 + $0x454] ss:$8 sps:$4 sm:$0xff]  }
 0x485   :  { %1988 = vmatpush1.bf16.msra.mxu0 %v10711_v4  ;;  %2019 = vmatprep.mubr.bf16.mxu0 %v12139_v0  ;;  %v10771_v4 = vld [vmem:[#allocation14 + $0x440] ss:$8 sps:$4 sm:$0xff]  }
 0x486   :  { %1989 = vmatprep.subr.bf16.mxu0 %v10719_v30  ;;  %v10774_v30 = vld [vmem:[#allocation14 + $0x450] ss:$8 sps:$4 sm:$0xff]  }
 0x489   :  { %1990 = vmatpush1.bf16.msra.mxu0 %v10717_v24  ;;  %v10779_v24 = vld [vmem:[#allocation14 + $0x464] ss:$8 sps:$4 sm:$0xff]  }
 0x48a   :  { %1991 = vmatprep.subr.bf16.mxu0 %v10725_v25  ;;  %v10777_v25 = vld [vmem:[#allocation14 + $0x460] ss:$8 sps:$4 sm:$0xff]  }
 0x48c   :  { %v11618_v5 = vpop.eup %11617 }
 0x48d   :  { %1992 = vmatpush1.bf16.msra.mxu0 %v10723_v27  ;;  %v10782_v27 = vld [vmem:[#allocation14 + $0x474] ss:$8 sps:$4 sm:$0xff]  }
 0x48e   :  { %1993 = vmatprep.subr.bf16.mxu0 %v10731_v28  ;;  %v10780_v28 = vld [vmem:[#allocation14 + $0x470] ss:$8 sps:$4 sm:$0xff]  }
 0x491   :  { %1994 = vmatpush1.bf16.msra.mxu0 %v10729_v29  ;;  %v10783_v29 = vld [vmem:[#allocation14 + $0x480] ss:$8 sps:$4 sm:$0xff]  }
 0x492   :  { %1995 = vmatprep.subr.bf16.mxu0 %v10737_v21  ;;  %v10786_v21 = vld [vmem:[#allocation14 + $0x490] ss:$8 sps:$4 sm:$0xff]  }
 0x495   :  { %1996 = vmatpush1.bf16.msra.mxu0 %v10735_v33  ;;  %v10789_v33 = vld [vmem:[#allocation14 + $0x4a0] ss:$8 sps:$4 sm:$0xff]  }
 0x496   :  { %1997 = vmatprep.subr.bf16.mxu0 %v10743_v35  ;;  %v10792_v35 = vld [vmem:[#allocation14 + $0x4b0] ss:$8 sps:$4 sm:$0xff]  }
 0x499   :  { %1998 = vmatpush1.bf16.msra.mxu0 %v10741_v26  ;;  %v10795_v26 = vld [vmem:[#allocation14 + $0x4c0] ss:$8 sps:$4 sm:$0xff]  }
 0x49a   :  { %1999 = vmatprep.subr.bf16.mxu0 %v10749_v38  ;;  %v10798_v38 = vld [vmem:[#allocation14 + $0x4d0] ss:$8 sps:$4 sm:$0xff]  }
 0x49d   :  { %2000 = vmatpush1.bf16.msra.mxu0 %v10747_v40  ;;  %v10801_v40 = vld [vmem:[#allocation14 + $0x4e0] ss:$8 sps:$4 sm:$0xff]  }
 0x49e   :  { %2001 = vmatprep.subr.bf16.mxu0 %v10755_v41  ;;  %v10804_v41 = vld [vmem:[#allocation14 + $0x4f0] ss:$8 sps:$4 sm:$0xff]  }
 0x4a1   :  { %2002 = vmatpush1.bf16.msra.mxu0 %v10753_v42  ;;  %v1805_v42 = vld [vmem:[#allocation10 + $0x10] sm:$0xf] }
 0x4a2   :  { %2431 = vmatprep.subr.bf16.mxu0 %v10761_v45  ;;  %v1810_v44 = vrot.slane %v1805_v42, %v12458_v9  ;;  %v1818_v63 = vrot.slane %v1805_v42, %v12511_v59  ;;  %v1814_v45 = vrot.slane %v1805_v42, %v12461_v10  ;;  %v1822_v46 = vrot.slane %v1805_v42, %v12482_v43 }
 0x557   :  { %v10251_v54 = vpop.f32.mrb[8].mxu0 }
 0x558   :  { %v10252_v56 = vpop.f32.mrb[9].mxu0 }
 0x559   :  { %v10253_v57 = vadd.f32 %v10252_v56, %v10251_v54  ;;  %v10254_v8 = vpop.f32.mrb[10].mxu0 }
 0x55a   :  { %v10255_v58 = vpop.f32.mrb[11].mxu0 }
 0x55b   :  { %v1739_v60 = vadd.f32 %v10253_v57, %v9527_v55 }
 0x55d   :  { %v1744_v61 = vmul.f32 %v9494_v50, %v1739_v60 }
 0x55f   :  { %v1745_v2 = vsub.f32 %v11720_v1, %v1744_v61 }
 0x561   :  { %v1746_v3 = vmul.f32 %v9494_v50, %v1745_v2 }
 0x563   :  { %v1750_v6 = vmul.f32 %v11618_v5, %v1746_v3 }
 0x565   :  { %v12553_v12 = vadd.f32 %v1750_v6, %v12445_v19  ;;  %v10768_v19 = vld [vmem:[#allocation14 + $0x430] ss:$8 sps:$4 sm:$0xff]  }
 0x567   :  { %v12556_v13 = vmul.f32 %v9544_v11, %v12553_v12 }
 0x569   :  { %v1770_v7 = vpack.c.bf16 %v12556_v13, %v12556_v13 }
 0x56b   :  { %2020 = vmatmul.mubr.bf16.vlgmr.msra.gmra.mrb[12].mxu0 %v1770_v7  ;;  %2061 = vmatmul.mubr.bf16.vlgmr.msra.gmra.mrb[12].mxu1 %v1770_v7 }
 0x56c   :  { %2432 = vmatpush1.bf16.msra.mxu0 %v10759_v14 }
 0x56d   :  { %2433 = vmatprep.subr.bf16.mxu0 %v10764_v16 }
 0x570   :  { %2434 = vmatpush1.bf16.msra.mxu0 %v10762_v17 }
 0x571   :  { %2435 = vmatprep.subr.bf16.mxu0 %v10767_v18 }
 0x574   :  { %2436 = vmatpush1.bf16.msra.mxu0 %v10765_v20 }
 0x575   :  { %2437 = vmatprep.subr.bf16.mxu0 %v10770_v22 }
 0x578   :  { %2438 = vmatpush1.bf16.msra.mxu0 %v10768_v19 }
 0x579   :  { %2439 = vmatprep.subr.bf16.mxu0 %v10773_v23 }
 0x57c   :  { %2440 = vmatpush1.bf16.msra.mxu0 %v10771_v4 }
 0x57d   :  { %2441 = vmatprep.subr.bf16.mxu0 %v10776_v47 }
 0x580   :  { %2442 = vmatpush1.bf16.msra.mxu0 %v10774_v30 }
 0x581   :  { %2443 = vmatprep.subr.bf16.mxu0 %v10779_v24 }
 0x584   :  { %2444 = vmatpush1.bf16.msra.mxu0 %v10777_v25 }
 0x585   :  { %2445 = vmatprep.subr.bf16.mxu0 %v10782_v27 }
 0x588   :  { %2446 = vmatpush1.bf16.msra.mxu0 %v10780_v28 }
 0x589   :  { %2447 = vmatprep.subr.bf16.mxu0 %v10785_v15 }
 0x58c   :  { %2448 = vmatpush1.bf16.msra.mxu0 %v10783_v29 }
 0x58d   :  { %2449 = vmatprep.subr.bf16.mxu0 %v10788_v31 }
 0x590   :  { %2450 = vmatpush1.bf16.msra.mxu0 %v10786_v21 }
 0x591   :  { %2451 = vmatprep.subr.bf16.mxu0 %v10791_v32 }
 0x594   :  { %2452 = vmatpush1.bf16.msra.mxu0 %v10789_v33 }
 0x595   :  { %2453 = vmatprep.subr.bf16.mxu0 %v10794_v34 }
 0x598   :  { %2454 = vmatpush1.bf16.msra.mxu0 %v10792_v35 }
 0x599   :  { %2455 = vmatprep.subr.bf16.mxu0 %v10797_v36 }
 0x59c   :  { %2456 = vmatpush1.bf16.msra.mxu0 %v10795_v26 }
 0x59d   :  { %2457 = vmatprep.subr.bf16.mxu0 %v10800_v37 }
 0x5a0   :  { %2458 = vmatpush1.bf16.msra.mxu0 %v10798_v38 }
 0x5a1   :  { %2459 = vmatprep.subr.bf16.mxu0 %v10803_v39 }
 0x5a4   :  { %2460 = vmatpush1.bf16.msra.mxu0 %v10801_v40 }
 0x5a5   :  { %2461 = vmatprep.subr.bf16.mxu0 %v10806_v62 }
 0x5a8   :  { %2462 = vmatpush1.bf16.msra.mxu0 %v10804_v41 }
 0x63e   :  { %v2021_v48 = vpop.f32.mrb[12].mxu0  ;;  %v2062_v49 = vpop.f32.mrb[12].mxu1 }
 0x63f   :  { %v2022_v50 = vadd.f32 %v2021_v48, %v1810_v44  ;;  %v2063_v52 = vadd.f32 %v2062_v49, %v1818_v63  ;;  %v2023_v53 = vpop.f32.mrb[13].mxu0  ;;  %v2064_v54 = vpop.f32.mrb[13].mxu1 }
 0x640   :  { %v2024_v55 = vadd.f32 %v2023_v53, %v1814_v45  ;;  %v2065_v56 = vadd.f32 %v2064_v54, %v1822_v46  ;;  %v2025_v57 = vpop.f32.mrb[14].mxu0  ;;  %v2066_v8 = vpop.f32.mrb[14].mxu1 }
 0x641   :  { %vm2069_vm8 = vcmp.gt.f32.partialorder %v2022_v50, 0.0  ;;  %v2073_v58 = vmul.f32 0.01, %v2022_v50  ;;  %vm2071_vm9 = vcmp.gt.f32.partialorder %v2063_v52, 0.0  ;;  %v2075_v60 = vmul.f32 0.01, %v2063_v52 }
 0x642   :  { %vm2070_vm10 = vcmp.gt.f32.partialorder %v2024_v55, 0.0  ;;  %v2074_v61 = vmul.f32 0.01, %v2024_v55  ;;  %vm2072_vm11 = vcmp.gt.f32.partialorder %v2065_v56, 0.0  ;;  %v2076_v1 = vmul.f32 0.01, %v2065_v56 }
 0x643   :  { %v12564_v2 = vsel %vm2069_vm8, %v2022_v50, %v2073_v58  ;;  %v12566_v3 = vsel %vm2071_vm9, %v2063_v52, %v2075_v60  ;;  %v2026_v5 = vpop.f32.mrb[15].mxu0  ;;  %v2067_v6 = vpop.f32.mrb[15].mxu1 }
 0x644   :  { %v2085_v11 = vrot.slane %v12564_v2, 4  ;;  %v2113_v14 = vmul.f32 %v12564_v2, %v12564_v2  ;;  %v2097_v7 = vrot.slane %v12566_v3, 4  ;;  %v2115_v16 = vmul.f32 %v12566_v3, %v12566_v3 }
 0x645   :  { %v12574_v17 = vsel %vm2070_vm10, %v2024_v55, %v2074_v61  ;;  %v12576_v18 = vsel %vm2072_vm11, %v2065_v56, %v2076_v1 }
 0x646   :  { %v2086_v20 = vadd.f32 %v2085_v11, %v12564_v2  ;;  %v2117_v22 = vrot.slane %v2113_v14, 4  ;;  %v2098_v19 = vadd.f32 %v2097_v7, %v12566_v3  ;;  %v2129_v23 = vrot.slane %v2115_v16, 4 }
 0x647   :  { %v2091_v4 = vrot.slane %v12574_v17, 4  ;;  %v2114_v47 = vmul.f32 %v12574_v17, %v12574_v17  ;;  %v2103_v30 = vrot.slane %v12576_v18, 4  ;;  %v2116_v24 = vmul.f32 %v12576_v18, %v12576_v18 }
 0x648   :  { %v2087_v25 = vrot.slane %v2086_v20, 2  ;;  %v2118_v27 = vadd.f32 %v2117_v22, %v2113_v14  ;;  %v2099_v28 = vrot.slane %v2098_v19, 2  ;;  %v2130_v15 = vadd.f32 %v2129_v23, %v2115_v16 }
 0x649   :  { %v2092_v29 = vadd.f32 %v2091_v4, %v12574_v17  ;;  %v2123_v31 = vrot.slane %v2114_v47, 4  ;;  %v2104_v21 = vadd.f32 %v2103_v30, %v12576_v18  ;;  %v2135_v32 = vrot.slane %v2116_v24, 4 }
 0x64a   :  { %v2088_v33 = vadd.f32 %v2087_v25, %v2086_v20  ;;  %v2119_v34 = vrot.slane %v2118_v27, 2  ;;  %v2100_v35 = vadd.f32 %v2099_v28, %v2098_v19  ;;  %v2131_v36 = vrot.slane %v2130_v15, 2 }
 0x64b   :  { %v2093_v26 = vrot.slane %v2092_v29, 2  ;;  %v2124_v37 = vadd.f32 %v2123_v31, %v2114_v47  ;;  %v2105_v38 = vrot.slane %v2104_v21, 2  ;;  %v2136_v39 = vadd.f32 %v2135_v32, %v2116_v24 }
 0x64c   :  { %v2089_v40 = vrot.slane %v2088_v33, 1  ;;  %v2120_v62 = vadd.f32 %v2119_v34, %v2118_v27  ;;  %v2101_v41 = vrot.slane %v2100_v35, 1  ;;  %v2132_v42 = vadd.f32 %v2131_v36, %v2130_v15 }
 0x64d   :  { %v2094_v44 = vadd.f32 %v2093_v26, %v2092_v29  ;;  %v2125_v63 = vrot.slane %v2124_v37, 2  ;;  %v2106_v45 = vadd.f32 %v2105_v38, %v2104_v21  ;;  %v2137_v46 = vrot.slane %v2136_v39, 2  ;;  %v2082_v26 = vld [vmem:[#allocation11 + $0x10] sm:$0xf]  ;;  %v2084_v38 = vld [vmem:[#allocation13 + $0x10] sm:$0xf] }
 0x64e   :  { %v2090_v48 = vadd.f32 %v2089_v40, %v2088_v33  ;;  %v2121_v49 = vrot.slane %v2120_v62, 1  ;;  %v2102_v50 = vadd.f32 %v2101_v41, %v2100_v35  ;;  %v2133_v52 = vrot.slane %v2132_v42, 1 }
 0x64f   :  { %v2095_v53 = vrot.slane %v2094_v44, 1  ;;  %v2126_v54 = vadd.f32 %v2125_v63, %v2124_v37  ;;  %v2107_v55 = vrot.slane %v2106_v45, 1  ;;  %v2138_v56 = vadd.f32 %v2137_v46, %v2136_v39 }
 0x650   :  { %v2109_v57 = vmul.f32 0.125, %v2090_v48  ;;  %v2122_v8 = vadd.f32 %v2121_v49, %v2120_v62  ;;  %v2111_v58 = vmul.f32 0.125, %v2102_v50  ;;  %v2134_v60 = vadd.f32 %v2133_v52, %v2132_v42 }
 0x651   :  { %v2096_v61 = vadd.f32 %v2095_v53, %v2094_v44  ;;  %v2127_v1 = vrot.slane %v2126_v54, 1  ;;  %v2108_v5 = vadd.f32 %v2107_v55, %v2106_v45  ;;  %v2139_v6 = vrot.slane %v2138_v56, 1 }
 0x652   :  { %v2141_v11 = vmul.f32 0.125, %v2122_v8  ;;  %v2145_v14 = vmul.f32 %v2109_v57, %v2109_v57  ;;  %v2143_v7 = vmul.f32 0.125, %v2134_v60  ;;  %v2147_v16 = vmul.f32 %v2111_v58, %v2111_v58 }
 0x653   :  { %v2110_v20 = vmul.f32 0.125, %v2096_v61  ;;  %v2128_v22 = vadd.f32 %v2127_v1, %v2126_v54  ;;  %v2112_v23 = vmul.f32 0.125, %v2108_v5  ;;  %v2140_v4 = vadd.f32 %v2139_v6, %v2138_v56 }
 0x654   :  { %v2149_v19 = vsub.f32 %v2141_v11, %v2145_v14  ;;  %v2151_v47 = vsub.f32 %v2143_v7, %v2147_v16  ;;  %v2157_v37 = vsub.f32 %v12564_v2, %v2109_v57  ;;  %v2177_v39 = vrot.slane %v2082_v26, %v12458_v9  ;;  %v10807_v11 = vld [vmem:[#allocation20 + $0x240] sm:$0xff]   ;;  %v10809_v7 = vld [vmem:[#allocation20 + $0x248] sm:$0xff]  }
 0x655   :  { %v2142_v30 = vmul.f32 0.125, %v2128_v22  ;;  %v2146_v24 = vmul.f32 %v2110_v20, %v2110_v20  ;;  %v2144_v27 = vmul.f32 0.125, %v2140_v4  ;;  %v2148_v28 = vmul.f32 %v2112_v23, %v2112_v23  ;;  %v10808_v14 = vld [vmem:[#allocation20 + $0x200] sm:$0xff]   ;;  %10257 = vmatprep.subr.bf16.mxu1 %v10807_v11  ;;  %v10810_v16 = vld [vmem:[#allocation20 + $0x208] sm:$0xff]   ;;  %v10812_v22 = vld [vmem:[#allocation20 + $0x210] sm:$0xff]  }
 0x656   :  { %v2153_v25 = vmax.f32 %v2149_v19, 0.0  ;;  %v2155_v15 = vmax.f32 %v2151_v47, 0.0  ;;  %v2159_v62 = vsub.f32 %v12566_v3, %v2111_v58  ;;  %v2185_v41 = vrot.slane %v2082_v26, %v12511_v59  ;;  %10258 = vmatpush3.bf16.msra.mxu1 %v10808_v14  ;;  %v10813_v19 = vld [vmem:[#allocation20 + $0x258] sm:$0xff]   ;;  %v10815_v4 = vld [vmem:[#allocation20 + $0x260] sm:$0xff]  }
 0x657   :  { %v2150_v29 = vsub.f32 %v2142_v30, %v2146_v24  ;;  %v2152_v21 = vsub.f32 %v2144_v27, %v2148_v28  ;;  %v2158_v45 = vsub.f32 %v12574_v17, %v2110_v20  ;;  %v2181_v46 = vrot.slane %v2082_v26, %v12461_v10  ;;  %10259 = vmatprep.subr.bf16.mxu1 %v10809_v7  ;;  %v10811_v20 = vld [vmem:[#allocation20 + $0x250] sm:$0xff]   ;;  %v10816_v47 = vld [vmem:[#allocation20 + $0x220] sm:$0xff]   ;;  %v10817_v30 = vld [vmem:[#allocation20 + $0x268] sm:$0xff]  }
 0x658   :  { %v2161_v31 = vadd.f32 1e-05, %v2153_v25  ;;  %v2163_v32 = vadd.f32 1e-05, %v2155_v15  ;;  %v2210_v48 = vrot.slane %v2084_v38, %v12511_v59  ;;  %v2160_v2 = vsub.f32 %v12576_v18, %v2112_v23  ;;  %v10814_v23 = vld [vmem:[#allocation20 + $0x218] sm:$0xff]   ;;  %v10818_v24 = vld [vmem:[#allocation20 + $0x228] sm:$0xff]  }
 0x659   :  { %v2154_v33 = vmax.f32 %v2150_v29, 0.0  ;;  %v2156_v34 = vmax.f32 %v2152_v21, 0.0  ;;  %v2202_v52 = vrot.slane %v2084_v38, %v12458_v9  ;;  %v2189_v53 = vrot.slane %v2082_v26, %v12482_v43  ;;  %v10819_v25 = vld [vmem:[#allocation20 + $0x270] sm:$0xff]   ;;  %v10821_v28 = vld [vmem:[#allocation20 + $0x278] sm:$0xff]  }
 0x65a   :  { %11619 = vrsqrt.f32 %v2161_v31  ;;  %v2206_v55 = vrot.slane %v2084_v38, %v12461_v10  ;;  %v2214_v17 = vrot.slane %v2084_v38, %v12482_v43  ;;  %10260 = vmatpush3.bf16.msra.mxu1 %v10810_v16  ;;  %v10820_v27 = vld [vmem:[#allocation20 + $0x230] sm:$0xff]   ;;  %v10822_v15 = vld [vmem:[#allocation20 + $0x238] sm:$0xff]   ;;  %v2259_v31 = vld [vmem:[#allocation16 + $0x8] sm:$0x3] }
 0x65b   :  { %11621 = vrsqrt.f32 %v2163_v32  ;;  %v2162_v35 = vadd.f32 1e-05, %v2154_v33  ;;  %v2164_v36 = vadd.f32 1e-05, %v2156_v34  ;;  %10261 = vmatprep.subr.bf16.mxu1 %v10811_v20  ;;  %v10825_v29 = vld [vmem:[#allocation14 + $0xa04] ss:$8 sps:$4 sm:$0xff]   ;;  %v2264_v21 = vrot.slane %v2259_v31, %v12458_v9 }
 0x65c   :  { %v2268_v32 = vrot.slane %v2259_v31, %v12461_v10 }
 0x65d   :  { %11623 = vrsqrt.f32 %v2162_v35 }
 0x65e   :  { %11625 = vrsqrt.f32 %v2164_v36  ;;  %10262 = vmatpush3.bf16.msra.mxu1 %v10812_v22 }
 0x65f   :  { %10263 = vmatprep.subr.bf16.mxu1 %v10813_v19 }
 0x662   :  { %10264 = vmatpush3.bf16.msra.mxu1 %v10814_v23 }
 0x663   :  { %10265 = vmatprep.subr.bf16.mxu1 %v10815_v4 }
 0x664   :  { %v11620_v40 = vpop.eup %11619 }
 0x665   :  { %v11622_v42 = vpop.eup %11621  ;;  %v2169_v44 = vmul.f32 %v11620_v40, %v2157_v37 }
 0x666   :  { %v2171_v63 = vmul.f32 %v11622_v42, %v2159_v62  ;;  %10266 = vmatpush3.bf16.msra.mxu1 %v10816_v47 }
 0x667   :  { %v11624_v49 = vpop.eup %11623  ;;  %v2194_v50 = vmul.f32 %v2177_v39, %v2169_v44  ;;  %10267 = vmatprep.subr.bf16.mxu1 %v10817_v30 }
 0x668   :  { %v11626_v3 = vpop.eup %11625  ;;  %v2170_v54 = vmul.f32 %v11624_v49, %v2158_v45  ;;  %v2196_v56 = vmul.f32 %v2185_v41, %v2171_v63 }
 0x669   :  { %v2172_v57 = vmul.f32 %v11626_v3, %v2160_v2  ;;  %v2219_v60 = vadd.f32 %v2202_v52, %v2194_v50 }
 0x66a   :  { %v2195_v8 = vmul.f32 %v2181_v46, %v2170_v54  ;;  %v12600_v58 = vadd.f32 %v2210_v48, %v2196_v56  ;;  %10268 = vmatpush3.bf16.msra.mxu1 %v10818_v24 }
 0x66b   :  { %v2197_v61 = vmul.f32 %v2189_v53, %v2172_v57  ;;  %v2223_v6 = vpack.c.bf16 %v2219_v60, %v2219_v60  ;;  %10269 = vmatprep.subr.bf16.mxu1 %v10819_v25 }
 0x66c   :  { %v2220_v1 = vadd.f32 %v2206_v55, %v2195_v8 }
 0x66d   :  { %v12602_v18 = vadd.f32 %v2214_v17, %v2197_v61 }
 0x66e   :  { %v2224_v5 = vpack.c.bf16 %v2220_v1, %v2220_v1  ;;  %10270 = vmatpush3.bf16.msra.mxu1 %v10820_v27 }
 0x66f   :  { %10271 = vmatprep.subr.bf16.mxu1 %v10821_v28  ;;  %v2479_v28 = vld [vmem:[#allocation17 + $0x8] sm:$0x3] }
 0x670   :  { %2463 = vmatprep.mubr.bf16.mxu0 %v2224_v5  ;;  %v2530_v31 = vrot.slane %v2479_v28, %v12458_v9 }
 0x671   :  { %2464 = vmatmul.mubr.bf16.vlgmr.msra.gmra.mrb[16].mxu0 %v2223_v6 }
 0x672   :  { %10272 = vmatpush3.bf16.msra.mxu1 %v10822_v15  ;;  %v2481_v15 = vld [vmem:[#allocation19 + $0x8] sm:$0x3] }
 0x673   :  { %2947 = vmatprep.subr.bf16.mxu1 %v10825_v29 }
 0x744   :  { %v2465_v33 = vpop.f32.mrb[16].mxu0 }
 0x745   :  { %v2466_v34 = vadd.f32 %v2465_v33, %v2264_v21  ;;  %v2467_v35 = vpop.f32.mrb[17].mxu0  ;;  %v2534_v33 = vrot.slane %v2479_v28, %v12461_v10  ;;  %v10875_v28 = vld [vmem:[#allocation20 + $0x550] sm:$0xff]  }
 0x746   :  { %v2468_v36 = vadd.f32 %v2467_v35, %v2268_v32  ;;  %v2469_v26 = vpop.f32.mrb[18].mxu0 }
 0x747   :  { %vm2472_vm12 = vcmp.gt.f32.partialorder %v2466_v34, 0.0  ;;  %v2474_v37 = vmul.f32 0.01, %v2466_v34  ;;  %v2470_v38 = vpop.f32.mrb[19].mxu0 }
 0x748   :  { %vm2473_vm13 = vcmp.gt.f32.partialorder %v2468_v36, 0.0  ;;  %v2475_v39 = vmul.f32 0.01, %v2468_v36 }
 0x749   :  { %v2476_v40 = vsel %vm2472_vm12, %v2466_v34, %v2474_v37  ;;  %v2547_v37 = vrot.slane %v2481_v15, %v12461_v10 }
 0x74a   :  { %v2482_v62 = vrot.slane %v2476_v40, 4  ;;  %v2496_v41 = vmul.f32 %v2476_v40, %v2476_v40  ;;  %v2477_v42 = vsel %vm2473_vm13, %v2468_v36, %v2475_v39  ;;  %v2543_v36 = vrot.slane %v2481_v15, %v12458_v9  ;;  %v10876_v15 = vld [vmem:[#allocation20 + $0x510] sm:$0xff]  }
 0x74b   :  { %v2488_v44 = vrot.slane %v2477_v42, 4  ;;  %v2497_v63 = vmul.f32 %v2477_v42, %v2477_v42 }
 0x74c   :  { %v2483_v45 = vadd.f32 %v2482_v62, %v2476_v40  ;;  %v2498_v46 = vrot.slane %v2496_v41, 4 }
 0x74d   :  { %v2489_v48 = vadd.f32 %v2488_v44, %v2477_v42  ;;  %v2504_v49 = vrot.slane %v2497_v63, 4 }
 0x74e   :  { %v2484_v2 = vrot.slane %v2483_v45, 2  ;;  %v2499_v50 = vadd.f32 %v2498_v46, %v2496_v41  ;;  %v10826_v46 = vld [vmem:[#allocation14 + $0xa10] ss:$8 sps:$4 sm:$0xff]  }
 0x74f   :  { %v2490_v52 = vrot.slane %v2489_v48, 2  ;;  %v2505_v53 = vadd.f32 %v2504_v49, %v2497_v63  ;;  %v10823_v63 = vld [vmem:[#allocation14 + $0xa00] ss:$8 sps:$4 sm:$0xff]  }
 0x750   :  { %v2485_v3 = vadd.f32 %v2484_v2, %v2483_v45  ;;  %v2500_v54 = vrot.slane %v2499_v50, 2  ;;  %v10828_v45 = vld [vmem:[#allocation14 + $0xa14] ss:$8 sps:$4 sm:$0xff]   ;;  %v10829_v49 = vld [vmem:[#allocation14 + $0xa20] ss:$8 sps:$4 sm:$0xff]  }
 0x751   :  { %v2491_v55 = vadd.f32 %v2490_v52, %v2489_v48  ;;  %v2506_v56 = vrot.slane %v2505_v53, 2  ;;  %v10831_v48 = vld [vmem:[#allocation14 + $0xa24] ss:$8 sps:$4 sm:$0xff]   ;;  %v10834_v2 = vld [vmem:[#allocation14 + $0xa34] ss:$8 sps:$4 sm:$0xff]  }
 0x752   :  { %v2486_v57 = vrot.slane %v2485_v3, 1  ;;  %v2501_v17 = vadd.f32 %v2500_v54, %v2499_v50  ;;  %v10832_v50 = vld [vmem:[#allocation14 + $0xa30] ss:$8 sps:$4 sm:$0xff]   ;;  %v10837_v52 = vld [vmem:[#allocation14 + $0xa44] ss:$8 sps:$4 sm:$0xff]  }
 0x753   :  { %v2492_v8 = vrot.slane %v2491_v55, 1  ;;  %v2507_v60 = vadd.f32 %v2506_v56, %v2505_v53  ;;  %v10835_v53 = vld [vmem:[#allocation14 + $0xa40] ss:$8 sps:$4 sm:$0xff]   ;;  %v10843_v54 = vld [vmem:[#allocation14 + $0xa64] ss:$8 sps:$4 sm:$0xff]  }
 0x754   :  { %v2487_v61 = vadd.f32 %v2486_v57, %v2485_v3  ;;  %v2502_v1 = vrot.slane %v2501_v17, 1  ;;  %v10840_v3 = vld [vmem:[#allocation14 + $0xa54] ss:$8 sps:$4 sm:$0xff]   ;;  %v10844_v57 = vld [vmem:[#allocation14 + $0xa70] ss:$8 sps:$4 sm:$0xff]  }
 0x755   :  { %v2493_v5 = vadd.f32 %v2492_v8, %v2491_v55  ;;  %v2508_v6 = vrot.slane %v2507_v60, 1  ;;  %v10841_v55 = vld [vmem:[#allocation14 + $0xa60] ss:$8 sps:$4 sm:$0xff]   ;;  %v10846_v56 = vld [vmem:[#allocation14 + $0xa74] ss:$8 sps:$4 sm:$0xff]  }
 0x756   :  { %v2494_v11 = vmul.f32 0.125, %v2487_v61  ;;  %v2503_v14 = vadd.f32 %v2502_v1, %v2501_v17  ;;  %v10849_v17 = vld [vmem:[#allocation14 + $0xa84] ss:$8 sps:$4 sm:$0xff]   ;;  %v10847_v8 = vld [vmem:[#allocation14 + $0xa80] ss:$8 sps:$4 sm:$0xff]  }
 0x757   :  { %v2495_v7 = vmul.f32 0.125, %v2493_v5  ;;  %v2509_v16 = vadd.f32 %v2508_v6, %v2507_v60  ;;  %v10852_v60 = vld [vmem:[#allocation14 + $0xa94] ss:$8 sps:$4 sm:$0xff]   ;;  %v10850_v61 = vld [vmem:[#allocation14 + $0xa90] ss:$8 sps:$4 sm:$0xff]  }
 0x758   :  { %v2510_v20 = vmul.f32 0.125, %v2503_v14  ;;  %v2512_v22 = vmul.f32 %v2494_v11, %v2494_v11  ;;  %v2518_v29 = vsub.f32 %v2476_v40, %v2494_v11  ;;  %v10855_v1 = vld [vmem:[#allocation14 + $0xaa4] ss:$8 sps:$4 sm:$0xff]   ;;  %v10853_v5 = vld [vmem:[#allocation14 + $0xaa0] ss:$8 sps:$4 sm:$0xff]  }
 0x759   :  { %v2511_v19 = vmul.f32 0.125, %v2509_v16  ;;  %v2513_v23 = vmul.f32 %v2495_v7, %v2495_v7  ;;  %v2519_v32 = vsub.f32 %v2477_v42, %v2495_v7  ;;  %v2740_v42 = vpack.c.bf16 %v12602_v18, %v12602_v18  ;;  %v10838_v18 = vld [vmem:[#allocation14 + $0xa50] ss:$8 sps:$4 sm:$0xff]   ;;  %v10858_v6 = vld [vmem:[#allocation14 + $0xab4] ss:$8 sps:$4 sm:$0xff]  }
 0x75a   :  { %v2514_v4 = vsub.f32 %v2510_v20, %v2512_v22  ;;  %v10856_v11 = vld [vmem:[#allocation14 + $0xab0] ss:$8 sps:$4 sm:$0xff]   ;;  %v10861_v14 = vld [vmem:[#allocation14 + $0xac4] ss:$8 sps:$4 sm:$0xff]   ;;  %v10859_v7 = vld [vmem:[#allocation14 + $0xac0] ss:$8 sps:$4 sm:$0xff]  }
 0x75b   :  { %v2515_v47 = vsub.f32 %v2511_v19, %v2513_v23  ;;  %v10864_v16 = vld [vmem:[#allocation14 + $0xad4] ss:$8 sps:$4 sm:$0xff]   ;;  %v10862_v20 = vld [vmem:[#allocation14 + $0xad0] ss:$8 sps:$4 sm:$0xff]   ;;  %v10867_v22 = vld [vmem:[#allocation14 + $0xae4] ss:$8 sps:$4 sm:$0xff]  }
 0x75c   :  { %v2516_v30 = vmax.f32 %v2514_v4, 0.0  ;;  %v10865_v19 = vld [vmem:[#allocation14 + $0xae0] ss:$8 sps:$4 sm:$0xff]   ;;  %v10870_v23 = vld [vmem:[#allocation14 + $0xaf4] ss:$8 sps:$4 sm:$0xff]  }
 0x75d   :  { %v2517_v24 = vmax.f32 %v2515_v47, 0.0  ;;  %v10868_v4 = vld [vmem:[#allocation14 + $0xaf0] ss:$8 sps:$4 sm:$0xff]   ;;  %v2739_v47 = vpack.c.bf16 %v12600_v58, %v12600_v58  ;;  %v10879_v58 = vld [vmem:[#allocation20 + $0x560] sm:$0xff]  }
 0x75e   :  { %v2520_v25 = vadd.f32 1e-05, %v2516_v30  ;;  %v10871_v30 = vld [vmem:[#allocation20 + $0x540] sm:$0xff]  }
 0x75f   :  { %v2521_v27 = vadd.f32 1e-05, %v2517_v24  ;;  %v10872_v24 = vld [vmem:[#allocation20 + $0x500] sm:$0xff]   ;;  %10279 = vmatprep.subr.bf16.mxu0 %v10871_v30 }
 0x760   :  { %11627 = vrsqrt.f32 %v2520_v25  ;;  %10280 = vmatpush3.bf16.msra.mxu0 %v10872_v24  ;;  %v10873_v25 = vld [vmem:[#allocation20 + $0x548] sm:$0xff]  }
 0x761   :  { %11629 = vrsqrt.f32 %v2521_v27  ;;  %v10874_v27 = vld [vmem:[#allocation20 + $0x508] sm:$0xff]   ;;  %10281 = vmatprep.subr.bf16.mxu0 %v10873_v25 }
 0x764   :  { %10282 = vmatpush3.bf16.msra.mxu0 %v10874_v27 }
 0x765   :  { %10283 = vmatprep.subr.bf16.mxu0 %v10875_v28 }
 0x768   :  { %10284 = vmatpush3.bf16.msra.mxu0 %v10876_v15 }
 0x76a   :  { %v11628_v21 = vpop.eup %11627 }
 0x76b   :  { %v11630_v34 = vpop.eup %11629  ;;  %v2524_v35 = vmul.f32 %v11628_v21, %v2518_v29  ;;  %v10877_v29 = vld [vmem:[#allocation20 + $0x558] sm:$0xff]   ;;  %v10880_v21 = vld [vmem:[#allocation20 + $0x520] sm:$0xff]  }
 0x76c   :  { %v2525_v26 = vmul.f32 %v11630_v34, %v2519_v32  ;;  %10285 = vmatprep.subr.bf16.mxu0 %v10877_v29  ;;  %v10881_v32 = vld [vmem:[#allocation20 + $0x568] sm:$0xff]   ;;  %v10883_v34 = vld [vmem:[#allocation20 + $0x570] sm:$0xff]  }
 0x76d   :  { %v2537_v38 = vmul.f32 %v2530_v31, %v2524_v35  ;;  %v10878_v31 = vld [vmem:[#allocation20 + $0x518] sm:$0xff]   ;;  %v10884_v35 = vld [vmem:[#allocation20 + $0x530] sm:$0xff]  }
 0x76e   :  { %v2538_v39 = vmul.f32 %v2534_v33, %v2525_v26  ;;  %10286 = vmatpush3.bf16.msra.mxu0 %v10878_v31  ;;  %v10882_v33 = vld [vmem:[#allocation20 + $0x528] sm:$0xff]   ;;  %v10886_v26 = vld [vmem:[#allocation20 + $0x538] sm:$0xff]  }
 0x76f   :  { %v2550_v62 = vadd.f32 %v2543_v36, %v2537_v38  ;;  %10287 = vmatprep.subr.bf16.mxu0 %v10879_v58  ;;  %v10885_v36 = vld [vmem:[#allocation20 + $0x578] sm:$0xff]  }
 0x770   :  { %v2551_v41 = vadd.f32 %v2547_v37, %v2538_v39  ;;  %v10889_v37 = vld [vmem:[#allocation8 + $0x304] ss:$16 sps:$4 sm:$0xff]   ;;  %v10890_v38 = vld [vmem:[#allocation8 + $0x308] ss:$16 sps:$4 sm:$0xff]   ;;  %v10892_v39 = vld [vmem:[#allocation8 + $0x30c] ss:$16 sps:$4 sm:$0xff]  }
 0x771   :  { %v2552_v40 = vpack.c.bf16 %v2550_v62, %v2550_v62  ;;  %v10898_v62 = vld [vmem:[#allocation8 + $0x32c] ss:$16 sps:$4 sm:$0xff]  }
 0x772   :  { %v2553_v44 = vpack.c.bf16 %v2551_v41, %v2551_v41  ;;  %10288 = vmatpush3.bf16.msra.mxu0 %v10880_v21  ;;  %v10896_v41 = vld [vmem:[#allocation8 + $0x328] ss:$16 sps:$4 sm:$0xff]  }
 0x773   :  { %10289 = vmatprep.subr.bf16.mxu0 %v10881_v32 }
 0x774   :  { %2723 = vmatprep.mubr.bf16.mxu1 %v2553_v44  ;;  %v10904_v44 = vld [vmem:[#allocation8 + $0x34c] ss:$16 sps:$4 sm:$0xff]  }
 0x775   :  { %2724 = vmatmul.mubr.bf16.vlgmr.msra.gmra.mrb[16].mxu1 %v2552_v40 }
 0x776   :  { %2948 = vmatpush1.bf16.msra.mxu1 %v10823_v63  ;;  %2979 = vmatprep.mubr.bf16.mxu1 %v2740_v42  ;;  %v10902_v63 = vld [vmem:[#allocation8 + $0x348] ss:$16 sps:$4 sm:$0xff]  }
 0x777   :  { %2949 = vmatprep.subr.bf16.mxu1 %v10828_v45  ;;  %10290 = vmatpush3.bf16.msra.mxu0 %v10882_v33  ;;  %v9609_v45 = vld [vmem:[#allocation22 + $0x4] ss:$0 sm:$0xff] }
 0x778   :  { %10291 = vmatprep.subr.bf16.mxu0 %v10883_v34 }
 0x77a   :  { %2950 = vmatpush1.bf16.msra.mxu1 %v10826_v46 }
 0x77b   :  { %2951 = vmatprep.subr.bf16.mxu1 %v10831_v48  ;;  %10292 = vmatpush3.bf16.msra.mxu0 %v10884_v35 }
 0x77c   :  { %10293 = vmatprep.subr.bf16.mxu0 %v10885_v36 }
 0x77e   :  { %2952 = vmatpush1.bf16.msra.mxu1 %v10829_v49 }
 0x77f   :  { %2953 = vmatprep.subr.bf16.mxu1 %v10834_v2  ;;  %10294 = vmatpush3.bf16.msra.mxu0 %v10886_v26 }
 0x780   :  { %3490 = vmatprep.subr.bf16.mxu0 %v10889_v37 }
 0x782   :  { %2954 = vmatpush1.bf16.msra.mxu1 %v10832_v50  ;;  %v1752_v50 = vrot.slane %v12549_v51, 4 }
 0x783   :  { %2955 = vmatprep.subr.bf16.mxu1 %v10837_v52 }
 0x784   :  { %v1753_v52 = vadd.f32 %v1752_v50, %v12549_v51 }
 0x786   :  { %2956 = vmatpush1.bf16.msra.mxu1 %v10835_v53  ;;  %v1754_v53 = vrot.slane %v1753_v52, 2 }
 0x787   :  { %2957 = vmatprep.subr.bf16.mxu1 %v10840_v3  ;;  %v12617_v3 = vld [vmem:[#allocation7 + $0x4] ss:$0 sm:$0xff] }
 0x78a   :  { %2958 = vmatpush1.bf16.msra.mxu1 %v10838_v18 }
 0x78b   :  { %2959 = vmatprep.subr.bf16.mxu1 %v10843_v54  ;;  %v1755_v54 = vadd.f32 %v1754_v53, %v1753_v52 }
 0x78e   :  { %2960 = vmatpush1.bf16.msra.mxu1 %v10841_v55 }
 0x78f   :  { %2961 = vmatprep.subr.bf16.mxu1 %v10846_v56 }
 0x792   :  { %2962 = vmatpush1.bf16.msra.mxu1 %v10844_v57 }
 0x793   :  { %2963 = vmatprep.subr.bf16.mxu1 %v10849_v17  ;;  %v1756_v17 = vrot.slane %v1755_v54, 1 }
 0x796   :  { %2964 = vmatpush1.bf16.msra.mxu1 %v10847_v8 }
 0x797   :  { %2965 = vmatprep.subr.bf16.mxu1 %v10852_v60 }
 0x79a   :  { %2966 = vmatpush1.bf16.msra.mxu1 %v10850_v61  ;;  %v1757_v61 = vadd.f32 %v1756_v17, %v1755_v54 }
 0x79b   :  { %2967 = vmatprep.subr.bf16.mxu1 %v10855_v1 }
 0x79e   :  { %2968 = vmatpush1.bf16.msra.mxu1 %v10853_v5  ;;  %v1758_v5 = vsub.f32 0.0, %v1757_v61 }
 0x79f   :  { %2969 = vmatprep.subr.bf16.mxu1 %v10858_v6 }
 0x7a2   :  { %2970 = vmatpush1.bf16.msra.mxu1 %v10856_v11  ;;  %v2775_v11 = vld [vmem:[#allocation16 + $0x14] sm:$0x3] }
 0x7a3   :  { %2971 = vmatprep.subr.bf16.mxu1 %v10861_v14  ;;  %v2780_v14 = vrot.slane %v2775_v11, %v12458_v9 }
 0x7a6   :  { %2972 = vmatpush1.bf16.msra.mxu1 %v10859_v7  ;;  %v2784_v7 = vrot.slane %v2775_v11, %v12461_v10 }
 0x7a7   :  { %2973 = vmatprep.subr.bf16.mxu1 %v10864_v16 }
 0x7aa   :  { %2974 = vmatpush1.bf16.msra.mxu1 %v10862_v20 }
 0x7ab   :  { %2975 = vmatprep.subr.bf16.mxu1 %v10867_v22 }
 0x7ae   :  { %2976 = vmatpush1.bf16.msra.mxu1 %v10865_v19 }
 0x7af   :  { %2977 = vmatprep.subr.bf16.mxu1 %v10870_v23 }
 0x7b2   :  { %2978 = vmatpush1.bf16.msra.mxu1 %v10868_v4 }
 0x7b3   :  { %3531 = vmatprep.subr.bf16.mxu1 %v10892_v39 }
 0x7b5   :  { %2980 = vmatmul.mubr.bf16.vlgmr.msra.gmra.mrb[20].mxu1 %v2739_v47 }
 0x7b6   :  { %3563 = vmatprep.mubr.bf16.mxu1 %v12139_v0  ;;  %3532 = vmatpush1.bf16.msra.mxu1 %v10890_v38 }
 0x7b7   :  { %3533 = vmatprep.subr.bf16.mxu1 %v10898_v62 }
 0x7ba   :  { %3534 = vmatpush1.bf16.msra.mxu1 %v10896_v41 }
 0x7bb   :  { %3535 = vmatprep.subr.bf16.mxu1 %v10904_v44 }
 0x7be   :  { %3536 = vmatpush1.bf16.msra.mxu1 %v10902_v63 }
 0x848   :  { %v10273_v40 = vpop.f32.mrb[16].mxu1 }
 0x849   :  { %v10274_v42 = vpop.f32.mrb[17].mxu1 }
 0x84a   :  { %v10275_v46 = vadd.f32 %v10274_v42, %v10273_v40  ;;  %v10276_v48 = vpop.f32.mrb[18].mxu1 }
 0x84b   :  { %v10277_v49 = vpop.f32.mrb[19].mxu1 }
 0x84c   :  { %v2726_v2 = vadd.f32 %v10275_v46, %v9609_v45 }
 0x84e   :  { %11631 = vtanh.f32 %v2726_v2 }
 0x858   :  { %v11632_v18 = vpop.eup %11631 }
 0x859   :  { %v12620_v55 = vmul.f32 %v11632_v18, %v12617_v3 }
 0x85b   :  { %v3255_v56 = vrot.slane %v12620_v55, 4 }
 0x85d   :  { %v3256_v57 = vadd.f32 %v3255_v56, %v12620_v55 }
 0x85f   :  { %v3257_v8 = vrot.slane %v3256_v57, 2 }
 0x861   :  { %v3258_v60 = vadd.f32 %v3257_v8, %v3256_v57 }
 0x863   :  { %v3259_v1 = vrot.slane %v3258_v60, 1 }
 0x865   :  { %v3260_v6 = vadd.f32 %v3259_v1, %v3258_v60  ;;  %v2995_v1 = vld [vmem:[#allocation17 + $0x14] sm:$0x3] }
 0x866   :  { %v3046_v11 = vrot.slane %v2995_v1, %v12458_v9 }
 0x867   :  { %v12624_v51 = vsub.f32 %v1758_v5, %v3260_v6  ;;  %v2997_v5 = vld [vmem:[#allocation19 + $0x14] sm:$0x3] }
 0x888   :  { %v2981_v16 = vpop.f32.mrb[20].mxu1 }
 0x889   :  { %v2982_v20 = vadd.f32 %v2981_v16, %v2780_v14  ;;  %v2983_v22 = vpop.f32.mrb[21].mxu1  ;;  %v3050_v16 = vrot.slane %v2995_v1, %v12461_v10 }
 0x88a   :  { %v2984_v19 = vadd.f32 %v2983_v22, %v2784_v7  ;;  %v2985_v23 = vpop.f32.mrb[22].mxu1 }
 0x88b   :  { %vm2988_vm14 = vcmp.gt.f32.partialorder %v2982_v20, 0.0  ;;  %v2990_v4 = vmul.f32 0.01, %v2982_v20  ;;  %v2986_v47 = vpop.f32.mrb[23].mxu1 }
 0x88c   :  { %vm2989_vm15 = vcmp.gt.f32.partialorder %v2984_v19, 0.0  ;;  %v2991_v30 = vmul.f32 0.01, %v2984_v19 }
 0x88d   :  { %v2992_v24 = vsel %vm2988_vm14, %v2982_v20, %v2990_v4  ;;  %v3063_v4 = vrot.slane %v2997_v5, %v12461_v10 }
 0x88e   :  { %v2998_v25 = vrot.slane %v2992_v24, 4  ;;  %v3012_v27 = vmul.f32 %v2992_v24, %v2992_v24  ;;  %v2993_v28 = vsel %vm2989_vm15, %v2984_v19, %v2991_v30  ;;  %v3059_v19 = vrot.slane %v2997_v5, %v12458_v9 }
 0x88f   :  { %v3004_v15 = vrot.slane %v2993_v28, 4  ;;  %v3013_v29 = vmul.f32 %v2993_v28, %v2993_v28 }
 0x890   :  { %v2999_v31 = vadd.f32 %v2998_v25, %v2992_v24  ;;  %v3014_v58 = vrot.slane %v3012_v27, 4 }
 0x891   :  { %v3005_v21 = vadd.f32 %v3004_v15, %v2993_v28  ;;  %v3020_v32 = vrot.slane %v3013_v29, 4 }
 0x892   :  { %v3000_v33 = vrot.slane %v2999_v31, 2  ;;  %v3015_v34 = vadd.f32 %v3014_v58, %v3012_v27  ;;  %v10901_v58 = vld [vmem:[#allocation8 + $0x344] ss:$16 sps:$4 sm:$0xff]  }
 0x893   :  { %v3006_v35 = vrot.slane %v3005_v21, 2  ;;  %v3021_v36 = vadd.f32 %v3020_v32, %v3013_v29  ;;  %v10887_v29 = vld [vmem:[#allocation8 + $0x300] ss:$16 sps:$4 sm:$0xff]   ;;  %v10907_v32 = vld [vmem:[#allocation8 + $0x364] ss:$16 sps:$4 sm:$0xff]  }
 0x894   :  { %v3001_v26 = vadd.f32 %v3000_v33, %v2999_v31  ;;  %v3016_v37 = vrot.slane %v3015_v34, 2  ;;  %v10895_v31 = vld [vmem:[#allocation8 + $0x324] ss:$16 sps:$4 sm:$0xff]   ;;  %v10910_v33 = vld [vmem:[#allocation8 + $0x36c] ss:$16 sps:$4 sm:$0xff]  }
 0x895   :  { %v3007_v38 = vadd.f32 %v3006_v35, %v3005_v21  ;;  %v3022_v39 = vrot.slane %v3021_v36, 2  ;;  %v10899_v21 = vld [vmem:[#allocation8 + $0x340] ss:$16 sps:$4 sm:$0xff]   ;;  %v10908_v35 = vld [vmem:[#allocation8 + $0x368] ss:$16 sps:$4 sm:$0xff]   ;;  %3537 = vmatprep.subr.bf16.mxu1 %v10910_v33 }
 0x896   :  { %v3002_v62 = vrot.slane %v3001_v26, 1  ;;  %v3017_v41 = vadd.f32 %v3016_v37, %v3015_v34  ;;  %v10905_v34 = vld [vmem:[#allocation8 + $0x360] ss:$16 sps:$4 sm:$0xff]   ;;  %3538 = vmatpush1.bf16.msra.mxu1 %v10908_v35 }
 0x897   :  { %v3008_v44 = vrot.slane %v3007_v38, 1  ;;  %v3023_v63 = vadd.f32 %v3022_v39, %v3021_v36  ;;  %v10913_v36 = vld [vmem:[#allocation8 + $0x384] ss:$16 sps:$4 sm:$0xff]   ;;  %v10911_v37 = vld [vmem:[#allocation8 + $0x380] ss:$16 sps:$4 sm:$0xff]  }
 0x898   :  { %v3003_v40 = vadd.f32 %v3002_v62, %v3001_v26  ;;  %v3018_v45 = vrot.slane %v3017_v41, 1  ;;  %v10916_v26 = vld [vmem:[#allocation8 + $0x38c] ss:$16 sps:$4 sm:$0xff]   ;;  %v10919_v39 = vld [vmem:[#allocation8 + $0x3a4] ss:$16 sps:$4 sm:$0xff]  }
 0x899   :  { %v3009_v42 = vadd.f32 %v3008_v44, %v3007_v38  ;;  %v3024_v46 = vrot.slane %v3023_v63, 1  ;;  %v10914_v38 = vld [vmem:[#allocation8 + $0x388] ss:$16 sps:$4 sm:$0xff]   ;;  %3539 = vmatprep.subr.bf16.mxu1 %v10916_v26  ;;  %v10922_v62 = vld [vmem:[#allocation8 + $0x3ac] ss:$16 sps:$4 sm:$0xff]  }
 0x89a   :  { %v3010_v48 = vmul.f32 0.125, %v3003_v40  ;;  %v3019_v49 = vadd.f32 %v3018_v45, %v3017_v41  ;;  %3540 = vmatpush1.bf16.msra.mxu1 %v10914_v38  ;;  %v10917_v41 = vld [vmem:[#allocation8 + $0x3a0] ss:$16 sps:$4 sm:$0xff]   ;;  %v10920_v44 = vld [vmem:[#allocation8 + $0x3a8] ss:$16 sps:$4 sm:$0xff]  }
 0x89b   :  { %v3011_v2 = vmul.f32 0.125, %v3009_v42  ;;  %v3025_v50 = vadd.f32 %v3024_v46, %v3023_v63  ;;  %3541 = vmatprep.subr.bf16.mxu1 %v10922_v62  ;;  %v10925_v63 = vld [vmem:[#allocation8 + $0x3c4] ss:$16 sps:$4 sm:$0xff]   ;;  %v10928_v40 = vld [vmem:[#allocation8 + $0x3cc] ss:$16 sps:$4 sm:$0xff]  }
 0x89c   :  { %v3026_v52 = vmul.f32 0.125, %v3019_v49  ;;  %v3028_v53 = vmul.f32 %v3010_v48, %v3010_v48  ;;  %v3034_v6 = vsub.f32 %v2992_v24, %v3010_v48  ;;  %v10923_v45 = vld [vmem:[#allocation8 + $0x3c0] ss:$16 sps:$4 sm:$0xff]   ;;  %v10926_v42 = vld [vmem:[#allocation8 + $0x3c8] ss:$16 sps:$4 sm:$0xff]  }
 0x89d   :  { %v3027_v18 = vmul.f32 0.125, %v3025_v50  ;;  %v3029_v54 = vmul.f32 %v3011_v2, %v3011_v2  ;;  %v3035_v7 = vsub.f32 %v2993_v28, %v3011_v2  ;;  %v10893_v28 = vld [vmem:[#allocation8 + $0x320] ss:$16 sps:$4 sm:$0xff]   ;;  %v10931_v46 = vld [vmem:[#allocation8 + $0x3e4] ss:$16 sps:$4 sm:$0xff]  }
 0x89e   :  { %v3030_v56 = vsub.f32 %v3026_v52, %v3028_v53  ;;  %3542 = vmatpush1.bf16.msra.mxu1 %v10920_v44  ;;  %v10929_v48 = vld [vmem:[#allocation8 + $0x3e0] ss:$16 sps:$4 sm:$0xff]   ;;  %v10932_v49 = vld [vmem:[#allocation8 + $0x3e8] ss:$16 sps:$4 sm:$0xff]   ;;  %v10934_v2 = vld [vmem:[#allocation8 + $0x3ec] ss:$16 sps:$4 sm:$0xff]  }
 0x89f   :  { %v3031_v57 = vsub.f32 %v3027_v18, %v3029_v54  ;;  %3543 = vmatprep.subr.bf16.mxu1 %v10928_v40  ;;  %v10937_v50 = vld [vmem:[#allocation14 + $0x304] ss:$8 sps:$4 sm:$0xff]   ;;  %v3250_v52 = vsub.f32 0.0, %v12620_v55  ;;  %v9659_v54 = vld [vmem:[#allocation22 + $0xa] ss:$0 sm:$0xff] }
 0x8a0   :  { %v3032_v17 = vmax.f32 %v3030_v56, 0.0  ;;  %v10965_v33 = vld [vmem:[#allocation14 + $0x3a0] ss:$8 sps:$4 sm:$0xff]   ;;  %v10968_v35 = vld [vmem:[#allocation14 + $0x3b0] ss:$8 sps:$4 sm:$0xff]  }
 0x8a1   :  { %v3033_v8 = vmax.f32 %v3031_v57, 0.0  ;;  %v3251_v53 = vmul.f32 1.442695, %v3250_v52  ;;  %v10971_v26 = vld [vmem:[#allocation14 + $0x3c0] ss:$8 sps:$4 sm:$0xff]  }
 0x8a2   :  { %v3036_v60 = vadd.f32 1e-05, %v3032_v17  ;;  %3544 = vmatpush1.bf16.msra.mxu1 %v10926_v42  ;;  %v10974_v38 = vld [vmem:[#allocation14 + $0x3d0] ss:$8 sps:$4 sm:$0xff]   ;;  %v10977_v62 = vld [vmem:[#allocation14 + $0x3e0] ss:$8 sps:$4 sm:$0xff]  }
 0x8a3   :  { %v3037_v61 = vadd.f32 1e-05, %v3033_v8  ;;  %3545 = vmatprep.subr.bf16.mxu1 %v10934_v2  ;;  %v10980_v44 = vld [vmem:[#allocation14 + $0x3f0] ss:$8 sps:$4 sm:$0xff]  }
 0x8a4   :  { %11633 = vrsqrt.f32 %v3036_v60 }
 0x8a5   :  { %11635 = vrsqrt.f32 %v3037_v61 }
 0x8a6   :  { %3546 = vmatpush1.bf16.msra.mxu1 %v10932_v49  ;;  %11637 = vpow2.f32 %v3251_v53 }
 0x8ae   :  { %v11634_v14 = vpop.eup %11633 }
 0x8af   :  { %v11636_v20 = vpop.eup %11635  ;;  %v3040_v22 = vmul.f32 %v11634_v14, %v3034_v6  ;;  %v9676_v14 = vld [vmem:[#allocation5 + $0x3] ss:$0 sm:$0xff] }
 0x8b0   :  { %v3041_v23 = vmul.f32 %v11636_v20, %v3035_v7  ;;  %v11638_v6 = vpop.eup %11637 }
 0x8b1   :  { %v3053_v47 = vmul.f32 %v3046_v11, %v3040_v22  ;;  %v10940_v22 = vld [vmem:[#allocation14 + $0x314] ss:$8 sps:$4 sm:$0xff]  }
 0x8b2   :  { %v3054_v30 = vmul.f32 %v3050_v16, %v3041_v23  ;;  %v10935_v16 = vld [vmem:[#allocation14 + $0x300] ss:$8 sps:$4 sm:$0xff]   ;;  %v10946_v23 = vld [vmem:[#allocation14 + $0x334] ss:$8 sps:$4 sm:$0xff]  }
 0x8b3   :  { %v3066_v25 = vadd.f32 %v3059_v19, %v3053_v47  ;;  %v10941_v19 = vld [vmem:[#allocation14 + $0x320] ss:$8 sps:$4 sm:$0xff]  }
 0x8b4   :  { %v3067_v27 = vadd.f32 %v3063_v4, %v3054_v30  ;;  %v10949_v4 = vld [vmem:[#allocation14 + $0x344] ss:$8 sps:$4 sm:$0xff]   ;;  %v10947_v47 = vld [vmem:[#allocation14 + $0x340] ss:$8 sps:$4 sm:$0xff]   ;;  %v10952_v30 = vld [vmem:[#allocation14 + $0x354] ss:$8 sps:$4 sm:$0xff]  }
 0x8b5   :  { %v3068_v24 = vpack.c.bf16 %v3066_v25, %v3066_v25  ;;  %v10950_v25 = vld [vmem:[#allocation14 + $0x350] ss:$8 sps:$4 sm:$0xff]  }
 0x8b6   :  { %v3069_v15 = vpack.c.bf16 %v3067_v27, %v3067_v27  ;;  %v10955_v27 = vld [vmem:[#allocation14 + $0x364] ss:$8 sps:$4 sm:$0xff]  }
 0x8b8   :  { %3239 = vmatprep.mubr.bf16.mxu0 %v3069_v15  ;;  %v10953_v15 = vld [vmem:[#allocation14 + $0x360] ss:$8 sps:$4 sm:$0xff]  }
 0x8b9   :  { %3240 = vmatmul.mubr.bf16.vlgmr.msra.gmra.mrb[20].mxu0 %v3068_v24  ;;  %v10956_v24 = vld [vmem:[#allocation14 + $0x370] ss:$8 sps:$4 sm:$0xff]  }
 0x8ba   :  { %3491 = vmatpush1.bf16.msra.mxu0 %v10887_v29  ;;  %3522 = vmatprep.mubr.bf16.mxu0 %v12139_v0  ;;  %v10958_v29 = vld [vmem:[#allocation14 + $0x374] ss:$8 sps:$4 sm:$0xff]  }
 0x8bb   :  { %3492 = vmatprep.subr.bf16.mxu0 %v10895_v31  ;;  %v10961_v31 = vld [vmem:[#allocation14 + $0x384] ss:$8 sps:$4 sm:$0xff]  }
 0x8be   :  { %3493 = vmatpush1.bf16.msra.mxu0 %v10893_v28  ;;  %v10959_v28 = vld [vmem:[#allocation14 + $0x380] ss:$8 sps:$4 sm:$0xff]  }
 0x8bf   :  { %3494 = vmatprep.subr.bf16.mxu0 %v10901_v58  ;;  %v10964_v58 = vld [vmem:[#allocation14 + $0x394] ss:$8 sps:$4 sm:$0xff]  }
 0x8c2   :  { %3495 = vmatpush1.bf16.msra.mxu0 %v10899_v21  ;;  %v10962_v21 = vld [vmem:[#allocation14 + $0x390] ss:$8 sps:$4 sm:$0xff]  }
 0x8c3   :  { %3496 = vmatprep.subr.bf16.mxu0 %v10907_v32  ;;  %v10967_v32 = vld [vmem:[#allocation14 + $0x3a4] ss:$8 sps:$4 sm:$0xff]  }
 0x8c6   :  { %3497 = vmatpush1.bf16.msra.mxu0 %v10905_v34  ;;  %v10970_v34 = vld [vmem:[#allocation14 + $0x3b4] ss:$8 sps:$4 sm:$0xff]  }
 0x8c7   :  { %3498 = vmatprep.subr.bf16.mxu0 %v10913_v36  ;;  %v10973_v36 = vld [vmem:[#allocation14 + $0x3c4] ss:$8 sps:$4 sm:$0xff]  }
 0x8ca   :  { %3499 = vmatpush1.bf16.msra.mxu0 %v10911_v37  ;;  %v10976_v37 = vld [vmem:[#allocation14 + $0x3d4] ss:$8 sps:$4 sm:$0xff]  }
 0x8cb   :  { %3500 = vmatprep.subr.bf16.mxu0 %v10919_v39  ;;  %v10979_v39 = vld [vmem:[#allocation14 + $0x3e4] ss:$8 sps:$4 sm:$0xff]  }
 0x8ce   :  { %3501 = vmatpush1.bf16.msra.mxu0 %v10917_v41  ;;  %v10982_v41 = vld [vmem:[#allocation14 + $0x3f4] ss:$8 sps:$4 sm:$0xff]  }
 0x8cf   :  { %3502 = vmatprep.subr.bf16.mxu0 %v10925_v63  ;;  %v3308_v63 = vld [vmem:[#allocation10 + $0xc] sm:$0xf] }
 0x8d0   :  { %v3313_v40 = vrot.slane %v3308_v63, %v12458_v9  ;;  %v3317_v42 = vrot.slane %v3308_v63, %v12461_v10 }
 0x8d2   :  { %3503 = vmatpush1.bf16.msra.mxu0 %v10923_v45  ;;  %v3321_v45 = vrot.slane %v3308_v63, %v12511_v59 }
 0x8d3   :  { %3504 = vmatprep.subr.bf16.mxu0 %v10931_v46  ;;  %v3325_v46 = vrot.slane %v3308_v63, %v12482_v43 }
 0x8d6   :  { %3505 = vmatpush1.bf16.msra.mxu0 %v10929_v48 }
 0x8d7   :  { %3934 = vmatprep.subr.bf16.mxu0 %v10937_v50 }
 0x98c   :  { %v10295_v18 = vpop.f32.mrb[20].mxu0 }
 0x98d   :  { %v10296_v56 = vpop.f32.mrb[21].mxu0 }
 0x98e   :  { %v10297_v57 = vadd.f32 %v10296_v56, %v10295_v18  ;;  %v10298_v17 = vpop.f32.mrb[22].mxu0 }
 0x98f   :  { %v10299_v8 = vpop.f32.mrb[23].mxu0 }
 0x990   :  { %v3242_v60 = vadd.f32 %v10297_v57, %v9659_v54 }
 0x992   :  { %v3247_v61 = vmul.f32 %v12617_v3, %v3242_v60 }
 0x994   :  { %v3248_v1 = vsub.f32 %v12553_v12, %v3247_v61  ;;  %v10938_v12 = vld [vmem:[#allocation14 + $0x310] ss:$8 sps:$4 sm:$0xff]  }
 0x996   :  { %v3249_v5 = vmul.f32 %v12617_v3, %v3248_v1  ;;  %v10943_v3 = vld [vmem:[#allocation14 + $0x324] ss:$8 sps:$4 sm:$0xff]  }
 0x998   :  { %v3253_v11 = vmul.f32 %v11638_v6, %v3249_v5 }
 0x99a   :  { %v12638_v55 = vadd.f32 %v3253_v11, %v12556_v13  ;;  %v10944_v13 = vld [vmem:[#allocation14 + $0x330] ss:$8 sps:$4 sm:$0xff]  }
 0x99c   :  { %v12641_v7 = vmul.f32 %v9676_v14, %v12638_v55 }
 0x99e   :  { %v3273_v20 = vpack.c.bf16 %v12641_v7, %v12641_v7 }
 0x9a0   :  { %3523 = vmatmul.mubr.bf16.vlgmr.msra.gmra.mrb[24].mxu0 %v3273_v20  ;;  %3564 = vmatmul.mubr.bf16.vlgmr.msra.gmra.mrb[24].mxu1 %v3273_v20 }
 0x9a1   :  { %3935 = vmatpush1.bf16.msra.mxu0 %v10935_v16 }
 0x9a2   :  { %3936 = vmatprep.subr.bf16.mxu0 %v10940_v22 }
 0x9a5   :  { %3937 = vmatpush1.bf16.msra.mxu0 %v10938_v12 }
 0x9a6   :  { %3938 = vmatprep.subr.bf16.mxu0 %v10943_v3 }
 0x9a9   :  { %3939 = vmatpush1.bf16.msra.mxu0 %v10941_v19 }
 0x9aa   :  { %3940 = vmatprep.subr.bf16.mxu0 %v10946_v23 }
 0x9ad   :  { %3941 = vmatpush1.bf16.msra.mxu0 %v10944_v13 }
 0x9ae   :  { %3942 = vmatprep.subr.bf16.mxu0 %v10949_v4 }
 0x9b1   :  { %3943 = vmatpush1.bf16.msra.mxu0 %v10947_v47 }
 0x9b2   :  { %3944 = vmatprep.subr.bf16.mxu0 %v10952_v30 }
 0x9b5   :  { %3945 = vmatpush1.bf16.msra.mxu0 %v10950_v25 }
 0x9b6   :  { %3946 = vmatprep.subr.bf16.mxu0 %v10955_v27 }
 0x9b9   :  { %3947 = vmatpush1.bf16.msra.mxu0 %v10953_v15 }
 0x9ba   :  { %3948 = vmatprep.subr.bf16.mxu0 %v10958_v29 }
 0x9bd   :  { %3949 = vmatpush1.bf16.msra.mxu0 %v10956_v24 }
 0x9be   :  { %3950 = vmatprep.subr.bf16.mxu0 %v10961_v31 }
 0x9c1   :  { %3951 = vmatpush1.bf16.msra.mxu0 %v10959_v28 }
 0x9c2   :  { %3952 = vmatprep.subr.bf16.mxu0 %v10964_v58 }
 0x9c5   :  { %3953 = vmatpush1.bf16.msra.mxu0 %v10962_v21 }
 0x9c6   :  { %3954 = vmatprep.subr.bf16.mxu0 %v10967_v32 }
 0x9c9   :  { %3955 = vmatpush1.bf16.msra.mxu0 %v10965_v33 }
 0x9ca   :  { %3956 = vmatprep.subr.bf16.mxu0 %v10970_v34 }
 0x9cd   :  { %3957 = vmatpush1.bf16.msra.mxu0 %v10968_v35 }
 0x9ce   :  { %3958 = vmatprep.subr.bf16.mxu0 %v10973_v36 }
 0x9d1   :  { %3959 = vmatpush1.bf16.msra.mxu0 %v10971_v26 }
 0x9d2   :  { %3960 = vmatprep.subr.bf16.mxu0 %v10976_v37 }
 0x9d5   :  { %3961 = vmatpush1.bf16.msra.mxu0 %v10974_v38 }
 0x9d6   :  { %3962 = vmatprep.subr.bf16.mxu0 %v10979_v39 }
 0x9d9   :  { %3963 = vmatpush1.bf16.msra.mxu0 %v10977_v62 }
 0x9da   :  { %3964 = vmatprep.subr.bf16.mxu0 %v10982_v41 }
 0x9dd   :  { %3965 = vmatpush1.bf16.msra.mxu0 %v10980_v44 }
 0xa73   :  { %v3524_v48 = vpop.f32.mrb[24].mxu0  ;;  %v3565_v49 = vpop.f32.mrb[24].mxu1 }
 0xa74   :  { %v3525_v2 = vadd.f32 %v3524_v48, %v3313_v40  ;;  %v3566_v50 = vadd.f32 %v3565_v49, %v3321_v45  ;;  %v3526_v52 = vpop.f32.mrb[25].mxu0  ;;  %v3567_v53 = vpop.f32.mrb[25].mxu1 }
 0xa75   :  { %v3527_v18 = vadd.f32 %v3526_v52, %v3317_v42  ;;  %v3568_v54 = vadd.f32 %v3567_v53, %v3325_v46  ;;  %v3528_v56 = vpop.f32.mrb[26].mxu0  ;;  %v3569_v57 = vpop.f32.mrb[26].mxu1 }
 0xa76   :  { %vm3572_vm0 = vcmp.gt.f32.partialorder %v3525_v2, 0.0  ;;  %v3576_v17 = vmul.f32 0.01, %v3525_v2  ;;  %vm3574_vm1 = vcmp.gt.f32.partialorder %v3566_v50, 0.0  ;;  %v3578_v8 = vmul.f32 0.01, %v3566_v50 }
 0xa77   :  { %vm3573_vm2 = vcmp.gt.f32.partialorder %v3527_v18, 0.0  ;;  %v3577_v60 = vmul.f32 0.01, %v3527_v18  ;;  %vm3575_vm3 = vcmp.gt.f32.partialorder %v3568_v54, 0.0  ;;  %v3579_v61 = vmul.f32 0.01, %v3568_v54 }
 0xa78   :  { %v12649_v1 = vsel %vm3572_vm0, %v3525_v2, %v3576_v17  ;;  %v12651_v5 = vsel %vm3574_vm1, %v3566_v50, %v3578_v8  ;;  %v3529_v6 = vpop.f32.mrb[27].mxu0  ;;  %v3570_v11 = vpop.f32.mrb[27].mxu1 }
 0xa79   :  { %v3588_v14 = vrot.slane %v12649_v1, 4  ;;  %v3616_v16 = vmul.f32 %v12649_v1, %v12649_v1  ;;  %v3600_v20 = vrot.slane %v12651_v5, 4  ;;  %v3618_v22 = vmul.f32 %v12651_v5, %v12651_v5 }
 0xa7a   :  { %v12659_v12 = vsel %vm3573_vm2, %v3527_v18, %v3577_v60  ;;  %v12661_v3 = vsel %vm3575_vm3, %v3568_v54, %v3579_v61 }
 0xa7b   :  { %v3589_v19 = vadd.f32 %v3588_v14, %v12649_v1  ;;  %v3620_v23 = vrot.slane %v3616_v16, 4  ;;  %v3601_v13 = vadd.f32 %v3600_v20, %v12651_v5  ;;  %v3632_v4 = vrot.slane %v3618_v22, 4 }
 0xa7c   :  { %v3594_v47 = vrot.slane %v12659_v12, 4  ;;  %v3617_v30 = vmul.f32 %v12659_v12, %v12659_v12  ;;  %v3606_v25 = vrot.slane %v12661_v3, 4  ;;  %v3619_v27 = vmul.f32 %v12661_v3, %v12661_v3 }
 0xa7d   :  { %v3590_v15 = vrot.slane %v3589_v19, 2  ;;  %v3621_v29 = vadd.f32 %v3620_v23, %v3616_v16  ;;  %v3602_v24 = vrot.slane %v3601_v13, 2  ;;  %v3633_v31 = vadd.f32 %v3632_v4, %v3618_v22 }
 0xa7e   :  { %v3595_v28 = vadd.f32 %v3594_v47, %v12659_v12  ;;  %v3626_v58 = vrot.slane %v3617_v30, 4  ;;  %v3607_v21 = vadd.f32 %v3606_v25, %v12661_v3  ;;  %v3638_v32 = vrot.slane %v3619_v27, 4 }
 0xa7f   :  { %v3591_v33 = vadd.f32 %v3590_v15, %v3589_v19  ;;  %v3622_v34 = vrot.slane %v3621_v29, 2  ;;  %v3603_v35 = vadd.f32 %v3602_v24, %v3601_v13  ;;  %v3634_v36 = vrot.slane %v3633_v31, 2 }
 0xa80   :  { %v3596_v26 = vrot.slane %v3595_v28, 2  ;;  %v3627_v37 = vadd.f32 %v3626_v58, %v3617_v30  ;;  %v3608_v38 = vrot.slane %v3607_v21, 2  ;;  %v3639_v39 = vadd.f32 %v3638_v32, %v3619_v27 }
 0xa81   :  { %v3592_v62 = vrot.slane %v3591_v33, 1  ;;  %v3623_v41 = vadd.f32 %v3622_v34, %v3621_v29  ;;  %v3604_v44 = vrot.slane %v3603_v35, 1  ;;  %v3635_v63 = vadd.f32 %v3634_v36, %v3633_v31 }
 0xa82   :  { %v3597_v40 = vadd.f32 %v3596_v26, %v3595_v28  ;;  %v3628_v45 = vrot.slane %v3627_v37, 2  ;;  %v3609_v42 = vadd.f32 %v3608_v38, %v3607_v21  ;;  %v3640_v46 = vrot.slane %v3639_v39, 2  ;;  %v3585_v26 = vld [vmem:[#allocation11 + $0xc] sm:$0xf]  ;;  %v3587_v38 = vld [vmem:[#allocation13 + $0xc] sm:$0xf] }
 0xa83   :  { %v3593_v48 = vadd.f32 %v3592_v62, %v3591_v33  ;;  %v3624_v49 = vrot.slane %v3623_v41, 1  ;;  %v3605_v2 = vadd.f32 %v3604_v44, %v3603_v35  ;;  %v3636_v50 = vrot.slane %v3635_v63, 1 }
 0xa84   :  { %v3598_v52 = vrot.slane %v3597_v40, 1  ;;  %v3629_v53 = vadd.f32 %v3628_v45, %v3627_v37  ;;  %v3610_v18 = vrot.slane %v3609_v42, 1  ;;  %v3641_v54 = vadd.f32 %v3640_v46, %v3639_v39 }
 0xa85   :  { %v3612_v56 = vmul.f32 0.125, %v3593_v48  ;;  %v3625_v57 = vadd.f32 %v3624_v49, %v3623_v41  ;;  %v3614_v17 = vmul.f32 0.125, %v3605_v2  ;;  %v3637_v8 = vadd.f32 %v3636_v50, %v3635_v63 }
 0xa86   :  { %v3599_v60 = vadd.f32 %v3598_v52, %v3597_v40  ;;  %v3630_v61 = vrot.slane %v3629_v53, 1  ;;  %v3611_v6 = vadd.f32 %v3610_v18, %v3609_v42  ;;  %v3642_v11 = vrot.slane %v3641_v54, 1 }
 0xa87   :  { %v3644_v14 = vmul.f32 0.125, %v3625_v57  ;;  %v3648_v16 = vmul.f32 %v3612_v56, %v3612_v56  ;;  %v3646_v20 = vmul.f32 0.125, %v3637_v8  ;;  %v3650_v22 = vmul.f32 %v3614_v17, %v3614_v17 }
 0xa88   :  { %v3613_v19 = vmul.f32 0.125, %v3599_v60  ;;  %v3631_v23 = vadd.f32 %v3630_v61, %v3629_v53  ;;  %v3615_v4 = vmul.f32 0.125, %v3611_v6  ;;  %v3643_v47 = vadd.f32 %v3642_v11, %v3641_v54 }
 0xa89   :  { %v3652_v13 = vsub.f32 %v3644_v14, %v3648_v16  ;;  %v3654_v30 = vsub.f32 %v3646_v20, %v3650_v22  ;;  %v3660_v37 = vsub.f32 %v12649_v1, %v3612_v56  ;;  %v3680_v39 = vrot.slane %v3585_v26, %v12458_v9  ;;  %v10983_v14 = vld [vmem:[#allocation20 + $0x1c0] sm:$0xff]   ;;  %v10985_v20 = vld [vmem:[#allocation20 + $0x1c8] sm:$0xff]  }
 0xa8a   :  { %v3645_v25 = vmul.f32 0.125, %v3631_v23  ;;  %v3649_v27 = vmul.f32 %v3613_v19, %v3613_v19  ;;  %v3647_v29 = vmul.f32 0.125, %v3643_v47  ;;  %v3651_v24 = vmul.f32 %v3615_v4, %v3615_v4  ;;  %v10984_v16 = vld [vmem:[#allocation20 + $0x180] sm:$0xff]   ;;  %10301 = vmatprep.subr.bf16.mxu1 %v10983_v14  ;;  %v10986_v22 = vld [vmem:[#allocation20 + $0x188] sm:$0xff]   ;;  %v10988_v23 = vld [vmem:[#allocation20 + $0x190] sm:$0xff]  }
 0xa8b   :  { %v3656_v15 = vmax.f32 %v3652_v13, 0.0  ;;  %v3658_v31 = vmax.f32 %v3654_v30, 0.0  ;;  %v3662_v41 = vsub.f32 %v12651_v5, %v3614_v17  ;;  %v3688_v44 = vrot.slane %v3585_v26, %v12511_v59  ;;  %10302 = vmatpush3.bf16.msra.mxu1 %v10984_v16  ;;  %v10989_v13 = vld [vmem:[#allocation20 + $0x1d8] sm:$0xff]   ;;  %v10991_v47 = vld [vmem:[#allocation20 + $0x1e0] sm:$0xff]  }
 0xa8c   :  { %v3653_v28 = vsub.f32 %v3645_v25, %v3649_v27  ;;  %v3655_v21 = vsub.f32 %v3647_v29, %v3651_v24  ;;  %v3661_v42 = vsub.f32 %v12659_v12, %v3613_v19  ;;  %v3684_v46 = vrot.slane %v3585_v26, %v12461_v10  ;;  %10303 = vmatprep.subr.bf16.mxu1 %v10985_v20  ;;  %v10987_v19 = vld [vmem:[#allocation20 + $0x1d0] sm:$0xff]   ;;  %v10992_v30 = vld [vmem:[#allocation20 + $0x1a0] sm:$0xff]   ;;  %v10993_v25 = vld [vmem:[#allocation20 + $0x1e8] sm:$0xff]  }
 0xa8d   :  { %v3664_v58 = vadd.f32 1e-05, %v3656_v15  ;;  %v3666_v32 = vadd.f32 1e-05, %v3658_v31  ;;  %v3713_v48 = vrot.slane %v3587_v38, %v12511_v59  ;;  %v3663_v1 = vsub.f32 %v12661_v3, %v3615_v4  ;;  %v10990_v4 = vld [vmem:[#allocation20 + $0x198] sm:$0xff]   ;;  %v10994_v27 = vld [vmem:[#allocation20 + $0x1a8] sm:$0xff]  }
 0xa8e   :  { %v3657_v33 = vmax.f32 %v3653_v28, 0.0  ;;  %v3659_v34 = vmax.f32 %v3655_v21, 0.0  ;;  %v3705_v50 = vrot.slane %v3587_v38, %v12458_v9  ;;  %v3692_v52 = vrot.slane %v3585_v26, %v12482_v43  ;;  %v10995_v15 = vld [vmem:[#allocation20 + $0x1f0] sm:$0xff]   ;;  %v10997_v24 = vld [vmem:[#allocation20 + $0x1f8] sm:$0xff]  }
 0xa8f   :  { %11639 = vrsqrt.f32 %v3664_v58  ;;  %v3709_v18 = vrot.slane %v3587_v38, %v12461_v10  ;;  %v3717_v12 = vrot.slane %v3587_v38, %v12482_v43  ;;  %10304 = vmatpush3.bf16.msra.mxu1 %v10986_v22  ;;  %v10996_v29 = vld [vmem:[#allocation20 + $0x1b0] sm:$0xff]   ;;  %v10998_v31 = vld [vmem:[#allocation20 + $0x1b8] sm:$0xff]  }
 0xa90   :  { %11641 = vrsqrt.f32 %v3666_v32  ;;  %v3665_v35 = vadd.f32 1e-05, %v3657_v33  ;;  %v3667_v36 = vadd.f32 1e-05, %v3659_v34  ;;  %10305 = vmatprep.subr.bf16.mxu1 %v10987_v19  ;;  %v11001_v28 = vld [vmem:[#allocation14 + $0x904] ss:$8 sps:$4 sm:$0xff]  }
 0xa91   :  { %v3762_v58 = vld [vmem:[#allocation16 + $0x6] sm:$0x3] }
 0xa92   :  { %11643 = vrsqrt.f32 %v3665_v35  ;;  %v3767_v21 = vrot.slane %v3762_v58, %v12458_v9  ;;  %v3771_v32 = vrot.slane %v3762_v58, %v12461_v10 }
 0xa93   :  { %11645 = vrsqrt.f32 %v3667_v36  ;;  %10306 = vmatpush3.bf16.msra.mxu1 %v10988_v23 }
 0xa94   :  { %10307 = vmatprep.subr.bf16.mxu1 %v10989_v13 }
 0xa97   :  { %10308 = vmatpush3.bf16.msra.mxu1 %v10990_v4 }
 0xa98   :  { %10309 = vmatprep.subr.bf16.mxu1 %v10991_v47 }
 0xa99   :  { %v11640_v62 = vpop.eup %11639 }
 0xa9a   :  { %v11642_v63 = vpop.eup %11641  ;;  %v3672_v40 = vmul.f32 %v11640_v62, %v3660_v37 }
 0xa9b   :  { %v3674_v45 = vmul.f32 %v11642_v63, %v3662_v41  ;;  %10310 = vmatpush3.bf16.msra.mxu1 %v10992_v30 }
 0xa9c   :  { %v11644_v49 = vpop.eup %11643  ;;  %v3697_v2 = vmul.f32 %v3680_v39, %v3672_v40  ;;  %10311 = vmatprep.subr.bf16.mxu1 %v10993_v25 }
 0xa9d   :  { %v11646_v5 = vpop.eup %11645  ;;  %v3673_v53 = vmul.f32 %v11644_v49, %v3661_v42  ;;  %v3699_v54 = vmul.f32 %v3688_v44, %v3674_v45 }
 0xa9e   :  { %v3675_v56 = vmul.f32 %v11646_v5, %v3663_v1  ;;  %v3722_v8 = vadd.f32 %v3705_v50, %v3697_v2 }
 0xa9f   :  { %v3698_v57 = vmul.f32 %v3684_v46, %v3673_v53  ;;  %v12685_v17 = vadd.f32 %v3713_v48, %v3699_v54  ;;  %10312 = vmatpush3.bf16.msra.mxu1 %v10994_v27 }
 0xaa0   :  { %v3700_v60 = vmul.f32 %v3692_v52, %v3675_v56  ;;  %v3726_v11 = vpack.c.bf16 %v3722_v8, %v3722_v8  ;;  %10313 = vmatprep.subr.bf16.mxu1 %v10995_v15 }
 0xaa1   :  { %v3723_v61 = vadd.f32 %v3709_v18, %v3698_v57 }
 0xaa2   :  { %v12687_v3 = vadd.f32 %v3717_v12, %v3700_v60 }
 0xaa3   :  { %v3727_v6 = vpack.c.bf16 %v3723_v61, %v3723_v61  ;;  %10314 = vmatpush3.bf16.msra.mxu1 %v10996_v29 }
 0xaa4   :  { %10315 = vmatprep.subr.bf16.mxu1 %v10997_v24  ;;  %v3982_v24 = vld [vmem:[#allocation17 + $0x6] sm:$0x3] }
 0xaa5   :  { %3966 = vmatprep.mubr.bf16.mxu0 %v3727_v6  ;;  %v4033_v58 = vrot.slane %v3982_v24, %v12458_v9 }
 0xaa6   :  { %3967 = vmatmul.mubr.bf16.vlgmr.msra.gmra.mrb[28].mxu0 %v3726_v11 }
 0xaa7   :  { %10316 = vmatpush3.bf16.msra.mxu1 %v10998_v31  ;;  %v3984_v31 = vld [vmem:[#allocation19 + $0x6] sm:$0x3] }
 0xaa8   :  { %4450 = vmatprep.subr.bf16.mxu1 %v11001_v28 }
 0xb79   :  { %v3968_v33 = vpop.f32.mrb[28].mxu0 }
 0xb7a   :  { %v3969_v34 = vadd.f32 %v3968_v33, %v3767_v21  ;;  %v3970_v35 = vpop.f32.mrb[29].mxu0  ;;  %v4037_v33 = vrot.slane %v3982_v24, %v12461_v10  ;;  %v11051_v24 = vld [vmem:[#allocation20 + $0x4d0] sm:$0xff]  }
 0xb7b   :  { %v3971_v36 = vadd.f32 %v3970_v35, %v3771_v32  ;;  %v3972_v26 = vpop.f32.mrb[30].mxu0 }
 0xb7c   :  { %vm3975_vm4 = vcmp.gt.f32.partialorder %v3969_v34, 0.0  ;;  %v3977_v37 = vmul.f32 0.01, %v3969_v34  ;;  %v3973_v38 = vpop.f32.mrb[31].mxu0 }
 0xb7d   :  { %vm3976_vm5 = vcmp.gt.f32.partialorder %v3971_v36, 0.0  ;;  %v3978_v39 = vmul.f32 0.01, %v3971_v36 }
 0xb7e   :  { %v3979_v62 = vsel %vm3975_vm4, %v3969_v34, %v3977_v37  ;;  %v4050_v37 = vrot.slane %v3984_v31, %v12461_v10 }
 0xb7f   :  { %v3985_v41 = vrot.slane %v3979_v62, 4  ;;  %v3999_v44 = vmul.f32 %v3979_v62, %v3979_v62  ;;  %v3980_v63 = vsel %vm3976_vm5, %v3971_v36, %v3978_v39  ;;  %v4046_v36 = vrot.slane %v3984_v31, %v12458_v9  ;;  %v11052_v31 = vld [vmem:[#allocation20 + $0x490] sm:$0xff]  }
 0xb80   :  { %v3991_v40 = vrot.slane %v3980_v63, 4  ;;  %v4000_v45 = vmul.f32 %v3980_v63, %v3980_v63 }
 0xb81   :  { %v3986_v42 = vadd.f32 %v3985_v41, %v3979_v62  ;;  %v4001_v46 = vrot.slane %v3999_v44, 4 }
 0xb82   :  { %v3992_v48 = vadd.f32 %v3991_v40, %v3980_v63  ;;  %v4007_v49 = vrot.slane %v4000_v45, 4 }
 0xb83   :  { %v3987_v1 = vrot.slane %v3986_v42, 2  ;;  %v4002_v2 = vadd.f32 %v4001_v46, %v3999_v44  ;;  %v11002_v46 = vld [vmem:[#allocation14 + $0x910] ss:$8 sps:$4 sm:$0xff]  }
 0xb84   :  { %v3993_v50 = vrot.slane %v3992_v48, 2  ;;  %v4008_v52 = vadd.f32 %v4007_v49, %v4000_v45  ;;  %v10999_v45 = vld [vmem:[#allocation14 + $0x900] ss:$8 sps:$4 sm:$0xff]  }
 0xb85   :  { %v3988_v5 = vadd.f32 %v3987_v1, %v3986_v42  ;;  %v4003_v53 = vrot.slane %v4002_v2, 2  ;;  %v11004_v42 = vld [vmem:[#allocation14 + $0x914] ss:$8 sps:$4 sm:$0xff]   ;;  %v11005_v49 = vld [vmem:[#allocation14 + $0x920] ss:$8 sps:$4 sm:$0xff]  }
 0xb86   :  { %v3994_v18 = vadd.f32 %v3993_v50, %v3992_v48  ;;  %v4009_v54 = vrot.slane %v4008_v52, 2  ;;  %v11007_v48 = vld [vmem:[#allocation14 + $0x924] ss:$8 sps:$4 sm:$0xff]   ;;  %v11010_v1 = vld [vmem:[#allocation14 + $0x934] ss:$8 sps:$4 sm:$0xff]  }
 0xb87   :  { %v3989_v56 = vrot.slane %v3988_v5, 1  ;;  %v4004_v12 = vadd.f32 %v4003_v53, %v4002_v2  ;;  %v11008_v2 = vld [vmem:[#allocation14 + $0x930] ss:$8 sps:$4 sm:$0xff]   ;;  %v11013_v50 = vld [vmem:[#allocation14 + $0x944] ss:$8 sps:$4 sm:$0xff]  }
 0xb88   :  { %v3995_v57 = vrot.slane %v3994_v18, 1  ;;  %v4010_v8 = vadd.f32 %v4009_v54, %v4008_v52  ;;  %v11011_v52 = vld [vmem:[#allocation14 + $0x940] ss:$8 sps:$4 sm:$0xff]   ;;  %v11019_v53 = vld [vmem:[#allocation14 + $0x964] ss:$8 sps:$4 sm:$0xff]  }
 0xb89   :  { %v3990_v60 = vadd.f32 %v3989_v56, %v3988_v5  ;;  %v4005_v61 = vrot.slane %v4004_v12, 1  ;;  %v11016_v5 = vld [vmem:[#allocation14 + $0x954] ss:$8 sps:$4 sm:$0xff]   ;;  %v11020_v56 = vld [vmem:[#allocation14 + $0x970] ss:$8 sps:$4 sm:$0xff]  }
 0xb8a   :  { %v3996_v6 = vadd.f32 %v3995_v57, %v3994_v18  ;;  %v4011_v11 = vrot.slane %v4010_v8, 1  ;;  %v11017_v18 = vld [vmem:[#allocation14 + $0x960] ss:$8 sps:$4 sm:$0xff]   ;;  %v11022_v54 = vld [vmem:[#allocation14 + $0x974] ss:$8 sps:$4 sm:$0xff]  }
 0xb8b   :  { %v3997_v14 = vmul.f32 0.125, %v3990_v60  ;;  %v4006_v16 = vadd.f32 %v4005_v61, %v4004_v12  ;;  %v11025_v12 = vld [vmem:[#allocation14 + $0x984] ss:$8 sps:$4 sm:$0xff]   ;;  %v11023_v57 = vld [vmem:[#allocation14 + $0x980] ss:$8 sps:$4 sm:$0xff]  }
 0xb8c   :  { %v3998_v20 = vmul.f32 0.125, %v3996_v6  ;;  %v4012_v22 = vadd.f32 %v4011_v11, %v4010_v8  ;;  %v11028_v8 = vld [vmem:[#allocation14 + $0x994] ss:$8 sps:$4 sm:$0xff]   ;;  %v11026_v60 = vld [vmem:[#allocation14 + $0x990] ss:$8 sps:$4 sm:$0xff]  }
 0xb8d   :  { %v4013_v19 = vmul.f32 0.125, %v4006_v16  ;;  %v4015_v23 = vmul.f32 %v3997_v14, %v3997_v14  ;;  %v4021_v28 = vsub.f32 %v3979_v62, %v3997_v14  ;;  %v11031_v61 = vld [vmem:[#allocation14 + $0x9a4] ss:$8 sps:$4 sm:$0xff]   ;;  %v11029_v6 = vld [vmem:[#allocation14 + $0x9a0] ss:$8 sps:$4 sm:$0xff]  }
 0xb8e   :  { %v4014_v13 = vmul.f32 0.125, %v4012_v22  ;;  %v4016_v4 = vmul.f32 %v3998_v20, %v3998_v20  ;;  %v4022_v32 = vsub.f32 %v3980_v63, %v3998_v20  ;;  %v4243_v63 = vpack.c.bf16 %v12687_v3, %v12687_v3  ;;  %v11014_v3 = vld [vmem:[#allocation14 + $0x950] ss:$8 sps:$4 sm:$0xff]   ;;  %v11034_v11 = vld [vmem:[#allocation14 + $0x9b4] ss:$8 sps:$4 sm:$0xff]  }
 0xb8f   :  { %v4017_v47 = vsub.f32 %v4013_v19, %v4015_v23  ;;  %v11032_v14 = vld [vmem:[#allocation14 + $0x9b0] ss:$8 sps:$4 sm:$0xff]   ;;  %v11037_v16 = vld [vmem:[#allocation14 + $0x9c4] ss:$8 sps:$4 sm:$0xff]   ;;  %v11035_v20 = vld [vmem:[#allocation14 + $0x9c0] ss:$8 sps:$4 sm:$0xff]  }
 0xb90   :  { %v4018_v30 = vsub.f32 %v4014_v13, %v4016_v4  ;;  %v11040_v22 = vld [vmem:[#allocation14 + $0x9d4] ss:$8 sps:$4 sm:$0xff]   ;;  %v11038_v19 = vld [vmem:[#allocation14 + $0x9d0] ss:$8 sps:$4 sm:$0xff]   ;;  %v11043_v23 = vld [vmem:[#allocation14 + $0x9e4] ss:$8 sps:$4 sm:$0xff]  }
 0xb91   :  { %v4019_v25 = vmax.f32 %v4017_v47, 0.0  ;;  %v11041_v13 = vld [vmem:[#allocation14 + $0x9e0] ss:$8 sps:$4 sm:$0xff]   ;;  %v11046_v4 = vld [vmem:[#allocation14 + $0x9f4] ss:$8 sps:$4 sm:$0xff]  }
 0xb92   :  { %v4020_v27 = vmax.f32 %v4018_v30, 0.0  ;;  %v11044_v47 = vld [vmem:[#allocation14 + $0x9f0] ss:$8 sps:$4 sm:$0xff]   ;;  %v4242_v30 = vpack.c.bf16 %v12685_v17, %v12685_v17  ;;  %v11055_v17 = vld [vmem:[#allocation20 + $0x4e0] sm:$0xff]  }
 0xb93   :  { %v4023_v15 = vadd.f32 1e-05, %v4019_v25  ;;  %v11047_v25 = vld [vmem:[#allocation20 + $0x4c0] sm:$0xff]  }
 0xb94   :  { %v4024_v29 = vadd.f32 1e-05, %v4020_v27  ;;  %v11048_v27 = vld [vmem:[#allocation20 + $0x480] sm:$0xff]   ;;  %10323 = vmatprep.subr.bf16.mxu0 %v11047_v25 }
 0xb95   :  { %11647 = vrsqrt.f32 %v4023_v15  ;;  %10324 = vmatpush3.bf16.msra.mxu0 %v11048_v27  ;;  %v11049_v15 = vld [vmem:[#allocation20 + $0x4c8] sm:$0xff]  }
 0xb96   :  { %11649 = vrsqrt.f32 %v4024_v29  ;;  %v11050_v29 = vld [vmem:[#allocation20 + $0x488] sm:$0xff]   ;;  %10325 = vmatprep.subr.bf16.mxu0 %v11049_v15 }
 0xb99   :  { %10326 = vmatpush3.bf16.msra.mxu0 %v11050_v29 }
 0xb9a   :  { %10327 = vmatprep.subr.bf16.mxu0 %v11051_v24 }
 0xb9d   :  { %10328 = vmatpush3.bf16.msra.mxu0 %v11052_v31 }
 0xb9f   :  { %v11648_v21 = vpop.eup %11647 }
 0xba0   :  { %v11650_v34 = vpop.eup %11649  ;;  %v4027_v35 = vmul.f32 %v11648_v21, %v4021_v28  ;;  %v11053_v28 = vld [vmem:[#allocation20 + $0x4d8] sm:$0xff]   ;;  %v11056_v21 = vld [vmem:[#allocation20 + $0x4a0] sm:$0xff]  }
 0xba1   :  { %v4028_v26 = vmul.f32 %v11650_v34, %v4022_v32  ;;  %10329 = vmatprep.subr.bf16.mxu0 %v11053_v28  ;;  %v11057_v32 = vld [vmem:[#allocation20 + $0x4e8] sm:$0xff]   ;;  %v11059_v34 = vld [vmem:[#allocation20 + $0x4f0] sm:$0xff]  }
 0xba2   :  { %v4040_v38 = vmul.f32 %v4033_v58, %v4027_v35  ;;  %v11054_v58 = vld [vmem:[#allocation20 + $0x498] sm:$0xff]   ;;  %v11060_v35 = vld [vmem:[#allocation20 + $0x4b0] sm:$0xff]  }
 0xba3   :  { %v4041_v39 = vmul.f32 %v4037_v33, %v4028_v26  ;;  %10330 = vmatpush3.bf16.msra.mxu0 %v11054_v58  ;;  %v11058_v33 = vld [vmem:[#allocation20 + $0x4a8] sm:$0xff]   ;;  %v11062_v26 = vld [vmem:[#allocation20 + $0x4b8] sm:$0xff]  }
 0xba4   :  { %v4053_v41 = vadd.f32 %v4046_v36, %v4040_v38  ;;  %10331 = vmatprep.subr.bf16.mxu0 %v11055_v17  ;;  %v11061_v36 = vld [vmem:[#allocation20 + $0x4f8] sm:$0xff]  }
 0xba5   :  { %v4054_v44 = vadd.f32 %v4050_v37, %v4041_v39  ;;  %v11065_v37 = vld [vmem:[#allocation8 + $0x204] ss:$16 sps:$4 sm:$0xff]   ;;  %v11066_v38 = vld [vmem:[#allocation8 + $0x208] ss:$16 sps:$4 sm:$0xff]   ;;  %v11068_v39 = vld [vmem:[#allocation8 + $0x20c] ss:$16 sps:$4 sm:$0xff]  }
 0xba6   :  { %v4055_v62 = vpack.c.bf16 %v4053_v41, %v4053_v41  ;;  %v11074_v41 = vld [vmem:[#allocation8 + $0x22c] ss:$16 sps:$4 sm:$0xff]  }
 0xba7   :  { %v4056_v40 = vpack.c.bf16 %v4054_v44, %v4054_v44  ;;  %10332 = vmatpush3.bf16.msra.mxu0 %v11056_v21  ;;  %v11072_v44 = vld [vmem:[#allocation8 + $0x228] ss:$16 sps:$4 sm:$0xff]  }
 0xba8   :  { %10333 = vmatprep.subr.bf16.mxu0 %v11057_v32 }
 0xba9   :  { %4226 = vmatprep.mubr.bf16.mxu1 %v4056_v40  ;;  %v11080_v40 = vld [vmem:[#allocation8 + $0x24c] ss:$16 sps:$4 sm:$0xff]  }
 0xbaa   :  { %4227 = vmatmul.mubr.bf16.vlgmr.msra.gmra.mrb[28].mxu1 %v4055_v62 }
 0xbab   :  { %4451 = vmatpush1.bf16.msra.mxu1 %v10999_v45  ;;  %4482 = vmatprep.mubr.bf16.mxu1 %v4243_v63  ;;  %v11078_v45 = vld [vmem:[#allocation8 + $0x248] ss:$16 sps:$4 sm:$0xff]  }
 0xbac   :  { %4452 = vmatprep.subr.bf16.mxu1 %v11004_v42  ;;  %10334 = vmatpush3.bf16.msra.mxu0 %v11058_v33  ;;  %v9741_v42 = vld [vmem:[#allocation22 + $0x3] ss:$0 sm:$0xff] }
 0xbad   :  { %10335 = vmatprep.subr.bf16.mxu0 %v11059_v34 }
 0xbaf   :  { %4453 = vmatpush1.bf16.msra.mxu1 %v11002_v46 }
 0xbb0   :  { %4454 = vmatprep.subr.bf16.mxu1 %v11007_v48  ;;  %10336 = vmatpush3.bf16.msra.mxu0 %v11060_v35 }
 0xbb1   :  { %10337 = vmatprep.subr.bf16.mxu0 %v11061_v36 }
 0xbb3   :  { %4455 = vmatpush1.bf16.msra.mxu1 %v11005_v49 }
 0xbb4   :  { %4456 = vmatprep.subr.bf16.mxu1 %v11010_v1  ;;  %10338 = vmatpush3.bf16.msra.mxu0 %v11062_v26 }
 0xbb5   :  { %4993 = vmatprep.subr.bf16.mxu0 %v11065_v37 }
 0xbb7   :  { %4457 = vmatpush1.bf16.msra.mxu1 %v11008_v2  ;;  %v12700_v2 = vld [vmem:[#allocation7 + $0x3] ss:$0 sm:$0xff] }
 0xbb8   :  { %4458 = vmatprep.subr.bf16.mxu1 %v11013_v50 }
 0xbbb   :  { %4459 = vmatpush1.bf16.msra.mxu1 %v11011_v52 }
 0xbbc   :  { %4460 = vmatprep.subr.bf16.mxu1 %v11016_v5 }
 0xbbf   :  { %4461 = vmatpush1.bf16.msra.mxu1 %v11014_v3 }
 0xbc0   :  { %4462 = vmatprep.subr.bf16.mxu1 %v11019_v53 }
 0xbc3   :  { %4463 = vmatpush1.bf16.msra.mxu1 %v11017_v18 }
 0xbc4   :  { %4464 = vmatprep.subr.bf16.mxu1 %v11022_v54 }
 0xbc7   :  { %4465 = vmatpush1.bf16.msra.mxu1 %v11020_v56 }
 0xbc8   :  { %4466 = vmatprep.subr.bf16.mxu1 %v11025_v12 }
 0xbcb   :  { %4467 = vmatpush1.bf16.msra.mxu1 %v11023_v57  ;;  %v4278_v57 = vld [vmem:[#allocation16 + $0x12] sm:$0x3] }
 0xbcc   :  { %4468 = vmatprep.subr.bf16.mxu1 %v11028_v8  ;;  %v4283_v8 = vrot.slane %v4278_v57, %v12458_v9 }
 0xbcf   :  { %4469 = vmatpush1.bf16.msra.mxu1 %v11026_v60  ;;  %v4287_v60 = vrot.slane %v4278_v57, %v12461_v10  ;;  %v4500_v57 = vld [vmem:[#allocation19 + $0x12] sm:$0x3] }
 0xbd0   :  { %4470 = vmatprep.subr.bf16.mxu1 %v11031_v61 }
 0xbd3   :  { %4471 = vmatpush1.bf16.msra.mxu1 %v11029_v6 }
 0xbd4   :  { %4472 = vmatprep.subr.bf16.mxu1 %v11034_v11 }
 0xbd7   :  { %4473 = vmatpush1.bf16.msra.mxu1 %v11032_v14 }
 0xbd8   :  { %4474 = vmatprep.subr.bf16.mxu1 %v11037_v16 }
 0xbdb   :  { %4475 = vmatpush1.bf16.msra.mxu1 %v11035_v20 }
 0xbdc   :  { %4476 = vmatprep.subr.bf16.mxu1 %v11040_v22 }
 0xbdf   :  { %4477 = vmatpush1.bf16.msra.mxu1 %v11038_v19 }
 0xbe0   :  { %4478 = vmatprep.subr.bf16.mxu1 %v11043_v23 }
 0xbe3   :  { %4479 = vmatpush1.bf16.msra.mxu1 %v11041_v13 }
 0xbe4   :  { %4480 = vmatprep.subr.bf16.mxu1 %v11046_v4 }
 0xbe7   :  { %4481 = vmatpush1.bf16.msra.mxu1 %v11044_v47 }
 0xbe8   :  { %5034 = vmatprep.subr.bf16.mxu1 %v11068_v39 }
 0xbea   :  { %4483 = vmatmul.mubr.bf16.vlgmr.msra.gmra.mrb[32].mxu1 %v4242_v30 }
 0xbeb   :  { %5066 = vmatprep.mubr.bf16.mxu1 %v12139_v0  ;;  %5035 = vmatpush1.bf16.msra.mxu1 %v11066_v38 }
 0xbec   :  { %5036 = vmatprep.subr.bf16.mxu1 %v11074_v41 }
 0xbef   :  { %5037 = vmatpush1.bf16.msra.mxu1 %v11072_v44 }
 0xbf0   :  { %5038 = vmatprep.subr.bf16.mxu1 %v11080_v40 }
 0xbf3   :  { %5039 = vmatpush1.bf16.msra.mxu1 %v11078_v45 }
 0xc7d   :  { %v10317_v62 = vpop.f32.mrb[28].mxu1 }
 0xc7e   :  { %v10318_v63 = vpop.f32.mrb[29].mxu1 }
 0xc7f   :  { %v10319_v46 = vadd.f32 %v10318_v63, %v10317_v62  ;;  %v10320_v48 = vpop.f32.mrb[30].mxu1 }
 0xc80   :  { %v10321_v49 = vpop.f32.mrb[31].mxu1 }
 0xc81   :  { %v4229_v1 = vadd.f32 %v10319_v46, %v9741_v42 }
 0xc83   :  { %11651 = vtanh.f32 %v4229_v1 }
 0xc8d   :  { %v11652_v50 = vpop.eup %11651 }
 0xc8e   :  { %v12703_v52 = vmul.f32 %v11652_v50, %v12700_v2 }
 0xc90   :  { %v4758_v5 = vrot.slane %v12703_v52, 4 }
 0xc92   :  { %v4759_v3 = vadd.f32 %v4758_v5, %v12703_v52 }
 0xc94   :  { %v4760_v53 = vrot.slane %v4759_v3, 2 }
 0xc96   :  { %v4761_v18 = vadd.f32 %v4760_v53, %v4759_v3 }
 0xc98   :  { %v4762_v54 = vrot.slane %v4761_v18, 1 }
 0xc9a   :  { %v12707_v56 = vadd.f32 %v4762_v54, %v4761_v18  ;;  %v4498_v54 = vld [vmem:[#allocation17 + $0x12] sm:$0x3] }
 0xc9c   :  { %v4764_v12 = vsub.f32 %v12624_v51, %v12707_v56 }
 0xcbd   :  { %v4484_v61 = vpop.f32.mrb[32].mxu1 }
 0xcbe   :  { %v4485_v6 = vadd.f32 %v4484_v61, %v4283_v8  ;;  %v4486_v11 = vpop.f32.mrb[33].mxu1 }
 0xcbf   :  { %v4487_v14 = vadd.f32 %v4486_v11, %v4287_v60  ;;  %v4488_v16 = vpop.f32.mrb[34].mxu1  ;;  %v4549_v60 = vrot.slane %v4498_v54, %v12458_v9  ;;  %v4553_v11 = vrot.slane %v4498_v54, %v12461_v10 }
 0xcc0   :  { %vm4491_vm6 = vcmp.gt.f32.partialorder %v4485_v6, 0.0  ;;  %v4493_v20 = vmul.f32 0.01, %v4485_v6  ;;  %v4489_v22 = vpop.f32.mrb[35].mxu1 }
 0xcc1   :  { %vm4492_vm7 = vcmp.gt.f32.partialorder %v4487_v14, 0.0  ;;  %v4494_v19 = vmul.f32 0.01, %v4487_v14 }
 0xcc2   :  { %v4495_v23 = vsel %vm4491_vm6, %v4485_v6, %v4493_v20  ;;  %v4562_v20 = vrot.slane %v4500_v57, %v12458_v9 }
 0xcc3   :  { %v4501_v13 = vrot.slane %v4495_v23, 4  ;;  %v4515_v4 = vmul.f32 %v4495_v23, %v4495_v23  ;;  %v4496_v47 = vsel %vm4492_vm7, %v4487_v14, %v4494_v19  ;;  %v4566_v19 = vrot.slane %v4500_v57, %v12461_v10 }
 0xcc4   :  { %v4507_v30 = vrot.slane %v4496_v47, 4  ;;  %v4516_v25 = vmul.f32 %v4496_v47, %v4496_v47 }
 0xcc5   :  { %v4502_v27 = vadd.f32 %v4501_v13, %v4495_v23  ;;  %v4517_v15 = vrot.slane %v4515_v4, 4 }
 0xcc6   :  { %v4508_v29 = vadd.f32 %v4507_v30, %v4496_v47  ;;  %v4523_v24 = vrot.slane %v4516_v25, 4 }
 0xcc7   :  { %v4503_v31 = vrot.slane %v4502_v27, 2  ;;  %v4518_v28 = vadd.f32 %v4517_v15, %v4515_v4  ;;  %v11063_v15 = vld [vmem:[#allocation8 + $0x200] ss:$16 sps:$4 sm:$0xff]  }
 0xcc8   :  { %v4509_v58 = vrot.slane %v4508_v29, 2  ;;  %v4524_v17 = vadd.f32 %v4523_v24, %v4516_v25  ;;  %v11077_v24 = vld [vmem:[#allocation8 + $0x244] ss:$16 sps:$4 sm:$0xff]  }
 0xcc9   :  { %v4504_v21 = vadd.f32 %v4503_v31, %v4502_v27  ;;  %v4519_v32 = vrot.slane %v4518_v28, 2  ;;  %v11075_v31 = vld [vmem:[#allocation8 + $0x240] ss:$16 sps:$4 sm:$0xff]  }
 0xcca   :  { %v4510_v33 = vadd.f32 %v4509_v58, %v4508_v29  ;;  %v4525_v34 = vrot.slane %v4524_v17, 2  ;;  %v11071_v29 = vld [vmem:[#allocation8 + $0x224] ss:$16 sps:$4 sm:$0xff]   ;;  %v11086_v58 = vld [vmem:[#allocation8 + $0x26c] ss:$16 sps:$4 sm:$0xff]  }
 0xccb   :  { %v4505_v35 = vrot.slane %v4504_v21, 1  ;;  %v4520_v36 = vadd.f32 %v4519_v32, %v4518_v28  ;;  %v11083_v28 = vld [vmem:[#allocation8 + $0x264] ss:$16 sps:$4 sm:$0xff]   ;;  %5040 = vmatprep.subr.bf16.mxu1 %v11086_v58  ;;  %v11138_v58 = vld [vmem:[#allocation14 + $0x290] ss:$8 sps:$4 sm:$0xff]  }
 0xccc   :  { %v4511_v26 = vrot.slane %v4510_v33, 1  ;;  %v4526_v37 = vadd.f32 %v4525_v34, %v4524_v17  ;;  %v11081_v17 = vld [vmem:[#allocation8 + $0x260] ss:$16 sps:$4 sm:$0xff]   ;;  %v11089_v32 = vld [vmem:[#allocation8 + $0x284] ss:$16 sps:$4 sm:$0xff]  }
 0xccd   :  { %v4506_v38 = vadd.f32 %v4505_v35, %v4504_v21  ;;  %v4521_v39 = vrot.slane %v4520_v36, 1  ;;  %v11084_v21 = vld [vmem:[#allocation8 + $0x268] ss:$16 sps:$4 sm:$0xff]   ;;  %v11087_v34 = vld [vmem:[#allocation8 + $0x280] ss:$16 sps:$4 sm:$0xff]  }
 0xcce   :  { %v4512_v41 = vadd.f32 %v4511_v26, %v4510_v33  ;;  %v4527_v44 = vrot.slane %v4526_v37, 1  ;;  %5041 = vmatpush1.bf16.msra.mxu1 %v11084_v21  ;;  %v11092_v33 = vld [vmem:[#allocation8 + $0x28c] ss:$16 sps:$4 sm:$0xff]   ;;  %v11090_v35 = vld [vmem:[#allocation8 + $0x288] ss:$16 sps:$4 sm:$0xff]  }
 0xccf   :  { %v4513_v40 = vmul.f32 0.125, %v4506_v38  ;;  %v4522_v45 = vadd.f32 %v4521_v39, %v4520_v36  ;;  %5042 = vmatprep.subr.bf16.mxu1 %v11092_v33  ;;  %v11095_v36 = vld [vmem:[#allocation8 + $0x2a4] ss:$16 sps:$4 sm:$0xff]   ;;  %v11098_v26 = vld [vmem:[#allocation8 + $0x2ac] ss:$16 sps:$4 sm:$0xff]  }
 0xcd0   :  { %v4514_v62 = vmul.f32 0.125, %v4512_v41  ;;  %v4528_v42 = vadd.f32 %v4527_v44, %v4526_v37  ;;  %v11093_v37 = vld [vmem:[#allocation8 + $0x2a0] ss:$16 sps:$4 sm:$0xff]   ;;  %v11096_v38 = vld [vmem:[#allocation8 + $0x2a8] ss:$16 sps:$4 sm:$0xff]  }
 0xcd1   :  { %v4529_v63 = vmul.f32 0.125, %v4522_v45  ;;  %v4531_v46 = vmul.f32 %v4513_v40, %v4513_v40  ;;  %v4537_v8 = vsub.f32 %v4495_v23, %v4513_v40  ;;  %v11101_v39 = vld [vmem:[#allocation8 + $0x2c4] ss:$16 sps:$4 sm:$0xff]   ;;  %v11104_v41 = vld [vmem:[#allocation8 + $0x2cc] ss:$16 sps:$4 sm:$0xff]  }
 0xcd2   :  { %v4530_v48 = vmul.f32 0.125, %v4528_v42  ;;  %v4532_v49 = vmul.f32 %v4514_v62, %v4514_v62  ;;  %v4538_v6 = vsub.f32 %v4496_v47, %v4514_v62  ;;  %v11069_v47 = vld [vmem:[#allocation8 + $0x220] ss:$16 sps:$4 sm:$0xff]   ;;  %5043 = vmatpush1.bf16.msra.mxu1 %v11090_v35  ;;  %v11102_v40 = vld [vmem:[#allocation8 + $0x2c8] ss:$16 sps:$4 sm:$0xff]  }
 0xcd3   :  { %v4533_v1 = vsub.f32 %v4529_v63, %v4531_v46  ;;  %5044 = vmatprep.subr.bf16.mxu1 %v11098_v26  ;;  %v11099_v44 = vld [vmem:[#allocation8 + $0x2c0] ss:$16 sps:$4 sm:$0xff]   ;;  %v11107_v45 = vld [vmem:[#allocation8 + $0x2e4] ss:$16 sps:$4 sm:$0xff]   ;;  %v11108_v42 = vld [vmem:[#allocation8 + $0x2e8] ss:$16 sps:$4 sm:$0xff]  }
 0xcd4   :  { %v4534_v50 = vsub.f32 %v4530_v48, %v4532_v49  ;;  %v11105_v62 = vld [vmem:[#allocation8 + $0x2e0] ss:$16 sps:$4 sm:$0xff]   ;;  %v11110_v63 = vld [vmem:[#allocation8 + $0x2ec] ss:$16 sps:$4 sm:$0xff]   ;;  %v4753_v48 = vsub.f32 0.0, %v12703_v52 }
 0xcd5   :  { %v4535_v5 = vmax.f32 %v4533_v1, 0.0  ;;  %v11113_v46 = vld [vmem:[#allocation14 + $0x204] ss:$8 sps:$4 sm:$0xff]   ;;  %v11141_v21 = vld [vmem:[#allocation14 + $0x2a0] ss:$8 sps:$4 sm:$0xff]  }
 0xcd6   :  { %v4536_v3 = vmax.f32 %v4534_v50, 0.0  ;;  %5045 = vmatpush1.bf16.msra.mxu1 %v11096_v38  ;;  %v4754_v49 = vmul.f32 1.442695, %v4753_v48  ;;  %v9791_v50 = vld [vmem:[#allocation22 + $0x9] ss:$0 sm:$0xff] }
 0xcd7   :  { %v4539_v53 = vadd.f32 1e-05, %v4535_v5  ;;  %5046 = vmatprep.subr.bf16.mxu1 %v11104_v41  ;;  %v11144_v33 = vld [vmem:[#allocation14 + $0x2b0] ss:$8 sps:$4 sm:$0xff]   ;;  %v11147_v35 = vld [vmem:[#allocation14 + $0x2c0] ss:$8 sps:$4 sm:$0xff]  }
 0xcd8   :  { %v4540_v18 = vadd.f32 1e-05, %v4536_v3  ;;  %v11150_v26 = vld [vmem:[#allocation14 + $0x2d0] ss:$8 sps:$4 sm:$0xff]   ;;  %v11153_v38 = vld [vmem:[#allocation14 + $0x2e0] ss:$8 sps:$4 sm:$0xff]  }
 0xcd9   :  { %11653 = vrsqrt.f32 %v4539_v53  ;;  %v11156_v41 = vld [vmem:[#allocation14 + $0x2f0] ss:$8 sps:$4 sm:$0xff]  }
 0xcda   :  { %11655 = vrsqrt.f32 %v4540_v18  ;;  %5047 = vmatpush1.bf16.msra.mxu1 %v11102_v40 }
 0xcdb   :  { %5048 = vmatprep.subr.bf16.mxu1 %v11110_v63  ;;  %11657 = vpow2.f32 %v4754_v49 }
 0xcde   :  { %5049 = vmatpush1.bf16.msra.mxu1 %v11108_v42 }
 0xce3   :  { %v11654_v61 = vpop.eup %11653 }
 0xce4   :  { %v11656_v14 = vpop.eup %11655  ;;  %v4543_v16 = vmul.f32 %v11654_v61, %v4537_v8 }
 0xce5   :  { %v4544_v22 = vmul.f32 %v11656_v14, %v4538_v6  ;;  %v11658_v61 = vpop.eup %11657 }
 0xce6   :  { %v4556_v13 = vmul.f32 %v4549_v60, %v4543_v16  ;;  %v11111_v16 = vld [vmem:[#allocation14 + $0x200] ss:$8 sps:$4 sm:$0xff]  }
 0xce7   :  { %v4557_v4 = vmul.f32 %v4553_v11, %v4544_v22  ;;  %v9808_v11 = vld [vmem:[#allocation5 + $0x2] ss:$0 sm:$0xff]  ;;  %v11116_v22 = vld [vmem:[#allocation14 + $0x214] ss:$8 sps:$4 sm:$0xff]  }
 0xce8   :  { %v4569_v30 = vadd.f32 %v4562_v20, %v4556_v13  ;;  %v11122_v13 = vld [vmem:[#allocation14 + $0x234] ss:$8 sps:$4 sm:$0xff]  }
 0xce9   :  { %v4570_v25 = vadd.f32 %v4566_v19, %v4557_v4  ;;  %v11117_v19 = vld [vmem:[#allocation14 + $0x220] ss:$8 sps:$4 sm:$0xff]   ;;  %v11125_v4 = vld [vmem:[#allocation14 + $0x244] ss:$8 sps:$4 sm:$0xff]  }
 0xcea   :  { %v4571_v23 = vpack.c.bf16 %v4569_v30, %v4569_v30  ;;  %v11123_v30 = vld [vmem:[#allocation14 + $0x240] ss:$8 sps:$4 sm:$0xff]  }
 0xceb   :  { %v4572_v27 = vpack.c.bf16 %v4570_v25, %v4570_v25  ;;  %v11128_v25 = vld [vmem:[#allocation14 + $0x254] ss:$8 sps:$4 sm:$0xff]  }
 0xced   :  { %4742 = vmatprep.mubr.bf16.mxu0 %v4572_v27  ;;  %v11126_v27 = vld [vmem:[#allocation14 + $0x250] ss:$8 sps:$4 sm:$0xff]  }
 0xcee   :  { %4743 = vmatmul.mubr.bf16.vlgmr.msra.gmra.mrb[32].mxu0 %v4571_v23  ;;  %v11129_v23 = vld [vmem:[#allocation14 + $0x260] ss:$8 sps:$4 sm:$0xff]  }
 0xcef   :  { %4994 = vmatpush1.bf16.msra.mxu0 %v11063_v15  ;;  %5025 = vmatprep.mubr.bf16.mxu0 %v12139_v0  ;;  %v11131_v15 = vld [vmem:[#allocation14 + $0x264] ss:$8 sps:$4 sm:$0xff]  }
 0xcf0   :  { %4995 = vmatprep.subr.bf16.mxu0 %v11071_v29  ;;  %v11134_v29 = vld [vmem:[#allocation14 + $0x274] ss:$8 sps:$4 sm:$0xff]  }
 0xcf3   :  { %4996 = vmatpush1.bf16.msra.mxu0 %v11069_v47  ;;  %v11132_v47 = vld [vmem:[#allocation14 + $0x270] ss:$8 sps:$4 sm:$0xff]  }
 0xcf4   :  { %4997 = vmatprep.subr.bf16.mxu0 %v11077_v24  ;;  %v11137_v24 = vld [vmem:[#allocation14 + $0x284] ss:$8 sps:$4 sm:$0xff]  }
 0xcf7   :  { %4998 = vmatpush1.bf16.msra.mxu0 %v11075_v31  ;;  %v11135_v31 = vld [vmem:[#allocation14 + $0x280] ss:$8 sps:$4 sm:$0xff]  }
 0xcf8   :  { %4999 = vmatprep.subr.bf16.mxu0 %v11083_v28  ;;  %v11140_v28 = vld [vmem:[#allocation14 + $0x294] ss:$8 sps:$4 sm:$0xff]  }
 0xcfb   :  { %5000 = vmatpush1.bf16.msra.mxu0 %v11081_v17  ;;  %v11143_v17 = vld [vmem:[#allocation14 + $0x2a4] ss:$8 sps:$4 sm:$0xff]  }
 0xcfc   :  { %5001 = vmatprep.subr.bf16.mxu0 %v11089_v32  ;;  %v11146_v32 = vld [vmem:[#allocation14 + $0x2b4] ss:$8 sps:$4 sm:$0xff]  }
 0xcff   :  { %5002 = vmatpush1.bf16.msra.mxu0 %v11087_v34  ;;  %v11149_v34 = vld [vmem:[#allocation14 + $0x2c4] ss:$8 sps:$4 sm:$0xff]  }
 0xd00   :  { %5003 = vmatprep.subr.bf16.mxu0 %v11095_v36  ;;  %v11152_v36 = vld [vmem:[#allocation14 + $0x2d4] ss:$8 sps:$4 sm:$0xff]  }
 0xd03   :  { %5004 = vmatpush1.bf16.msra.mxu0 %v11093_v37  ;;  %v11155_v37 = vld [vmem:[#allocation14 + $0x2e4] ss:$8 sps:$4 sm:$0xff]  }
 0xd04   :  { %5005 = vmatprep.subr.bf16.mxu0 %v11101_v39  ;;  %v11158_v39 = vld [vmem:[#allocation14 + $0x2f4] ss:$8 sps:$4 sm:$0xff]  }
 0xd07   :  { %5006 = vmatpush1.bf16.msra.mxu0 %v11099_v44  ;;  %v4811_v44 = vld [vmem:[#allocation10 + $0x8] sm:$0xf] }
 0xd08   :  { %5007 = vmatprep.subr.bf16.mxu0 %v11107_v45  ;;  %v4816_v40 = vrot.slane %v4811_v44, %v12458_v9  ;;  %v4824_v45 = vrot.slane %v4811_v44, %v12511_v59  ;;  %v4828_v42 = vrot.slane %v4811_v44, %v12482_v43 }
 0xd0b   :  { %5008 = vmatpush1.bf16.msra.mxu0 %v11105_v62  ;;  %v4820_v62 = vrot.slane %v4811_v44, %v12461_v10 }
 0xd0c   :  { %5437 = vmatprep.subr.bf16.mxu0 %v11113_v46 }
 0xdc1   :  { %v10339_v1 = vpop.f32.mrb[32].mxu0 }
 0xdc2   :  { %v10340_v5 = vpop.f32.mrb[33].mxu0 }
 0xdc3   :  { %v10341_v3 = vadd.f32 %v10340_v5, %v10339_v1  ;;  %v10342_v53 = vpop.f32.mrb[34].mxu0 }
 0xdc4   :  { %v10343_v18 = vpop.f32.mrb[35].mxu0 }
 0xdc5   :  { %v4745_v54 = vadd.f32 %v10341_v3, %v9791_v50 }
 0xdc7   :  { %v4750_v57 = vmul.f32 %v12700_v2, %v4745_v54 }
 0xdc9   :  { %v4751_v8 = vsub.f32 %v12638_v55, %v4750_v57  ;;  %v11114_v55 = vld [vmem:[#allocation14 + $0x210] ss:$8 sps:$4 sm:$0xff]  }
 0xdcb   :  { %v4752_v60 = vmul.f32 %v12700_v2, %v4751_v8  ;;  %v11119_v2 = vld [vmem:[#allocation14 + $0x224] ss:$8 sps:$4 sm:$0xff]  }
 0xdcd   :  { %v4756_v6 = vmul.f32 %v11658_v61, %v4752_v60 }
 0xdcf   :  { %v12723_v52 = vadd.f32 %v4756_v6, %v12641_v7  ;;  %v11120_v7 = vld [vmem:[#allocation14 + $0x230] ss:$8 sps:$4 sm:$0xff]  }
 0xdd1   :  { %v12726_v14 = vmul.f32 %v9808_v11, %v12723_v52 }
 0xdd3   :  { %v4776_v20 = vpack.c.bf16 %v12726_v14, %v12726_v14 }
 0xdd5   :  { %5026 = vmatmul.mubr.bf16.vlgmr.msra.gmra.mrb[36].mxu0 %v4776_v20  ;;  %5067 = vmatmul.mubr.bf16.vlgmr.msra.gmra.mrb[36].mxu1 %v4776_v20 }
 0xdd6   :  { %5438 = vmatpush1.bf16.msra.mxu0 %v11111_v16 }
 0xdd7   :  { %5439 = vmatprep.subr.bf16.mxu0 %v11116_v22 }
 0xdda   :  { %5440 = vmatpush1.bf16.msra.mxu0 %v11114_v55 }
 0xddb   :  { %5441 = vmatprep.subr.bf16.mxu0 %v11119_v2 }
 0xdde   :  { %5442 = vmatpush1.bf16.msra.mxu0 %v11117_v19 }
 0xddf   :  { %5443 = vmatprep.subr.bf16.mxu0 %v11122_v13 }
 0xde2   :  { %5444 = vmatpush1.bf16.msra.mxu0 %v11120_v7 }
 0xde3   :  { %5445 = vmatprep.subr.bf16.mxu0 %v11125_v4 }
 0xde6   :  { %5446 = vmatpush1.bf16.msra.mxu0 %v11123_v30 }
 0xde7   :  { %5447 = vmatprep.subr.bf16.mxu0 %v11128_v25 }
 0xdea   :  { %5448 = vmatpush1.bf16.msra.mxu0 %v11126_v27 }
 0xdeb   :  { %5449 = vmatprep.subr.bf16.mxu0 %v11131_v15 }
 0xdee   :  { %5450 = vmatpush1.bf16.msra.mxu0 %v11129_v23 }
 0xdef   :  { %5451 = vmatprep.subr.bf16.mxu0 %v11134_v29 }
 0xdf2   :  { %5452 = vmatpush1.bf16.msra.mxu0 %v11132_v47 }
 0xdf3   :  { %5453 = vmatprep.subr.bf16.mxu0 %v11137_v24 }
 0xdf6   :  { %5454 = vmatpush1.bf16.msra.mxu0 %v11135_v31 }
 0xdf7   :  { %5455 = vmatprep.subr.bf16.mxu0 %v11140_v28 }
 0xdfa   :  { %5456 = vmatpush1.bf16.msra.mxu0 %v11138_v58 }
 0xdfb   :  { %5457 = vmatprep.subr.bf16.mxu0 %v11143_v17 }
 0xdfe   :  { %5458 = vmatpush1.bf16.msra.mxu0 %v11141_v21 }
 0xdff   :  { %5459 = vmatprep.subr.bf16.mxu0 %v11146_v32 }
 0xe02   :  { %5460 = vmatpush1.bf16.msra.mxu0 %v11144_v33 }
 0xe03   :  { %5461 = vmatprep.subr.bf16.mxu0 %v11149_v34 }
 0xe06   :  { %5462 = vmatpush1.bf16.msra.mxu0 %v11147_v35 }
 0xe07   :  { %5463 = vmatprep.subr.bf16.mxu0 %v11152_v36 }
 0xe0a   :  { %5464 = vmatpush1.bf16.msra.mxu0 %v11150_v26 }
 0xe0b   :  { %5465 = vmatprep.subr.bf16.mxu0 %v11155_v37 }
 0xe0e   :  { %5466 = vmatpush1.bf16.msra.mxu0 %v11153_v38 }
 0xe0f   :  { %5467 = vmatprep.subr.bf16.mxu0 %v11158_v39 }
 0xe12   :  { %5468 = vmatpush1.bf16.msra.mxu0 %v11156_v41 }
 0xea8   :  { %v5027_v63 = vpop.f32.mrb[36].mxu0  ;;  %v5068_v46 = vpop.f32.mrb[36].mxu1 }
 0xea9   :  { %v5028_v48 = vadd.f32 %v5027_v63, %v4816_v40  ;;  %v5069_v49 = vadd.f32 %v5068_v46, %v4824_v45  ;;  %v5029_v1 = vpop.f32.mrb[37].mxu0  ;;  %v5070_v50 = vpop.f32.mrb[37].mxu1 }
 0xeaa   :  { %v5030_v5 = vadd.f32 %v5029_v1, %v4820_v62  ;;  %v5071_v3 = vadd.f32 %v5070_v50, %v4828_v42  ;;  %v5031_v53 = vpop.f32.mrb[38].mxu0  ;;  %v5072_v18 = vpop.f32.mrb[38].mxu1 }
 0xeab   :  { %vm5075_vm8 = vcmp.gt.f32.partialorder %v5028_v48, 0.0  ;;  %v5079_v54 = vmul.f32 0.01, %v5028_v48  ;;  %vm5077_vm9 = vcmp.gt.f32.partialorder %v5069_v49, 0.0  ;;  %v5081_v57 = vmul.f32 0.01, %v5069_v49 }
 0xeac   :  { %vm5076_vm10 = vcmp.gt.f32.partialorder %v5030_v5, 0.0  ;;  %v5080_v8 = vmul.f32 0.01, %v5030_v5  ;;  %vm5078_vm11 = vcmp.gt.f32.partialorder %v5071_v3, 0.0  ;;  %v5082_v60 = vmul.f32 0.01, %v5071_v3 }
 0xead   :  { %v12734_v61 = vsel %vm5075_vm8, %v5028_v48, %v5079_v54  ;;  %v12736_v6 = vsel %vm5077_vm9, %v5069_v49, %v5081_v57  ;;  %v5032_v11 = vpop.f32.mrb[39].mxu0  ;;  %v5073_v16 = vpop.f32.mrb[39].mxu1 }
 0xeae   :  { %v5091_v20 = vrot.slane %v12734_v61, 4  ;;  %v5119_v22 = vmul.f32 %v12734_v61, %v12734_v61  ;;  %v5103_v55 = vrot.slane %v12736_v6, 4  ;;  %v5121_v2 = vmul.f32 %v12736_v6, %v12736_v6 }
 0xeaf   :  { %v12744_v19 = vsel %vm5076_vm10, %v5030_v5, %v5080_v8  ;;  %v12746_v13 = vsel %vm5078_vm11, %v5071_v3, %v5082_v60 }
 0xeb0   :  { %v5092_v7 = vadd.f32 %v5091_v20, %v12734_v61  ;;  %v5123_v4 = vrot.slane %v5119_v22, 4  ;;  %v5104_v30 = vadd.f32 %v5103_v55, %v12736_v6  ;;  %v5135_v25 = vrot.slane %v5121_v2, 4 }
 0xeb1   :  { %v5097_v27 = vrot.slane %v12744_v19, 4  ;;  %v5120_v15 = vmul.f32 %v12744_v19, %v12744_v19  ;;  %v5109_v23 = vrot.slane %v12746_v13, 4  ;;  %v5122_v29 = vmul.f32 %v12746_v13, %v12746_v13 }
 0xeb2   :  { %v5093_v47 = vrot.slane %v5092_v7, 2  ;;  %v5124_v24 = vadd.f32 %v5123_v4, %v5119_v22  ;;  %v5105_v31 = vrot.slane %v5104_v30, 2  ;;  %v5136_v28 = vadd.f32 %v5135_v25, %v5121_v2 }
 0xeb3   :  { %v5098_v58 = vadd.f32 %v5097_v27, %v12744_v19  ;;  %v5129_v17 = vrot.slane %v5120_v15, 4  ;;  %v5110_v21 = vadd.f32 %v5109_v23, %v12746_v13  ;;  %v5141_v32 = vrot.slane %v5122_v29, 4 }
 0xeb4   :  { %v5094_v33 = vadd.f32 %v5093_v47, %v5092_v7  ;;  %v5125_v34 = vrot.slane %v5124_v24, 2  ;;  %v5106_v35 = vadd.f32 %v5105_v31, %v5104_v30  ;;  %v5137_v36 = vrot.slane %v5136_v28, 2 }
 0xeb5   :  { %v5099_v26 = vrot.slane %v5098_v58, 2  ;;  %v5130_v37 = vadd.f32 %v5129_v17, %v5120_v15  ;;  %v5111_v38 = vrot.slane %v5110_v21, 2  ;;  %v5142_v39 = vadd.f32 %v5141_v32, %v5122_v29 }
 0xeb6   :  { %v5095_v41 = vrot.slane %v5094_v33, 1  ;;  %v5126_v44 = vadd.f32 %v5125_v34, %v5124_v24  ;;  %v5107_v40 = vrot.slane %v5106_v35, 1  ;;  %v5138_v45 = vadd.f32 %v5137_v36, %v5136_v28 }
 0xeb7   :  { %v5100_v62 = vadd.f32 %v5099_v26, %v5098_v58  ;;  %v5131_v42 = vrot.slane %v5130_v37, 2  ;;  %v5112_v63 = vadd.f32 %v5111_v38, %v5110_v21  ;;  %v5143_v46 = vrot.slane %v5142_v39, 2  ;;  %v5088_v38 = vld [vmem:[#allocation11 + $0x8] sm:$0xf] }
 0xeb8   :  { %v5096_v48 = vadd.f32 %v5095_v41, %v5094_v33  ;;  %v5127_v49 = vrot.slane %v5126_v44, 1  ;;  %v5108_v1 = vadd.f32 %v5107_v40, %v5106_v35  ;;  %v5139_v50 = vrot.slane %v5138_v45, 1  ;;  %v5090_v41 = vld [vmem:[#allocation13 + $0x8] sm:$0xf] }
 0xeb9   :  { %v5101_v5 = vrot.slane %v5100_v62, 1  ;;  %v5132_v3 = vadd.f32 %v5131_v42, %v5130_v37  ;;  %v5113_v53 = vrot.slane %v5112_v63, 1  ;;  %v5144_v18 = vadd.f32 %v5143_v46, %v5142_v39 }
 0xeba   :  { %v5115_v54 = vmul.f32 0.125, %v5096_v48  ;;  %v5128_v57 = vadd.f32 %v5127_v49, %v5126_v44  ;;  %v5117_v8 = vmul.f32 0.125, %v5108_v1  ;;  %v5140_v60 = vadd.f32 %v5139_v50, %v5138_v45 }
 0xebb   :  { %v5102_v11 = vadd.f32 %v5101_v5, %v5100_v62  ;;  %v5133_v16 = vrot.slane %v5132_v3, 1  ;;  %v5114_v20 = vadd.f32 %v5113_v53, %v5112_v63  ;;  %v5145_v22 = vrot.slane %v5144_v18, 1 }
 0xebc   :  { %v5147_v55 = vmul.f32 0.125, %v5128_v57  ;;  %v5151_v2 = vmul.f32 %v5115_v54, %v5115_v54  ;;  %v5149_v7 = vmul.f32 0.125, %v5140_v60  ;;  %v5153_v4 = vmul.f32 %v5117_v8, %v5117_v8 }
 0xebd   :  { %v5116_v30 = vmul.f32 0.125, %v5102_v11  ;;  %v5134_v25 = vadd.f32 %v5133_v16, %v5132_v3  ;;  %v5118_v15 = vmul.f32 0.125, %v5114_v20  ;;  %v5146_v23 = vadd.f32 %v5145_v22, %v5144_v18 }
 0xebe   :  { %v5155_v27 = vsub.f32 %v5147_v55, %v5151_v2  ;;  %v5157_v29 = vsub.f32 %v5149_v7, %v5153_v4  ;;  %v5163_v39 = vsub.f32 %v12734_v61, %v5115_v54  ;;  %v5183_v44 = vrot.slane %v5088_v38, %v12458_v9  ;;  %v11159_v7 = vld [vmem:[#allocation20 + $0x140] sm:$0xff]  }
 0xebf   :  { %v5148_v47 = vmul.f32 0.125, %v5134_v25  ;;  %v5152_v24 = vmul.f32 %v5116_v30, %v5116_v30  ;;  %v5150_v28 = vmul.f32 0.125, %v5146_v23  ;;  %v5154_v58 = vmul.f32 %v5118_v15, %v5118_v15  ;;  %v11160_v4 = vld [vmem:[#allocation20 + $0x100] sm:$0xff]   ;;  %10345 = vmatprep.subr.bf16.mxu1 %v11159_v7  ;;  %v11162_v25 = vld [vmem:[#allocation20 + $0x108] sm:$0xff]   ;;  %v11165_v23 = vld [vmem:[#allocation20 + $0x158] sm:$0xff]  }
 0xec0   :  { %v5159_v31 = vmax.f32 %v5155_v27, 0.0  ;;  %v5161_v17 = vmax.f32 %v5157_v29, 0.0  ;;  %v5165_v45 = vsub.f32 %v12736_v6, %v5117_v8  ;;  %v5191_v62 = vrot.slane %v5088_v38, %v12511_v59  ;;  %10346 = vmatpush3.bf16.msra.mxu1 %v11160_v4  ;;  %v11163_v27 = vld [vmem:[#allocation20 + $0x150] sm:$0xff]   ;;  %v11166_v29 = vld [vmem:[#allocation20 + $0x118] sm:$0xff]  }
 0xec1   :  { %v5156_v21 = vsub.f32 %v5148_v47, %v5152_v24  ;;  %v5158_v33 = vsub.f32 %v5150_v28, %v5154_v58  ;;  %v5164_v48 = vsub.f32 %v12744_v19, %v5116_v30  ;;  %v5187_v49 = vrot.slane %v5088_v38, %v12461_v10  ;;  %v11161_v30 = vld [vmem:[#allocation20 + $0x148] sm:$0xff]   ;;  %v11167_v47 = vld [vmem:[#allocation20 + $0x160] sm:$0xff]   ;;  %v11171_v58 = vld [vmem:[#allocation20 + $0x170] sm:$0xff]  }
 0xec2   :  { %v5167_v32 = vadd.f32 1e-05, %v5159_v31  ;;  %v5169_v34 = vadd.f32 1e-05, %v5161_v17  ;;  %v5216_v1 = vrot.slane %v5090_v41, %v12511_v59  ;;  %v5166_v61 = vsub.f32 %v12746_v13, %v5118_v15  ;;  %10347 = vmatprep.subr.bf16.mxu1 %v11161_v30  ;;  %v11164_v15 = vld [vmem:[#allocation20 + $0x110] sm:$0xff]   ;;  %v11168_v24 = vld [vmem:[#allocation20 + $0x120] sm:$0xff]  }
 0xec3   :  { %v5160_v35 = vmax.f32 %v5156_v21, 0.0  ;;  %v5162_v36 = vmax.f32 %v5158_v33, 0.0  ;;  %v5208_v3 = vrot.slane %v5090_v41, %v12458_v9  ;;  %v5195_v53 = vrot.slane %v5088_v38, %v12482_v43  ;;  %v11169_v31 = vld [vmem:[#allocation20 + $0x168] sm:$0xff]   ;;  %v11172_v17 = vld [vmem:[#allocation20 + $0x130] sm:$0xff]   ;;  %v11173_v21 = vld [vmem:[#allocation20 + $0x178] sm:$0xff]  }
 0xec4   :  { %11659 = vrsqrt.f32 %v5167_v32  ;;  %v5212_v54 = vrot.slane %v5090_v41, %v12461_v10  ;;  %v5220_v19 = vrot.slane %v5090_v41, %v12482_v43  ;;  %10348 = vmatpush3.bf16.msra.mxu1 %v11162_v25  ;;  %v11170_v28 = vld [vmem:[#allocation20 + $0x128] sm:$0xff]   ;;  %v11174_v32 = vld [vmem:[#allocation20 + $0x138] sm:$0xff]  }
 0xec5   :  { %11661 = vrsqrt.f32 %v5169_v34  ;;  %v5168_v26 = vadd.f32 1e-05, %v5160_v35  ;;  %v5170_v37 = vadd.f32 1e-05, %v5162_v36  ;;  %10349 = vmatprep.subr.bf16.mxu1 %v11163_v27  ;;  %v11177_v33 = vld [vmem:[#allocation14 + $0x804] ss:$8 sps:$4 sm:$0xff]  }
 0xec6   :  { %v5265_v34 = vld [vmem:[#allocation16 + $0x4] sm:$0x3] }
 0xec7   :  { %11663 = vrsqrt.f32 %v5168_v26  ;;  %v5270_v35 = vrot.slane %v5265_v34, %v12458_v9  ;;  %v5274_v36 = vrot.slane %v5265_v34, %v12461_v10  ;;  %v5487_v34 = vld [vmem:[#allocation19 + $0x4] sm:$0x3] }
 0xec8   :  { %11665 = vrsqrt.f32 %v5170_v37  ;;  %10350 = vmatpush3.bf16.msra.mxu1 %v11164_v15 }
 0xec9   :  { %10351 = vmatprep.subr.bf16.mxu1 %v11165_v23 }
 0xecc   :  { %10352 = vmatpush3.bf16.msra.mxu1 %v11166_v29 }
 0xecd   :  { %10353 = vmatprep.subr.bf16.mxu1 %v11167_v47 }
 0xece   :  { %v11660_v40 = vpop.eup %11659 }
 0xecf   :  { %v11662_v42 = vpop.eup %11661  ;;  %v5175_v63 = vmul.f32 %v11660_v40, %v5163_v39 }
 0xed0   :  { %v5177_v46 = vmul.f32 %v11662_v42, %v5165_v45  ;;  %10354 = vmatpush3.bf16.msra.mxu1 %v11168_v24 }
 0xed1   :  { %v11664_v50 = vpop.eup %11663  ;;  %v5200_v5 = vmul.f32 %v5183_v44, %v5175_v63  ;;  %10355 = vmatprep.subr.bf16.mxu1 %v11169_v31 }
 0xed2   :  { %v11666_v6 = vpop.eup %11665  ;;  %v5176_v18 = vmul.f32 %v11664_v50, %v5164_v48  ;;  %v5202_v57 = vmul.f32 %v5191_v62, %v5177_v46 }
 0xed3   :  { %v5178_v8 = vmul.f32 %v11666_v6, %v5166_v61  ;;  %v5225_v16 = vadd.f32 %v5208_v3, %v5200_v5 }
 0xed4   :  { %v5201_v60 = vmul.f32 %v5187_v49, %v5176_v18  ;;  %v12770_v11 = vadd.f32 %v5216_v1, %v5202_v57  ;;  %10356 = vmatpush3.bf16.msra.mxu1 %v11170_v28 }
 0xed5   :  { %v5203_v20 = vmul.f32 %v5195_v53, %v5178_v8  ;;  %v5229_v2 = vpack.c.bf16 %v5225_v16, %v5225_v16  ;;  %10357 = vmatprep.subr.bf16.mxu1 %v11171_v58 }
 0xed6   :  { %v5226_v22 = vadd.f32 %v5212_v54, %v5201_v60 }
 0xed7   :  { %v12772_v13 = vadd.f32 %v5220_v19, %v5203_v20 }
 0xed8   :  { %v5230_v55 = vpack.c.bf16 %v5226_v22, %v5226_v22  ;;  %10358 = vmatpush3.bf16.msra.mxu1 %v11172_v17 }
 0xed9   :  { %10359 = vmatprep.subr.bf16.mxu1 %v11173_v21 }
 0xeda   :  { %5469 = vmatprep.mubr.bf16.mxu0 %v5230_v55 }
 0xedb   :  { %5470 = vmatmul.mubr.bf16.vlgmr.msra.gmra.mrb[40].mxu0 %v5229_v2 }
 0xedc   :  { %10360 = vmatpush3.bf16.msra.mxu1 %v11174_v32 }
 0xedd   :  { %5953 = vmatprep.subr.bf16.mxu1 %v11177_v33  ;;  %v5485_v33 = vld [vmem:[#allocation17 + $0x4] sm:$0x3] }
 0xfae   :  { %v5471_v26 = vpop.f32.mrb[40].mxu0 }
 0xfaf   :  { %v5472_v37 = vadd.f32 %v5471_v26, %v5270_v35  ;;  %v5473_v38 = vpop.f32.mrb[41].mxu0 }
 0xfb0   :  { %v5474_v39 = vadd.f32 %v5473_v38, %v5274_v36  ;;  %v5475_v41 = vpop.f32.mrb[42].mxu0  ;;  %v5536_v36 = vrot.slane %v5485_v33, %v12458_v9  ;;  %v5540_v38 = vrot.slane %v5485_v33, %v12461_v10  ;;  %v11225_v33 = vld [vmem:[#allocation20 + $0x448] sm:$0xff]  }
 0xfb1   :  { %vm5478_vm12 = vcmp.gt.f32.partialorder %v5472_v37, 0.0  ;;  %v5480_v44 = vmul.f32 0.01, %v5472_v37  ;;  %v5476_v40 = vpop.f32.mrb[43].mxu0 }
 0xfb2   :  { %vm5479_vm13 = vcmp.gt.f32.partialorder %v5474_v39, 0.0  ;;  %v5481_v45 = vmul.f32 0.01, %v5474_v39 }
 0xfb3   :  { %v5482_v62 = vsel %vm5478_vm12, %v5472_v37, %v5480_v44  ;;  %v5549_v44 = vrot.slane %v5487_v34, %v12458_v9 }
 0xfb4   :  { %v5488_v42 = vrot.slane %v5482_v62, 4  ;;  %v5502_v63 = vmul.f32 %v5482_v62, %v5482_v62  ;;  %v5483_v46 = vsel %vm5479_vm13, %v5474_v39, %v5481_v45  ;;  %v5553_v45 = vrot.slane %v5487_v34, %v12461_v10  ;;  %v11226_v34 = vld [vmem:[#allocation20 + $0x408] sm:$0xff]  }
 0xfb5   :  { %v5494_v48 = vrot.slane %v5483_v46, 4  ;;  %v5503_v49 = vmul.f32 %v5483_v46, %v5483_v46 }
 0xfb6   :  { %v5489_v1 = vadd.f32 %v5488_v42, %v5482_v62  ;;  %v5504_v50 = vrot.slane %v5502_v63, 4 }
 0xfb7   :  { %v5495_v61 = vadd.f32 %v5494_v48, %v5483_v46  ;;  %v5510_v5 = vrot.slane %v5503_v49, 4 }
 0xfb8   :  { %v5490_v3 = vrot.slane %v5489_v1, 2  ;;  %v5505_v53 = vadd.f32 %v5504_v50, %v5502_v63  ;;  %v11175_v50 = vld [vmem:[#allocation14 + $0x800] ss:$8 sps:$4 sm:$0xff]  }
 0xfb9   :  { %v5496_v6 = vrot.slane %v5495_v61, 2  ;;  %v5511_v18 = vadd.f32 %v5510_v5, %v5503_v49  ;;  %v11178_v5 = vld [vmem:[#allocation14 + $0x810] ss:$8 sps:$4 sm:$0xff]  }
 0xfba   :  { %v5491_v54 = vadd.f32 %v5490_v3, %v5489_v1  ;;  %v5506_v57 = vrot.slane %v5505_v53, 2  ;;  %v11183_v3 = vld [vmem:[#allocation14 + $0x824] ss:$8 sps:$4 sm:$0xff]  }
 0xfbb   :  { %v5497_v8 = vadd.f32 %v5496_v6, %v5495_v61  ;;  %v5512_v19 = vrot.slane %v5511_v18, 2  ;;  %v11180_v61 = vld [vmem:[#allocation14 + $0x814] ss:$8 sps:$4 sm:$0xff]  }
 0xfbc   :  { %v5492_v60 = vrot.slane %v5491_v54, 1  ;;  %v5507_v16 = vadd.f32 %v5506_v57, %v5505_v53  ;;  %v11181_v53 = vld [vmem:[#allocation14 + $0x820] ss:$8 sps:$4 sm:$0xff]   ;;  %v11186_v6 = vld [vmem:[#allocation14 + $0x834] ss:$8 sps:$4 sm:$0xff]  }
 0xfbd   :  { %v5498_v20 = vrot.slane %v5497_v8, 1  ;;  %v5513_v22 = vadd.f32 %v5512_v19, %v5511_v18  ;;  %v11184_v18 = vld [vmem:[#allocation14 + $0x830] ss:$8 sps:$4 sm:$0xff]   ;;  %v11187_v57 = vld [vmem:[#allocation14 + $0x840] ss:$8 sps:$4 sm:$0xff]  }
 0xfbe   :  { %v5493_v55 = vadd.f32 %v5492_v60, %v5491_v54  ;;  %v5508_v2 = vrot.slane %v5507_v16, 1  ;;  %v11189_v54 = vld [vmem:[#allocation14 + $0x844] ss:$8 sps:$4 sm:$0xff]   ;;  %v11193_v60 = vld [vmem:[#allocation14 + $0x860] ss:$8 sps:$4 sm:$0xff]  }
 0xfbf   :  { %v5499_v7 = vadd.f32 %v5498_v20, %v5497_v8  ;;  %v5514_v4 = vrot.slane %v5513_v22, 1  ;;  %v11192_v8 = vld [vmem:[#allocation14 + $0x854] ss:$8 sps:$4 sm:$0xff]   ;;  %v11195_v19 = vld [vmem:[#allocation14 + $0x864] ss:$8 sps:$4 sm:$0xff]  }
 0xfc0   :  { %v5500_v30 = vmul.f32 0.125, %v5493_v55  ;;  %v5509_v25 = vadd.f32 %v5508_v2, %v5507_v16  ;;  %v11198_v16 = vld [vmem:[#allocation14 + $0x874] ss:$8 sps:$4 sm:$0xff]   ;;  %v11196_v20 = vld [vmem:[#allocation14 + $0x870] ss:$8 sps:$4 sm:$0xff]  }
 0xfc1   :  { %v5501_v27 = vmul.f32 0.125, %v5499_v7  ;;  %v5515_v15 = vadd.f32 %v5514_v4, %v5513_v22  ;;  %v11201_v22 = vld [vmem:[#allocation14 + $0x884] ss:$8 sps:$4 sm:$0xff]   ;;  %v11199_v55 = vld [vmem:[#allocation14 + $0x880] ss:$8 sps:$4 sm:$0xff]  }
 0xfc2   :  { %v5516_v23 = vmul.f32 0.125, %v5509_v25  ;;  %v5518_v29 = vmul.f32 %v5500_v30, %v5500_v30  ;;  %v5524_v35 = vsub.f32 %v5482_v62, %v5500_v30  ;;  %v11204_v2 = vld [vmem:[#allocation14 + $0x894] ss:$8 sps:$4 sm:$0xff]   ;;  %v11202_v7 = vld [vmem:[#allocation14 + $0x890] ss:$8 sps:$4 sm:$0xff]  }
 0xfc3   :  { %v5517_v47 = vmul.f32 0.125, %v5515_v15  ;;  %v5519_v24 = vmul.f32 %v5501_v27, %v5501_v27  ;;  %v5525_v37 = vsub.f32 %v5483_v46, %v5501_v27  ;;  %v5746_v46 = vpack.c.bf16 %v12772_v13, %v12772_v13  ;;  %v11190_v13 = vld [vmem:[#allocation14 + $0x850] ss:$8 sps:$4 sm:$0xff]   ;;  %v11207_v4 = vld [vmem:[#allocation14 + $0x8a4] ss:$8 sps:$4 sm:$0xff]  }
 0xfc4   :  { %v5520_v31 = vsub.f32 %v5516_v23, %v5518_v29  ;;  %v11205_v30 = vld [vmem:[#allocation14 + $0x8a0] ss:$8 sps:$4 sm:$0xff]   ;;  %v11210_v25 = vld [vmem:[#allocation14 + $0x8b4] ss:$8 sps:$4 sm:$0xff]   ;;  %v11208_v27 = vld [vmem:[#allocation14 + $0x8b0] ss:$8 sps:$4 sm:$0xff]  }
 0xfc5   :  { %v5521_v28 = vsub.f32 %v5517_v47, %v5519_v24  ;;  %v11213_v15 = vld [vmem:[#allocation14 + $0x8c4] ss:$8 sps:$4 sm:$0xff]   ;;  %v11211_v23 = vld [vmem:[#allocation14 + $0x8c0] ss:$8 sps:$4 sm:$0xff]   ;;  %v11216_v29 = vld [vmem:[#allocation14 + $0x8d4] ss:$8 sps:$4 sm:$0xff]  }
 0xfc6   :  { %v5522_v58 = vmax.f32 %v5520_v31, 0.0  ;;  %v11214_v47 = vld [vmem:[#allocation14 + $0x8d0] ss:$8 sps:$4 sm:$0xff]   ;;  %v11219_v24 = vld [vmem:[#allocation14 + $0x8e4] ss:$8 sps:$4 sm:$0xff]  }
 0xfc7   :  { %v5523_v17 = vmax.f32 %v5521_v28, 0.0  ;;  %v11217_v31 = vld [vmem:[#allocation14 + $0x8e0] ss:$8 sps:$4 sm:$0xff]   ;;  %v11222_v28 = vld [vmem:[#allocation14 + $0x8f4] ss:$8 sps:$4 sm:$0xff]  }
 0xfc8   :  { %v5526_v21 = vadd.f32 1e-05, %v5522_v58  ;;  %v11220_v58 = vld [vmem:[#allocation14 + $0x8f0] ss:$8 sps:$4 sm:$0xff]  }
 0xfc9   :  { %v5527_v32 = vadd.f32 1e-05, %v5523_v17  ;;  %v5745_v17 = vpack.c.bf16 %v12770_v11, %v12770_v11  ;;  %v11231_v11 = vld [vmem:[#allocation20 + $0x460] sm:$0xff]  }
 0xfca   :  { %11667 = vrsqrt.f32 %v5526_v21  ;;  %v11223_v21 = vld [vmem:[#allocation20 + $0x440] sm:$0xff]  }
 0xfcb   :  { %11669 = vrsqrt.f32 %v5527_v32  ;;  %v11224_v32 = vld [vmem:[#allocation20 + $0x400] sm:$0xff]   ;;  %10367 = vmatprep.subr.bf16.mxu0 %v11223_v21 }
 0xfcc   :  { %10368 = vmatpush3.bf16.msra.mxu0 %v11224_v32 }
 0xfcd   :  { %10369 = vmatprep.subr.bf16.mxu0 %v11225_v33 }
 0xfd0   :  { %10370 = vmatpush3.bf16.msra.mxu0 %v11226_v34 }
 0xfd4   :  { %v11668_v26 = vpop.eup %11667 }
 0xfd5   :  { %v11670_v39 = vpop.eup %11669  ;;  %v5530_v41 = vmul.f32 %v11668_v26, %v5524_v35  ;;  %v11227_v35 = vld [vmem:[#allocation20 + $0x450] sm:$0xff]   ;;  %v11229_v26 = vld [vmem:[#allocation20 + $0x458] sm:$0xff]  }
 0xfd6   :  { %v5531_v40 = vmul.f32 %v11670_v39, %v5525_v37  ;;  %10371 = vmatprep.subr.bf16.mxu0 %v11227_v35  ;;  %v11230_v37 = vld [vmem:[#allocation20 + $0x418] sm:$0xff]   ;;  %v11233_v39 = vld [vmem:[#allocation20 + $0x468] sm:$0xff]  }
 0xfd7   :  { %v5543_v42 = vmul.f32 %v5536_v36, %v5530_v41  ;;  %v11228_v36 = vld [vmem:[#allocation20 + $0x410] sm:$0xff]   ;;  %v11234_v41 = vld [vmem:[#allocation20 + $0x428] sm:$0xff]  }
 0xfd8   :  { %v5544_v63 = vmul.f32 %v5540_v38, %v5531_v40  ;;  %10372 = vmatpush3.bf16.msra.mxu0 %v11228_v36  ;;  %v11232_v38 = vld [vmem:[#allocation20 + $0x420] sm:$0xff]   ;;  %v11236_v40 = vld [vmem:[#allocation20 + $0x430] sm:$0xff]  }
 0xfd9   :  { %v5556_v48 = vadd.f32 %v5549_v44, %v5543_v42  ;;  %10373 = vmatprep.subr.bf16.mxu0 %v11229_v26  ;;  %v11235_v44 = vld [vmem:[#allocation20 + $0x470] sm:$0xff]   ;;  %v11238_v42 = vld [vmem:[#allocation20 + $0x438] sm:$0xff]  }
 0xfda   :  { %v5557_v49 = vadd.f32 %v5553_v45, %v5544_v63  ;;  %v11237_v45 = vld [vmem:[#allocation20 + $0x478] sm:$0xff]   ;;  %v11241_v63 = vld [vmem:[#allocation8 + $0x104] ss:$16 sps:$4 sm:$0xff]  }
 0xfdb   :  { %v5558_v62 = vpack.c.bf16 %v5556_v48, %v5556_v48  ;;  %v11242_v48 = vld [vmem:[#allocation8 + $0x108] ss:$16 sps:$4 sm:$0xff]  }
 0xfdc   :  { %v5559_v1 = vpack.c.bf16 %v5557_v49, %v5557_v49  ;;  %10374 = vmatpush3.bf16.msra.mxu0 %v11230_v37  ;;  %v11244_v49 = vld [vmem:[#allocation8 + $0x10c] ss:$16 sps:$4 sm:$0xff]  }
 0xfdd   :  { %10375 = vmatprep.subr.bf16.mxu0 %v11231_v11 }
 0xfde   :  { %5729 = vmatprep.mubr.bf16.mxu1 %v5559_v1  ;;  %v11250_v1 = vld [vmem:[#allocation8 + $0x12c] ss:$16 sps:$4 sm:$0xff]  }
 0xfdf   :  { %5730 = vmatmul.mubr.bf16.vlgmr.msra.gmra.mrb[40].mxu1 %v5558_v62  ;;  %v11256_v62 = vld [vmem:[#allocation8 + $0x14c] ss:$16 sps:$4 sm:$0xff]  }
 0xfe0   :  { %5954 = vmatpush1.bf16.msra.mxu1 %v11175_v50  ;;  %5985 = vmatprep.mubr.bf16.mxu1 %v5746_v46  ;;  %v11248_v50 = vld [vmem:[#allocation8 + $0x128] ss:$16 sps:$4 sm:$0xff]  }
 0xfe1   :  { %5955 = vmatprep.subr.bf16.mxu1 %v11180_v61  ;;  %10376 = vmatpush3.bf16.msra.mxu0 %v11232_v38  ;;  %v11254_v61 = vld [vmem:[#allocation8 + $0x148] ss:$16 sps:$4 sm:$0xff]  }
 0xfe2   :  { %10377 = vmatprep.subr.bf16.mxu0 %v11233_v39 }
 0xfe4   :  { %5956 = vmatpush1.bf16.msra.mxu1 %v11178_v5  ;;  %v9873_v5 = vld [vmem:[#allocation22 + $0x2] ss:$0 sm:$0xff] }
 0xfe5   :  { %5957 = vmatprep.subr.bf16.mxu1 %v11183_v3  ;;  %10378 = vmatpush3.bf16.msra.mxu0 %v11234_v41 }
 0xfe6   :  { %10379 = vmatprep.subr.bf16.mxu0 %v11235_v44 }
 0xfe8   :  { %5958 = vmatpush1.bf16.msra.mxu1 %v11181_v53 }
 0xfe9   :  { %5959 = vmatprep.subr.bf16.mxu1 %v11186_v6  ;;  %10380 = vmatpush3.bf16.msra.mxu0 %v11236_v40 }
 0xfea   :  { %10381 = vmatprep.subr.bf16.mxu0 %v11237_v45 }
 0xfec   :  { %5960 = vmatpush1.bf16.msra.mxu1 %v11184_v18 }
 0xfed   :  { %5961 = vmatprep.subr.bf16.mxu1 %v11189_v54  ;;  %10382 = vmatpush3.bf16.msra.mxu0 %v11238_v42 }
 0xfee   :  { %6496 = vmatprep.subr.bf16.mxu0 %v11241_v63 }
 0xff0   :  { %5962 = vmatpush1.bf16.msra.mxu1 %v11187_v57  ;;  %v12785_v57 = vld [vmem:[#allocation7 + $0x2] ss:$0 sm:$0xff] }
 0xff1   :  { %5963 = vmatprep.subr.bf16.mxu1 %v11192_v8 }
 0xff4   :  { %5964 = vmatpush1.bf16.msra.mxu1 %v11190_v13 }
 0xff5   :  { %5965 = vmatprep.subr.bf16.mxu1 %v11195_v19 }
 0xff8   :  { %5966 = vmatpush1.bf16.msra.mxu1 %v11193_v60 }
 0xff9   :  { %5967 = vmatprep.subr.bf16.mxu1 %v11198_v16 }
 0xffc   :  { %5968 = vmatpush1.bf16.msra.mxu1 %v11196_v20 }
 0xffd   :  { %5969 = vmatprep.subr.bf16.mxu1 %v11201_v22 }
0x1000   :  { %5970 = vmatpush1.bf16.msra.mxu1 %v11199_v55 }
0x1001   :  { %5971 = vmatprep.subr.bf16.mxu1 %v11204_v2 }
0x1004   :  { %5972 = vmatpush1.bf16.msra.mxu1 %v11202_v7  ;;  %v5781_v7 = vld [vmem:[#allocation16 + $0x10] sm:$0x3] }
0x1005   :  { %5973 = vmatprep.subr.bf16.mxu1 %v11207_v4  ;;  %v5786_v4 = vrot.slane %v5781_v7, %v12458_v9 }
0x1008   :  { %5974 = vmatpush1.bf16.msra.mxu1 %v11205_v30  ;;  %v5790_v30 = vrot.slane %v5781_v7, %v12461_v10 }
0x1009   :  { %5975 = vmatprep.subr.bf16.mxu1 %v11210_v25 }
0x100c   :  { %5976 = vmatpush1.bf16.msra.mxu1 %v11208_v27 }
0x100d   :  { %5977 = vmatprep.subr.bf16.mxu1 %v11213_v15 }
0x1010   :  { %5978 = vmatpush1.bf16.msra.mxu1 %v11211_v23 }
0x1011   :  { %5979 = vmatprep.subr.bf16.mxu1 %v11216_v29 }
0x1014   :  { %5980 = vmatpush1.bf16.msra.mxu1 %v11214_v47 }
0x1015   :  { %5981 = vmatprep.subr.bf16.mxu1 %v11219_v24 }
0x1018   :  { %5982 = vmatpush1.bf16.msra.mxu1 %v11217_v31 }
0x1019   :  { %5983 = vmatprep.subr.bf16.mxu1 %v11222_v28 }
0x101c   :  { %5984 = vmatpush1.bf16.msra.mxu1 %v11220_v58 }
0x101d   :  { %6537 = vmatprep.subr.bf16.mxu1 %v11244_v49 }
0x101f   :  { %5986 = vmatmul.mubr.bf16.vlgmr.msra.gmra.mrb[44].mxu1 %v5745_v17 }
0x1020   :  { %6569 = vmatprep.mubr.bf16.mxu1 %v12139_v0  ;;  %6538 = vmatpush1.bf16.msra.mxu1 %v11242_v48 }
0x1021   :  { %6539 = vmatprep.subr.bf16.mxu1 %v11250_v1 }
0x1024   :  { %6540 = vmatpush1.bf16.msra.mxu1 %v11248_v50 }
0x1025   :  { %6541 = vmatprep.subr.bf16.mxu1 %v11256_v62 }
0x1028   :  { %6542 = vmatpush1.bf16.msra.mxu1 %v11254_v61 }
0x10b2   :  { %v10361_v46 = vpop.f32.mrb[40].mxu1 }
0x10b3   :  { %v10362_v3 = vpop.f32.mrb[41].mxu1 }
0x10b4   :  { %v10363_v53 = vadd.f32 %v10362_v3, %v10361_v46  ;;  %v10364_v6 = vpop.f32.mrb[42].mxu1 }
0x10b5   :  { %v10365_v18 = vpop.f32.mrb[43].mxu1 }
0x10b6   :  { %v5732_v54 = vadd.f32 %v10363_v53, %v9873_v5 }
0x10b8   :  { %11671 = vtanh.f32 %v5732_v54 }
0x10c2   :  { %v11672_v8 = vpop.eup %11671 }
0x10c3   :  { %v12788_v13 = vmul.f32 %v11672_v8, %v12785_v57 }
0x10c5   :  { %v6261_v19 = vrot.slane %v12788_v13, 4 }
0x10c7   :  { %v6262_v60 = vadd.f32 %v6261_v19, %v12788_v13 }
0x10c9   :  { %v6263_v16 = vrot.slane %v6262_v60, 2 }
0x10cb   :  { %v6264_v20 = vadd.f32 %v6263_v16, %v6262_v60 }
0x10cd   :  { %v6265_v22 = vrot.slane %v6264_v20, 1 }
0x10cf   :  { %v6266_v55 = vadd.f32 %v6265_v22, %v6264_v20  ;;  %v6001_v20 = vld [vmem:[#allocation17 + $0x10] sm:$0x3]  ;;  %v6003_v22 = vld [vmem:[#allocation19 + $0x10] sm:$0x3] }
0x10d0   :  { %v6052_v7 = vrot.slane %v6001_v20, %v12458_v9 }
0x10d1   :  { %v12795_v2 = vsub.f32 %v4764_v12, %v6266_v55 }
0x10f2   :  { %v5987_v25 = vpop.f32.mrb[44].mxu1 }
0x10f3   :  { %v5988_v27 = vadd.f32 %v5987_v25, %v5786_v4  ;;  %v5989_v15 = vpop.f32.mrb[45].mxu1  ;;  %v6056_v25 = vrot.slane %v6001_v20, %v12461_v10 }
0x10f4   :  { %v5990_v23 = vadd.f32 %v5989_v15, %v5790_v30  ;;  %v5991_v29 = vpop.f32.mrb[46].mxu1 }
0x10f5   :  { %vm5994_vm14 = vcmp.gt.f32.partialorder %v5988_v27, 0.0  ;;  %v5996_v47 = vmul.f32 0.01, %v5988_v27  ;;  %v5992_v24 = vpop.f32.mrb[47].mxu1 }
0x10f6   :  { %vm5995_vm15 = vcmp.gt.f32.partialorder %v5990_v23, 0.0  ;;  %v5997_v31 = vmul.f32 0.01, %v5990_v23 }
0x10f7   :  { %v5998_v28 = vsel %vm5994_vm14, %v5988_v27, %v5996_v47  ;;  %v6069_v47 = vrot.slane %v6003_v22, %v12461_v10 }
0x10f8   :  { %v6004_v58 = vrot.slane %v5998_v28, 4  ;;  %v6018_v51 = vmul.f32 %v5998_v28, %v5998_v28  ;;  %v5999_v56 = vsel %vm5995_vm15, %v5990_v23, %v5997_v31  ;;  %v6065_v23 = vrot.slane %v6003_v22, %v12458_v9 }
0x10f9   :  { %v6010_v12 = vrot.slane %v5999_v56, 4  ;;  %v6019_v17 = vmul.f32 %v5999_v56, %v5999_v56 }
0x10fa   :  { %v6005_v21 = vadd.f32 %v6004_v58, %v5998_v28  ;;  %v6020_v32 = vrot.slane %v6018_v51, 4 }
0x10fb   :  { %v6011_v33 = vadd.f32 %v6010_v12, %v5999_v56  ;;  %v6026_v34 = vrot.slane %v6019_v17, 4 }
0x10fc   :  { %v6006_v35 = vrot.slane %v6005_v21, 2  ;;  %v6021_v36 = vadd.f32 %v6020_v32, %v6018_v51  ;;  %v11253_v32 = vld [vmem:[#allocation8 + $0x144] ss:$16 sps:$4 sm:$0xff]  }
0x10fd   :  { %v6012_v26 = vrot.slane %v6011_v33, 2  ;;  %v6027_v37 = vadd.f32 %v6026_v34, %v6019_v17  ;;  %v11239_v17 = vld [vmem:[#allocation8 + $0x100] ss:$16 sps:$4 sm:$0xff]   ;;  %v11259_v34 = vld [vmem:[#allocation8 + $0x164] ss:$16 sps:$4 sm:$0xff]  }
0x10fe   :  { %v6007_v11 = vadd.f32 %v6006_v35, %v6005_v21  ;;  %v6022_v38 = vrot.slane %v6021_v36, 2  ;;  %v11247_v21 = vld [vmem:[#allocation8 + $0x124] ss:$16 sps:$4 sm:$0xff]   ;;  %v11262_v35 = vld [vmem:[#allocation8 + $0x16c] ss:$16 sps:$4 sm:$0xff]  }
0x10ff   :  { %v6013_v39 = vadd.f32 %v6012_v26, %v6011_v33  ;;  %v6028_v41 = vrot.slane %v6027_v37, 2  ;;  %v11251_v33 = vld [vmem:[#allocation8 + $0x140] ss:$16 sps:$4 sm:$0xff]   ;;  %v11260_v26 = vld [vmem:[#allocation8 + $0x168] ss:$16 sps:$4 sm:$0xff]   ;;  %6543 = vmatprep.subr.bf16.mxu1 %v11262_v35 }
0x1100   :  { %v6008_v44 = vrot.slane %v6007_v11, 1  ;;  %v6023_v40 = vadd.f32 %v6022_v38, %v6021_v36  ;;  %v11257_v36 = vld [vmem:[#allocation8 + $0x160] ss:$16 sps:$4 sm:$0xff]   ;;  %6544 = vmatpush1.bf16.msra.mxu1 %v11260_v26 }
0x1101   :  { %v6014_v45 = vrot.slane %v6013_v39, 1  ;;  %v6029_v42 = vadd.f32 %v6028_v41, %v6027_v37  ;;  %v11265_v37 = vld [vmem:[#allocation8 + $0x184] ss:$16 sps:$4 sm:$0xff]   ;;  %v11263_v38 = vld [vmem:[#allocation8 + $0x180] ss:$16 sps:$4 sm:$0xff]  }
0x1102   :  { %v6009_v63 = vadd.f32 %v6008_v44, %v6007_v11  ;;  %v6024_v48 = vrot.slane %v6023_v40, 1  ;;  %v11268_v11 = vld [vmem:[#allocation8 + $0x18c] ss:$16 sps:$4 sm:$0xff]   ;;  %v11271_v41 = vld [vmem:[#allocation8 + $0x1a4] ss:$16 sps:$4 sm:$0xff]  }
0x1103   :  { %v6015_v49 = vadd.f32 %v6014_v45, %v6013_v39  ;;  %v6030_v1 = vrot.slane %v6029_v42, 1  ;;  %v11266_v39 = vld [vmem:[#allocation8 + $0x188] ss:$16 sps:$4 sm:$0xff]   ;;  %6545 = vmatprep.subr.bf16.mxu1 %v11268_v11  ;;  %v11274_v44 = vld [vmem:[#allocation8 + $0x1ac] ss:$16 sps:$4 sm:$0xff]  }
0x1104   :  { %v6016_v50 = vmul.f32 0.125, %v6009_v63  ;;  %v6025_v62 = vadd.f32 %v6024_v48, %v6023_v40  ;;  %6546 = vmatpush1.bf16.msra.mxu1 %v11266_v39  ;;  %v11269_v40 = vld [vmem:[#allocation8 + $0x1a0] ss:$16 sps:$4 sm:$0xff]   ;;  %v11272_v45 = vld [vmem:[#allocation8 + $0x1a8] ss:$16 sps:$4 sm:$0xff]  }
0x1105   :  { %v6017_v61 = vmul.f32 0.125, %v6015_v49  ;;  %v6031_v46 = vadd.f32 %v6030_v1, %v6029_v42  ;;  %6547 = vmatprep.subr.bf16.mxu1 %v11274_v44  ;;  %v11277_v42 = vld [vmem:[#allocation8 + $0x1c4] ss:$16 sps:$4 sm:$0xff]   ;;  %v11280_v63 = vld [vmem:[#allocation8 + $0x1cc] ss:$16 sps:$4 sm:$0xff]  }
0x1106   :  { %v6032_v5 = vmul.f32 0.125, %v6025_v62  ;;  %v6034_v3 = vmul.f32 %v6016_v50, %v6016_v50  ;;  %v6040_v55 = vsub.f32 %v5998_v28, %v6016_v50  ;;  %v11275_v48 = vld [vmem:[#allocation8 + $0x1c0] ss:$16 sps:$4 sm:$0xff]   ;;  %v11278_v49 = vld [vmem:[#allocation8 + $0x1c8] ss:$16 sps:$4 sm:$0xff]  }
0x1107   :  { %v6033_v53 = vmul.f32 0.125, %v6031_v46  ;;  %v6035_v6 = vmul.f32 %v6017_v61, %v6017_v61  ;;  %v6041_v30 = vsub.f32 %v5999_v56, %v6017_v61  ;;  %v11245_v56 = vld [vmem:[#allocation8 + $0x120] ss:$16 sps:$4 sm:$0xff]   ;;  %v11283_v1 = vld [vmem:[#allocation8 + $0x1e4] ss:$16 sps:$4 sm:$0xff]  }
0x1108   :  { %v6036_v18 = vsub.f32 %v6032_v5, %v6034_v3  ;;  %6548 = vmatpush1.bf16.msra.mxu1 %v11272_v45  ;;  %v11281_v50 = vld [vmem:[#allocation8 + $0x1e0] ss:$16 sps:$4 sm:$0xff]   ;;  %v11284_v62 = vld [vmem:[#allocation8 + $0x1e8] ss:$16 sps:$4 sm:$0xff]   ;;  %v11286_v61 = vld [vmem:[#allocation8 + $0x1ec] ss:$16 sps:$4 sm:$0xff]  }
0x1109   :  { %v6037_v54 = vsub.f32 %v6033_v53, %v6035_v6  ;;  %6549 = vmatprep.subr.bf16.mxu1 %v11280_v63  ;;  %v11289_v46 = vld [vmem:[#allocation14 + $0x104] ss:$8 sps:$4 sm:$0xff]   ;;  %v6256_v5 = vsub.f32 0.0, %v12788_v13  ;;  %v9923_v6 = vld [vmem:[#allocation22 + $0x8] ss:$0 sm:$0xff] }
0x110a   :  { %v6038_v8 = vmax.f32 %v6036_v18, 0.0  ;;  %v11317_v35 = vld [vmem:[#allocation14 + $0x1a0] ss:$8 sps:$4 sm:$0xff]   ;;  %v11320_v26 = vld [vmem:[#allocation14 + $0x1b0] ss:$8 sps:$4 sm:$0xff]  }
0x110b   :  { %v6039_v19 = vmax.f32 %v6037_v54, 0.0  ;;  %v6257_v3 = vmul.f32 1.442695, %v6256_v5  ;;  %v11323_v11 = vld [vmem:[#allocation14 + $0x1c0] ss:$8 sps:$4 sm:$0xff]  }
0x110c   :  { %v6042_v60 = vadd.f32 1e-05, %v6038_v8  ;;  %6550 = vmatpush1.bf16.msra.mxu1 %v11278_v49  ;;  %v11326_v39 = vld [vmem:[#allocation14 + $0x1d0] ss:$8 sps:$4 sm:$0xff]   ;;  %v11329_v44 = vld [vmem:[#allocation14 + $0x1e0] ss:$8 sps:$4 sm:$0xff]  }
0x110d   :  { %v6043_v16 = vadd.f32 1e-05, %v6039_v19  ;;  %6551 = vmatprep.subr.bf16.mxu1 %v11286_v61  ;;  %v11332_v45 = vld [vmem:[#allocation14 + $0x1f0] ss:$8 sps:$4 sm:$0xff]  }
0x110e   :  { %11673 = vrsqrt.f32 %v6042_v60 }
0x110f   :  { %11675 = vrsqrt.f32 %v6043_v16 }
0x1110   :  { %6552 = vmatpush1.bf16.msra.mxu1 %v11284_v62  ;;  %11677 = vpow2.f32 %v6257_v3 }
0x1118   :  { %v11674_v4 = vpop.eup %11673 }
0x1119   :  { %v11676_v27 = vpop.eup %11675  ;;  %v6046_v15 = vmul.f32 %v11674_v4, %v6040_v55  ;;  %v9940_v4 = vld [vmem:[#allocation5 + $0x1] ss:$0 sm:$0xff] }
0x111a   :  { %v6047_v29 = vmul.f32 %v11676_v27, %v6041_v30  ;;  %v11678_v55 = vpop.eup %11677 }
0x111b   :  { %v6059_v24 = vmul.f32 %v6052_v7, %v6046_v15  ;;  %v11292_v15 = vld [vmem:[#allocation14 + $0x114] ss:$8 sps:$4 sm:$0xff]  }
0x111c   :  { %v6060_v31 = vmul.f32 %v6056_v25, %v6047_v29  ;;  %v11287_v25 = vld [vmem:[#allocation14 + $0x100] ss:$8 sps:$4 sm:$0xff]   ;;  %v11298_v29 = vld [vmem:[#allocation14 + $0x134] ss:$8 sps:$4 sm:$0xff]  }
0x111d   :  { %v6072_v58 = vadd.f32 %v6065_v23, %v6059_v24  ;;  %v11293_v23 = vld [vmem:[#allocation14 + $0x120] ss:$8 sps:$4 sm:$0xff]  }
0x111e   :  { %v6073_v51 = vadd.f32 %v6069_v47, %v6060_v31  ;;  %v11301_v47 = vld [vmem:[#allocation14 + $0x144] ss:$8 sps:$4 sm:$0xff]   ;;  %v11299_v24 = vld [vmem:[#allocation14 + $0x140] ss:$8 sps:$4 sm:$0xff]   ;;  %v11304_v31 = vld [vmem:[#allocation14 + $0x154] ss:$8 sps:$4 sm:$0xff]  }
0x111f   :  { %v6074_v28 = vpack.c.bf16 %v6072_v58, %v6072_v58  ;;  %v11302_v58 = vld [vmem:[#allocation14 + $0x150] ss:$8 sps:$4 sm:$0xff]  }
0x1120   :  { %v6075_v12 = vpack.c.bf16 %v6073_v51, %v6073_v51  ;;  %v11307_v51 = vld [vmem:[#allocation14 + $0x164] ss:$8 sps:$4 sm:$0xff]  }
0x1122   :  { %6245 = vmatprep.mubr.bf16.mxu0 %v6075_v12  ;;  %v11305_v12 = vld [vmem:[#allocation14 + $0x160] ss:$8 sps:$4 sm:$0xff]  }
0x1123   :  { %6246 = vmatmul.mubr.bf16.vlgmr.msra.gmra.mrb[44].mxu0 %v6074_v28  ;;  %v11308_v28 = vld [vmem:[#allocation14 + $0x170] ss:$8 sps:$4 sm:$0xff]  }
0x1124   :  { %6497 = vmatpush1.bf16.msra.mxu0 %v11239_v17  ;;  %6528 = vmatprep.mubr.bf16.mxu0 %v12139_v0  ;;  %v11310_v17 = vld [vmem:[#allocation14 + $0x174] ss:$8 sps:$4 sm:$0xff]  }
0x1125   :  { %6498 = vmatprep.subr.bf16.mxu0 %v11247_v21  ;;  %v11313_v21 = vld [vmem:[#allocation14 + $0x184] ss:$8 sps:$4 sm:$0xff]  }
0x1128   :  { %6499 = vmatpush1.bf16.msra.mxu0 %v11245_v56  ;;  %v11311_v56 = vld [vmem:[#allocation14 + $0x180] ss:$8 sps:$4 sm:$0xff]  }
0x1129   :  { %6500 = vmatprep.subr.bf16.mxu0 %v11253_v32  ;;  %v11316_v32 = vld [vmem:[#allocation14 + $0x194] ss:$8 sps:$4 sm:$0xff]  }
0x112c   :  { %6501 = vmatpush1.bf16.msra.mxu0 %v11251_v33  ;;  %v11314_v33 = vld [vmem:[#allocation14 + $0x190] ss:$8 sps:$4 sm:$0xff]  }
0x112d   :  { %6502 = vmatprep.subr.bf16.mxu0 %v11259_v34  ;;  %v11319_v34 = vld [vmem:[#allocation14 + $0x1a4] ss:$8 sps:$4 sm:$0xff]  }
0x1130   :  { %6503 = vmatpush1.bf16.msra.mxu0 %v11257_v36  ;;  %v11322_v36 = vld [vmem:[#allocation14 + $0x1b4] ss:$8 sps:$4 sm:$0xff]  }
0x1131   :  { %6504 = vmatprep.subr.bf16.mxu0 %v11265_v37  ;;  %v11325_v37 = vld [vmem:[#allocation14 + $0x1c4] ss:$8 sps:$4 sm:$0xff]  }
0x1134   :  { %6505 = vmatpush1.bf16.msra.mxu0 %v11263_v38  ;;  %v11328_v38 = vld [vmem:[#allocation14 + $0x1d4] ss:$8 sps:$4 sm:$0xff]  }
0x1135   :  { %6506 = vmatprep.subr.bf16.mxu0 %v11271_v41  ;;  %v11331_v41 = vld [vmem:[#allocation14 + $0x1e4] ss:$8 sps:$4 sm:$0xff]  }
0x1138   :  { %6507 = vmatpush1.bf16.msra.mxu0 %v11269_v40  ;;  %v11334_v40 = vld [vmem:[#allocation14 + $0x1f4] ss:$8 sps:$4 sm:$0xff]  }
0x1139   :  { %6508 = vmatprep.subr.bf16.mxu0 %v11277_v42  ;;  %v6314_v42 = vld [vmem:[#allocation10 + $0x4] sm:$0xf] }
0x113a   :  { %v6319_v63 = vrot.slane %v6314_v42, %v12458_v9  ;;  %v6323_v49 = vrot.slane %v6314_v42, %v12461_v10 }
0x113c   :  { %6509 = vmatpush1.bf16.msra.mxu0 %v11275_v48  ;;  %v6327_v48 = vrot.slane %v6314_v42, %v12511_v59 }
0x113d   :  { %6510 = vmatprep.subr.bf16.mxu0 %v11283_v1  ;;  %v6331_v1 = vrot.slane %v6314_v42, %v12482_v43 }
0x1140   :  { %6511 = vmatpush1.bf16.msra.mxu0 %v11281_v50 }
0x1141   :  { %6940 = vmatprep.subr.bf16.mxu0 %v11289_v46 }
0x11f6   :  { %v10383_v53 = vpop.f32.mrb[44].mxu0 }
0x11f7   :  { %v10384_v18 = vpop.f32.mrb[45].mxu0 }
0x11f8   :  { %v10385_v54 = vadd.f32 %v10384_v18, %v10383_v53  ;;  %v10386_v8 = vpop.f32.mrb[46].mxu0 }
0x11f9   :  { %v10387_v19 = vpop.f32.mrb[47].mxu0 }
0x11fa   :  { %v6248_v60 = vadd.f32 %v10385_v54, %v9923_v6 }
0x11fc   :  { %v6253_v16 = vmul.f32 %v12785_v57, %v6248_v60 }
0x11fe   :  { %v6254_v20 = vsub.f32 %v12723_v52, %v6253_v16  ;;  %v11290_v52 = vld [vmem:[#allocation14 + $0x110] ss:$8 sps:$4 sm:$0xff]  }
0x1200   :  { %v6255_v22 = vmul.f32 %v12785_v57, %v6254_v20  ;;  %v11295_v57 = vld [vmem:[#allocation14 + $0x124] ss:$8 sps:$4 sm:$0xff]  }
0x1202   :  { %v6259_v7 = vmul.f32 %v11678_v55, %v6255_v22 }
0x1204   :  { %v12809_v13 = vadd.f32 %v6259_v7, %v12726_v14  ;;  %v11296_v14 = vld [vmem:[#allocation14 + $0x130] ss:$8 sps:$4 sm:$0xff]  }
0x1206   :  { %v12812_v30 = vmul.f32 %v9940_v4, %v12809_v13 }
0x1208   :  { %v6279_v27 = vpack.c.bf16 %v12812_v30, %v12812_v30 }
0x120a   :  { %6529 = vmatmul.mubr.bf16.vlgmr.msra.gmra.mrb[48].mxu0 %v6279_v27  ;;  %6570 = vmatmul.mubr.bf16.vlgmr.msra.gmra.mrb[48].mxu1 %v6279_v27 }
0x120b   :  { %6941 = vmatpush1.bf16.msra.mxu0 %v11287_v25 }
0x120c   :  { %6942 = vmatprep.subr.bf16.mxu0 %v11292_v15 }
0x120f   :  { %6943 = vmatpush1.bf16.msra.mxu0 %v11290_v52 }
0x1210   :  { %6944 = vmatprep.subr.bf16.mxu0 %v11295_v57 }
0x1213   :  { %6945 = vmatpush1.bf16.msra.mxu0 %v11293_v23 }
0x1214   :  { %6946 = vmatprep.subr.bf16.mxu0 %v11298_v29 }
0x1217   :  { %6947 = vmatpush1.bf16.msra.mxu0 %v11296_v14 }
0x1218   :  { %6948 = vmatprep.subr.bf16.mxu0 %v11301_v47 }
0x121b   :  { %6949 = vmatpush1.bf16.msra.mxu0 %v11299_v24 }
0x121c   :  { %6950 = vmatprep.subr.bf16.mxu0 %v11304_v31 }
0x121f   :  { %6951 = vmatpush1.bf16.msra.mxu0 %v11302_v58 }
0x1220   :  { %6952 = vmatprep.subr.bf16.mxu0 %v11307_v51 }
0x1223   :  { %6953 = vmatpush1.bf16.msra.mxu0 %v11305_v12 }
0x1224   :  { %6954 = vmatprep.subr.bf16.mxu0 %v11310_v17 }
0x1227   :  { %6955 = vmatpush1.bf16.msra.mxu0 %v11308_v28 }
0x1228   :  { %6956 = vmatprep.subr.bf16.mxu0 %v11313_v21 }
0x122b   :  { %6957 = vmatpush1.bf16.msra.mxu0 %v11311_v56 }
0x122c   :  { %6958 = vmatprep.subr.bf16.mxu0 %v11316_v32 }
0x122f   :  { %6959 = vmatpush1.bf16.msra.mxu0 %v11314_v33 }
0x1230   :  { %6960 = vmatprep.subr.bf16.mxu0 %v11319_v34 }
0x1233   :  { %6961 = vmatpush1.bf16.msra.mxu0 %v11317_v35 }
0x1234   :  { %6962 = vmatprep.subr.bf16.mxu0 %v11322_v36 }
0x1237   :  { %6963 = vmatpush1.bf16.msra.mxu0 %v11320_v26 }
0x1238   :  { %6964 = vmatprep.subr.bf16.mxu0 %v11325_v37 }
0x123b   :  { %6965 = vmatpush1.bf16.msra.mxu0 %v11323_v11 }
0x123c   :  { %6966 = vmatprep.subr.bf16.mxu0 %v11328_v38 }
0x123f   :  { %6967 = vmatpush1.bf16.msra.mxu0 %v11326_v39 }
0x1240   :  { %6968 = vmatprep.subr.bf16.mxu0 %v11331_v41 }
0x1243   :  { %6969 = vmatpush1.bf16.msra.mxu0 %v11329_v44 }
0x1244   :  { %6970 = vmatprep.subr.bf16.mxu0 %v11334_v40 }
0x1247   :  { %6971 = vmatpush1.bf16.msra.mxu0 %v11332_v45 }
0x12dd   :  { %v6530_v50 = vpop.f32.mrb[48].mxu0  ;;  %v6571_v62 = vpop.f32.mrb[48].mxu1 }
0x12de   :  { %v6531_v61 = vadd.f32 %v6530_v50, %v6319_v63  ;;  %v6572_v46 = vadd.f32 %v6571_v62, %v6327_v48  ;;  %v6532_v5 = vpop.f32.mrb[49].mxu0  ;;  %v6573_v3 = vpop.f32.mrb[49].mxu1 }
0x12df   :  { %v6533_v53 = vadd.f32 %v6532_v5, %v6323_v49  ;;  %v6574_v6 = vadd.f32 %v6573_v3, %v6331_v1  ;;  %v6534_v18 = vpop.f32.mrb[50].mxu0  ;;  %v6575_v54 = vpop.f32.mrb[50].mxu1 }
0x12e0   :  { %vm6578_vm0 = vcmp.gt.f32.partialorder %v6531_v61, 0.0  ;;  %v6582_v8 = vmul.f32 0.01, %v6531_v61  ;;  %vm6580_vm1 = vcmp.gt.f32.partialorder %v6572_v46, 0.0  ;;  %v6584_v19 = vmul.f32 0.01, %v6572_v46 }
0x12e1   :  { %vm6579_vm2 = vcmp.gt.f32.partialorder %v6533_v53, 0.0  ;;  %v6583_v60 = vmul.f32 0.01, %v6533_v53  ;;  %vm6581_vm3 = vcmp.gt.f32.partialorder %v6574_v6, 0.0  ;;  %v6585_v16 = vmul.f32 0.01, %v6574_v6 }
0x12e2   :  { %v12820_v20 = vsel %vm6578_vm0, %v6531_v61, %v6582_v8  ;;  %v12822_v22 = vsel %vm6580_vm1, %v6572_v46, %v6584_v19  ;;  %v6535_v55 = vpop.f32.mrb[51].mxu0  ;;  %v6576_v7 = vpop.f32.mrb[51].mxu1  ;;  %vm12141_vm0 = vmmov 0  }
0x12e3   :  { %v6594_v4 = vrot.slane %v12820_v20, 4  ;;  %v6622_v25 = vmul.f32 %v12820_v20, %v12820_v20  ;;  %v6606_v27 = vrot.slane %v12822_v22, 4  ;;  %v6624_v15 = vmul.f32 %v12822_v22, %v12822_v22 }
0x12e4   :  { %v12830_v52 = vsel %vm6579_vm2, %v6533_v53, %v6583_v60  ;;  %v12832_v57 = vsel %vm6581_vm3, %v6574_v6, %v6585_v16 }
0x12e5   :  { %v6595_v23 = vadd.f32 %v6594_v4, %v12820_v20  ;;  %v6626_v29 = vrot.slane %v6622_v25, 4  ;;  %v6607_v14 = vadd.f32 %v6606_v27, %v12822_v22  ;;  %v6638_v47 = vrot.slane %v6624_v15, 4 }
0x12e6   :  { %v6600_v24 = vrot.slane %v12830_v52, 4  ;;  %v6623_v31 = vmul.f32 %v12830_v52, %v12830_v52  ;;  %v6612_v58 = vrot.slane %v12832_v57, 4  ;;  %v6625_v51 = vmul.f32 %v12832_v57, %v12832_v57 }
0x12e7   :  { %v6596_v12 = vrot.slane %v6595_v23, 2  ;;  %v6627_v17 = vadd.f32 %v6626_v29, %v6622_v25  ;;  %v6608_v28 = vrot.slane %v6607_v14, 2  ;;  %v6639_v21 = vadd.f32 %v6638_v47, %v6624_v15 }
0x12e8   :  { %v6601_v56 = vadd.f32 %v6600_v24, %v12830_v52  ;;  %v6632_v32 = vrot.slane %v6623_v31, 4  ;;  %v6613_v33 = vadd.f32 %v6612_v58, %v12832_v57  ;;  %v6644_v34 = vrot.slane %v6625_v51, 4 }
0x12e9   :  { %v6597_v35 = vadd.f32 %v6596_v12, %v6595_v23  ;;  %v6628_v36 = vrot.slane %v6627_v17, 2  ;;  %v6609_v26 = vadd.f32 %v6608_v28, %v6607_v14  ;;  %v6640_v37 = vrot.slane %v6639_v21, 2 }
0x12ea   :  { %v6602_v11 = vrot.slane %v6601_v56, 2  ;;  %v6633_v38 = vadd.f32 %v6632_v32, %v6623_v31  ;;  %v6614_v39 = vrot.slane %v6613_v33, 2  ;;  %v6645_v41 = vadd.f32 %v6644_v34, %v6625_v51 }
0x12eb   :  { %v6598_v44 = vrot.slane %v6597_v35, 1  ;;  %v6629_v40 = vadd.f32 %v6628_v36, %v6627_v17  ;;  %v6610_v45 = vrot.slane %v6609_v26, 1  ;;  %v6641_v42 = vadd.f32 %v6640_v37, %v6639_v21 }
0x12ec   :  { %v6603_v63 = vadd.f32 %v6602_v11, %v6601_v56  ;;  %v6634_v48 = vrot.slane %v6633_v38, 2  ;;  %v6615_v49 = vadd.f32 %v6614_v39, %v6613_v33  ;;  %v6646_v1 = vrot.slane %v6645_v41, 2  ;;  %v6591_v11 = vld [vmem:[#allocation11 + $0x4] sm:$0xf]  ;;  %v6593_v39 = vld [vmem:[#allocation13 + $0x4] sm:$0xf] }
0x12ed   :  { %v6599_v50 = vadd.f32 %v6598_v44, %v6597_v35  ;;  %v6630_v62 = vrot.slane %v6629_v40, 1  ;;  %v6611_v61 = vadd.f32 %v6610_v45, %v6609_v26  ;;  %v6642_v46 = vrot.slane %v6641_v42, 1 }
0x12ee   :  { %v6604_v5 = vrot.slane %v6603_v63, 1  ;;  %v6635_v3 = vadd.f32 %v6634_v48, %v6633_v38  ;;  %v6616_v53 = vrot.slane %v6615_v49, 1  ;;  %v6647_v6 = vadd.f32 %v6646_v1, %v6645_v41 }
0x12ef   :  { %v6618_v18 = vmul.f32 0.125, %v6599_v50  ;;  %v6631_v54 = vadd.f32 %v6630_v62, %v6629_v40  ;;  %v6620_v8 = vmul.f32 0.125, %v6611_v61  ;;  %v6643_v19 = vadd.f32 %v6642_v46, %v6641_v42 }
0x12f0   :  { %v6605_v60 = vadd.f32 %v6604_v5, %v6603_v63  ;;  %v6636_v16 = vrot.slane %v6635_v3, 1  ;;  %v6617_v55 = vadd.f32 %v6616_v53, %v6615_v49  ;;  %v6648_v7 = vrot.slane %v6647_v6, 1 }
0x12f1   :  { %v6650_v4 = vmul.f32 0.125, %v6631_v54  ;;  %v6654_v25 = vmul.f32 %v6618_v18, %v6618_v18  ;;  %v6652_v27 = vmul.f32 0.125, %v6643_v19  ;;  %v6656_v15 = vmul.f32 %v6620_v8, %v6620_v8 }
0x12f2   :  { %v6619_v23 = vmul.f32 0.125, %v6605_v60  ;;  %v6637_v29 = vadd.f32 %v6636_v16, %v6635_v3  ;;  %v6621_v47 = vmul.f32 0.125, %v6617_v55  ;;  %v6649_v24 = vadd.f32 %v6648_v7, %v6647_v6 }
0x12f3   :  { %v6658_v14 = vsub.f32 %v6650_v4, %v6654_v25  ;;  %v6660_v31 = vsub.f32 %v6652_v27, %v6656_v15  ;;  %v6666_v38 = vsub.f32 %v12820_v20, %v6618_v18  ;;  %v6686_v41 = vrot.slane %v6591_v11, %v12458_v9  ;;  %v11335_v4 = vld [vmem:[#allocation20 + $0xc0] sm:$0xff]   ;;  %v11337_v27 = vld [vmem:[#allocation20 + $0xc8] sm:$0xff]  }
0x12f4   :  { %v6651_v58 = vmul.f32 0.125, %v6637_v29  ;;  %v6655_v51 = vmul.f32 %v6619_v23, %v6619_v23  ;;  %v6653_v17 = vmul.f32 0.125, %v6649_v24  ;;  %v6657_v28 = vmul.f32 %v6621_v47, %v6621_v47  ;;  %v11336_v25 = vld [vmem:[#allocation20 + $0x80] sm:$0xff]   ;;  %10389 = vmatprep.subr.bf16.mxu1 %v11335_v4  ;;  %v11338_v15 = vld [vmem:[#allocation20 + $0x88] sm:$0xff]   ;;  %v11340_v29 = vld [vmem:[#allocation20 + $0x90] sm:$0xff]  }
0x12f5   :  { %v6662_v12 = vmax.f32 %v6658_v14, 0.0  ;;  %v6664_v21 = vmax.f32 %v6660_v31, 0.0  ;;  %v6668_v40 = vsub.f32 %v12822_v22, %v6620_v8  ;;  %v6694_v45 = vrot.slane %v6591_v11, %v12511_v59  ;;  %10390 = vmatpush3.bf16.msra.mxu1 %v11336_v25  ;;  %v11341_v14 = vld [vmem:[#allocation20 + $0xd8] sm:$0xff]   ;;  %v11343_v24 = vld [vmem:[#allocation20 + $0xe0] sm:$0xff]  }
0x12f6   :  { %v6659_v56 = vsub.f32 %v6651_v58, %v6655_v51  ;;  %v6661_v33 = vsub.f32 %v6653_v17, %v6657_v28  ;;  %v6667_v49 = vsub.f32 %v12830_v52, %v6619_v23  ;;  %v6690_v1 = vrot.slane %v6591_v11, %v12461_v10  ;;  %10391 = vmatprep.subr.bf16.mxu1 %v11337_v27  ;;  %v11339_v23 = vld [vmem:[#allocation20 + $0xd0] sm:$0xff]   ;;  %v11344_v31 = vld [vmem:[#allocation20 + $0xa0] sm:$0xff]   ;;  %v11345_v58 = vld [vmem:[#allocation20 + $0xe8] sm:$0xff]  }
0x12f7   :  { %v6670_v32 = vadd.f32 1e-05, %v6662_v12  ;;  %v6672_v34 = vadd.f32 1e-05, %v6664_v21  ;;  %v6719_v50 = vrot.slane %v6593_v39, %v12511_v59  ;;  %v6669_v20 = vsub.f32 %v12832_v57, %v6621_v47  ;;  %v11342_v47 = vld [vmem:[#allocation20 + $0x98] sm:$0xff]   ;;  %v11346_v51 = vld [vmem:[#allocation20 + $0xa8] sm:$0xff]  }
0x12f8   :  { %v6663_v35 = vmax.f32 %v6659_v56, 0.0  ;;  %v6665_v36 = vmax.f32 %v6661_v33, 0.0  ;;  %v6711_v46 = vrot.slane %v6593_v39, %v12458_v9  ;;  %v6698_v5 = vrot.slane %v6591_v11, %v12482_v43  ;;  %v11347_v12 = vld [vmem:[#allocation20 + $0xf0] sm:$0xff]   ;;  %v11349_v28 = vld [vmem:[#allocation20 + $0xf8] sm:$0xff]  }
0x12f9   :  { %11679 = vrsqrt.f32 %v6670_v32  ;;  %v6715_v53 = vrot.slane %v6593_v39, %v12461_v10  ;;  %v6723_v52 = vrot.slane %v6593_v39, %v12482_v43  ;;  %10392 = vmatpush3.bf16.msra.mxu1 %v11338_v15  ;;  %v11348_v17 = vld [vmem:[#allocation20 + $0xb0] sm:$0xff]   ;;  %v11350_v21 = vld [vmem:[#allocation20 + $0xb8] sm:$0xff]  }
0x12fa   :  { %11681 = vrsqrt.f32 %v6672_v34  ;;  %v6671_v26 = vadd.f32 1e-05, %v6663_v35  ;;  %v6673_v37 = vadd.f32 1e-05, %v6665_v36  ;;  %10393 = vmatprep.subr.bf16.mxu1 %v11339_v23  ;;  %v11353_v56 = vld [vmem:[#allocation14 + $0x704] ss:$8 sps:$4 sm:$0xff]  }
0x12fb   :  { %v6768_v32 = vld [vmem:[#allocation16 + $0x2] sm:$0x3] }
0x12fc   :  { %11683 = vrsqrt.f32 %v6671_v26  ;;  %v6773_v33 = vrot.slane %v6768_v32, %v12458_v9  ;;  %v6777_v34 = vrot.slane %v6768_v32, %v12461_v10 }
0x12fd   :  { %11685 = vrsqrt.f32 %v6673_v37  ;;  %10394 = vmatpush3.bf16.msra.mxu1 %v11340_v29 }
0x12fe   :  { %10395 = vmatprep.subr.bf16.mxu1 %v11341_v14 }
0x1301   :  { %10396 = vmatpush3.bf16.msra.mxu1 %v11342_v47 }
0x1302   :  { %10397 = vmatprep.subr.bf16.mxu1 %v11343_v24 }
0x1303   :  { %v11680_v44 = vpop.eup %11679 }
0x1304   :  { %v11682_v42 = vpop.eup %11681  ;;  %v6678_v63 = vmul.f32 %v11680_v44, %v6666_v38 }
0x1305   :  { %v6680_v48 = vmul.f32 %v11682_v42, %v6668_v40  ;;  %10398 = vmatpush3.bf16.msra.mxu1 %v11344_v31 }
0x1306   :  { %v11684_v62 = vpop.eup %11683  ;;  %v6703_v61 = vmul.f32 %v6686_v41, %v6678_v63  ;;  %10399 = vmatprep.subr.bf16.mxu1 %v11345_v58 }
0x1307   :  { %v11686_v22 = vpop.eup %11685  ;;  %v6679_v3 = vmul.f32 %v11684_v62, %v6667_v49  ;;  %v6705_v6 = vmul.f32 %v6694_v45, %v6680_v48 }
0x1308   :  { %v6681_v18 = vmul.f32 %v11686_v22, %v6669_v20  ;;  %v6728_v19 = vadd.f32 %v6711_v46, %v6703_v61 }
0x1309   :  { %v6704_v54 = vmul.f32 %v6690_v1, %v6679_v3  ;;  %v12856_v8 = vadd.f32 %v6719_v50, %v6705_v6  ;;  %10400 = vmatpush3.bf16.msra.mxu1 %v11346_v51 }
0x130a   :  { %v6706_v60 = vmul.f32 %v6698_v5, %v6681_v18  ;;  %v6732_v7 = vpack.c.bf16 %v6728_v19, %v6728_v19  ;;  %10401 = vmatprep.subr.bf16.mxu1 %v11347_v12 }
0x130b   :  { %v6729_v16 = vadd.f32 %v6715_v53, %v6704_v54 }
0x130c   :  { %v12858_v57 = vadd.f32 %v6723_v52, %v6706_v60 }
0x130d   :  { %v6733_v55 = vpack.c.bf16 %v6729_v16, %v6729_v16  ;;  %10402 = vmatpush3.bf16.msra.mxu1 %v11348_v17 }
0x130e   :  { %10403 = vmatprep.subr.bf16.mxu1 %v11349_v28  ;;  %v6988_v28 = vld [vmem:[#allocation17 + $0x2] sm:$0x3] }
0x130f   :  { %6972 = vmatprep.mubr.bf16.mxu0 %v6733_v55  ;;  %v7039_v32 = vrot.slane %v6988_v28, %v12458_v9 }
0x1310   :  { %6973 = vmatmul.mubr.bf16.vlgmr.msra.gmra.mrb[52].mxu0 %v6732_v7 }
0x1311   :  { %10404 = vmatpush3.bf16.msra.mxu1 %v11350_v21  ;;  %v6990_v21 = vld [vmem:[#allocation19 + $0x2] sm:$0x3] }
0x1312   :  { %7456 = vmatprep.subr.bf16.mxu1 %v11353_v56 }
0x13e3   :  { %v6974_v35 = vpop.f32.mrb[52].mxu0 }
0x13e4   :  { %v6975_v36 = vadd.f32 %v6974_v35, %v6773_v33  ;;  %v6976_v26 = vpop.f32.mrb[53].mxu0  ;;  %v7043_v35 = vrot.slane %v6988_v28, %v12461_v10  ;;  %v11403_v28 = vld [vmem:[#allocation20 + $0x3d0] sm:$0xff]  }
0x13e5   :  { %v6977_v37 = vadd.f32 %v6976_v26, %v6777_v34  ;;  %v6978_v11 = vpop.f32.mrb[54].mxu0 }
0x13e6   :  { %vm6981_vm4 = vcmp.gt.f32.partialorder %v6975_v36, 0.0  ;;  %v6983_v38 = vmul.f32 0.01, %v6975_v36  ;;  %v6979_v39 = vpop.f32.mrb[55].mxu0 }
0x13e7   :  { %vm6982_vm5 = vcmp.gt.f32.partialorder %v6977_v37, 0.0  ;;  %v6984_v41 = vmul.f32 0.01, %v6977_v37 }
0x13e8   :  { %v6985_v44 = vsel %vm6981_vm4, %v6975_v36, %v6983_v38  ;;  %v7056_v38 = vrot.slane %v6990_v21, %v12461_v10 }
0x13e9   :  { %v6991_v40 = vrot.slane %v6985_v44, 4  ;;  %v7005_v45 = vmul.f32 %v6985_v44, %v6985_v44  ;;  %v6986_v42 = vsel %vm6982_vm5, %v6977_v37, %v6984_v41  ;;  %v7052_v37 = vrot.slane %v6990_v21, %v12458_v9  ;;  %v11404_v21 = vld [vmem:[#allocation20 + $0x390] sm:$0xff]  }
0x13ea   :  { %v6997_v63 = vrot.slane %v6986_v42, 4  ;;  %v7006_v48 = vmul.f32 %v6986_v42, %v6986_v42 }
0x13eb   :  { %v6992_v49 = vadd.f32 %v6991_v40, %v6985_v44  ;;  %v7007_v1 = vrot.slane %v7005_v45, 4 }
0x13ec   :  { %v6998_v50 = vadd.f32 %v6997_v63, %v6986_v42  ;;  %v7013_v62 = vrot.slane %v7006_v48, 4 }
0x13ed   :  { %v6993_v20 = vrot.slane %v6992_v49, 2  ;;  %v7008_v61 = vadd.f32 %v7007_v1, %v7005_v45  ;;  %v11354_v1 = vld [vmem:[#allocation14 + $0x710] ss:$8 sps:$4 sm:$0xff]  }
0x13ee   :  { %v6999_v46 = vrot.slane %v6998_v50, 2  ;;  %v7014_v5 = vadd.f32 %v7013_v62, %v7006_v48  ;;  %v11351_v48 = vld [vmem:[#allocation14 + $0x700] ss:$8 sps:$4 sm:$0xff]  }
0x13ef   :  { %v6994_v22 = vadd.f32 %v6993_v20, %v6992_v49  ;;  %v7009_v3 = vrot.slane %v7008_v61, 2  ;;  %v11356_v49 = vld [vmem:[#allocation14 + $0x714] ss:$8 sps:$4 sm:$0xff]   ;;  %v11357_v62 = vld [vmem:[#allocation14 + $0x720] ss:$8 sps:$4 sm:$0xff]  }
0x13f0   :  { %v7000_v53 = vadd.f32 %v6999_v46, %v6998_v50  ;;  %v7015_v6 = vrot.slane %v7014_v5, 2  ;;  %v11359_v50 = vld [vmem:[#allocation14 + $0x724] ss:$8 sps:$4 sm:$0xff]   ;;  %v11362_v20 = vld [vmem:[#allocation14 + $0x734] ss:$8 sps:$4 sm:$0xff]  }
0x13f1   :  { %v6995_v18 = vrot.slane %v6994_v22, 1  ;;  %v7010_v52 = vadd.f32 %v7009_v3, %v7008_v61  ;;  %v11360_v61 = vld [vmem:[#allocation14 + $0x730] ss:$8 sps:$4 sm:$0xff]   ;;  %v11365_v46 = vld [vmem:[#allocation14 + $0x744] ss:$8 sps:$4 sm:$0xff]  }
0x13f2   :  { %v7001_v54 = vrot.slane %v7000_v53, 1  ;;  %v7016_v19 = vadd.f32 %v7015_v6, %v7014_v5  ;;  %v11363_v5 = vld [vmem:[#allocation14 + $0x740] ss:$8 sps:$4 sm:$0xff]   ;;  %v11371_v3 = vld [vmem:[#allocation14 + $0x764] ss:$8 sps:$4 sm:$0xff]  }
0x13f3   :  { %v6996_v60 = vadd.f32 %v6995_v18, %v6994_v22  ;;  %v7011_v16 = vrot.slane %v7010_v52, 1  ;;  %v11368_v22 = vld [vmem:[#allocation14 + $0x754] ss:$8 sps:$4 sm:$0xff]   ;;  %v11372_v18 = vld [vmem:[#allocation14 + $0x770] ss:$8 sps:$4 sm:$0xff]  }
0x13f4   :  { %v7002_v55 = vadd.f32 %v7001_v54, %v7000_v53  ;;  %v7017_v7 = vrot.slane %v7016_v19, 1  ;;  %v11369_v53 = vld [vmem:[#allocation14 + $0x760] ss:$8 sps:$4 sm:$0xff]   ;;  %v11374_v6 = vld [vmem:[#allocation14 + $0x774] ss:$8 sps:$4 sm:$0xff]  }
0x13f5   :  { %v7003_v4 = vmul.f32 0.125, %v6996_v60  ;;  %v7012_v25 = vadd.f32 %v7011_v16, %v7010_v52  ;;  %v11377_v52 = vld [vmem:[#allocation14 + $0x784] ss:$8 sps:$4 sm:$0xff]   ;;  %v11375_v54 = vld [vmem:[#allocation14 + $0x780] ss:$8 sps:$4 sm:$0xff]  }
0x13f6   :  { %v7004_v27 = vmul.f32 0.125, %v7002_v55  ;;  %v7018_v15 = vadd.f32 %v7017_v7, %v7016_v19  ;;  %v11380_v19 = vld [vmem:[#allocation14 + $0x794] ss:$8 sps:$4 sm:$0xff]   ;;  %v11378_v60 = vld [vmem:[#allocation14 + $0x790] ss:$8 sps:$4 sm:$0xff]  }
0x13f7   :  { %v7019_v23 = vmul.f32 0.125, %v7012_v25  ;;  %v7021_v29 = vmul.f32 %v7003_v4, %v7003_v4  ;;  %v7027_v56 = vsub.f32 %v6985_v44, %v7003_v4  ;;  %v11383_v16 = vld [vmem:[#allocation14 + $0x7a4] ss:$8 sps:$4 sm:$0xff]   ;;  %v11381_v55 = vld [vmem:[#allocation14 + $0x7a0] ss:$8 sps:$4 sm:$0xff]  }
0x13f8   :  { %v7020_v14 = vmul.f32 0.125, %v7018_v15  ;;  %v7022_v47 = vmul.f32 %v7004_v27, %v7004_v27  ;;  %v7028_v34 = vsub.f32 %v6986_v42, %v7004_v27  ;;  %v7249_v42 = vpack.c.bf16 %v12858_v57, %v12858_v57  ;;  %v11366_v57 = vld [vmem:[#allocation14 + $0x750] ss:$8 sps:$4 sm:$0xff]   ;;  %v11386_v7 = vld [vmem:[#allocation14 + $0x7b4] ss:$8 sps:$4 sm:$0xff]  }
0x13f9   :  { %v7023_v24 = vsub.f32 %v7019_v23, %v7021_v29  ;;  %v11384_v4 = vld [vmem:[#allocation14 + $0x7b0] ss:$8 sps:$4 sm:$0xff]   ;;  %v11389_v25 = vld [vmem:[#allocation14 + $0x7c4] ss:$8 sps:$4 sm:$0xff]   ;;  %v11387_v27 = vld [vmem:[#allocation14 + $0x7c0] ss:$8 sps:$4 sm:$0xff]  }
0x13fa   :  { %v7024_v31 = vsub.f32 %v7020_v14, %v7022_v47  ;;  %v11392_v15 = vld [vmem:[#allocation14 + $0x7d4] ss:$8 sps:$4 sm:$0xff]   ;;  %v11390_v23 = vld [vmem:[#allocation14 + $0x7d0] ss:$8 sps:$4 sm:$0xff]   ;;  %v11395_v29 = vld [vmem:[#allocation14 + $0x7e4] ss:$8 sps:$4 sm:$0xff]  }
0x13fb   :  { %v7025_v58 = vmax.f32 %v7023_v24, 0.0  ;;  %v11393_v14 = vld [vmem:[#allocation14 + $0x7e0] ss:$8 sps:$4 sm:$0xff]   ;;  %v11398_v47 = vld [vmem:[#allocation14 + $0x7f4] ss:$8 sps:$4 sm:$0xff]  }
0x13fc   :  { %v7026_v51 = vmax.f32 %v7024_v31, 0.0  ;;  %v11396_v24 = vld [vmem:[#allocation14 + $0x7f0] ss:$8 sps:$4 sm:$0xff]   ;;  %v7248_v31 = vpack.c.bf16 %v12856_v8, %v12856_v8  ;;  %v11407_v8 = vld [vmem:[#allocation20 + $0x3e0] sm:$0xff]  }
0x13fd   :  { %v7029_v12 = vadd.f32 1e-05, %v7025_v58  ;;  %v11399_v58 = vld [vmem:[#allocation20 + $0x3c0] sm:$0xff]  }
0x13fe   :  { %v7030_v17 = vadd.f32 1e-05, %v7026_v51  ;;  %v11400_v51 = vld [vmem:[#allocation20 + $0x380] sm:$0xff]   ;;  %10411 = vmatprep.subr.bf16.mxu0 %v11399_v58 }
0x13ff   :  { %11687 = vrsqrt.f32 %v7029_v12  ;;  %10412 = vmatpush3.bf16.msra.mxu0 %v11400_v51  ;;  %v11401_v12 = vld [vmem:[#allocation20 + $0x3c8] sm:$0xff]  }
0x1400   :  { %11689 = vrsqrt.f32 %v7030_v17  ;;  %v11402_v17 = vld [vmem:[#allocation20 + $0x388] sm:$0xff]   ;;  %10413 = vmatprep.subr.bf16.mxu0 %v11401_v12 }
0x1403   :  { %10414 = vmatpush3.bf16.msra.mxu0 %v11402_v17 }
0x1404   :  { %10415 = vmatprep.subr.bf16.mxu0 %v11403_v28 }
0x1407   :  { %10416 = vmatpush3.bf16.msra.mxu0 %v11404_v21 }
0x1409   :  { %v11688_v33 = vpop.eup %11687 }
0x140a   :  { %v11690_v36 = vpop.eup %11689  ;;  %v7033_v26 = vmul.f32 %v11688_v33, %v7027_v56  ;;  %v11405_v56 = vld [vmem:[#allocation20 + $0x3d8] sm:$0xff]   ;;  %v11408_v33 = vld [vmem:[#allocation20 + $0x3a0] sm:$0xff]  }
0x140b   :  { %v7034_v11 = vmul.f32 %v11690_v36, %v7028_v34  ;;  %10417 = vmatprep.subr.bf16.mxu0 %v11405_v56  ;;  %v11409_v34 = vld [vmem:[#allocation20 + $0x3e8] sm:$0xff]   ;;  %v11411_v36 = vld [vmem:[#allocation20 + $0x3f0] sm:$0xff]  }
0x140c   :  { %v7046_v39 = vmul.f32 %v7039_v32, %v7033_v26  ;;  %v11406_v32 = vld [vmem:[#allocation20 + $0x398] sm:$0xff]   ;;  %v11412_v26 = vld [vmem:[#allocation20 + $0x3b0] sm:$0xff]  }
0x140d   :  { %v7047_v41 = vmul.f32 %v7043_v35, %v7034_v11  ;;  %10418 = vmatpush3.bf16.msra.mxu0 %v11406_v32  ;;  %v11410_v35 = vld [vmem:[#allocation20 + $0x3a8] sm:$0xff]   ;;  %v11414_v11 = vld [vmem:[#allocation20 + $0x3b8] sm:$0xff]  }
0x140e   :  { %v7059_v40 = vadd.f32 %v7052_v37, %v7046_v39  ;;  %10419 = vmatprep.subr.bf16.mxu0 %v11407_v8  ;;  %v11413_v37 = vld [vmem:[#allocation20 + $0x3f8] sm:$0xff]  }
0x140f   :  { %v7060_v45 = vadd.f32 %v7056_v38, %v7047_v41  ;;  %v11417_v38 = vld [vmem:[#allocation8 + $0x4] ss:$16 sps:$4 sm:$0xff]   ;;  %v11418_v39 = vld [vmem:[#allocation8 + $0x8] ss:$16 sps:$4 sm:$0xff]   ;;  %v11420_v41 = vld [vmem:[#allocation8 + $0xc] ss:$16 sps:$4 sm:$0xff]  }
0x1410   :  { %v7061_v44 = vpack.c.bf16 %v7059_v40, %v7059_v40  ;;  %v11426_v40 = vld [vmem:[#allocation8 + $0x2c] ss:$16 sps:$4 sm:$0xff]  }
0x1411   :  { %v7062_v63 = vpack.c.bf16 %v7060_v45, %v7060_v45  ;;  %10420 = vmatpush3.bf16.msra.mxu0 %v11408_v33  ;;  %v11424_v45 = vld [vmem:[#allocation8 + $0x28] ss:$16 sps:$4 sm:$0xff]  }
0x1412   :  { %10421 = vmatprep.subr.bf16.mxu0 %v11409_v34 }
0x1413   :  { %7232 = vmatprep.mubr.bf16.mxu1 %v7062_v63  ;;  %v11432_v63 = vld [vmem:[#allocation8 + $0x4c] ss:$16 sps:$4 sm:$0xff]  }
0x1414   :  { %7233 = vmatmul.mubr.bf16.vlgmr.msra.gmra.mrb[52].mxu1 %v7061_v44 }
0x1415   :  { %7457 = vmatpush1.bf16.msra.mxu1 %v11351_v48  ;;  %7488 = vmatprep.mubr.bf16.mxu1 %v7249_v42  ;;  %v11430_v48 = vld [vmem:[#allocation8 + $0x48] ss:$16 sps:$4 sm:$0xff]  }
0x1416   :  { %7458 = vmatprep.subr.bf16.mxu1 %v11356_v49  ;;  %10422 = vmatpush3.bf16.msra.mxu0 %v11410_v35  ;;  %v10005_v49 = vld [vmem:[#allocation22 + $0x1] ss:$0 sm:$0xff] }
0x1417   :  { %10423 = vmatprep.subr.bf16.mxu0 %v11411_v36 }
0x1419   :  { %7459 = vmatpush1.bf16.msra.mxu1 %v11354_v1 }
0x141a   :  { %7460 = vmatprep.subr.bf16.mxu1 %v11359_v50  ;;  %10424 = vmatpush3.bf16.msra.mxu0 %v11412_v26 }
0x141b   :  { %10425 = vmatprep.subr.bf16.mxu0 %v11413_v37 }
0x141d   :  { %7461 = vmatpush1.bf16.msra.mxu1 %v11357_v62 }
0x141e   :  { %7462 = vmatprep.subr.bf16.mxu1 %v11362_v20  ;;  %10426 = vmatpush3.bf16.msra.mxu0 %v11414_v11 }
0x141f   :  { %7995 = vmatprep.subr.bf16.mxu0 %v11417_v38 }
0x1421   :  { %7463 = vmatpush1.bf16.msra.mxu1 %v11360_v61  ;;  %v12871_v61 = vld [vmem:[#allocation7 + $0x1] ss:$0 sm:$0xff] }
0x1422   :  { %7464 = vmatprep.subr.bf16.mxu1 %v11365_v46 }
0x1425   :  { %7465 = vmatpush1.bf16.msra.mxu1 %v11363_v5 }
0x1426   :  { %7466 = vmatprep.subr.bf16.mxu1 %v11368_v22 }
0x1429   :  { %7467 = vmatpush1.bf16.msra.mxu1 %v11366_v57 }
0x142a   :  { %7468 = vmatprep.subr.bf16.mxu1 %v11371_v3 }
0x142d   :  { %7469 = vmatpush1.bf16.msra.mxu1 %v11369_v53 }
0x142e   :  { %7470 = vmatprep.subr.bf16.mxu1 %v11374_v6 }
0x1431   :  { %7471 = vmatpush1.bf16.msra.mxu1 %v11372_v18 }
0x1432   :  { %7472 = vmatprep.subr.bf16.mxu1 %v11377_v52 }
0x1435   :  { %7473 = vmatpush1.bf16.msra.mxu1 %v11375_v54  ;;  %v7284_v54 = vld [vmem:[#allocation16 + $0xe] sm:$0x3] }
0x1436   :  { %7474 = vmatprep.subr.bf16.mxu1 %v11380_v19  ;;  %v7289_v19 = vrot.slane %v7284_v54, %v12458_v9 }
0x1439   :  { %7475 = vmatpush1.bf16.msra.mxu1 %v11378_v60  ;;  %v7293_v60 = vrot.slane %v7284_v54, %v12461_v10  ;;  %v7506_v54 = vld [vmem:[#allocation19 + $0xe] sm:$0x3] }
0x143a   :  { %7476 = vmatprep.subr.bf16.mxu1 %v11383_v16 }
0x143d   :  { %7477 = vmatpush1.bf16.msra.mxu1 %v11381_v55 }
0x143e   :  { %7478 = vmatprep.subr.bf16.mxu1 %v11386_v7 }
0x1441   :  { %7479 = vmatpush1.bf16.msra.mxu1 %v11384_v4 }
0x1442   :  { %7480 = vmatprep.subr.bf16.mxu1 %v11389_v25 }
0x1445   :  { %7481 = vmatpush1.bf16.msra.mxu1 %v11387_v27 }
0x1446   :  { %7482 = vmatprep.subr.bf16.mxu1 %v11392_v15 }
0x1449   :  { %7483 = vmatpush1.bf16.msra.mxu1 %v11390_v23 }
0x144a   :  { %7484 = vmatprep.subr.bf16.mxu1 %v11395_v29 }
0x144d   :  { %7485 = vmatpush1.bf16.msra.mxu1 %v11393_v14 }
0x144e   :  { %7486 = vmatprep.subr.bf16.mxu1 %v11398_v47 }
0x1451   :  { %7487 = vmatpush1.bf16.msra.mxu1 %v11396_v24 }
0x1452   :  { %8036 = vmatprep.subr.bf16.mxu1 %v11420_v41 }
0x1454   :  { %7489 = vmatmul.mubr.bf16.vlgmr.msra.gmra.mrb[56].mxu1 %v7248_v31 }
0x1455   :  { %8068 = vmatprep.mubr.bf16.mxu1 %v12139_v0  ;;  %8037 = vmatpush1.bf16.msra.mxu1 %v11418_v39 }
0x1456   :  { %8038 = vmatprep.subr.bf16.mxu1 %v11426_v40 }
0x1459   :  { %8039 = vmatpush1.bf16.msra.mxu1 %v11424_v45 }
0x145a   :  { %8040 = vmatprep.subr.bf16.mxu1 %v11432_v63 }
0x145d   :  { %8041 = vmatpush1.bf16.msra.mxu1 %v11430_v48 }
0x14e7   :  { %v10405_v44 = vpop.f32.mrb[52].mxu1 }
0x14e8   :  { %v10406_v42 = vpop.f32.mrb[53].mxu1 }
0x14e9   :  { %v10407_v1 = vadd.f32 %v10406_v42, %v10405_v44  ;;  %v10408_v50 = vpop.f32.mrb[54].mxu1 }
0x14ea   :  { %v10409_v62 = vpop.f32.mrb[55].mxu1 }
0x14eb   :  { %v7235_v20 = vadd.f32 %v10407_v1, %v10005_v49 }
0x14ed   :  { %11691 = vtanh.f32 %v7235_v20 }
0x14f7   :  { %v11692_v46 = vpop.eup %11691 }
0x14f8   :  { %v12874_v5 = vmul.f32 %v11692_v46, %v12871_v61 }
0x14fa   :  { %v7764_v22 = vrot.slane %v12874_v5, 4 }
0x14fc   :  { %v7765_v57 = vadd.f32 %v7764_v22, %v12874_v5 }
0x14fe   :  { %v7766_v3 = vrot.slane %v7765_v57, 2 }
0x1500   :  { %v7767_v53 = vadd.f32 %v7766_v3, %v7765_v57 }
0x1502   :  { %v7768_v6 = vrot.slane %v7767_v53, 1 }
0x1504   :  { %v12878_v18 = vadd.f32 %v7768_v6, %v7767_v53  ;;  %v7504_v6 = vld [vmem:[#allocation17 + $0xe] sm:$0x3] }
0x1506   :  { %v7770_v52 = vsub.f32 %v12795_v2, %v12878_v18 }
0x1527   :  { %v7490_v16 = vpop.f32.mrb[56].mxu1 }
0x1528   :  { %v7491_v55 = vadd.f32 %v7490_v16, %v7289_v19  ;;  %v7492_v7 = vpop.f32.mrb[57].mxu1 }
0x1529   :  { %v7493_v4 = vadd.f32 %v7492_v7, %v7293_v60  ;;  %v7494_v25 = vpop.f32.mrb[58].mxu1  ;;  %v7555_v60 = vrot.slane %v7504_v6, %v12458_v9  ;;  %v7559_v7 = vrot.slane %v7504_v6, %v12461_v10 }
0x152a   :  { %vm7497_vm6 = vcmp.gt.f32.partialorder %v7491_v55, 0.0  ;;  %v7499_v27 = vmul.f32 0.01, %v7491_v55  ;;  %v7495_v15 = vpop.f32.mrb[59].mxu1 }
0x152b   :  { %vm7498_vm7 = vcmp.gt.f32.partialorder %v7493_v4, 0.0  ;;  %v7500_v23 = vmul.f32 0.01, %v7493_v4 }
0x152c   :  { %v7501_v29 = vsel %vm7497_vm6, %v7491_v55, %v7499_v27  ;;  %v7568_v27 = vrot.slane %v7506_v54, %v12458_v9 }
0x152d   :  { %v7507_v14 = vrot.slane %v7501_v29, 4  ;;  %v7521_v47 = vmul.f32 %v7501_v29, %v7501_v29  ;;  %v7502_v24 = vsel %vm7498_vm7, %v7493_v4, %v7500_v23  ;;  %v7572_v23 = vrot.slane %v7506_v54, %v12461_v10 }
0x152e   :  { %v7513_v31 = vrot.slane %v7502_v24, 4  ;;  %v7522_v58 = vmul.f32 %v7502_v24, %v7502_v24 }
0x152f   :  { %v7508_v51 = vadd.f32 %v7507_v14, %v7501_v29  ;;  %v7523_v12 = vrot.slane %v7521_v47, 4 }
0x1530   :  { %v7514_v17 = vadd.f32 %v7513_v31, %v7502_v24  ;;  %v7529_v28 = vrot.slane %v7522_v58, 4 }
0x1531   :  { %v7509_v21 = vrot.slane %v7508_v51, 2  ;;  %v7524_v56 = vadd.f32 %v7523_v12, %v7521_v47  ;;  %v11415_v12 = vld [vmem:[#allocation8] ss:$16 sps:$4 sm:$0xff]  }
0x1532   :  { %v7515_v32 = vrot.slane %v7514_v17, 2  ;;  %v7530_v8 = vadd.f32 %v7529_v28, %v7522_v58  ;;  %v11429_v28 = vld [vmem:[#allocation8 + $0x44] ss:$16 sps:$4 sm:$0xff]  }
0x1533   :  { %v7510_v33 = vadd.f32 %v7509_v21, %v7508_v51  ;;  %v7525_v34 = vrot.slane %v7524_v56, 2  ;;  %v11427_v21 = vld [vmem:[#allocation8 + $0x40] ss:$16 sps:$4 sm:$0xff]  }
0x1534   :  { %v7516_v35 = vadd.f32 %v7515_v32, %v7514_v17  ;;  %v7531_v36 = vrot.slane %v7530_v8, 2  ;;  %v11423_v17 = vld [vmem:[#allocation8 + $0x24] ss:$16 sps:$4 sm:$0xff]   ;;  %v11438_v32 = vld [vmem:[#allocation8 + $0x6c] ss:$16 sps:$4 sm:$0xff]  }
0x1535   :  { %v7511_v26 = vrot.slane %v7510_v33, 1  ;;  %v7526_v37 = vadd.f32 %v7525_v34, %v7524_v56  ;;  %v11435_v56 = vld [vmem:[#allocation8 + $0x64] ss:$16 sps:$4 sm:$0xff]   ;;  %8042 = vmatprep.subr.bf16.mxu1 %v11438_v32 }
0x1536   :  { %v7517_v11 = vrot.slane %v7516_v35, 1  ;;  %v7532_v38 = vadd.f32 %v7531_v36, %v7530_v8  ;;  %v11433_v8 = vld [vmem:[#allocation8 + $0x60] ss:$16 sps:$4 sm:$0xff]   ;;  %v11441_v34 = vld [vmem:[#allocation8 + $0x84] ss:$16 sps:$4 sm:$0xff]  }
0x1537   :  { %v7512_v39 = vadd.f32 %v7511_v26, %v7510_v33  ;;  %v7527_v41 = vrot.slane %v7526_v37, 1  ;;  %v11436_v33 = vld [vmem:[#allocation8 + $0x68] ss:$16 sps:$4 sm:$0xff]   ;;  %v11439_v36 = vld [vmem:[#allocation8 + $0x80] ss:$16 sps:$4 sm:$0xff]  }
0x1538   :  { %v7518_v40 = vadd.f32 %v7517_v11, %v7516_v35  ;;  %v7533_v45 = vrot.slane %v7532_v38, 1  ;;  %8043 = vmatpush1.bf16.msra.mxu1 %v11436_v33  ;;  %v11444_v35 = vld [vmem:[#allocation8 + $0x8c] ss:$16 sps:$4 sm:$0xff]   ;;  %v11442_v26 = vld [vmem:[#allocation8 + $0x88] ss:$16 sps:$4 sm:$0xff]  }
0x1539   :  { %v7519_v63 = vmul.f32 0.125, %v7512_v39  ;;  %v7528_v48 = vadd.f32 %v7527_v41, %v7526_v37  ;;  %8044 = vmatprep.subr.bf16.mxu1 %v11444_v35  ;;  %v11450_v37 = vld [vmem:[#allocation8 + $0xac] ss:$16 sps:$4 sm:$0xff]   ;;  %v11445_v11 = vld [vmem:[#allocation8 + $0xa0] ss:$16 sps:$4 sm:$0xff]  }
0x153a   :  { %v7520_v44 = vmul.f32 0.125, %v7518_v40  ;;  %v7534_v49 = vadd.f32 %v7533_v45, %v7532_v38  ;;  %v11448_v38 = vld [vmem:[#allocation8 + $0xa8] ss:$16 sps:$4 sm:$0xff]   ;;  %v11453_v39 = vld [vmem:[#allocation8 + $0xc4] ss:$16 sps:$4 sm:$0xff]  }
0x153b   :  { %v7535_v42 = vmul.f32 0.125, %v7528_v48  ;;  %v7537_v1 = vmul.f32 %v7519_v63, %v7519_v63  ;;  %v7543_v19 = vsub.f32 %v7501_v29, %v7519_v63  ;;  %v11456_v41 = vld [vmem:[#allocation8 + $0xcc] ss:$16 sps:$4 sm:$0xff]   ;;  %v11451_v40 = vld [vmem:[#allocation8 + $0xc0] ss:$16 sps:$4 sm:$0xff]  }
0x153c   :  { %v7536_v50 = vmul.f32 0.125, %v7534_v49  ;;  %v7538_v62 = vmul.f32 %v7520_v44, %v7520_v44  ;;  %v7544_v55 = vsub.f32 %v7502_v24, %v7520_v44  ;;  %v11421_v24 = vld [vmem:[#allocation8 + $0x20] ss:$16 sps:$4 sm:$0xff]   ;;  %8045 = vmatpush1.bf16.msra.mxu1 %v11442_v26  ;;  %v11454_v45 = vld [vmem:[#allocation8 + $0xc8] ss:$16 sps:$4 sm:$0xff]  }
0x153d   :  { %v7539_v20 = vsub.f32 %v7535_v42, %v7537_v1  ;;  %8046 = vmatprep.subr.bf16.mxu1 %v11450_v37  ;;  %v11459_v63 = vld [vmem:[#allocation8 + $0xe4] ss:$16 sps:$4 sm:$0xff]   ;;  %v11457_v48 = vld [vmem:[#allocation8 + $0xe0] ss:$16 sps:$4 sm:$0xff]   ;;  %v11460_v44 = vld [vmem:[#allocation8 + $0xe8] ss:$16 sps:$4 sm:$0xff]  }
0x153e   :  { %v7540_v46 = vsub.f32 %v7536_v50, %v7538_v62  ;;  %v11462_v49 = vld [vmem:[#allocation8 + $0xec] ss:$16 sps:$4 sm:$0xff]   ;;  %v7759_v1 = vsub.f32 0.0, %v12874_v5 }
0x153f   :  { %v7541_v22 = vmax.f32 %v7539_v20, 0.0  ;;  %v11465_v42 = vld [vmem:[#allocation14 + $0x4] ss:$8 sps:$4 sm:$0xff]   ;;  %v11498_v33 = vld [vmem:[#allocation14 + $0xb4] ss:$8 sps:$4 sm:$0xff]  }
0x1540   :  { %v7542_v57 = vmax.f32 %v7540_v46, 0.0  ;;  %8047 = vmatpush1.bf16.msra.mxu1 %v11448_v38  ;;  %v7760_v50 = vmul.f32 1.442695, %v7759_v1  ;;  %v10055_v20 = vld [vmem:[#allocation22 + $0x7] ss:$0 sm:$0xff] }
0x1541   :  { %v7545_v3 = vadd.f32 1e-05, %v7541_v22  ;;  %8048 = vmatprep.subr.bf16.mxu1 %v11456_v41  ;;  %v11495_v32 = vld [vmem:[#allocation14 + $0xa4] ss:$8 sps:$4 sm:$0xff]   ;;  %v11504_v26 = vld [vmem:[#allocation14 + $0xd4] ss:$8 sps:$4 sm:$0xff]  }
0x1542   :  { %v7546_v53 = vadd.f32 1e-05, %v7542_v57  ;;  %v11501_v35 = vld [vmem:[#allocation14 + $0xc4] ss:$8 sps:$4 sm:$0xff]   ;;  %v11510_v38 = vld [vmem:[#allocation14 + $0xf4] ss:$8 sps:$4 sm:$0xff]  }
0x1543   :  { %11693 = vrsqrt.f32 %v7545_v3  ;;  %v11507_v37 = vld [vmem:[#allocation14 + $0xe4] ss:$8 sps:$4 sm:$0xff]   ;;  %v7813_v41 = vld [vmem:[#allocation10] sm:$0xf] }
0x1544   :  { %11695 = vrsqrt.f32 %v7546_v53  ;;  %8049 = vmatpush1.bf16.msra.mxu1 %v11454_v45  ;;  %v7826_v45 = vrot.slane %v7813_v41, %v12511_v59 }
0x1545   :  { %8050 = vmatprep.subr.bf16.mxu1 %v11462_v49  ;;  %11697 = vpow2.f32 %v7760_v50 }
0x1548   :  { %8051 = vmatpush1.bf16.msra.mxu1 %v11460_v44 }
0x154d   :  { %v11694_v16 = vpop.eup %11693 }
0x154e   :  { %v11696_v4 = vpop.eup %11695  ;;  %v7549_v25 = vmul.f32 %v11694_v16, %v7543_v19 }
0x154f   :  { %v7550_v15 = vmul.f32 %v11696_v4, %v7544_v55  ;;  %v10072_v55 = vld [vmem:[#allocation5] ss:$0 sm:$0xff]  ;;  %v11463_v4 = vld [vmem:[#allocation14] ss:$8 sps:$4 sm:$0xff]  }
0x1550   :  { %v7562_v14 = vmul.f32 %v7555_v60, %v7549_v25  ;;  %v11698_v60 = vpop.eup %11697 }
0x1551   :  { %v7563_v47 = vmul.f32 %v7559_v7, %v7550_v15  ;;  %v11469_v15 = vld [vmem:[#allocation14 + $0x20] ss:$8 sps:$4 sm:$0xff]  }
0x1552   :  { %v7575_v31 = vadd.f32 %v7568_v27, %v7562_v14  ;;  %v11468_v27 = vld [vmem:[#allocation14 + $0x14] ss:$8 sps:$4 sm:$0xff]   ;;  %v11477_v14 = vld [vmem:[#allocation14 + $0x44] ss:$8 sps:$4 sm:$0xff]  }
0x1553   :  { %v7576_v58 = vadd.f32 %v7572_v23, %v7563_v47  ;;  %v11474_v23 = vld [vmem:[#allocation14 + $0x34] ss:$8 sps:$4 sm:$0xff]   ;;  %v11475_v47 = vld [vmem:[#allocation14 + $0x40] ss:$8 sps:$4 sm:$0xff]  }
0x1554   :  { %v7577_v29 = vpack.c.bf16 %v7575_v31, %v7575_v31  ;;  %v11480_v31 = vld [vmem:[#allocation14 + $0x54] ss:$8 sps:$4 sm:$0xff]  }
0x1555   :  { %v7578_v51 = vpack.c.bf16 %v7576_v58, %v7576_v58  ;;  %v11478_v58 = vld [vmem:[#allocation14 + $0x50] ss:$8 sps:$4 sm:$0xff]  }
0x1557   :  { %7748 = vmatprep.mubr.bf16.mxu0 %v7578_v51  ;;  %v11483_v51 = vld [vmem:[#allocation14 + $0x64] ss:$8 sps:$4 sm:$0xff]  }
0x1558   :  { %7749 = vmatmul.mubr.bf16.vlgmr.msra.gmra.mrb[56].mxu0 %v7577_v29  ;;  %v11486_v29 = vld [vmem:[#allocation14 + $0x74] ss:$8 sps:$4 sm:$0xff]  }
0x1559   :  { %7996 = vmatpush1.bf16.msra.mxu0 %v11415_v12  ;;  %8027 = vmatprep.mubr.bf16.mxu0 %v12139_v0  ;;  %v11447_v0 = vld [vmem:[#allocation8 + $0xa4] ss:$16 sps:$4 sm:$0xff]   ;;  %v11481_v12 = vld [vmem:[#allocation14 + $0x60] ss:$8 sps:$4 sm:$0xff]  }
0x155a   :  { %7997 = vmatprep.subr.bf16.mxu0 %v11423_v17  ;;  %v11484_v17 = vld [vmem:[#allocation14 + $0x70] ss:$8 sps:$4 sm:$0xff]  }
0x155d   :  { %7998 = vmatpush1.bf16.msra.mxu0 %v11421_v24  ;;  %v11489_v24 = vld [vmem:[#allocation14 + $0x84] ss:$8 sps:$4 sm:$0xff]  }
0x155e   :  { %7999 = vmatprep.subr.bf16.mxu0 %v11429_v28  ;;  %v11487_v28 = vld [vmem:[#allocation14 + $0x80] ss:$8 sps:$4 sm:$0xff]  }
0x1561   :  { %8000 = vmatpush1.bf16.msra.mxu0 %v11427_v21  ;;  %v11492_v21 = vld [vmem:[#allocation14 + $0x94] ss:$8 sps:$4 sm:$0xff]  }
0x1562   :  { %8001 = vmatprep.subr.bf16.mxu0 %v11435_v56  ;;  %v11490_v56 = vld [vmem:[#allocation14 + $0x90] ss:$8 sps:$4 sm:$0xff]  }
0x1565   :  { %8002 = vmatpush1.bf16.msra.mxu0 %v11433_v8  ;;  %v11493_v8 = vld [vmem:[#allocation14 + $0xa0] ss:$8 sps:$4 sm:$0xff]  }
0x1566   :  { %8003 = vmatprep.subr.bf16.mxu0 %v11441_v34  ;;  %v11496_v34 = vld [vmem:[#allocation14 + $0xb0] ss:$8 sps:$4 sm:$0xff]  }
0x1569   :  { %8004 = vmatpush1.bf16.msra.mxu0 %v11439_v36  ;;  %v11499_v36 = vld [vmem:[#allocation14 + $0xc0] ss:$8 sps:$4 sm:$0xff]  }
0x156a   :  { %8005 = vmatprep.subr.bf16.mxu0 %v11447_v0  ;;  %v11502_v0 = vld [vmem:[#allocation14 + $0xd0] ss:$8 sps:$4 sm:$0xff]  }
0x156d   :  { %8006 = vmatpush1.bf16.msra.mxu0 %v11445_v11  ;;  %v11505_v11 = vld [vmem:[#allocation14 + $0xe0] ss:$8 sps:$4 sm:$0xff]  }
0x156e   :  { %8007 = vmatprep.subr.bf16.mxu0 %v11453_v39  ;;  %v11508_v39 = vld [vmem:[#allocation14 + $0xf0] ss:$8 sps:$4 sm:$0xff]  }
0x1571   :  { %8008 = vmatpush1.bf16.msra.mxu0 %v11451_v40  ;;  %v7818_v40 = vrot.slane %v7813_v41, %v12458_v9 }
0x1572   :  { %8009 = vmatprep.subr.bf16.mxu0 %v11459_v63  ;;  %v7822_v63 = vrot.slane %v7813_v41, %v12461_v10 }
0x1575   :  { %8010 = vmatpush1.bf16.msra.mxu0 %v11457_v48  ;;  %v7830_v48 = vrot.slane %v7813_v41, %v12482_v43 }
0x1576   :  { %8435 = vmatprep.subr.bf16.mxu0 %v11465_v42 }
0x162b   :  { %v10427_v62 = vpop.f32.mrb[56].mxu0 }
0x162c   :  { %v10428_v46 = vpop.f32.mrb[57].mxu0 }
0x162d   :  { %v10429_v22 = vadd.f32 %v10428_v46, %v10427_v62  ;;  %v10430_v57 = vpop.f32.mrb[58].mxu0 }
0x162e   :  { %v10431_v3 = vpop.f32.mrb[59].mxu0 }
0x162f   :  { %v7751_v53 = vadd.f32 %v10429_v22, %v10055_v20 }
0x1631   :  { %v7756_v6 = vmul.f32 %v12871_v61, %v7751_v53 }
0x1633   :  { %v7757_v54 = vsub.f32 %v12809_v13, %v7756_v6  ;;  %v11466_v13 = vld [vmem:[#allocation14 + $0x10] ss:$8 sps:$4 sm:$0xff]  }
0x1635   :  { %v7758_v19 = vmul.f32 %v12871_v61, %v7757_v54  ;;  %v11471_v61 = vld [vmem:[#allocation14 + $0x24] ss:$8 sps:$4 sm:$0xff]  }
0x1637   :  { %v7762_v16 = vmul.f32 %v11698_v60, %v7758_v19 }
0x1639   :  { %v12894_v5 = vadd.f32 %v7762_v16, %v12812_v30  ;;  %v11472_v30 = vld [vmem:[#allocation14 + $0x30] ss:$8 sps:$4 sm:$0xff]  }
0x163b   :  { %v12897_v7 = vmul.f32 %v10072_v55, %v12894_v5 }
0x163d   :  { %v7780_v25 = vpack.c.bf16 %v12897_v7, %v12897_v7 }
0x163f   :  { %8028 = vmatmul.mubr.bf16.vlgmr.msra.gmra.mrb[60].mxu0 %v7780_v25  ;;  %8069 = vmatmul.mubr.bf16.vlgmr.msra.gmra.mrb[60].mxu1 %v7780_v25 }
0x1640   :  { %8436 = vmatpush1.bf16.msra.mxu0 %v11463_v4 }
0x1641   :  { %8437 = vmatprep.subr.bf16.mxu0 %v11468_v27 }
0x1644   :  { %8438 = vmatpush1.bf16.msra.mxu0 %v11466_v13 }
0x1645   :  { %8439 = vmatprep.subr.bf16.mxu0 %v11471_v61 }
0x1648   :  { %8440 = vmatpush1.bf16.msra.mxu0 %v11469_v15 }
0x1649   :  { %8441 = vmatprep.subr.bf16.mxu0 %v11474_v23 }
0x164c   :  { %8442 = vmatpush1.bf16.msra.mxu0 %v11472_v30 }
0x164d   :  { %8443 = vmatprep.subr.bf16.mxu0 %v11477_v14 }
0x1650   :  { %8444 = vmatpush1.bf16.msra.mxu0 %v11475_v47 }
0x1651   :  { %8445 = vmatprep.subr.bf16.mxu0 %v11480_v31 }
0x1654   :  { %8446 = vmatpush1.bf16.msra.mxu0 %v11478_v58 }
0x1655   :  { %8447 = vmatprep.subr.bf16.mxu0 %v11483_v51 }
0x1658   :  { %8448 = vmatpush1.bf16.msra.mxu0 %v11481_v12 }
0x1659   :  { %8449 = vmatprep.subr.bf16.mxu0 %v11486_v29 }
0x165c   :  { %8450 = vmatpush1.bf16.msra.mxu0 %v11484_v17 }
0x165d   :  { %8451 = vmatprep.subr.bf16.mxu0 %v11489_v24 }
0x1660   :  { %8452 = vmatpush1.bf16.msra.mxu0 %v11487_v28 }
0x1661   :  { %8453 = vmatprep.subr.bf16.mxu0 %v11492_v21 }
0x1664   :  { %8454 = vmatpush1.bf16.msra.mxu0 %v11490_v56 }
0x1665   :  { %8455 = vmatprep.subr.bf16.mxu0 %v11495_v32 }
0x1668   :  { %8456 = vmatpush1.bf16.msra.mxu0 %v11493_v8 }
0x1669   :  { %8457 = vmatprep.subr.bf16.mxu0 %v11498_v33 }
0x166c   :  { %8458 = vmatpush1.bf16.msra.mxu0 %v11496_v34 }
0x166d   :  { %8459 = vmatprep.subr.bf16.mxu0 %v11501_v35 }
0x1670   :  { %8460 = vmatpush1.bf16.msra.mxu0 %v11499_v36 }
0x1671   :  { %8461 = vmatprep.subr.bf16.mxu0 %v11504_v26 }
0x1674   :  { %8462 = vmatpush1.bf16.msra.mxu0 %v11502_v0 }
0x1675   :  { %8463 = vmatprep.subr.bf16.mxu0 %v11507_v37 }
0x1678   :  { %8464 = vmatpush1.bf16.msra.mxu0 %v11505_v11 }
0x1679   :  { %8465 = vmatprep.subr.bf16.mxu0 %v11510_v38 }
0x167c   :  { %8466 = vmatpush1.bf16.msra.mxu0 %v11508_v39 }
0x1712   :  { %v8029_v44 = vpop.f32.mrb[60].mxu0  ;;  %v8070_v49 = vpop.f32.mrb[60].mxu1 }
0x1713   :  { %v8030_v42 = vadd.f32 %v8029_v44, %v7818_v40  ;;  %v8071_v1 = vadd.f32 %v8070_v49, %v7826_v45  ;;  %v8031_v50 = vpop.f32.mrb[61].mxu0  ;;  %v8072_v62 = vpop.f32.mrb[61].mxu1 }
0x1714   :  { %v8032_v20 = vadd.f32 %v8031_v50, %v7822_v63  ;;  %v8073_v46 = vadd.f32 %v8072_v62, %v7830_v48  ;;  %v8033_v22 = vpop.f32.mrb[62].mxu0  ;;  %v8074_v57 = vpop.f32.mrb[62].mxu1 }
0x1715   :  { %vm8077_vm8 = vcmp.gt.f32.partialorder %v8030_v42, 0.0  ;;  %v8081_v3 = vmul.f32 0.01, %v8030_v42  ;;  %vm8079_vm9 = vcmp.gt.f32.partialorder %v8071_v1, 0.0  ;;  %v8083_v53 = vmul.f32 0.01, %v8071_v1 }
0x1716   :  { %vm8078_vm10 = vcmp.gt.f32.partialorder %v8032_v20, 0.0  ;;  %v8082_v6 = vmul.f32 0.01, %v8032_v20  ;;  %vm8080_vm11 = vcmp.gt.f32.partialorder %v8073_v46, 0.0  ;;  %v8084_v54 = vmul.f32 0.01, %v8073_v46 }
0x1717   :  { %v12905_v19 = vsel %vm8077_vm8, %v8030_v42, %v8081_v3  ;;  %v12907_v60 = vsel %vm8079_vm9, %v8071_v1, %v8083_v53  ;;  %v8034_v16 = vpop.f32.mrb[63].mxu0  ;;  %v8075_v55 = vpop.f32.mrb[63].mxu1 }
0x1718   :  { %v8091_v4 = vrot.slane %v12905_v19, 4  ;;  %v8119_v25 = vmul.f32 %v12905_v19, %v12905_v19  ;;  %v8103_v27 = vrot.slane %v12907_v60, 4  ;;  %v8121_v13 = vmul.f32 %v12907_v60, %v12907_v60 }
0x1719   :  { %v12915_v61 = vsel %vm8078_vm10, %v8032_v20, %v8082_v6  ;;  %v12917_v15 = vsel %vm8080_vm11, %v8073_v46, %v8084_v54 }
0x171a   :  { %v8092_v23 = vadd.f32 %v8091_v4, %v12905_v19  ;;  %v8123_v30 = vrot.slane %v8119_v25, 4  ;;  %v8104_v14 = vadd.f32 %v8103_v27, %v12907_v60  ;;  %v8135_v47 = vrot.slane %v8121_v13, 4 }
0x171b   :  { %v8097_v31 = vrot.slane %v12915_v61, 4  ;;  %v8120_v58 = vmul.f32 %v12915_v61, %v12915_v61  ;;  %v8109_v51 = vrot.slane %v12917_v15, 4  ;;  %v8122_v12 = vmul.f32 %v12917_v15, %v12917_v15 }
0x171c   :  { %v8093_v29 = vrot.slane %v8092_v23, 2  ;;  %v8124_v17 = vadd.f32 %v8123_v30, %v8119_v25  ;;  %v8105_v24 = vrot.slane %v8104_v14, 2  ;;  %v8136_v28 = vadd.f32 %v8135_v47, %v8121_v13 }
0x171d   :  { %v8098_v21 = vadd.f32 %v8097_v31, %v12915_v61  ;;  %v8129_v56 = vrot.slane %v8120_v58, 4  ;;  %v8110_v32 = vadd.f32 %v8109_v51, %v12917_v15  ;;  %v8141_v8 = vrot.slane %v8122_v12, 4 }
0x171e   :  { %v8094_v33 = vadd.f32 %v8093_v29, %v8092_v23  ;;  %v8125_v34 = vrot.slane %v8124_v17, 2  ;;  %v8106_v35 = vadd.f32 %v8105_v24, %v8104_v14  ;;  %v8137_v36 = vrot.slane %v8136_v28, 2 }
0x171f   :  { %v8099_v26 = vrot.slane %v8098_v21, 2  ;;  %v8130_v0 = vadd.f32 %v8129_v56, %v8120_v58  ;;  %v8111_v37 = vrot.slane %v8110_v32, 2  ;;  %v8142_v11 = vadd.f32 %v8141_v8, %v8122_v12 }
0x1720   :  { %v8095_v38 = vrot.slane %v8094_v33, 1  ;;  %v8126_v39 = vadd.f32 %v8125_v34, %v8124_v17  ;;  %v8107_v41 = vrot.slane %v8106_v35, 1  ;;  %v8138_v40 = vadd.f32 %v8137_v36, %v8136_v28 }
0x1721   :  { %v8100_v45 = vadd.f32 %v8099_v26, %v8098_v21  ;;  %v8131_v63 = vrot.slane %v8130_v0, 2  ;;  %v8112_v48 = vadd.f32 %v8111_v37, %v8110_v32  ;;  %v8143_v44 = vrot.slane %v8142_v11, 2 }
0x1722   :  { %v8096_v49 = vadd.f32 %v8095_v38, %v8094_v33  ;;  %v8127_v42 = vrot.slane %v8126_v39, 1  ;;  %v8108_v1 = vadd.f32 %v8107_v41, %v8106_v35  ;;  %v8139_v50 = vrot.slane %v8138_v40, 1 }
0x1723   :  { %v8101_v62 = vrot.slane %v8100_v45, 1  ;;  %v8132_v20 = vadd.f32 %v8131_v63, %v8130_v0  ;;  %v8113_v46 = vrot.slane %v8112_v48, 1  ;;  %v8144_v22 = vadd.f32 %v8143_v44, %v8142_v11  ;;  %v8089_v0 = vld [vmem:[#allocation11] sm:$0xf]  ;;  %v8090_v11 = vld [vmem:[#allocation13] sm:$0xf] }
0x1724   :  { %v8115_v57 = vmul.f32 0.125, %v8096_v49  ;;  %v8128_v3 = vadd.f32 %v8127_v42, %v8126_v39  ;;  %v8117_v53 = vmul.f32 0.125, %v8108_v1  ;;  %v8140_v6 = vadd.f32 %v8139_v50, %v8138_v40 }
0x1725   :  { %v8102_v54 = vadd.f32 %v8101_v62, %v8100_v45  ;;  %v8133_v16 = vrot.slane %v8132_v20, 1  ;;  %v8114_v55 = vadd.f32 %v8113_v46, %v8112_v48  ;;  %v8145_v4 = vrot.slane %v8144_v22, 1 }
0x1726   :  { %v8147_v25 = vmul.f32 0.125, %v8128_v3  ;;  %v8151_v27 = vmul.f32 %v8115_v57, %v8115_v57  ;;  %v8149_v13 = vmul.f32 0.125, %v8140_v6  ;;  %v8153_v23 = vmul.f32 %v8117_v53, %v8117_v53 }
0x1727   :  { %v8116_v30 = vmul.f32 0.125, %v8102_v54  ;;  %v8134_v14 = vadd.f32 %v8133_v16, %v8132_v20  ;;  %v8118_v31 = vmul.f32 0.125, %v8114_v55  ;;  %v8146_v58 = vadd.f32 %v8145_v4, %v8144_v22 }
0x1728   :  { %v8155_v47 = vsub.f32 %v8147_v25, %v8151_v27  ;;  %v8157_v51 = vsub.f32 %v8149_v13, %v8153_v23  ;;  %v8163_v37 = vsub.f32 %v12905_v19, %v8115_v57  ;;  %v8183_v38 = vrot.slane %v8089_v0, %v12458_v9  ;;  %v11511_v25 = vld [vmem:[#allocation20 + $0x40] sm:$0xff]   ;;  %v11513_v13 = vld [vmem:[#allocation20 + $0x48] sm:$0xff]  }
0x1729   :  { %v8148_v12 = vmul.f32 0.125, %v8134_v14  ;;  %v8152_v29 = vmul.f32 %v8116_v30, %v8116_v30  ;;  %v8150_v24 = vmul.f32 0.125, %v8146_v58  ;;  %v8154_v28 = vmul.f32 %v8118_v31, %v8118_v31  ;;  %v11512_v27 = vld [vmem:[#allocation20] sm:$0xff]   ;;  %10433 = vmatprep.subr.bf16.mxu1 %v11511_v25  ;;  %v11514_v23 = vld [vmem:[#allocation20 + $0x8] sm:$0xff]   ;;  %v11517_v14 = vld [vmem:[#allocation20 + $0x58] sm:$0xff]  }
0x172a   :  { %v8159_v17 = vmax.f32 %v8155_v47, 0.0  ;;  %v8161_v21 = vmax.f32 %v8157_v51, 0.0  ;;  %v8165_v41 = vsub.f32 %v12907_v60, %v8117_v53  ;;  %v8191_v40 = vrot.slane %v8089_v0, %v12511_v59  ;;  %10434 = vmatpush3.bf16.msra.mxu1 %v11512_v27  ;;  %v11518_v47 = vld [vmem:[#allocation20 + $0x18] sm:$0xff]   ;;  %v11520_v58 = vld [vmem:[#allocation20 + $0x20] sm:$0xff]   ;;  %v11521_v51 = vld [vmem:[#allocation20 + $0x68] sm:$0xff]  }
0x172b   :  { %v8156_v56 = vsub.f32 %v8148_v12, %v8152_v29  ;;  %v8158_v8 = vsub.f32 %v8150_v24, %v8154_v28  ;;  %v8164_v44 = vsub.f32 %v12915_v61, %v8116_v30  ;;  %v8187_v49 = vrot.slane %v8089_v0, %v12461_v10  ;;  %10435 = vmatprep.subr.bf16.mxu1 %v11513_v13  ;;  %v11516_v30 = vld [vmem:[#allocation20 + $0x10] sm:$0xff]   ;;  %v11522_v12 = vld [vmem:[#allocation20 + $0x28] sm:$0xff]   ;;  %v11525_v24 = vld [vmem:[#allocation20 + $0x78] sm:$0xff]  }
0x172c   :  { %v8167_v32 = vadd.f32 1e-05, %v8159_v17  ;;  %v8169_v33 = vadd.f32 1e-05, %v8161_v21  ;;  %v8216_v42 = vrot.slane %v8090_v11, %v12511_v59  ;;  %v8166_v19 = vsub.f32 %v12917_v15, %v8118_v31  ;;  %v11519_v31 = vld [vmem:[#allocation20 + $0x60] sm:$0xff]   ;;  %v11523_v29 = vld [vmem:[#allocation20 + $0x70] sm:$0xff]  }
0x172d   :  { %v8160_v34 = vmax.f32 %v8156_v56, 0.0  ;;  %v8162_v35 = vmax.f32 %v8158_v8, 0.0  ;;  %v8208_v62 = vrot.slane %v8090_v11, %v12458_v9  ;;  %v8195_v20 = vrot.slane %v8089_v0, %v12482_v43  ;;  %v11524_v17 = vld [vmem:[#allocation20 + $0x30] sm:$0xff]   ;;  %v11526_v28 = vld [vmem:[#allocation20 + $0x38] sm:$0xff]  }
0x172e   :  { %11699 = vrsqrt.f32 %v8167_v32  ;;  %v8212_v22 = vrot.slane %v8090_v11, %v12461_v10  ;;  %v8220_v61 = vrot.slane %v8090_v11, %v12482_v43  ;;  %10436 = vmatpush3.bf16.msra.mxu1 %v11514_v23  ;;  %v11515_v43 = vld [vmem:[#allocation20 + $0x50] sm:$0xff]   ;;  %v11529_v21 = vld [vmem:[#allocation14 + $0x604] ss:$8 sps:$4 sm:$0xff]   ;;  %v8263_v56 = vld [vmem:[#allocation16] sm:$0x3] }
0x172f   :  { %11701 = vrsqrt.f32 %v8169_v33  ;;  %v8168_v36 = vadd.f32 1e-05, %v8160_v34  ;;  %v8170_v26 = vadd.f32 1e-05, %v8162_v35  ;;  %10437 = vmatprep.subr.bf16.mxu1 %v11515_v43  ;;  %v8268_v32 = vrot.slane %v8263_v56, %v12458_v9 }
0x1730   :  { %v8272_v8 = vrot.slane %v8263_v56, %v12461_v10 }
0x1731   :  { %11703 = vrsqrt.f32 %v8168_v36 }
0x1732   :  { %11705 = vrsqrt.f32 %v8170_v26  ;;  %10438 = vmatpush3.bf16.msra.mxu1 %v11516_v30 }
0x1733   :  { %10439 = vmatprep.subr.bf16.mxu1 %v11517_v14 }
0x1736   :  { %10440 = vmatpush3.bf16.msra.mxu1 %v11518_v47 }
0x1737   :  { %10441 = vmatprep.subr.bf16.mxu1 %v11519_v31 }
0x1738   :  { %v11700_v39 = vpop.eup %11699 }
0x1739   :  { %v11702_v45 = vpop.eup %11701  ;;  %v8175_v63 = vmul.f32 %v11700_v39, %v8163_v37 }
0x173a   :  { %v8177_v48 = vmul.f32 %v11702_v45, %v8165_v41  ;;  %10442 = vmatpush3.bf16.msra.mxu1 %v11520_v58 }
0x173b   :  { %v11704_v1 = vpop.eup %11703  ;;  %v8200_v50 = vmul.f32 %v8183_v38, %v8175_v63  ;;  %10443 = vmatprep.subr.bf16.mxu1 %v11521_v51 }
0x173c   :  { %v11706_v60 = vpop.eup %11705  ;;  %v8176_v46 = vmul.f32 %v11704_v1, %v8164_v44  ;;  %v8202_v57 = vmul.f32 %v8191_v40, %v8177_v48 }
0x173d   :  { %v8178_v3 = vmul.f32 %v11706_v60, %v8166_v19  ;;  %v8225_v59 = vadd.f32 %v8208_v62, %v8200_v50 }
0x173e   :  { %v8201_v53 = vmul.f32 %v8187_v49, %v8176_v46  ;;  %v12941_v6 = vadd.f32 %v8216_v42, %v8202_v57  ;;  %10444 = vmatpush3.bf16.msra.mxu1 %v11522_v12 }
0x173f   :  { %v8203_v54 = vmul.f32 %v8195_v20, %v8178_v3  ;;  %v8229_v4 = vpack.c.bf16 %v8225_v59, %v8225_v59  ;;  %10445 = vmatprep.subr.bf16.mxu1 %v11523_v29 }
0x1740   :  { %v8226_v16 = vadd.f32 %v8212_v22, %v8201_v53 }
0x1741   :  { %v12943_v15 = vadd.f32 %v8220_v61, %v8203_v54 }
0x1742   :  { %v8230_v55 = vpack.c.bf16 %v8226_v16, %v8226_v16  ;;  %10446 = vmatpush3.bf16.msra.mxu1 %v11524_v17  ;;  %v8482_v17 = vld [vmem:[#allocation17] sm:$0x3] }
0x1743   :  { %10447 = vmatprep.subr.bf16.mxu1 %v11525_v24  ;;  %v8483_v24 = vld [vmem:[#allocation19] sm:$0x3] }
0x1744   :  { %8467 = vmatprep.mubr.bf16.mxu0 %v8230_v55 }
0x1745   :  { %8468 = vmatmul.mubr.bf16.vlgmr.msra.gmra.mrb[64].mxu0 %v8229_v4 }
0x1746   :  { %10448 = vmatpush3.bf16.msra.mxu1 %v11526_v28 }
0x1747   :  { %8947 = vmatprep.subr.bf16.mxu1 %v11529_v21  ;;  %v8532_v21 = vrot.slane %v8482_v17, %v12458_v9 }
0x1818   :  { %v8469_v33 = vpop.f32.mrb[64].mxu0 }
0x1819   :  { %v8470_v34 = vadd.f32 %v8469_v33, %v8268_v32  ;;  %v8471_v35 = vpop.f32.mrb[65].mxu0 }
0x181a   :  { %v8472_v36 = vadd.f32 %v8471_v35, %v8272_v8  ;;  %v8473_v26 = vpop.f32.mrb[66].mxu0  ;;  %v8536_v8 = vrot.slane %v8482_v17, %v12461_v10  ;;  %v8545_v35 = vrot.slane %v8483_v24, %v12458_v9  ;;  %v11580_v17 = vld [vmem:[#allocation20 + $0x310] sm:$0xff]  }
0x181b   :  { %vm8476_vm12 = vcmp.gt.f32.partialorder %v8470_v34, 0.0  ;;  %v8478_v0 = vmul.f32 0.01, %v8470_v34  ;;  %v8474_v37 = vpop.f32.mrb[67].mxu0  ;;  %v8549_v26 = vrot.slane %v8483_v24, %v12461_v10  ;;  %v11581_v24 = vld [vmem:[#allocation20 + $0x358] sm:$0xff]  }
0x181c   :  { %vm8477_vm13 = vcmp.gt.f32.partialorder %v8472_v36, 0.0  ;;  %v8479_v11 = vmul.f32 0.01, %v8472_v36 }
0x181d   :  { %v8480_v38 = vsel %vm8476_vm12, %v8470_v34, %v8478_v0 }
0x181e   :  { %v8484_v39 = vrot.slane %v8480_v38, 4  ;;  %v8498_v41 = vmul.f32 %v8480_v38, %v8480_v38  ;;  %v8481_v40 = vsel %vm8477_vm13, %v8472_v36, %v8479_v11 }
0x181f   :  { %v8490_v45 = vrot.slane %v8481_v40, 4  ;;  %v8499_v63 = vmul.f32 %v8481_v40, %v8481_v40 }
0x1820   :  { %v8485_v48 = vadd.f32 %v8484_v39, %v8480_v38  ;;  %v8500_v44 = vrot.slane %v8498_v41, 4 }
0x1821   :  { %v8491_v49 = vadd.f32 %v8490_v45, %v8481_v40  ;;  %v8506_v42 = vrot.slane %v8499_v63, 4  ;;  %v11527_v45 = vld [vmem:[#allocation14 + $0x600] ss:$8 sps:$4 sm:$0xff]  }
0x1822   :  { %v8486_v1 = vrot.slane %v8485_v48, 2  ;;  %v8501_v19 = vadd.f32 %v8500_v44, %v8498_v41  ;;  %v11535_v44 = vld [vmem:[#allocation14 + $0x624] ss:$8 sps:$4 sm:$0xff]  }
0x1823   :  { %v8492_v50 = vrot.slane %v8491_v49, 2  ;;  %v8507_v62 = vadd.f32 %v8506_v42, %v8499_v63  ;;  %v11532_v63 = vld [vmem:[#allocation14 + $0x614] ss:$8 sps:$4 sm:$0xff]  }
0x1824   :  { %v8487_v20 = vadd.f32 %v8486_v1, %v8485_v48  ;;  %v8502_v60 = vrot.slane %v8501_v19, 2  ;;  %v11530_v48 = vld [vmem:[#allocation14 + $0x610] ss:$8 sps:$4 sm:$0xff]   ;;  %v11538_v42 = vld [vmem:[#allocation14 + $0x634] ss:$8 sps:$4 sm:$0xff]  }
0x1825   :  { %v8493_v46 = vadd.f32 %v8492_v50, %v8491_v49  ;;  %v8508_v22 = vrot.slane %v8507_v62, 2  ;;  %v11533_v49 = vld [vmem:[#allocation14 + $0x620] ss:$8 sps:$4 sm:$0xff]   ;;  %v11536_v1 = vld [vmem:[#allocation14 + $0x630] ss:$8 sps:$4 sm:$0xff]  }
0x1826   :  { %v8488_v57 = vrot.slane %v8487_v20, 1  ;;  %v8503_v3 = vadd.f32 %v8502_v60, %v8501_v19  ;;  %v11541_v19 = vld [vmem:[#allocation14 + $0x644] ss:$8 sps:$4 sm:$0xff]   ;;  %v11539_v50 = vld [vmem:[#allocation14 + $0x640] ss:$8 sps:$4 sm:$0xff]  }
0x1827   :  { %v8494_v61 = vrot.slane %v8493_v46, 1  ;;  %v8509_v53 = vadd.f32 %v8508_v22, %v8507_v62  ;;  %v11544_v62 = vld [vmem:[#allocation14 + $0x654] ss:$8 sps:$4 sm:$0xff]   ;;  %v11545_v60 = vld [vmem:[#allocation14 + $0x660] ss:$8 sps:$4 sm:$0xff]  }
0x1828   :  { %v8489_v59 = vadd.f32 %v8488_v57, %v8487_v20  ;;  %v8504_v54 = vrot.slane %v8503_v3, 1  ;;  %v11547_v20 = vld [vmem:[#allocation14 + $0x664] ss:$8 sps:$4 sm:$0xff]   ;;  %v11548_v22 = vld [vmem:[#allocation14 + $0x670] ss:$8 sps:$4 sm:$0xff]  }
0x1829   :  { %v8495_v16 = vadd.f32 %v8494_v61, %v8493_v46  ;;  %v8510_v55 = vrot.slane %v8509_v53, 1  ;;  %v11550_v46 = vld [vmem:[#allocation14 + $0x674] ss:$8 sps:$4 sm:$0xff]   ;;  %v11553_v57 = vld [vmem:[#allocation14 + $0x684] ss:$8 sps:$4 sm:$0xff]  }
0x182a   :  { %v8496_v4 = vmul.f32 0.125, %v8489_v59  ;;  %v8505_v25 = vadd.f32 %v8504_v54, %v8503_v3  ;;  %v11551_v3 = vld [vmem:[#allocation14 + $0x680] ss:$8 sps:$4 sm:$0xff]   ;;  %v11556_v61 = vld [vmem:[#allocation14 + $0x694] ss:$8 sps:$4 sm:$0xff]  }
0x182b   :  { %v8497_v27 = vmul.f32 0.125, %v8495_v16  ;;  %v8511_v13 = vadd.f32 %v8510_v55, %v8509_v53  ;;  %v11554_v53 = vld [vmem:[#allocation14 + $0x690] ss:$8 sps:$4 sm:$0xff]   ;;  %v11559_v59 = vld [vmem:[#allocation14 + $0x6a4] ss:$8 sps:$4 sm:$0xff]  }
0x182c   :  { %v8512_v23 = vmul.f32 0.125, %v8505_v25  ;;  %v8514_v43 = vmul.f32 %v8496_v4, %v8496_v4  ;;  %v8520_v28 = vsub.f32 %v8480_v38, %v8496_v4  ;;  %v11557_v54 = vld [vmem:[#allocation14 + $0x6a0] ss:$8 sps:$4 sm:$0xff]   ;;  %v11562_v16 = vld [vmem:[#allocation14 + $0x6b4] ss:$8 sps:$4 sm:$0xff]  }
0x182d   :  { %v8513_v30 = vmul.f32 0.125, %v8511_v13  ;;  %v8515_v14 = vmul.f32 %v8497_v27, %v8497_v27  ;;  %v8521_v32 = vsub.f32 %v8481_v40, %v8497_v27  ;;  %v8740_v40 = vpack.c.bf16 %v12943_v15, %v12943_v15  ;;  %v11542_v15 = vld [vmem:[#allocation14 + $0x650] ss:$8 sps:$4 sm:$0xff]   ;;  %v11565_v4 = vld [vmem:[#allocation14 + $0x6c4] ss:$8 sps:$4 sm:$0xff]  }
0x182e   :  { %v8516_v47 = vsub.f32 %v8512_v23, %v8514_v43  ;;  %v11560_v55 = vld [vmem:[#allocation14 + $0x6b0] ss:$8 sps:$4 sm:$0xff]   ;;  %v11563_v25 = vld [vmem:[#allocation14 + $0x6c0] ss:$8 sps:$4 sm:$0xff]   ;;  %v11568_v27 = vld [vmem:[#allocation14 + $0x6d4] ss:$8 sps:$4 sm:$0xff]  }
0x182f   :  { %v8517_v31 = vsub.f32 %v8513_v30, %v8515_v14  ;;  %v11566_v13 = vld [vmem:[#allocation14 + $0x6d0] ss:$8 sps:$4 sm:$0xff]   ;;  %v11571_v23 = vld [vmem:[#allocation14 + $0x6e4] ss:$8 sps:$4 sm:$0xff]   ;;  %v11569_v43 = vld [vmem:[#allocation14 + $0x6e0] ss:$8 sps:$4 sm:$0xff]  }
0x1830   :  { %v8518_v58 = vmax.f32 %v8516_v47, 0.0  ;;  %v11574_v30 = vld [vmem:[#allocation14 + $0x6f4] ss:$8 sps:$4 sm:$0xff]   ;;  %v11572_v14 = vld [vmem:[#allocation14 + $0x6f0] ss:$8 sps:$4 sm:$0xff]   ;;  %v8739_v47 = vpack.c.bf16 %v12941_v6, %v12941_v6 }
0x1831   :  { %v8519_v51 = vmax.f32 %v8517_v31, 0.0  ;;  %v11575_v31 = vld [vmem:[#allocation20 + $0x340] sm:$0xff]   ;;  %v11585_v6 = vld [vmem:[#allocation20 + $0x368] sm:$0xff]  }
0x1832   :  { %v8522_v12 = vadd.f32 1e-05, %v8518_v58  ;;  %v11576_v58 = vld [vmem:[#allocation20 + $0x300] sm:$0xff]   ;;  %10455 = vmatprep.subr.bf16.mxu0 %v11575_v31 }
0x1833   :  { %v8523_v29 = vadd.f32 1e-05, %v8519_v51  ;;  %10456 = vmatpush3.bf16.msra.mxu0 %v11576_v58  ;;  %v11577_v51 = vld [vmem:[#allocation20 + $0x348] sm:$0xff]  }
0x1834   :  { %11707 = vrsqrt.f32 %v8522_v12  ;;  %v11578_v12 = vld [vmem:[#allocation20 + $0x308] sm:$0xff]   ;;  %10457 = vmatprep.subr.bf16.mxu0 %v11577_v51 }
0x1835   :  { %11709 = vrsqrt.f32 %v8523_v29  ;;  %v11579_v29 = vld [vmem:[#allocation20 + $0x350] sm:$0xff]  }
0x1837   :  { %10458 = vmatpush3.bf16.msra.mxu0 %v11578_v12 }
0x1838   :  { %10459 = vmatprep.subr.bf16.mxu0 %v11579_v29 }
0x183b   :  { %10460 = vmatpush3.bf16.msra.mxu0 %v11580_v17 }
0x183c   :  { %10461 = vmatprep.subr.bf16.mxu0 %v11581_v24 }
0x183e   :  { %v11708_v56 = vpop.eup %11707 }
0x183f   :  { %v11710_v33 = vpop.eup %11709  ;;  %v8526_v34 = vmul.f32 %v11708_v56, %v8520_v28  ;;  %v11582_v28 = vld [vmem:[#allocation20 + $0x318] sm:$0xff]   ;;  %v11584_v56 = vld [vmem:[#allocation20 + $0x320] sm:$0xff]  }
0x1840   :  { %v8527_v36 = vmul.f32 %v11710_v33, %v8521_v32  ;;  %10462 = vmatpush3.bf16.msra.mxu0 %v11582_v28  ;;  %v11586_v32 = vld [vmem:[#allocation20 + $0x328] sm:$0xff]   ;;  %v11588_v33 = vld [vmem:[#allocation20 + $0x330] sm:$0xff]  }
0x1841   :  { %v8539_v0 = vmul.f32 %v8532_v21, %v8526_v34  ;;  %v11583_v21 = vld [vmem:[#allocation20 + $0x360] sm:$0xff]   ;;  %v11589_v34 = vld [vmem:[#allocation20 + $0x378] sm:$0xff]  }
0x1842   :  { %v8540_v37 = vmul.f32 %v8536_v8, %v8527_v36  ;;  %10463 = vmatprep.subr.bf16.mxu0 %v11583_v21  ;;  %v11587_v8 = vld [vmem:[#allocation20 + $0x370] sm:$0xff]   ;;  %v12140_v36 = vmov 0.0  }
0x1843   :  { %v8552_v11 = vadd.f32 %v8545_v35, %v8539_v0  ;;  %v11590_v35 = vld [vmem:[#allocation20 + $0x338] sm:$0xff]   ;;  %v10137_v0 = vld [vmem:[#allocation22] ss:$0 sm:$0xff] }
0x1844   :  { %v8553_v39 = vadd.f32 %v8549_v26, %v8540_v37  ;;  %10464 = vmatpush3.bf16.msra.mxu0 %v11584_v56 }
0x1845   :  { %v8554_v38 = vpack.c.bf16 %v8552_v11, %v8552_v11  ;;  %10465 = vmatprep.subr.bf16.mxu0 %v11585_v6 }
0x1846   :  { %v8555_v41 = vpack.c.bf16 %v8553_v39, %v8553_v39 }
0x1848   :  { %8723 = vmatprep.mubr.bf16.mxu1 %v8555_v41  ;;  %10466 = vmatpush3.bf16.msra.mxu0 %v11586_v32 }
0x1849   :  { %8724 = vmatmul.mubr.bf16.vlgmr.msra.gmra.mrb[64].mxu1 %v8554_v38  ;;  %10467 = vmatprep.subr.bf16.mxu0 %v11587_v8  ;;  %v12956_v38 = vld [vmem:[#allocation7] ss:$0 sm:$0xff] }
0x184a   :  { %8948 = vmatpush1.bf16.msra.mxu1 %v11527_v45  ;;  %8979 = vmatprep.mubr.bf16.mxu1 %v8740_v40 }
0x184b   :  { %8949 = vmatprep.subr.bf16.mxu1 %v11532_v63 }
0x184c   :  { %10468 = vmatpush3.bf16.msra.mxu0 %v11588_v33 }
0x184d   :  { %10469 = vmatprep.subr.bf16.mxu0 %v11589_v34 }
0x184e   :  { %8950 = vmatpush1.bf16.msra.mxu1 %v11530_v48 }
0x184f   :  { %8951 = vmatprep.subr.bf16.mxu1 %v11535_v44 }
0x1850   :  { %10470 = vmatpush3.bf16.msra.mxu0 %v11590_v35 }
0x1851   :  { %10486 = vmatprep.subr.bf16.mxu0 %v12140_v36 }
0x1852   :  { %8952 = vmatpush1.bf16.msra.mxu1 %v11533_v49 }
0x1853   :  { %8953 = vmatprep.subr.bf16.mxu1 %v11538_v42 }
0x1856   :  { %8954 = vmatpush1.bf16.msra.mxu1 %v11536_v1 }
0x1857   :  { %8955 = vmatprep.subr.bf16.mxu1 %v11541_v19 }
0x185a   :  { %8956 = vmatpush1.bf16.msra.mxu1 %v11539_v50 }
0x185b   :  { %8957 = vmatprep.subr.bf16.mxu1 %v11544_v62  ;;  %v8775_v62 = vld [vmem:[#allocation16 + $0xc] sm:$0x3] }
0x185e   :  { %8958 = vmatpush1.bf16.msra.mxu1 %v11542_v15  ;;  %v8780_v15 = vrot.slane %v8775_v62, %v12458_v9 }
0x185f   :  { %8959 = vmatprep.subr.bf16.mxu1 %v11547_v20  ;;  %v8784_v20 = vrot.slane %v8775_v62, %v12461_v10 }
0x1862   :  { %8960 = vmatpush1.bf16.msra.mxu1 %v11545_v60 }
0x1863   :  { %8961 = vmatprep.subr.bf16.mxu1 %v11550_v46 }
0x1866   :  { %8962 = vmatpush1.bf16.msra.mxu1 %v11548_v22 }
0x1867   :  { %8963 = vmatprep.subr.bf16.mxu1 %v11553_v57 }
0x186a   :  { %8964 = vmatpush1.bf16.msra.mxu1 %v11551_v3 }
0x186b   :  { %8965 = vmatprep.subr.bf16.mxu1 %v11556_v61 }
0x186e   :  { %8966 = vmatpush1.bf16.msra.mxu1 %v11554_v53 }
0x186f   :  { %8967 = vmatprep.subr.bf16.mxu1 %v11559_v59 }
0x1872   :  { %8968 = vmatpush1.bf16.msra.mxu1 %v11557_v54 }
0x1873   :  { %8969 = vmatprep.subr.bf16.mxu1 %v11562_v16 }
0x1876   :  { %8970 = vmatpush1.bf16.msra.mxu1 %v11560_v55 }
0x1877   :  { %8971 = vmatprep.subr.bf16.mxu1 %v11565_v4 }
0x187a   :  { %8972 = vmatpush1.bf16.msra.mxu1 %v11563_v25 }
0x187b   :  { %8973 = vmatprep.subr.bf16.mxu1 %v11568_v27 }
0x187e   :  { %8974 = vmatpush1.bf16.msra.mxu1 %v11566_v13 }
0x187f   :  { %8975 = vmatprep.subr.bf16.mxu1 %v11571_v23 }
0x1882   :  { %8976 = vmatpush1.bf16.msra.mxu1 %v11569_v43 }
0x1883   :  { %8977 = vmatprep.subr.bf16.mxu1 %v11574_v30 }
0x1886   :  { %8978 = vmatpush1.bf16.msra.mxu1 %v11572_v14 }
0x1889   :  { %8980 = vmatmul.mubr.bf16.vlgmr.msra.gmra.mrb[68].mxu1 %v8739_v47 }
0x191c   :  { %v10449_v26 = vpop.f32.mrb[64].mxu1 }
0x191d   :  { %v10450_v37 = vpop.f32.mrb[65].mxu1 }
0x191e   :  { %v10451_v11 = vadd.f32 %v10450_v37, %v10449_v26  ;;  %v10452_v39 = vpop.f32.mrb[66].mxu1 }
0x191f   :  { %v10453_v41 = vpop.f32.mrb[67].mxu1 }
0x1920   :  { %v8726_v45 = vadd.f32 %v10451_v11, %v10137_v0 }
0x1922   :  { %11711 = vtanh.f32 %v8726_v45 }
0x192c   :  { %v11712_v63 = vpop.eup %11711 }
0x192d   :  { %v12959_v40 = vmul.f32 %v11712_v63, %v12956_v38 }
0x192f   :  { %v9255_v48 = vrot.slane %v12959_v40, 4 }
0x1931   :  { %v9256_v44 = vadd.f32 %v9255_v48, %v12959_v40 }
0x1933   :  { %v9257_v49 = vrot.slane %v9256_v44, 2 }
0x1935   :  { %v9258_v42 = vadd.f32 %v9257_v49, %v9256_v44  ;;  %v8995_v44 = vld [vmem:[#allocation17 + $0xc] sm:$0x3]  ;;  %v8997_v49 = vld [vmem:[#allocation19 + $0xc] sm:$0x3] }
0x1936   :  { %v9050_v62 = vrot.slane %v8995_v44, %v12461_v10 }
0x1937   :  { %v9259_v1 = vrot.slane %v9258_v42, 1 }
0x1939   :  { %v9260_v19 = vadd.f32 %v9259_v1, %v9258_v42  ;;  %v9046_v1 = vrot.slane %v8995_v44, %v12458_v9 }
0x193b   :  { %v9261_v50 = vsub.f32 %v7770_v52, %v9260_v19 }
0x193d   :  { %9375 = vst [vmem:[#allocation27] sm:$0x1] %v9261_v50 }
0x195c   :  { %v8981_v60 = vpop.f32.mrb[68].mxu1 }
0x195d   :  { %v8982_v46 = vadd.f32 %v8981_v60, %v8780_v15  ;;  %v8983_v22 = vpop.f32.mrb[69].mxu1  ;;  %v9059_v60 = vrot.slane %v8997_v49, %v12458_v9  ;;  %v11594_v9 = vld [vmem:[#allocation23 + $0x18] sm:$0xff]  }
0x195e   :  { %v8984_v57 = vadd.f32 %v8983_v22, %v8784_v20  ;;  %v8985_v3 = vpop.f32.mrb[70].mxu1  ;;  %v9063_v22 = vrot.slane %v8997_v49, %v12461_v10  ;;  %v11595_v10 = vld [vmem:[#allocation23 + $0x20] sm:$0xff]  }
0x195f   :  { %vm8988_vm14 = vcmp.gt.f32.partialorder %v8982_v46, 0.0  ;;  %v8990_v61 = vmul.f32 0.01, %v8982_v46  ;;  %v8986_v53 = vpop.f32.mrb[71].mxu1 }
0x1960   :  { %vm8989_vm15 = vcmp.gt.f32.partialorder %v8984_v57, 0.0  ;;  %v8991_v59 = vmul.f32 0.01, %v8984_v57 }
0x1961   :  { %v8992_v54 = vsel %vm8988_vm14, %v8982_v46, %v8990_v61 }
0x1962   :  { %v8998_v16 = vrot.slane %v8992_v54, 4  ;;  %v9012_v2 = vmul.f32 %v8992_v54, %v8992_v54  ;;  %v8993_v18 = vsel %vm8989_vm15, %v8984_v57, %v8991_v59 }
0x1963   :  { %v9004_v52 = vrot.slane %v8993_v18, 4  ;;  %v9013_v55 = vmul.f32 %v8993_v18, %v8993_v18 }
0x1964   :  { %v8999_v4 = vadd.f32 %v8998_v16, %v8992_v54  ;;  %v9014_v25 = vrot.slane %v9012_v2, 4  ;;  %v11591_v16 = vld [vmem:[#allocation23] sm:$0xff]  }
0x1965   :  { %v9005_v27 = vadd.f32 %v9004_v52, %v8993_v18  ;;  %v9020_v13 = vrot.slane %v9013_v55, 4  ;;  %v11596_v52 = vld [vmem:[#allocation23 + $0x28] sm:$0xff]  }
0x1966   :  { %v9000_v23 = vrot.slane %v8999_v4, 2  ;;  %v9015_v43 = vadd.f32 %v9014_v25, %v9012_v2  ;;  %v11592_v2 = vld [vmem:[#allocation23 + $0x8] sm:$0xff]   ;;  %v9250_v25 = vsub.f32 0.0, %v12959_v40 }
0x1967   :  { %v9006_v30 = vrot.slane %v9005_v27, 2  ;;  %v9021_v14 = vadd.f32 %v9020_v13, %v9013_v55  ;;  %v11597_v55 = vld [vmem:[#allocation23 + $0x30] sm:$0xff]  }
0x1968   :  { %v9001_v47 = vadd.f32 %v9000_v23, %v8999_v4  ;;  %v9016_v31 = vrot.slane %v9015_v43, 2  ;;  %v11598_v4 = vld [vmem:[#allocation23 + $0x38] sm:$0xff]  }
0x1969   :  { %v9007_v58 = vadd.f32 %v9006_v30, %v9005_v27  ;;  %v9022_v51 = vrot.slane %v9021_v14, 2  ;;  %v9251_v27 = vmul.f32 1.442695, %v9250_v25  ;;  %v10187_v23 = vld [vmem:[#allocation22 + $0x6] ss:$0 sm:$0xff] }
0x196a   :  { %v9002_v12 = vrot.slane %v9001_v47, 1  ;;  %v9017_v29 = vadd.f32 %v9016_v31, %v9015_v43 }
0x196b   :  { %v9008_v17 = vrot.slane %v9007_v58, 1  ;;  %v9023_v24 = vadd.f32 %v9022_v51, %v9021_v14 }
0x196c   :  { %v9003_v28 = vadd.f32 %v9002_v12, %v9001_v47  ;;  %v9018_v21 = vrot.slane %v9017_v29, 1 }
0x196d   :  { %v9009_v56 = vadd.f32 %v9008_v17, %v9007_v58  ;;  %v9024_v6 = vrot.slane %v9023_v24, 1 }
0x196e   :  { %v9010_v32 = vmul.f32 0.125, %v9003_v28  ;;  %v9019_v8 = vadd.f32 %v9018_v21, %v9017_v29 }
0x196f   :  { %v9011_v33 = vmul.f32 0.125, %v9009_v56  ;;  %v9025_v34 = vadd.f32 %v9024_v6, %v9023_v24 }
0x1970   :  { %v9026_v35 = vmul.f32 0.125, %v9019_v8  ;;  %v9028_v26 = vmul.f32 %v9010_v32, %v9010_v32  ;;  %v9034_v42 = vsub.f32 %v8992_v54, %v9010_v32 }
0x1971   :  { %v9027_v0 = vmul.f32 0.125, %v9025_v34  ;;  %v9029_v37 = vmul.f32 %v9011_v33, %v9011_v33  ;;  %v9035_v50 = vsub.f32 %v8993_v18, %v9011_v33  ;;  %v11593_v18 = vld [vmem:[#allocation23 + $0x10] sm:$0xff]  }
0x1972   :  { %v9030_v11 = vsub.f32 %v9026_v35, %v9028_v26 }
0x1973   :  { %v9031_v39 = vsub.f32 %v9027_v0, %v9029_v37 }
0x1974   :  { %v9032_v41 = vmax.f32 %v9030_v11, 0.0 }
0x1975   :  { %v9033_v45 = vmax.f32 %v9031_v39, 0.0 }
0x1976   :  { %v9036_v63 = vadd.f32 1e-05, %v9032_v41 }
0x1977   :  { %v9037_v48 = vadd.f32 1e-05, %v9033_v45 }
0x1978   :  { %11713 = vrsqrt.f32 %v9036_v63 }
0x1979   :  { %11715 = vrsqrt.f32 %v9037_v48 }
0x197a   :  { %11717 = vpow2.f32 %v9251_v27 }
0x1982   :  { %v11714_v19 = vpop.eup %11713 }
0x1983   :  { %v11716_v15 = vpop.eup %11715  ;;  %v9040_v20 = vmul.f32 %v11714_v19, %v9034_v42 }
0x1984   :  { %v9041_v46 = vmul.f32 %v11716_v15, %v9035_v50  ;;  %v11718_v29 = vpop.eup %11717 }
0x1985   :  { %v9053_v57 = vmul.f32 %v9046_v1, %v9040_v20 }
0x1986   :  { %v9054_v3 = vmul.f32 %v9050_v62, %v9041_v46 }
0x1987   :  { %v9066_v61 = vadd.f32 %v9059_v60, %v9053_v57 }
0x1988   :  { %v9067_v53 = vadd.f32 %v9063_v22, %v9054_v3 }
0x1989   :  { %v9068_v54 = vpack.c.bf16 %v9066_v61, %v9066_v61 }
0x198a   :  { %v9069_v59 = vpack.c.bf16 %v9067_v53, %v9067_v53 }
0x198c   :  { %9239 = vmatprep.mubr.bf16.mxu0 %v9069_v59 }
0x198d   :  { %9240 = vmatmul.mubr.bf16.vlgmr.msra.gmra.mrb[68].mxu0 %v9068_v54 }
0x198e   :  { %10487 = vmatpush3.bf16.msra.mxu0 %v11591_v16  ;;  %10502 = vmatprep.mubr.msk.bf16.mxu0 %vm12141_vm0, %v12140_v36 }
0x198f   :  { %10488 = vmatprep.subr.bf16.mxu0 %v12140_v36 }
0x1992   :  { %10489 = vmatpush3.bf16.msra.mxu0 %v11592_v2 }
0x1993   :  { %10490 = vmatprep.subr.bf16.mxu0 %v12140_v36 }
0x1996   :  { %10491 = vmatpush3.bf16.msra.mxu0 %v11593_v18 }
0x1997   :  { %10492 = vmatprep.subr.bf16.mxu0 %v12140_v36 }
0x199a   :  { %10493 = vmatpush3.bf16.msra.mxu0 %v11594_v9 }
0x199b   :  { %10494 = vmatprep.subr.bf16.mxu0 %v12140_v36 }
0x199e   :  { %10495 = vmatpush3.bf16.msra.mxu0 %v11595_v10 }
0x199f   :  { %10496 = vmatprep.subr.bf16.mxu0 %v12140_v36 }
0x19a2   :  { %10497 = vmatpush3.bf16.msra.mxu0 %v11596_v52 }
0x19a3   :  { %10498 = vmatprep.subr.bf16.mxu0 %v12140_v36 }
0x19a6   :  { %10499 = vmatpush3.bf16.msra.mxu0 %v11597_v55 }
0x19a7   :  { %10500 = vmatprep.subr.bf16.mxu0 %v12140_v36 }
0x19aa   :  { %10501 = vmatpush3.bf16.msra.mxu0 %v11598_v4 }
0x1a60   :  { %v10471_v13 = vpop.f32.mrb[68].mxu0 }
0x1a61   :  { %v10472_v43 = vpop.f32.mrb[69].mxu0 }
0x1a62   :  { %v10473_v30 = vadd.f32 %v10472_v43, %v10471_v13  ;;  %v10474_v14 = vpop.f32.mrb[70].mxu0 }
0x1a63   :  { %v10475_v47 = vpop.f32.mrb[71].mxu0 }
0x1a64   :  { %v9242_v31 = vadd.f32 %v10473_v30, %v10187_v23 }
0x1a66   :  { %v9247_v58 = vmul.f32 %v12956_v38, %v9242_v31 }
0x1a68   :  { %v9248_v51 = vsub.f32 %v12894_v5, %v9247_v58 }
0x1a6a   :  { %v9249_v12 = vmul.f32 %v12956_v38, %v9248_v51 }
0x1a6c   :  { %v9253_v36 = vmul.f32 %v11718_v29, %v9249_v12 }
0x1a6e   :  { %v9254_v17 = vadd.f32 %v9253_v36, %v12897_v7 }
0x1a70   :  { %v9262_v40 = vpack.c.bf16 %v9254_v17, %v9254_v17 }
0x1a72   :  { %10503 = vmatmul.mubr.bf16.vlgmr.msra.gmra.mrb[72].mxu0 %v9262_v40 }
0x1a73   :  { %12062 = shalt.err (!%p12059_p12)
}
0x1a74   :  { %s12063_s2 = scalar_lea.hbm %s13025_s16, 16 }
0x1a75   :  { %p12064_p13 = scmp.ne.s32.totalorder %s13025_s16, %s12063_s2  ;;  %p12067_p0 = scmp.lt.u32.totalorder %s12063_s2, %s13025_s16 }
0x1a77   :  { %p12069_p1 = pnand %p12067_p0, %p12064_p13 }
0x1a79   :  { %12072 = shalt.err (!%p12069_p1)
}
0x1a7a   :  { %9395 = dma.vmem_to_hbm [thread:$0]  %s9393_s29, 16, %s13025_s16, [#allocation28]   ;;  %v10204_v5 = vld [vmem:[#allocation25] ss:$0 sm:$0xff] }
0x1a7b   :  { %s12143_s21 = smov [#allocation26]  }
0x1a7c   :  { %s9382_s10 = sshll.u32 %s12143_s21, 4  ;;  %s9383_s10 = int_to_ptr.vmem [resolvable:$true] %s9382_s10 }
0x1a7d   :  { %s12073_s24 = scalar_lea.vmem %s9383_s10, 128  ;;  %p12078_p3 = scmp.lt.s32.totalorder %s9383_s10, %s9383_s10 }
0x1a7e   :  { %p12074_p2 = scmp.ne.s32.totalorder %s9383_s10, %s12073_s24  ;;  %p12079_p4 = scmp.lt.s32.totalorder %s12073_s24, %s12073_s24 }
0x1a80   :  { %p12080_p5 = por %p12079_p4, %p12078_p3 }
0x1a82   :  { %p12081_p6 = pnand %p12080_p5, %p12074_p2 }
0x1b45   :  { %v9368_v7 = vpop.f32.mrb[72].mxu0 }
0x1b46   :  { %v9369_v38 = vadd.f32 %v10204_v5, %v9368_v7  ;;  %v10504_v24 = vpop.f32.mrb[73].mxu0 }
0x1b47   :  { %v9371_v28 = vpop.f32.mrb[74].mxu0 }
0x1b48   :  { %9374 = vst [vmem:[#allocation26] sm:$0xff] %v9369_v38  ;;  %v10505_v21 = vpop.f32.mrb[75].mxu0 }
0x1b49   :  { %12084 = shalt.err (!%p12081_p6)
}
0x1b4a   :  { %s12085_s16 = scalar_lea.hbm %s13024_s15, 128 }
0x1b4b   :  { %p12086_p7 = scmp.ne.s32.totalorder %s13024_s15, %s12085_s16  ;;  %p12089_p8 = scmp.lt.u32.totalorder %s12085_s16, %s13024_s15 }
0x1b4d   :  { %p12091_p9 = pnand %p12089_p8, %p12086_p7 }
0x1b4f   :  { %12094 = shalt.err (!%p12091_p9)
}
0x1b50   :  { %9385 = dma.vmem_to_hbm [thread:$0]  %s9383_s10, 128, %s13024_s15, [#allocation4]  }
0x1b51   :  { %12111 = dma.done.wait [#allocation4], 128  }
0x1b52   :  { %12112 = vsyncadd [#allocation4], 4294967168 }
0x1b53   :  { %12113 = dma.done.wait [#allocation28], 16  }
0x1b54   :  { %12114 = vsyncadd [#allocation28], 4294967280 }
0x1b55   :  { %9402 = vsyncpa [#allocation3], 1 }
0x1b56   :  { %9403 = vsyncpa [#allocation6], 1 }
0x1b57   :  { %9404 = vsyncpa [#allocation9], 1 }
0x1b58   :  { %9405 = vsyncpa [#allocation12], 1 }
0x1b59   :  { %9406 = vsyncpa [#allocation15], 1 }
0x1b5a   :  { %9407 = vsyncpa [#allocation18], 1 }
0x1b5b   :  { %9408 = vsyncpa [#allocation21], 1 }
0x1b5c   :  { %9409 = vsyncpa [#allocation24], 1 }
0x1b5d   :  { %9410 = vsyncpa [#allocation4], 1 }
0x1b5e   :  { %9411 = vsyncpa [#allocation28], 1 }

</bundles_post_ra>
